<compile_context>
chip_gen: v7x
topology: tpu7x:2x2x1
jax: 0.10.0
libtpu: 0.0.40
codegen_flags: <defaults>
</compile_context>

<pallas_src>
import jax
import jax.numpy as jnp
from jax.experimental import pallas as pl
from jax.experimental.pallas import tpu as pltpu


# ---------------------------------------------------------------------------
# Layout constants
# ---------------------------------------------------------------------------
_PLANE_ROWS = 224            # 14*14 = 196 valid rows per pool1 parity plane
_IMG_ROWS = 4 * _PLANE_ROWS  # 896 rows of conv1 im2col patches per image
_CONV2_M = 144               # conv2 output rows (valid up to 14*9+9 = 135)
_FEAT_ROWS = 32              # 25 valid pooled2 pixels, padded to 32
_FC1_K = _FEAT_ROWS * 128    # 4096


# ---------------------------------------------------------------------------
# Kernel 1: conv1 -> relu -> pool1 -> conv2 -> relu -> pool2   (bm images/step)
# ---------------------------------------------------------------------------
def _conv_pool_kernel(x_ref, w1_ref, b1_ref, w2_ref, b2_ref, sel_ref, out_ref,
                      p1_ref, y2_ref):
    # x_ref : (bm, 896, 128) bf16  im2col conv1 patches; rows are grouped into
    #         4 pool-parity planes of 224 rows, within-plane row = 14*i + j,
    #         lanes = (kh*5+kw)*3 + cin (75 valid, zero padded).
    # w1_ref: (128, 128)  folded conv1 weight        b1_ref: (1, 128)
    # w2_ref: (13, 256, 128)  tap-paired conv2 weight b2_ref: (1, 128)
    # sel_ref: (32, 128) 0/1 matrix, row 5*i3+j3 selects slab row 28*i3+2*j3
    bm = x_ref.shape[0]
    for b in range(bm):
        # ---- conv1 + bias + ReLU, fused with maxpool1 (max over 4 planes) ---
        # Two 112-row halves per plane keep the f32 running max vreg-resident.
        for half in range(2):
            m = None
            for plane in range(4):
                start = plane * _PLANE_ROWS + half * 112
                chunk = x_ref[b, pl.ds(start, 112), :]              # (112,128)
                v = jnp.dot(chunk, w1_ref[...],
                            preferred_element_type=jnp.float32)
                v = jnp.maximum(v + b1_ref[...], 0.0)
                m = v if m is None else jnp.maximum(m, v)
            p1_ref[pl.ds(half * 112, 112), :] = m.astype(p1_ref.dtype)

        # ---- conv2: 6 -> 16 channels, 5x5, on the dense 14x14 pooled map ----
        # Output pixel (i2, j2) accumulates at row 14*i2 + j2; taps are paired
        # (K = 256) so the 256-deep MXU is filled and only 13 matmuls issue.
        acc2 = jnp.zeros((_CONV2_M, 128), jnp.float32)
        for t in range(13):
            k0 = 2 * t
            k1 = min(2 * t + 1, 24)          # last pair: tap 24 + zero weights
            kh0, kw0 = divmod(k0, 5)
            kh1, kw1 = divmod(k1, 5)
            lhs = jnp.concatenate(
                [p1_ref[pl.ds(14 * kh0 + kw0, _CONV2_M), :],
                 p1_ref[pl.ds(14 * kh1 + kw1, _CONV2_M), :]], axis=-1)
            acc2 = acc2 + jnp.dot(lhs, w2_ref[t],
                                  preferred_element_type=jnp.float32)
        y2_ref[...] = jnp.maximum(acc2 + b2_ref[...], 0.0)          # f32

        # ---- maxpool2 (2x2, stride 2), fully vectorised ----------------------
        # pooled2(i3,j3) = max of y2 rows r, r+1, r+14, r+15 with r = 28i3+2j3.
        m2 = jnp.maximum(
            jnp.maximum(y2_ref[pl.ds(0, 128), :], y2_ref[pl.ds(1, 128), :]),
            jnp.maximum(y2_ref[pl.ds(14, 128), :], y2_ref[pl.ds(15, 128), :]))
        # Compact the 25 scattered rows to rows p = 5*i3 + j3 with one tiny
        # 0/1-matrix matmul (exact selection, zero masked row/col traffic).
        feat = jnp.dot(sel_ref[...], m2.astype(jnp.bfloat16),
                       preferred_element_type=jnp.float32)          # (32,128)
        out_ref[b] = feat.astype(out_ref.dtype)


def _conv_pool_stage(xp, pk, bm):
    B = xp.shape[0]
    return pl.pallas_call(
        _conv_pool_kernel,
        out_shape=jax.ShapeDtypeStruct((B, _FEAT_ROWS, 128), jnp.bfloat16),
        grid=(B // bm,),
        in_specs=[
            pl.BlockSpec((bm, _IMG_ROWS, 128), lambda i: (i, 0, 0)),
            pl.BlockSpec((128, 128), lambda i: (0, 0)),
            pl.BlockSpec((1, 128), lambda i: (0, 0)),
            pl.BlockSpec((13, 256, 128), lambda i: (0, 0, 0)),
            pl.BlockSpec((1, 128), lambda i: (0, 0)),
            pl.BlockSpec((_FEAT_ROWS, 128), lambda i: (0, 0)),
        ],
        out_specs=pl.BlockSpec((bm, _FEAT_ROWS, 128), lambda i: (i, 0, 0)),
        scratch_shapes=[
            pltpu.VMEM((_PLANE_ROWS, 128), jnp.bfloat16),   # pooled1 (dense)
            pltpu.VMEM((_CONV2_M, 128), jnp.float32),       # conv2 + relu out
        ],
        compiler_params=pltpu.CompilerParams(
            dimension_semantics=("parallel",)),
    )(xp, pk["w1"], pk["b1"], pk["w2"], pk["b2"], pk["sel"])


# ---------------------------------------------------------------------------
# Kernel 2: fc1 -> relu -> fc2 -> relu -> fc3   (tm-row batch tile per step)
# ---------------------------------------------------------------------------
def _fc_kernel(f_ref, w1_ref, b1_ref, w2_ref, b2_ref, w3_ref, b3_ref, o_ref):
    h = jnp.dot(f_ref[...], w1_ref[...],
                preferred_element_type=jnp.float32) + b1_ref[...]
    h = jnp.maximum(h, 0.0)
    h = jnp.dot(h.astype(jnp.bfloat16), w2_ref[...],
                preferred_element_type=jnp.float32) + b2_ref[...]
    h = jnp.maximum(h, 0.0)
    h = jnp.dot(h.astype(jnp.bfloat16), w3_ref[...],
                preferred_element_type=jnp.float32) + b3_ref[...]
    o_ref[...] = h


def _fc_stage(feats, pk):
    B = feats.shape[0]
    tm = 128 if B % 128 == 0 else B
    flops = 2 * B * (_FC1_K * 256 + 256 * 128 + 128 * 128)
    bytes_accessed = (B * _FC1_K * 2 + B * 128 * 4
                      + (_FC1_K * 256 + 256 * 128 + 128 * 128) * 2)
    return pl.pallas_call(
        _fc_kernel,
        out_shape=jax.ShapeDtypeStruct((B, 128), jnp.float32),
        grid=(B // tm,),
        in_specs=[
            pl.BlockSpec((tm, _FC1_K), lambda i: (i, 0)),
            pl.BlockSpec((_FC1_K, 256), lambda i: (0, 0)),
            pl.BlockSpec((1, 256), lambda i: (0, 0)),
            pl.BlockSpec((256, 128), lambda i: (0, 0)),
            pl.BlockSpec((1, 128), lambda i: (0, 0)),
            pl.BlockSpec((128, 128), lambda i: (0, 0)),
            pl.BlockSpec((1, 128), lambda i: (0, 0)),
        ],
        out_specs=pl.BlockSpec((tm, 128), lambda i: (i, 0)),
        compiler_params=pltpu.CompilerParams(
            dimension_semantics=("parallel",)),
        cost_estimate=pl.CostEstimate(flops=flops, transcendentals=0,
                                      bytes_accessed=bytes_accessed),
    )(feats, pk["fc1_w"], pk["fc1_b"], pk["fc2_w"], pk["fc2_b"],
      pk["fc3_w"], pk["fc3_b"])


# ---------------------------------------------------------------------------
# Parameters (torch layout) + one-time repacking into TPU-friendly layouts
# ---------------------------------------------------------------------------
def init_lenet_params(key):
    def uinit(k, shape, fan_in):
        bound = 1.0 / (fan_in ** 0.5)
        return jax.random.uniform(k, shape, jnp.float32, -bound, bound)

    ks = jax.random.split(key, 10)
    return {
        "conv1_w": uinit(ks[0], (6, 3, 5, 5), 75),    "conv1_b": uinit(ks[1], (6,), 75),
        "conv2_w": uinit(ks[2], (16, 6, 5, 5), 150),  "conv2_b": uinit(ks[3], (16,), 150),
        "fc1_w": uinit(ks[4], (256, 400), 400),       "fc1_b": uinit(ks[5], (256,), 400),
        "fc2_w": uinit(ks[6], (128, 256), 256),       "fc2_b": uinit(ks[7], (128,), 256),
        "fc3_w": uinit(ks[8], (100, 128), 128),       "fc3_b": uinit(ks[9], (100,), 128),
    }


def pack_lenet_params(p):
    """One-time repack: fold taps into K, pad to 128 lanes, cast matmuls to bf16."""
    bf16, f32 = jnp.bfloat16, jnp.float32
    # conv1 folded over the 5x5 taps: (cout,cin,kh,kw) -> (75,6) -> (128,128),
    # row index = (kh*5+kw)*3 + cin (matches the im2col K ordering).
    w1 = jnp.transpose(p["conv1_w"], (2, 3, 1, 0)).reshape(75, 6)
    w1 = jnp.pad(w1, ((0, 53), (0, 122))).astype(bf16)
    b1 = jnp.pad(p["conv1_b"], (0, 122)).reshape(1, 128).astype(f32)
    # conv2: (cout,cin,kh,kw) -> (25,6,16) -> pad (26,128,128) (tap 25 = zeros)
    # -> pair consecutive taps along K -> (13,256,128).
    w2 = jnp.transpose(p["conv2_w"], (2, 3, 1, 0)).reshape(25, 6, 16)
    w2 = jnp.pad(w2, ((0, 1), (0, 122), (0, 112)))
    w2 = w2.reshape(13, 256, 128).astype(bf16)
    b2 = jnp.pad(p["conv2_b"], (0, 112)).reshape(1, 128).astype(f32)
    # pool2 compaction matrix: row p = 5*i3+j3 selects slab row 28*i3 + 2*j3.
    rows = jnp.arange(_FEAT_ROWS)
    src = 28 * (rows // 5) + 2 * (rows % 5)
    sel = jnp.where((rows < 25)[:, None],
                    jax.nn.one_hot(src, 128, dtype=f32), 0.0).astype(bf16)
    # fc1: feature row = p*128 + c, absorbing torch's (C,H,W) flatten order.
    wf1 = jnp.transpose(p["fc1_w"].reshape(256, 16, 25), (2, 1, 0))   # (p,c,n)
    wf1 = jnp.pad(wf1, ((0, 7), (0, 112), (0, 0))).reshape(_FC1_K, 256).astype(bf16)
    bf1 = p["fc1_b"].reshape(1, 256).astype(f32)
    wf2 = jnp.transpose(p["fc2_w"]).astype(bf16)                      # (256,128)
    bf2 = p["fc2_b"].reshape(1, 128).astype(f32)
    wf3 = jnp.pad(jnp.transpose(p["fc3_w"]), ((0, 0), (0, 28))).astype(bf16)
    bf3 = jnp.pad(p["fc3_b"], (0, 28)).reshape(1, 128).astype(f32)
    return {"w1": w1, "b1": b1, "w2": w2, "b2": b2, "sel": sel,
            "fc1_w": wf1, "fc1_b": bf1, "fc2_w": wf2, "fc2_b": bf2,
            "fc3_w": wf3, "fc3_b": bf3}


# ---------------------------------------------------------------------------
# Forward
# ---------------------------------------------------------------------------
def _prep_input(x):
    """NCHW f32 -> conv1 im2col patches in pool-parity-plane row order (bf16)."""
    B = x.shape[0]
    xcl = jnp.transpose(x, (0, 2, 3, 1))                       # (B,32,32,3)
    pats = jnp.stack([xcl[:, kh:kh + 28, kw:kw + 28, :]
                      for kh in range(5) for kw in range(5)], axis=3)
    pats = pats.reshape(B, 28, 28, 75)                         # K = tap*3 + c
    # Regroup the 28x28 conv1-output grid into 4 parity planes (h%2, w%2),
    # within-plane row = 14*i + j -> pool1 becomes a max of 4 aligned slabs.
    pats = pats.reshape(B, 14, 2, 14, 2, 75).transpose(0, 2, 4, 1, 3, 5)
    pats = pats.reshape(B, 4, 196, 75)
    pats = jnp.pad(pats, ((0, 0), (0, 0), (0, _PLANE_ROWS - 196), (0, 128 - 75)))
    return pats.reshape(B, _IMG_ROWS, 128).astype(jnp.bfloat16)


def _pick_bm(B):
    """Images per grid step: <=8, divides B, keeps >=2 steps (v7x dual TC)."""
    for bm in (8, 4, 2, 1):
        if B % bm == 0 and (B // bm >= 2 or bm == 1):
            return bm
    return 1


@jax.jit
def _lenet_logits(packed, x):
    B = x.shape[0]
    feats = _conv_pool_stage(_prep_input(x), packed, _pick_bm(B))   # (B,32,128)
    feats = feats.reshape(B, _FC1_K)                                # free reshape
    return _fc_stage(feats, packed)[:, :100]                        # (B,100)


def lenet_forward(packed, x):
    B = x.shape[0]
    logits = _lenet_logits(packed, x)
    shape_dict = {1: [B, 6, 14, 14], 2: [B, 16, 5, 5], 3: [B, 400],
                  4: [B, 256], 5: [B, 128], 6: [B, 100]}
    return logits, shape_dict


# ---------------------------------------------------------------------------
# Pure-JAX reference (f32, XLA) used only for the self-check in __main__
# ---------------------------------------------------------------------------
def _reference_forward(params, x):
    def conv_relu(h, w, b):
        y = jax.lax.conv_general_dilated(
            h, w, window_strides=(1, 1), padding="VALID",
            dimension_numbers=("NCHW", "OIHW", "NCHW"))
        return jax.nn.relu(y + b.reshape(1, -1, 1, 1))

    def pool(h):
        return jax.lax.reduce_window(h, -jnp.inf, jax.lax.max,
                                     (1, 1, 2, 2), (1, 1, 2, 2), "VALID")

    h = pool(conv_relu(x, params["conv1_w"], params["conv1_b"]))
    h = pool(conv_relu(h, params["conv2_w"], params["conv2_b"]))
    h = h.reshape(x.shape[0], 400)
    h = jax.nn.relu(h @ params["fc1_w"].T + params["fc1_b"])
    h = jax.nn.relu(h @ params["fc2_w"].T + params["fc2_b"])
    return h @ params["fc3_w"].T + params["fc3_b"]


if __name__ == "__main__":
    key = jax.random.PRNGKey(0)
    pkey, xkey = jax.random.split(key)
    params = init_lenet_params(pkey)
    packed = pack_lenet_params(params)
    # Architecture fixes the spatial size at 32x32 (because of the 16*5*5 flatten).
    x = jax.random.normal(xkey, (2, 3, 32, 32), dtype=jnp.float32)

    logits, shape_dict = lenet_forward(packed, x)
    logits = jax.block_until_ready(logits)

    assert logits.shape == (2, 100), logits.shape
    assert shape_dict == {1: [2, 6, 14, 14], 2: [2, 16, 5, 5], 3: [2, 400],
                          4: [2, 256], 5: [2, 128], 6: [2, 100]}, shape_dict

    ref = _reference_forward(params, x)
    err = float(jnp.max(jnp.abs(logits - ref)))
    assert err < 0.05, f"max |pallas - reference| = {err}"

    print("KERNEL_OK")
</pallas_src>

<mosaic_0001>
module attributes {stable_mosaic.version = 11 : i64} {
  func.func @_conv_pool_kernel(%arg0: i32, %arg1: memref<1x896x128xbf16, #tpu.memory_space<vmem>>, %arg2: memref<128x128xbf16, #tpu.memory_space<vmem>>, %arg3: memref<1x128xf32, #tpu.memory_space<vmem>>, %arg4: memref<13x256x128xbf16, #tpu.memory_space<vmem>>, %arg5: memref<1x128xf32, #tpu.memory_space<vmem>>, %arg6: memref<32x128xbf16, #tpu.memory_space<vmem>>, %arg7: memref<1x32x128xbf16, #tpu.memory_space<vmem>>, %arg8: memref<224x128xbf16, #tpu.memory_space<vmem>>, %arg9: memref<144x128xf32, #tpu.memory_space<vmem>>) attributes {dimension_semantics = [#tpu.dimension_semantics<parallel>], iteration_bounds = array<i64: 2>, scalar_prefetch = 0 : i64, scratch_operands = 2 : i64, tpu.core_type = #tpu.core_type<tc>, window_params = [{transform_indices = @transform_0, window_bounds = array<i64: 1, 896, 128>}, {pipeline_mode = #tpu.pipeline_mode<synchronous>, transform_indices = @transform_1, window_bounds = array<i64: 128, 128>}, {pipeline_mode = #tpu.pipeline_mode<synchronous>, transform_indices = @transform_2, window_bounds = array<i64: 1, 128>}, {pipeline_mode = #tpu.pipeline_mode<synchronous>, transform_indices = @transform_3, window_bounds = array<i64: 13, 256, 128>}, {pipeline_mode = #tpu.pipeline_mode<synchronous>, transform_indices = @transform_4, window_bounds = array<i64: 1, 128>}, {pipeline_mode = #tpu.pipeline_mode<synchronous>, transform_indices = @transform_5, window_bounds = array<i64: 32, 128>}, {transform_indices = @transform_6, window_bounds = array<i64: 1, 32, 128>}]} {
    %c0 = arith.constant 0 : index
    %c0_0 = arith.constant 0 : index
    %c0_1 = arith.constant 0 : index
    %0 = vector.load %arg1[%c0, %c0_0, %c0_1] : memref<1x896x128xbf16, #tpu.memory_space<vmem>>, vector<1x112x128xbf16>
    %1 = vector.shape_cast %0 : vector<1x112x128xbf16> to vector<112x128xbf16>
    %c0_2 = arith.constant 0 : index
    %c0_3 = arith.constant 0 : index
    %2 = vector.load %arg2[%c0_2, %c0_3] : memref<128x128xbf16, #tpu.memory_space<vmem>>, vector<128x128xbf16>
    %cst = arith.constant dense<0.000000e+00> : vector<112x128xf32>
    %3 = tpu.matmul %1, %2, %cst {dimension_numbers = #tpu.dot_dimension_numbers<[1], [0], [0], [1], [0, 0, 1, 1], [], []>} : vector<112x128xbf16>, vector<128x128xbf16>, vector<112x128xf32> -> vector<112x128xf32>
    %c0_4 = arith.constant 0 : index
    %c0_5 = arith.constant 0 : index
    %4 = vector.load %arg3[%c0_4, %c0_5] : memref<1x128xf32, #tpu.memory_space<vmem>>, vector<1x128xf32>
    %5 = vector.broadcast %4 : vector<1x128xf32> to vector<112x128xf32>
    %6 = arith.addf %3, %5 : vector<112x128xf32>
    %cst_6 = arith.constant 0.000000e+00 : f32
    %7 = vector.broadcast %cst_6 : f32 to vector<112x128xf32>
    %8 = arith.maximumf %6, %7 : vector<112x128xf32>
    %c0_7 = arith.constant 0 : index
    %c224 = arith.constant 224 : index
    %c0_8 = arith.constant 0 : index
    %9 = vector.load %arg1[%c0_7, %c224, %c0_8] : memref<1x896x128xbf16, #tpu.memory_space<vmem>>, vector<1x112x128xbf16>
    %10 = vector.shape_cast %9 : vector<1x112x128xbf16> to vector<112x128xbf16>
    %c0_9 = arith.constant 0 : index
    %c0_10 = arith.constant 0 : index
    %11 = vector.load %arg2[%c0_9, %c0_10] : memref<128x128xbf16, #tpu.memory_space<vmem>>, vector<128x128xbf16>
    %cst_11 = arith.constant dense<0.000000e+00> : vector<112x128xf32>
    %12 = tpu.matmul %10, %11, %cst_11 {dimension_numbers = #tpu.dot_dimension_numbers<[1], [0], [0], [1], [0, 0, 1, 1], [], []>} : vector<112x128xbf16>, vector<128x128xbf16>, vector<112x128xf32> -> vector<112x128xf32>
    %c0_12 = arith.constant 0 : index
    %c0_13 = arith.constant 0 : index
    %13 = vector.load %arg3[%c0_12, %c0_13] : memref<1x128xf32, #tpu.memory_space<vmem>>, vector<1x128xf32>
    %14 = vector.broadcast %13 : vector<1x128xf32> to vector<112x128xf32>
    %15 = arith.addf %12, %14 : vector<112x128xf32>
    %cst_14 = arith.constant 0.000000e+00 : f32
    %16 = vector.broadcast %cst_14 : f32 to vector<112x128xf32>
    %17 = arith.maximumf %15, %16 : vector<112x128xf32>
    %18 = arith.maximumf %8, %17 : vector<112x128xf32>
    %c0_15 = arith.constant 0 : index
    %c448 = arith.constant 448 : index
    %c0_16 = arith.constant 0 : index
    %19 = vector.load %arg1[%c0_15, %c448, %c0_16] : memref<1x896x128xbf16, #tpu.memory_space<vmem>>, vector<1x112x128xbf16>
    %20 = vector.shape_cast %19 : vector<1x112x128xbf16> to vector<112x128xbf16>
    %c0_17 = arith.constant 0 : index
    %c0_18 = arith.constant 0 : index
    %21 = vector.load %arg2[%c0_17, %c0_18] : memref<128x128xbf16, #tpu.memory_space<vmem>>, vector<128x128xbf16>
    %cst_19 = arith.constant dense<0.000000e+00> : vector<112x128xf32>
    %22 = tpu.matmul %20, %21, %cst_19 {dimension_numbers = #tpu.dot_dimension_numbers<[1], [0], [0], [1], [0, 0, 1, 1], [], []>} : vector<112x128xbf16>, vector<128x128xbf16>, vector<112x128xf32> -> vector<112x128xf32>
    %c0_20 = arith.constant 0 : index
    %c0_21 = arith.constant 0 : index
    %23 = vector.load %arg3[%c0_20, %c0_21] : memref<1x128xf32, #tpu.memory_space<vmem>>, vector<1x128xf32>
    %24 = vector.broadcast %23 : vector<1x128xf32> to vector<112x128xf32>
    %25 = arith.addf %22, %24 : vector<112x128xf32>
    %cst_22 = arith.constant 0.000000e+00 : f32
    %26 = vector.broadcast %cst_22 : f32 to vector<112x128xf32>
    %27 = arith.maximumf %25, %26 : vector<112x128xf32>
    %28 = arith.maximumf %18, %27 : vector<112x128xf32>
    %c0_23 = arith.constant 0 : index
    %c672 = arith.constant 672 : index
    %c0_24 = arith.constant 0 : index
    %29 = vector.load %arg1[%c0_23, %c672, %c0_24] : memref<1x896x128xbf16, #tpu.memory_space<vmem>>, vector<1x112x128xbf16>
    %30 = vector.shape_cast %29 : vector<1x112x128xbf16> to vector<112x128xbf16>
    %c0_25 = arith.constant 0 : index
    %c0_26 = arith.constant 0 : index
    %31 = vector.load %arg2[%c0_25, %c0_26] : memref<128x128xbf16, #tpu.memory_space<vmem>>, vector<128x128xbf16>
    %cst_27 = arith.constant dense<0.000000e+00> : vector<112x128xf32>
    %32 = tpu.matmul %30, %31, %cst_27 {dimension_numbers = #tpu.dot_dimension_numbers<[1], [0], [0], [1], [0, 0, 1, 1], [], []>} : vector<112x128xbf16>, vector<128x128xbf16>, vector<112x128xf32> -> vector<112x128xf32>
    %c0_28 = arith.constant 0 : index
    %c0_29 = arith.constant 0 : index
    %33 = vector.load %arg3[%c0_28, %c0_29] : memref<1x128xf32, #tpu.memory_space<vmem>>, vector<1x128xf32>
    %34 = vector.broadcast %33 : vector<1x128xf32> to vector<112x128xf32>
    %35 = arith.addf %32, %34 : vector<112x128xf32>
    %cst_30 = arith.constant 0.000000e+00 : f32
    %36 = vector.broadcast %cst_30 : f32 to vector<112x128xf32>
    %37 = arith.maximumf %35, %36 : vector<112x128xf32>
    %38 = arith.maximumf %28, %37 : vector<112x128xf32>
    %39 = arith.truncf %38 : vector<112x128xf32> to vector<112x128xbf16>
    %c0_31 = arith.constant 0 : index
    %c0_32 = arith.constant 0 : index
    %40 = vector.load %arg8[%c0_31, %c0_32] : memref<224x128xbf16, #tpu.memory_space<vmem>>, vector<112x128xbf16>
    tpu.vector_store %arg8[%c0_31, %c0_32], %39 {strides = array<i32>} : memref<224x128xbf16, #tpu.memory_space<vmem>>, vector<112x128xbf16>,
    %c0_33 = arith.constant 0 : index
    %c112 = arith.constant 112 : index
    %c0_34 = arith.constant 0 : index
    %41 = vector.load %arg1[%c0_33, %c112, %c0_34] : memref<1x896x128xbf16, #tpu.memory_space<vmem>>, vector<1x112x128xbf16>
    %42 = vector.shape_cast %41 : vector<1x112x128xbf16> to vector<112x128xbf16>
    %c0_35 = arith.constant 0 : index
    %c0_36 = arith.constant 0 : index
    %43 = vector.load %arg2[%c0_35, %c0_36] : memref<128x128xbf16, #tpu.memory_space<vmem>>, vector<128x128xbf16>
    %cst_37 = arith.constant dense<0.000000e+00> : vector<112x128xf32>
    %44 = tpu.matmul %42, %43, %cst_37 {dimension_numbers = #tpu.dot_dimension_numbers<[1], [0], [0], [1], [0, 0, 1, 1], [], []>} : vector<112x128xbf16>, vector<128x128xbf16>, vector<112x128xf32> -> vector<112x128xf32>
    %c0_38 = arith.constant 0 : index
    %c0_39 = arith.constant 0 : index
    %45 = vector.load %arg3[%c0_38, %c0_39] : memref<1x128xf32, #tpu.memory_space<vmem>>, vector<1x128xf32>
    %46 = vector.broadcast %45 : vector<1x128xf32> to vector<112x128xf32>
    %47 = arith.addf %44, %46 : vector<112x128xf32>
    %cst_40 = arith.constant 0.000000e+00 : f32
    %48 = vector.broadcast %cst_40 : f32 to vector<112x128xf32>
    %49 = arith.maximumf %47, %48 : vector<112x128xf32>
    %c0_41 = arith.constant 0 : index
    %c336 = arith.constant 336 : index
    %c0_42 = arith.constant 0 : index
    %50 = vector.load %arg1[%c0_41, %c336, %c0_42] : memref<1x896x128xbf16, #tpu.memory_space<vmem>>, vector<1x112x128xbf16>
    %51 = vector.shape_cast %50 : vector<1x112x128xbf16> to vector<112x128xbf16>
    %c0_43 = arith.constant 0 : index
    %c0_44 = arith.constant 0 : index
    %52 = vector.load %arg2[%c0_43, %c0_44] : memref<128x128xbf16, #tpu.memory_space<vmem>>, vector<128x128xbf16>
    %cst_45 = arith.constant dense<0.000000e+00> : vector<112x128xf32>
    %53 = tpu.matmul %51, %52, %cst_45 {dimension_numbers = #tpu.dot_dimension_numbers<[1], [0], [0], [1], [0, 0, 1, 1], [], []>} : vector<112x128xbf16>, vector<128x128xbf16>, vector<112x128xf32> -> vector<112x128xf32>
    %c0_46 = arith.constant 0 : index
    %c0_47 = arith.constant 0 : index
    %54 = vector.load %arg3[%c0_46, %c0_47] : memref<1x128xf32, #tpu.memory_space<vmem>>, vector<1x128xf32>
    %55 = vector.broadcast %54 : vector<1x128xf32> to vector<112x128xf32>
    %56 = arith.addf %53, %55 : vector<112x128xf32>
    %cst_48 = arith.constant 0.000000e+00 : f32
    %57 = vector.broadcast %cst_48 : f32 to vector<112x128xf32>
    %58 = arith.maximumf %56, %57 : vector<112x128xf32>
    %59 = arith.maximumf %49, %58 : vector<112x128xf32>
    %c0_49 = arith.constant 0 : index
    %c560 = arith.constant 560 : index
    %c0_50 = arith.constant 0 : index
    %60 = vector.load %arg1[%c0_49, %c560, %c0_50] : memref<1x896x128xbf16, #tpu.memory_space<vmem>>, vector<1x112x128xbf16>
    %61 = vector.shape_cast %60 : vector<1x112x128xbf16> to vector<112x128xbf16>
    %c0_51 = arith.constant 0 : index
    %c0_52 = arith.constant 0 : index
    %62 = vector.load %arg2[%c0_51, %c0_52] : memref<128x128xbf16, #tpu.memory_space<vmem>>, vector<128x128xbf16>
    %cst_53 = arith.constant dense<0.000000e+00> : vector<112x128xf32>
    %63 = tpu.matmul %61, %62, %cst_53 {dimension_numbers = #tpu.dot_dimension_numbers<[1], [0], [0], [1], [0, 0, 1, 1], [], []>} : vector<112x128xbf16>, vector<128x128xbf16>, vector<112x128xf32> -> vector<112x128xf32>
    %c0_54 = arith.constant 0 : index
    %c0_55 = arith.constant 0 : index
    %64 = vector.load %arg3[%c0_54, %c0_55] : memref<1x128xf32, #tpu.memory_space<vmem>>, vector<1x128xf32>
    %65 = vector.broadcast %64 : vector<1x128xf32> to vector<112x128xf32>
    %66 = arith.addf %63, %65 : vector<112x128xf32>
    %cst_56 = arith.constant 0.000000e+00 : f32
    %67 = vector.broadcast %cst_56 : f32 to vector<112x128xf32>
    %68 = arith.maximumf %66, %67 : vector<112x128xf32>
    %69 = arith.maximumf %59, %68 : vector<112x128xf32>
    %c0_57 = arith.constant 0 : index
    %c784 = arith.constant 784 : index
    %c0_58 = arith.constant 0 : index
    %70 = vector.load %arg1[%c0_57, %c784, %c0_58] : memref<1x896x128xbf16, #tpu.memory_space<vmem>>, vector<1x112x128xbf16>
    %71 = vector.shape_cast %70 : vector<1x112x128xbf16> to vector<112x128xbf16>
    %c0_59 = arith.constant 0 : index
    %c0_60 = arith.constant 0 : index
    %72 = vector.load %arg2[%c0_59, %c0_60] : memref<128x128xbf16, #tpu.memory_space<vmem>>, vector<128x128xbf16>
    %cst_61 = arith.constant dense<0.000000e+00> : vector<112x128xf32>
    %73 = tpu.matmul %71, %72, %cst_61 {dimension_numbers = #tpu.dot_dimension_numbers<[1], [0], [0], [1], [0, 0, 1, 1], [], []>} : vector<112x128xbf16>, vector<128x128xbf16>, vector<112x128xf32> -> vector<112x128xf32>
    %c0_62 = arith.constant 0 : index
    %c0_63 = arith.constant 0 : index
    %74 = vector.load %arg3[%c0_62, %c0_63] : memref<1x128xf32, #tpu.memory_space<vmem>>, vector<1x128xf32>
    %75 = vector.broadcast %74 : vector<1x128xf32> to vector<112x128xf32>
    %76 = arith.addf %73, %75 : vector<112x128xf32>
    %cst_64 = arith.constant 0.000000e+00 : f32
    %77 = vector.broadcast %cst_64 : f32 to vector<112x128xf32>
    %78 = arith.maximumf %76, %77 : vector<112x128xf32>
    %79 = arith.maximumf %69, %78 : vector<112x128xf32>
    %80 = arith.truncf %79 : vector<112x128xf32> to vector<112x128xbf16>
    %c112_65 = arith.constant 112 : index
    %c0_66 = arith.constant 0 : index
    %81 = vector.load %arg8[%c112_65, %c0_66] : memref<224x128xbf16, #tpu.memory_space<vmem>>, vector<112x128xbf16>
    tpu.vector_store %arg8[%c112_65, %c0_66], %80 {strides = array<i32>} : memref<224x128xbf16, #tpu.memory_space<vmem>>, vector<112x128xbf16>,
    %cst_67 = arith.constant 0.000000e+00 : f32
    %82 = vector.broadcast %cst_67 : f32 to vector<144x128xf32>
    %c0_68 = arith.constant 0 : index
    %c0_69 = arith.constant 0 : index
    %83 = vector.load %arg8[%c0_68, %c0_69] : memref<224x128xbf16, #tpu.memory_space<vmem>>, vector<144x128xbf16>
    %c1 = arith.constant 1 : index
    %c0_70 = arith.constant 0 : index
    %84 = vector.load %arg8[%c1, %c0_70] : memref<224x128xbf16, #tpu.memory_space<vmem>>, vector<144x128xbf16>
    %85 = tpu.concatenate %83, %84 in 1 : vector<144x128xbf16>, vector<144x128xbf16> -> vector<144x256xbf16>
    %c0_71 = arith.constant 0 : index
    %c0_72 = arith.constant 0 : index
    %c0_73 = arith.constant 0 : index
    %86 = vector.load %arg4[%c0_71, %c0_72, %c0_73] : memref<13x256x128xbf16, #tpu.memory_space<vmem>>, vector<1x256x128xbf16>
    %87 = vector.shape_cast %86 : vector<1x256x128xbf16> to vector<256x128xbf16>
    %cst_74 = arith.constant dense<0.000000e+00> : vector<144x128xf32>
    %88 = tpu.matmul %85, %87, %cst_74 {dimension_numbers = #tpu.dot_dimension_numbers<[1], [0], [0], [1], [0, 0, 1, 1], [], []>} : vector<144x256xbf16>, vector<256x128xbf16>, vector<144x128xf32> -> vector<144x128xf32>
    %89 = arith.addf %82, %88 : vector<144x128xf32>
    %c2 = arith.constant 2 : index
    %c0_75 = arith.constant 0 : index
    %90 = vector.load %arg8[%c2, %c0_75] : memref<224x128xbf16, #tpu.memory_space<vmem>>, vector<144x128xbf16>
    %c3 = arith.constant 3 : index
    %c0_76 = arith.constant 0 : index
    %91 = vector.load %arg8[%c3, %c0_76] : memref<224x128xbf16, #tpu.memory_space<vmem>>, vector<144x128xbf16>
    %92 = tpu.concatenate %90, %91 in 1 : vector<144x128xbf16>, vector<144x128xbf16> -> vector<144x256xbf16>
    %c1_77 = arith.constant 1 : index
    %c0_78 = arith.constant 0 : index
    %c0_79 = arith.constant 0 : index
    %93 = vector.load %arg4[%c1_77, %c0_78, %c0_79] : memref<13x256x128xbf16, #tpu.memory_space<vmem>>, vector<1x256x128xbf16>
    %94 = vector.shape_cast %93 : vector<1x256x128xbf16> to vector<256x128xbf16>
    %cst_80 = arith.constant dense<0.000000e+00> : vector<144x128xf32>
    %95 = tpu.matmul %92, %94, %cst_80 {dimension_numbers = #tpu.dot_dimension_numbers<[1], [0], [0], [1], [0, 0, 1, 1], [], []>} : vector<144x256xbf16>, vector<256x128xbf16>, vector<144x128xf32> -> vector<144x128xf32>
    %96 = arith.addf %89, %95 : vector<144x128xf32>
    %c4 = arith.constant 4 : index
    %c0_81 = arith.constant 0 : index
    %97 = vector.load %arg8[%c4, %c0_81] : memref<224x128xbf16, #tpu.memory_space<vmem>>, vector<144x128xbf16>
    %c14 = arith.constant 14 : index
    %c0_82 = arith.constant 0 : index
    %98 = vector.load %arg8[%c14, %c0_82] : memref<224x128xbf16, #tpu.memory_space<vmem>>, vector<144x128xbf16>
    %99 = tpu.concatenate %97, %98 in 1 : vector<144x128xbf16>, vector<144x128xbf16> -> vector<144x256xbf16>
    %c2_83 = arith.constant 2 : index
    %c0_84 = arith.constant 0 : index
    %c0_85 = arith.constant 0 : index
    %100 = vector.load %arg4[%c2_83, %c0_84, %c0_85] : memref<13x256x128xbf16, #tpu.memory_space<vmem>>, vector<1x256x128xbf16>
    %101 = vector.shape_cast %100 : vector<1x256x128xbf16> to vector<256x128xbf16>
    %cst_86 = arith.constant dense<0.000000e+00> : vector<144x128xf32>
    %102 = tpu.matmul %99, %101, %cst_86 {dimension_numbers = #tpu.dot_dimension_numbers<[1], [0], [0], [1], [0, 0, 1, 1], [], []>} : vector<144x256xbf16>, vector<256x128xbf16>, vector<144x128xf32> -> vector<144x128xf32>
    %103 = arith.addf %96, %102 : vector<144x128xf32>
    %c15 = arith.constant 15 : index
    %c0_87 = arith.constant 0 : index
    %104 = vector.load %arg8[%c15, %c0_87] : memref<224x128xbf16, #tpu.memory_space<vmem>>, vector<144x128xbf16>
    %c16 = arith.constant 16 : index
    %c0_88 = arith.constant 0 : index
    %105 = vector.load %arg8[%c16, %c0_88] : memref<224x128xbf16, #tpu.memory_space<vmem>>, vector<144x128xbf16>
    %106 = tpu.concatenate %104, %105 in 1 : vector<144x128xbf16>, vector<144x128xbf16> -> vector<144x256xbf16>
    %c3_89 = arith.constant 3 : index
    %c0_90 = arith.constant 0 : index
    %c0_91 = arith.constant 0 : index
    %107 = vector.load %arg4[%c3_89, %c0_90, %c0_91] : memref<13x256x128xbf16, #tpu.memory_space<vmem>>, vector<1x256x128xbf16>
    %108 = vector.shape_cast %107 : vector<1x256x128xbf16> to vector<256x128xbf16>
    %cst_92 = arith.constant dense<0.000000e+00> : vector<144x128xf32>
    %109 = tpu.matmul %106, %108, %cst_92 {dimension_numbers = #tpu.dot_dimension_numbers<[1], [0], [0], [1], [0, 0, 1, 1], [], []>} : vector<144x256xbf16>, vector<256x128xbf16>, vector<144x128xf32> -> vector<144x128xf32>
    %110 = arith.addf %103, %109 : vector<144x128xf32>
    %c17 = arith.constant 17 : index
    %c0_93 = arith.constant 0 : index
    %111 = vector.load %arg8[%c17, %c0_93] : memref<224x128xbf16, #tpu.memory_space<vmem>>, vector<144x128xbf16>
    %c18 = arith.constant 18 : index
    %c0_94 = arith.constant 0 : index
    %112 = vector.load %arg8[%c18, %c0_94] : memref<224x128xbf16, #tpu.memory_space<vmem>>, vector<144x128xbf16>
    %113 = tpu.concatenate %111, %112 in 1 : vector<144x128xbf16>, vector<144x128xbf16> -> vector<144x256xbf16>
    %c4_95 = arith.constant 4 : index
    %c0_96 = arith.constant 0 : index
    %c0_97 = arith.constant 0 : index
    %114 = vector.load %arg4[%c4_95, %c0_96, %c0_97] : memref<13x256x128xbf16, #tpu.memory_space<vmem>>, vector<1x256x128xbf16>
    %115 = vector.shape_cast %114 : vector<1x256x128xbf16> to vector<256x128xbf16>
    %cst_98 = arith.constant dense<0.000000e+00> : vector<144x128xf32>
    %116 = tpu.matmul %113, %115, %cst_98 {dimension_numbers = #tpu.dot_dimension_numbers<[1], [0], [0], [1], [0, 0, 1, 1], [], []>} : vector<144x256xbf16>, vector<256x128xbf16>, vector<144x128xf32> -> vector<144x128xf32>
    %117 = arith.addf %110, %116 : vector<144x128xf32>
    %c28 = arith.constant 28 : index
    %c0_99 = arith.constant 0 : index
    %118 = vector.load %arg8[%c28, %c0_99] : memref<224x128xbf16, #tpu.memory_space<vmem>>, vector<144x128xbf16>
    %c29 = arith.constant 29 : index
    %c0_100 = arith.constant 0 : index
    %119 = vector.load %arg8[%c29, %c0_100] : memref<224x128xbf16, #tpu.memory_space<vmem>>, vector<144x128xbf16>
    %120 = tpu.concatenate %118, %119 in 1 : vector<144x128xbf16>, vector<144x128xbf16> -> vector<144x256xbf16>
    %c5 = arith.constant 5 : index
    %c0_101 = arith.constant 0 : index
    %c0_102 = arith.constant 0 : index
    %121 = vector.load %arg4[%c5, %c0_101, %c0_102] : memref<13x256x128xbf16, #tpu.memory_space<vmem>>, vector<1x256x128xbf16>
    %122 = vector.shape_cast %121 : vector<1x256x128xbf16> to vector<256x128xbf16>
    %cst_103 = arith.constant dense<0.000000e+00> : vector<144x128xf32>
    %123 = tpu.matmul %120, %122, %cst_103 {dimension_numbers = #tpu.dot_dimension_numbers<[1], [0], [0], [1], [0, 0, 1, 1], [], []>} : vector<144x256xbf16>, vector<256x128xbf16>, vector<144x128xf32> -> vector<144x128xf32>
    %124 = arith.addf %117, %123 : vector<144x128xf32>
    %c30 = arith.constant 30 : index
    %c0_104 = arith.constant 0 : index
    %125 = vector.load %arg8[%c30, %c0_104] : memref<224x128xbf16, #tpu.memory_space<vmem>>, vector<144x128xbf16>
    %c31 = arith.constant 31 : index
    %c0_105 = arith.constant 0 : index
    %126 = vector.load %arg8[%c31, %c0_105] : memref<224x128xbf16, #tpu.memory_space<vmem>>, vector<144x128xbf16>
    %127 = tpu.concatenate %125, %126 in 1 : vector<144x128xbf16>, vector<144x128xbf16> -> vector<144x256xbf16>
    %c6 = arith.constant 6 : index
    %c0_106 = arith.constant 0 : index
    %c0_107 = arith.constant 0 : index
    %128 = vector.load %arg4[%c6, %c0_106, %c0_107] : memref<13x256x128xbf16, #tpu.memory_space<vmem>>, vector<1x256x128xbf16>
    %129 = vector.shape_cast %128 : vector<1x256x128xbf16> to vector<256x128xbf16>
    %cst_108 = arith.constant dense<0.000000e+00> : vector<144x128xf32>
    %130 = tpu.matmul %127, %129, %cst_108 {dimension_numbers = #tpu.dot_dimension_numbers<[1], [0], [0], [1], [0, 0, 1, 1], [], []>} : vector<144x256xbf16>, vector<256x128xbf16>, vector<144x128xf32> -> vector<144x128xf32>
    %131 = arith.addf %124, %130 : vector<144x128xf32>
    %c32 = arith.constant 32 : index
    %c0_109 = arith.constant 0 : index
    %132 = vector.load %arg8[%c32, %c0_109] : memref<224x128xbf16, #tpu.memory_space<vmem>>, vector<144x128xbf16>
    %c42 = arith.constant 42 : index
    %c0_110 = arith.constant 0 : index
    %133 = vector.load %arg8[%c42, %c0_110] : memref<224x128xbf16, #tpu.memory_space<vmem>>, vector<144x128xbf16>
    %134 = tpu.concatenate %132, %133 in 1 : vector<144x128xbf16>, vector<144x128xbf16> -> vector<144x256xbf16>
    %c7 = arith.constant 7 : index
    %c0_111 = arith.constant 0 : index
    %c0_112 = arith.constant 0 : index
    %135 = vector.load %arg4[%c7, %c0_111, %c0_112] : memref<13x256x128xbf16, #tpu.memory_space<vmem>>, vector<1x256x128xbf16>
    %136 = vector.shape_cast %135 : vector<1x256x128xbf16> to vector<256x128xbf16>
    %cst_113 = arith.constant dense<0.000000e+00> : vector<144x128xf32>
    %137 = tpu.matmul %134, %136, %cst_113 {dimension_numbers = #tpu.dot_dimension_numbers<[1], [0], [0], [1], [0, 0, 1, 1], [], []>} : vector<144x256xbf16>, vector<256x128xbf16>, vector<144x128xf32> -> vector<144x128xf32>
    %138 = arith.addf %131, %137 : vector<144x128xf32>
    %c43 = arith.constant 43 : index
    %c0_114 = arith.constant 0 : index
    %139 = vector.load %arg8[%c43, %c0_114] : memref<224x128xbf16, #tpu.memory_space<vmem>>, vector<144x128xbf16>
    %c44 = arith.constant 44 : index
    %c0_115 = arith.constant 0 : index
    %140 = vector.load %arg8[%c44, %c0_115] : memref<224x128xbf16, #tpu.memory_space<vmem>>, vector<144x128xbf16>
    %141 = tpu.concatenate %139, %140 in 1 : vector<144x128xbf16>, vector<144x128xbf16> -> vector<144x256xbf16>
    %c8 = arith.constant 8 : index
    %c0_116 = arith.constant 0 : index
    %c0_117 = arith.constant 0 : index
    %142 = vector.load %arg4[%c8, %c0_116, %c0_117] : memref<13x256x128xbf16, #tpu.memory_space<vmem>>, vector<1x256x128xbf16>
    %143 = vector.shape_cast %142 : vector<1x256x128xbf16> to vector<256x128xbf16>
    %cst_118 = arith.constant dense<0.000000e+00> : vector<144x128xf32>
    %144 = tpu.matmul %141, %143, %cst_118 {dimension_numbers = #tpu.dot_dimension_numbers<[1], [0], [0], [1], [0, 0, 1, 1], [], []>} : vector<144x256xbf16>, vector<256x128xbf16>, vector<144x128xf32> -> vector<144x128xf32>
    %145 = arith.addf %138, %144 : vector<144x128xf32>
    %c45 = arith.constant 45 : index
    %c0_119 = arith.constant 0 : index
    %146 = vector.load %arg8[%c45, %c0_119] : memref<224x128xbf16, #tpu.memory_space<vmem>>, vector<144x128xbf16>
    %c46 = arith.constant 46 : index
    %c0_120 = arith.constant 0 : index
    %147 = vector.load %arg8[%c46, %c0_120] : memref<224x128xbf16, #tpu.memory_space<vmem>>, vector<144x128xbf16>
    %148 = tpu.concatenate %146, %147 in 1 : vector<144x128xbf16>, vector<144x128xbf16> -> vector<144x256xbf16>
    %c9 = arith.constant 9 : index
    %c0_121 = arith.constant 0 : index
    %c0_122 = arith.constant 0 : index
    %149 = vector.load %arg4[%c9, %c0_121, %c0_122] : memref<13x256x128xbf16, #tpu.memory_space<vmem>>, vector<1x256x128xbf16>
    %150 = vector.shape_cast %149 : vector<1x256x128xbf16> to vector<256x128xbf16>
    %cst_123 = arith.constant dense<0.000000e+00> : vector<144x128xf32>
    %151 = tpu.matmul %148, %150, %cst_123 {dimension_numbers = #tpu.dot_dimension_numbers<[1], [0], [0], [1], [0, 0, 1, 1], [], []>} : vector<144x256xbf16>, vector<256x128xbf16>, vector<144x128xf32> -> vector<144x128xf32>
    %152 = arith.addf %145, %151 : vector<144x128xf32>
    %c56 = arith.constant 56 : index
    %c0_124 = arith.constant 0 : index
    %153 = vector.load %arg8[%c56, %c0_124] : memref<224x128xbf16, #tpu.memory_space<vmem>>, vector<144x128xbf16>
    %c57 = arith.constant 57 : index
    %c0_125 = arith.constant 0 : index
    %154 = vector.load %arg8[%c57, %c0_125] : memref<224x128xbf16, #tpu.memory_space<vmem>>, vector<144x128xbf16>
    %155 = tpu.concatenate %153, %154 in 1 : vector<144x128xbf16>, vector<144x128xbf16> -> vector<144x256xbf16>
    %c10 = arith.constant 10 : index
    %c0_126 = arith.constant 0 : index
    %c0_127 = arith.constant 0 : index
    %156 = vector.load %arg4[%c10, %c0_126, %c0_127] : memref<13x256x128xbf16, #tpu.memory_space<vmem>>, vector<1x256x128xbf16>
    %157 = vector.shape_cast %156 : vector<1x256x128xbf16> to vector<256x128xbf16>
    %cst_128 = arith.constant dense<0.000000e+00> : vector<144x128xf32>
    %158 = tpu.matmul %155, %157, %cst_128 {dimension_numbers = #tpu.dot_dimension_numbers<[1], [0], [0], [1], [0, 0, 1, 1], [], []>} : vector<144x256xbf16>, vector<256x128xbf16>, vector<144x128xf32> -> vector<144x128xf32>
    %159 = arith.addf %152, %158 : vector<144x128xf32>
    %c58 = arith.constant 58 : index
    %c0_129 = arith.constant 0 : index
    %160 = vector.load %arg8[%c58, %c0_129] : memref<224x128xbf16, #tpu.memory_space<vmem>>, vector<144x128xbf16>
    %c59 = arith.constant 59 : index
    %c0_130 = arith.constant 0 : index
    %161 = vector.load %arg8[%c59, %c0_130] : memref<224x128xbf16, #tpu.memory_space<vmem>>, vector<144x128xbf16>
    %162 = tpu.concatenate %160, %161 in 1 : vector<144x128xbf16>, vector<144x128xbf16> -> vector<144x256xbf16>
    %c11 = arith.constant 11 : index
    %c0_131 = arith.constant 0 : index
    %c0_132 = arith.constant 0 : index
    %163 = vector.load %arg4[%c11, %c0_131, %c0_132] : memref<13x256x128xbf16, #tpu.memory_space<vmem>>, vector<1x256x128xbf16>
    %164 = vector.shape_cast %163 : vector<1x256x128xbf16> to vector<256x128xbf16>
    %cst_133 = arith.constant dense<0.000000e+00> : vector<144x128xf32>
    %165 = tpu.matmul %162, %164, %cst_133 {dimension_numbers = #tpu.dot_dimension_numbers<[1], [0], [0], [1], [0, 0, 1, 1], [], []>} : vector<144x256xbf16>, vector<256x128xbf16>, vector<144x128xf32> -> vector<144x128xf32>
    %166 = arith.addf %159, %165 : vector<144x128xf32>
    %c60 = arith.constant 60 : index
    %c0_134 = arith.constant 0 : index
    %167 = vector.load %arg8[%c60, %c0_134] : memref<224x128xbf16, #tpu.memory_space<vmem>>, vector<144x128xbf16>
    %c60_135 = arith.constant 60 : index
    %c0_136 = arith.constant 0 : index
    %168 = vector.load %arg8[%c60_135, %c0_136] : memref<224x128xbf16, #tpu.memory_space<vmem>>, vector<144x128xbf16>
    %169 = tpu.concatenate %167, %168 in 1 : vector<144x128xbf16>, vector<144x128xbf16> -> vector<144x256xbf16>
    %c12 = arith.constant 12 : index
    %c0_137 = arith.constant 0 : index
    %c0_138 = arith.constant 0 : index
    %170 = vector.load %arg4[%c12, %c0_137, %c0_138] : memref<13x256x128xbf16, #tpu.memory_space<vmem>>, vector<1x256x128xbf16>
    %171 = vector.shape_cast %170 : vector<1x256x128xbf16> to vector<256x128xbf16>
    %cst_139 = arith.constant dense<0.000000e+00> : vector<144x128xf32>
    %172 = tpu.matmul %169, %171, %cst_139 {dimension_numbers = #tpu.dot_dimension_numbers<[1], [0], [0], [1], [0, 0, 1, 1], [], []>} : vector<144x256xbf16>, vector<256x128xbf16>, vector<144x128xf32> -> vector<144x128xf32>
    %173 = arith.addf %166, %172 : vector<144x128xf32>
    %c0_140 = arith.constant 0 : index
    %c0_141 = arith.constant 0 : index
    %174 = vector.load %arg5[%c0_140, %c0_141] : memref<1x128xf32, #tpu.memory_space<vmem>>, vector<1x128xf32>
    %175 = vector.broadcast %174 : vector<1x128xf32> to vector<144x128xf32>
    %176 = arith.addf %173, %175 : vector<144x128xf32>
    %cst_142 = arith.constant 0.000000e+00 : f32
    %177 = vector.broadcast %cst_142 : f32 to vector<144x128xf32>
    %178 = arith.maximumf %176, %177 : vector<144x128xf32>
    %c0_143 = arith.constant 0 : index
    %c0_144 = arith.constant 0 : index
    %179 = vector.load %arg9[%c0_143, %c0_144] : memref<144x128xf32, #tpu.memory_space<vmem>>, vector<144x128xf32>
    tpu.vector_store %arg9[%c0_143, %c0_144], %178 {strides = array<i32>} : memref<144x128xf32, #tpu.memory_space<vmem>>, vector<144x128xf32>,
    %c0_145 = arith.constant 0 : index
    %c0_146 = arith.constant 0 : index
    %180 = vector.load %arg9[%c0_145, %c0_146] : memref<144x128xf32, #tpu.memory_space<vmem>>, vector<128x128xf32>
    %c1_147 = arith.constant 1 : index
    %c0_148 = arith.constant 0 : index
    %181 = vector.load %arg9[%c1_147, %c0_148] : memref<144x128xf32, #tpu.memory_space<vmem>>, vector<128x128xf32>
    %182 = arith.maximumf %180, %181 : vector<128x128xf32>
    %c14_149 = arith.constant 14 : index
    %c0_150 = arith.constant 0 : index
    %183 = vector.load %arg9[%c14_149, %c0_150] : memref<144x128xf32, #tpu.memory_space<vmem>>, vector<128x128xf32>
    %c15_151 = arith.constant 15 : index
    %c0_152 = arith.constant 0 : index
    %184 = vector.load %arg9[%c15_151, %c0_152] : memref<144x128xf32, #tpu.memory_space<vmem>>, vector<128x128xf32>
    %185 = arith.maximumf %183, %184 : vector<128x128xf32>
    %186 = arith.maximumf %182, %185 : vector<128x128xf32>
    %c0_153 = arith.constant 0 : index
    %c0_154 = arith.constant 0 : index
    %187 = vector.load %arg6[%c0_153, %c0_154] : memref<32x128xbf16, #tpu.memory_space<vmem>>, vector<32x128xbf16>
    %188 = arith.truncf %186 : vector<128x128xf32> to vector<128x128xbf16>
    %cst_155 = arith.constant dense<0.000000e+00> : vector<32x128xf32>
    %189 = tpu.matmul %187, %188, %cst_155 {dimension_numbers = #tpu.dot_dimension_numbers<[1], [0], [0], [1], [0, 0, 1, 1], [], []>} : vector<32x128xbf16>, vector<128x128xbf16>, vector<32x128xf32> -> vector<32x128xf32>
    %190 = arith.truncf %189 : vector<32x128xf32> to vector<32x128xbf16>
    %c0_156 = arith.constant 0 : index
    %c0_157 = arith.constant 0 : index
    %c0_158 = arith.constant 0 : index
    %191 = vector.load %arg7[%c0_156, %c0_157, %c0_158] : memref<1x32x128xbf16, #tpu.memory_space<vmem>>, vector<1x32x128xbf16>
    %192 = vector.shape_cast %191 : vector<1x32x128xbf16> to vector<32x128xbf16>
    %193 = vector.shape_cast %190 : vector<32x128xbf16> to vector<1x32x128xbf16>
    tpu.vector_store %arg7[%c0_156, %c0_157, %c0_158], %193 {strides = array<i32>} : memref<1x32x128xbf16, #tpu.memory_space<vmem>>, vector<1x32x128xbf16>,
    return
  }
  func.func @transform_0(%arg0: i32) -> (i32, i32, i32) {
    %c0_i32 = arith.constant 0 : i32
    %c0_i32_0 = arith.constant 0 : i32
    %c0_i32_1 = arith.constant 0 : i32
    return %arg0, %c0_i32, %c0_i32_0 : i32, i32, i32
  }
  func.func @transform_1(%arg0: i32) -> (i32, i32) {
    %c0_i32 = arith.constant 0 : i32
    %c0_i32_0 = arith.constant 0 : i32
    %c0_i32_1 = arith.constant 0 : i32
    return %c0_i32, %c0_i32_0 : i32, i32
  }
  func.func @transform_2(%arg0: i32) -> (i32, i32) {
    %c0_i32 = arith.constant 0 : i32
    %c0_i32_0 = arith.constant 0 : i32
    %c0_i32_1 = arith.constant 0 : i32
    return %c0_i32, %c0_i32_0 : i32, i32
  }
  func.func @transform_3(%arg0: i32) -> (i32, i32, i32) {
    %c0_i32 = arith.constant 0 : i32
    %c0_i32_0 = arith.constant 0 : i32
    %c0_i32_1 = arith.constant 0 : i32
    %c0_i32_2 = arith.constant 0 : i32
    return %c0_i32, %c0_i32_0, %c0_i32_1 : i32, i32, i32
  }
  func.func @transform_4(%arg0: i32) -> (i32, i32) {
    %c0_i32 = arith.constant 0 : i32
    %c0_i32_0 = arith.constant 0 : i32
    %c0_i32_1 = arith.constant 0 : i32
    return %c0_i32, %c0_i32_0 : i32, i32
  }
  func.func @transform_5(%arg0: i32) -> (i32, i32) {
    %c0_i32 = arith.constant 0 : i32
    %c0_i32_0 = arith.constant 0 : i32
    %c0_i32_1 = arith.constant 0 : i32
    return %c0_i32, %c0_i32_0 : i32, i32
  }
  func.func @transform_6(%arg0: i32) -> (i32, i32, i32) {
    %c0_i32 = arith.constant 0 : i32
    %c0_i32_0 = arith.constant 0 : i32
    %c0_i32_1 = arith.constant 0 : i32
    return %arg0, %c0_i32, %c0_i32_0 : i32, i32, i32
  }
}

module attributes {stable_mosaic.version = 11 : i64} {
  func.func @_fc_kernel(%arg0: i32, %arg1: memref<2x4096xbf16, #tpu.memory_space<vmem>>, %arg2: memref<4096x256xbf16, #tpu.memory_space<vmem>>, %arg3: memref<1x256xf32, #tpu.memory_space<vmem>>, %arg4: memref<256x128xbf16, #tpu.memory_space<vmem>>, %arg5: memref<1x128xf32, #tpu.memory_space<vmem>>, %arg6: memref<128x128xbf16, #tpu.memory_space<vmem>>, %arg7: memref<1x128xf32, #tpu.memory_space<vmem>>, %arg8: memref<2x128xf32, #tpu.memory_space<vmem>>) attributes {dimension_semantics = [#tpu.dimension_semantics<parallel>], iteration_bounds = array<i64: 1>, scalar_prefetch = 0 : i64, scratch_operands = 0 : i64, tpu.core_type = #tpu.core_type<tc>, window_params = [{transform_indices = @transform_0, window_bounds = array<i64: 2, 4096>}, {pipeline_mode = #tpu.pipeline_mode<synchronous>, transform_indices = @transform_1, window_bounds = array<i64: 4096, 256>}, {pipeline_mode = #tpu.pipeline_mode<synchronous>, transform_indices = @transform_2, window_bounds = array<i64: 1, 256>}, {pipeline_mode = #tpu.pipeline_mode<synchronous>, transform_indices = @transform_3, window_bounds = array<i64: 256, 128>}, {pipeline_mode = #tpu.pipeline_mode<synchronous>, transform_indices = @transform_4, window_bounds = array<i64: 1, 128>}, {pipeline_mode = #tpu.pipeline_mode<synchronous>, transform_indices = @transform_5, window_bounds = array<i64: 128, 128>}, {pipeline_mode = #tpu.pipeline_mode<synchronous>, transform_indices = @transform_6, window_bounds = array<i64: 1, 128>}, {transform_indices = @transform_7, window_bounds = array<i64: 2, 128>}]} {
    %c0 = arith.constant 0 : index
    %c0_0 = arith.constant 0 : index
    %0 = vector.load %arg1[%c0, %c0_0] : memref<2x4096xbf16, #tpu.memory_space<vmem>>, vector<2x4096xbf16>
    %c0_1 = arith.constant 0 : index
    %c0_2 = arith.constant 0 : index
    %1 = vector.load %arg2[%c0_1, %c0_2] : memref<4096x256xbf16, #tpu.memory_space<vmem>>, vector<4096x256xbf16>
    %cst = arith.constant dense<0.000000e+00> : vector<2x256xf32>
    %2 = tpu.matmul %0, %1, %cst {dimension_numbers = #tpu.dot_dimension_numbers<[1], [0], [0], [1], [0, 0, 1, 1], [], []>} : vector<2x4096xbf16>, vector<4096x256xbf16>, vector<2x256xf32> -> vector<2x256xf32>
    %c0_3 = arith.constant 0 : index
    %c0_4 = arith.constant 0 : index
    %3 = vector.load %arg3[%c0_3, %c0_4] : memref<1x256xf32, #tpu.memory_space<vmem>>, vector<1x256xf32>
    %4 = vector.broadcast %3 : vector<1x256xf32> to vector<2x256xf32>
    %5 = arith.addf %2, %4 : vector<2x256xf32>
    %cst_5 = arith.constant 0.000000e+00 : f32
    %6 = vector.broadcast %cst_5 : f32 to vector<2x256xf32>
    %7 = arith.maximumf %5, %6 : vector<2x256xf32>
    %8 = arith.truncf %7 : vector<2x256xf32> to vector<2x256xbf16>
    %c0_6 = arith.constant 0 : index
    %c0_7 = arith.constant 0 : index
    %9 = vector.load %arg4[%c0_6, %c0_7] : memref<256x128xbf16, #tpu.memory_space<vmem>>, vector<256x128xbf16>
    %cst_8 = arith.constant dense<0.000000e+00> : vector<2x128xf32>
    %10 = tpu.matmul %8, %9, %cst_8 {dimension_numbers = #tpu.dot_dimension_numbers<[1], [0], [0], [1], [0, 0, 1, 1], [], []>} : vector<2x256xbf16>, vector<256x128xbf16>, vector<2x128xf32> -> vector<2x128xf32>
    %c0_9 = arith.constant 0 : index
    %c0_10 = arith.constant 0 : index
    %11 = vector.load %arg5[%c0_9, %c0_10] : memref<1x128xf32, #tpu.memory_space<vmem>>, vector<1x128xf32>
    %12 = vector.broadcast %11 : vector<1x128xf32> to vector<2x128xf32>
    %13 = arith.addf %10, %12 : vector<2x128xf32>
    %cst_11 = arith.constant 0.000000e+00 : f32
    %14 = vector.broadcast %cst_11 : f32 to vector<2x128xf32>
    %15 = arith.maximumf %13, %14 : vector<2x128xf32>
    %16 = arith.truncf %15 : vector<2x128xf32> to vector<2x128xbf16>
    %c0_12 = arith.constant 0 : index
    %c0_13 = arith.constant 0 : index
    %17 = vector.load %arg6[%c0_12, %c0_13] : memref<128x128xbf16, #tpu.memory_space<vmem>>, vector<128x128xbf16>
    %cst_14 = arith.constant dense<0.000000e+00> : vector<2x128xf32>
    %18 = tpu.matmul %16, %17, %cst_14 {dimension_numbers = #tpu.dot_dimension_numbers<[1], [0], [0], [1], [0, 0, 1, 1], [], []>} : vector<2x128xbf16>, vector<128x128xbf16>, vector<2x128xf32> -> vector<2x128xf32>
    %c0_15 = arith.constant 0 : index
    %c0_16 = arith.constant 0 : index
    %19 = vector.load %arg7[%c0_15, %c0_16] : memref<1x128xf32, #tpu.memory_space<vmem>>, vector<1x128xf32>
    %20 = vector.broadcast %19 : vector<1x128xf32> to vector<2x128xf32>
    %21 = arith.addf %18, %20 : vector<2x128xf32>
    %c0_17 = arith.constant 0 : index
    %c0_18 = arith.constant 0 : index
    %22 = vector.load %arg8[%c0_17, %c0_18] : memref<2x128xf32, #tpu.memory_space<vmem>>, vector<2x128xf32>
    tpu.vector_store %arg8[%c0_17, %c0_18], %21 {strides = array<i32>} : memref<2x128xf32, #tpu.memory_space<vmem>>, vector<2x128xf32>,
    return
  }
  func.func @transform_0(%arg0: i32) -> (i32, i32) {
    %c0_i32 = arith.constant 0 : i32
    %c0_i32_0 = arith.constant 0 : i32
    return %arg0, %c0_i32 : i32, i32
  }
  func.func @transform_1(%arg0: i32) -> (i32, i32) {
    %c0_i32 = arith.constant 0 : i32
    %c0_i32_0 = arith.constant 0 : i32
    %c0_i32_1 = arith.constant 0 : i32
    return %c0_i32, %c0_i32_0 : i32, i32
  }
  func.func @transform_2(%arg0: i32) -> (i32, i32) {
    %c0_i32 = arith.constant 0 : i32
    %c0_i32_0 = arith.constant 0 : i32
    %c0_i32_1 = arith.constant 0 : i32
    return %c0_i32, %c0_i32_0 : i32, i32
  }
  func.func @transform_3(%arg0: i32) -> (i32, i32) {
    %c0_i32 = arith.constant 0 : i32
    %c0_i32_0 = arith.constant 0 : i32
    %c0_i32_1 = arith.constant 0 : i32
    return %c0_i32, %c0_i32_0 : i32, i32
  }
  func.func @transform_4(%arg0: i32) -> (i32, i32) {
    %c0_i32 = arith.constant 0 : i32
    %c0_i32_0 = arith.constant 0 : i32
    %c0_i32_1 = arith.constant 0 : i32
    return %c0_i32, %c0_i32_0 : i32, i32
  }
  func.func @transform_5(%arg0: i32) -> (i32, i32) {
    %c0_i32 = arith.constant 0 : i32
    %c0_i32_0 = arith.constant 0 : i32
    %c0_i32_1 = arith.constant 0 : i32
    return %c0_i32, %c0_i32_0 : i32, i32
  }
  func.func @transform_6(%arg0: i32) -> (i32, i32) {
    %c0_i32 = arith.constant 0 : i32
    %c0_i32_0 = arith.constant 0 : i32
    %c0_i32_1 = arith.constant 0 : i32
    return %c0_i32, %c0_i32_0 : i32, i32
  }
  func.func @transform_7(%arg0: i32) -> (i32, i32) {
    %c0_i32 = arith.constant 0 : i32
    %c0_i32_0 = arith.constant 0 : i32
    return %arg0, %c0_i32 : i32, i32
  }
}

</mosaic_0001>

<bundles_post_ra>
// kernel: _lenet_logits.3
= control target key start
LH: loop header
LB: loop body
LE: loop exit
PB: predicated region body
PF: predicated region fallthrough
CT: control target
= control target key end

     0   :  { %v546_v38 = vlaneseq  ;;  %v5786_v39 = vmov 1966171168   ;;  %s7624_s0 = inlined_call_operand.vmem [shape: bf16[2,4096], index: 0, kind: input, shape index: {}]   ;;  %s7625_s1 = inlined_call_operand.vmem [shape: bf16[4096,256], index: 1, kind: input, shape index: {}]   ;;  %s7626_s2 = inlined_call_operand.vmem [shape: f32[1,256], index: 2, kind: input, shape index: {}]   ;;  %s7627_s3 = inlined_call_operand.vmem [shape: bf16[256,128], index: 3, kind: input, shape index: {}]   ;;  %s7628_s4 = inlined_call_operand.vmem [shape: f32[1,128], index: 4, kind: input, shape index: {}]   ;;  %s7629_s5 = inlined_call_operand.vmem [shape: bf16[128,128], index: 5, kind: input, shape index: {}]   ;;  %s7630_s6 = inlined_call_operand.vmem [shape: f32[1,128], index: 6, kind: input, shape index: {}]   ;;  %s7631_s7 = inlined_call_operand.hbm [shape: f32[2,128], index: 7, kind: output, shape index: {}]  }
   0x1   :  { %v4964_v0 = vld [vmem:[%s7625_s1 + $0x4] ss:$8 sps:$4 sm:$0xff]   ;;  %v4968_v2 = vld [vmem:[%s7625_s1] ss:$8 sps:$4 sm:$0xff]   ;;  %v4970_v4 = vld [vmem:[%s7625_s1 + $0x14] ss:$8 sps:$4 sm:$0xff]   ;;  %v562_v40 = vunpack.c.l.s4 %v5786_v39 }
   0x2   :  { %v4966_v1 = vld [vmem:[%s7625_s1 + $0x704] ss:$8 sps:$4 sm:$0xff]   ;;  %3348 = vmatprep.subr.bf16.mxu1 %v4964_v0  ;;  %v4969_v3 = vld [vmem:[%s7625_s1 + $0x700] ss:$8 sps:$4 sm:$0xff]   ;;  %v4972_v5 = vld [vmem:[%s7625_s1 + $0x714] ss:$8 sps:$4 sm:$0xff]  }
   0x3   :  { %3635 = vmatprep.subr.bf16.mxu0 %v4966_v1  ;;  %3349 = vmatpush1.bf16.msra.mxu1 %v4968_v2  ;;  %v4974_v6 = vld [vmem:[%s7625_s1 + $0x10] ss:$8 sps:$4 sm:$0xff]   ;;  %v4976_v8 = vld [vmem:[%s7625_s1 + $0x24] ss:$8 sps:$4 sm:$0xff]   ;;  %v4980_v10 = vld [vmem:[%s7625_s1 + $0x20] ss:$8 sps:$4 sm:$0xff]   ;;  %v563_v46 = vunpack.c.0.s8 %v562_v40 }
   0x4   :  { %3636 = vmatpush1.bf16.msra.mxu0 %v4969_v3  ;;  %3350 = vmatprep.subr.bf16.mxu1 %v4970_v4  ;;  %v4975_v7 = vld [vmem:[%s7625_s1 + $0x710] ss:$8 sps:$4 sm:$0xff]   ;;  %v4978_v9 = vld [vmem:[%s7625_s1 + $0x724] ss:$8 sps:$4 sm:$0xff]   ;;  %v4981_v11 = vld [vmem:[%s7625_s1 + $0x720] ss:$8 sps:$4 sm:$0xff]  }
   0x5   :  { %3637 = vmatprep.subr.bf16.mxu0 %v4972_v5  ;;  %v4982_v12 = vld [vmem:[%s7625_s1 + $0x34] ss:$8 sps:$4 sm:$0xff]   ;;  %v4986_v14 = vld [vmem:[%s7625_s1 + $0x30] ss:$8 sps:$4 sm:$0xff]   ;;  %v4988_v16 = vld [vmem:[%s7625_s1 + $0x44] ss:$8 sps:$4 sm:$0xff]  }
   0x6   :  { %v4984_v13 = vld [vmem:[%s7625_s1 + $0x734] ss:$8 sps:$4 sm:$0xff]   ;;  %v4987_v15 = vld [vmem:[%s7625_s1 + $0x730] ss:$8 sps:$4 sm:$0xff]   ;;  %v4990_v17 = vld [vmem:[%s7625_s1 + $0x744] ss:$8 sps:$4 sm:$0xff]  }
   0x7   :  { %3351 = vmatpush1.bf16.msra.mxu1 %v4974_v6  ;;  %v4992_v18 = vld [vmem:[%s7625_s1 + $0x40] ss:$8 sps:$4 sm:$0xff]   ;;  %v4994_v20 = vld [vmem:[%s7625_s1 + $0x54] ss:$8 sps:$4 sm:$0xff]   ;;  %v4998_v22 = vld [vmem:[%s7625_s1 + $0x50] ss:$8 sps:$4 sm:$0xff]  }
   0x8   :  { %3638 = vmatpush1.bf16.msra.mxu0 %v4975_v7  ;;  %3352 = vmatprep.subr.bf16.mxu1 %v4976_v8  ;;  %v4993_v19 = vld [vmem:[%s7625_s1 + $0x740] ss:$8 sps:$4 sm:$0xff]   ;;  %v4996_v21 = vld [vmem:[%s7625_s1 + $0x754] ss:$8 sps:$4 sm:$0xff]   ;;  %v4999_v23 = vld [vmem:[%s7625_s1 + $0x750] ss:$8 sps:$4 sm:$0xff]  }
   0x9   :  { %3639 = vmatprep.subr.bf16.mxu0 %v4978_v9  ;;  %v5000_v24 = vld [vmem:[%s7625_s1 + $0x64] ss:$8 sps:$4 sm:$0xff]   ;;  %v5004_v26 = vld [vmem:[%s7625_s1 + $0x60] ss:$8 sps:$4 sm:$0xff]   ;;  %v5006_v28 = vld [vmem:[%s7625_s1 + $0x74] ss:$8 sps:$4 sm:$0xff]  }
   0xa   :  { %v5002_v25 = vld [vmem:[%s7625_s1 + $0x764] ss:$8 sps:$4 sm:$0xff]   ;;  %v5005_v27 = vld [vmem:[%s7625_s1 + $0x760] ss:$8 sps:$4 sm:$0xff]   ;;  %v5008_v29 = vld [vmem:[%s7625_s1 + $0x774] ss:$8 sps:$4 sm:$0xff]  }
   0xb   :  { %3353 = vmatpush1.bf16.msra.mxu1 %v4980_v10  ;;  %v5010_v30 = vld [vmem:[%s7625_s1 + $0x70] ss:$8 sps:$4 sm:$0xff]   ;;  %v5012_v32 = vld [vmem:[%s7625_s1 + $0x84] ss:$8 sps:$4 sm:$0xff]   ;;  %v5016_v34 = vld [vmem:[%s7625_s1 + $0x80] ss:$8 sps:$4 sm:$0xff]  }
   0xc   :  { %3640 = vmatpush1.bf16.msra.mxu0 %v4981_v11  ;;  %3354 = vmatprep.subr.bf16.mxu1 %v4982_v12  ;;  %v5011_v31 = vld [vmem:[%s7625_s1 + $0x770] ss:$8 sps:$4 sm:$0xff]   ;;  %v5014_v33 = vld [vmem:[%s7625_s1 + $0x784] ss:$8 sps:$4 sm:$0xff]   ;;  %v5017_v35 = vld [vmem:[%s7625_s1 + $0x780] ss:$8 sps:$4 sm:$0xff]  }
   0xd   :  { %3641 = vmatprep.subr.bf16.mxu0 %v4984_v13  ;;  %v5018_v36 = vld [vmem:[%s7625_s1 + $0x94] ss:$8 sps:$4 sm:$0xff]   ;;  %v5022_v41 = vld [vmem:[%s7625_s1 + $0x90] ss:$8 sps:$4 sm:$0xff]   ;;  %v5024_v43 = vld [vmem:[%s7625_s1 + $0xa4] ss:$8 sps:$4 sm:$0xff]  }
   0xe   :  { %v5020_v37 = vld [vmem:[%s7625_s1 + $0x794] ss:$8 sps:$4 sm:$0xff]   ;;  %v5023_v42 = vld [vmem:[%s7625_s1 + $0x790] ss:$8 sps:$4 sm:$0xff]   ;;  %v5026_v44 = vld [vmem:[%s7625_s1 + $0x7a4] ss:$8 sps:$4 sm:$0xff]  }
   0xf   :  { %3355 = vmatpush1.bf16.msra.mxu1 %v4986_v14  ;;  %v5956_v45 = vshrl.u32 %v546_v38, 7  ;;  %v5028_v47 = vld [vmem:[%s7625_s1 + $0xa0] ss:$8 sps:$4 sm:$0xff]   ;;  %v5030_v49 = vld [vmem:[%s7625_s1 + $0xb4] ss:$8 sps:$4 sm:$0xff]  }
  0x10   :  { %3642 = vmatpush1.bf16.msra.mxu0 %v4987_v15  ;;  %3356 = vmatprep.subr.bf16.mxu1 %v4988_v16  ;;  %v5029_v48 = vld [vmem:[%s7625_s1 + $0x7a0] ss:$8 sps:$4 sm:$0xff]   ;;  %v5032_v50 = vld [vmem:[%s7625_s1 + $0x7b4] ss:$8 sps:$4 sm:$0xff]   ;;  %v5034_v53 = vld [vmem:[%s7625_s1 + $0xb0] ss:$8 sps:$4 sm:$0xff]  }
  0x11   :  { %3643 = vmatprep.subr.bf16.mxu0 %v4990_v17  ;;  %v5971_v51 = vsub.s32 %v563_v46, %v5956_v45  ;;  %v5976_v52 = vld [vmem:[%s7624_s0] sm:$0xff]  ;;  %v5035_v55 = vld [vmem:[%s7625_s1 + $0x7b0] ss:$8 sps:$4 sm:$0xff]   ;;  %v29_v56 = vld [vmem:[%s7624_s0 + $0x8] sm:$0xff] }
  0x12   :  { %v5036_v57 = vld [vmem:[%s7625_s1 + $0xc4] ss:$8 sps:$4 sm:$0xff]   ;;  %v609_v60 = vcombine.high %v29_v56, %v29_v56  ;;  %v5040_v63 = vld [vmem:[%s7625_s1 + $0xc0] ss:$8 sps:$4 sm:$0xff]   ;;  %v5042_v1 = vld [vmem:[%s7625_s1 + $0xd4] ss:$8 sps:$4 sm:$0xff]  }
  0x13   :  { %3357 = vmatpush1.bf16.msra.mxu1 %v4992_v18  ;;  %v567_v54 = vrot.slane %v5976_v52, %v5971_v51  ;;  %v5038_v58 = vld [vmem:[%s7625_s1 + $0x7c4] ss:$8 sps:$4 sm:$0xff]   ;;  %v5041_v0 = vld [vmem:[%s7625_s1 + $0x7c0] ss:$8 sps:$4 sm:$0xff]   ;;  %v5044_v2 = vld [vmem:[%s7625_s1 + $0x7d4] ss:$8 sps:$4 sm:$0xff]  }
  0x14   :  { %3644 = vmatpush1.bf16.msra.mxu0 %v4993_v19  ;;  %3358 = vmatprep.subr.bf16.mxu1 %v4994_v20  ;;  %v623_v62 = vrot.slane %v609_v60, %v5971_v51  ;;  %v5046_v5 = vld [vmem:[%s7625_s1 + $0xd0] ss:$8 sps:$4 sm:$0xff]   ;;  %v5048_v7 = vld [vmem:[%s7625_s1 + $0xe4] ss:$8 sps:$4 sm:$0xff]   ;;  %v5052_v10 = vld [vmem:[%s7625_s1 + $0xe0] ss:$8 sps:$4 sm:$0xff]  }
  0x15   :  { %3645 = vmatprep.subr.bf16.mxu0 %v4996_v21  ;;  %v575_v59 = vcombine.high %v567_v54, %v567_v54  ;;  %v5047_v6 = vld [vmem:[%s7625_s1 + $0x7d0] ss:$8 sps:$4 sm:$0xff]   ;;  %v5050_v8 = vld [vmem:[%s7625_s1 + $0x7e4] ss:$8 sps:$4 sm:$0xff]   ;;  %v5053_v11 = vld [vmem:[%s7625_s1 + $0x7e0] ss:$8 sps:$4 sm:$0xff]   ;;  %v6054_v19 = vrot.slane %v567_v54, %v5971_v51 }
  0x16   :  { %v625_v3 = vcombine.high %v623_v62, %v623_v62  ;;  %v5054_v12 = vld [vmem:[%s7625_s1 + $0xf4] ss:$8 sps:$4 sm:$0xff]   ;;  %v6039_v14 = vrot.slane %v623_v62, %v5971_v51  ;;  %v5058_v15 = vld [vmem:[%s7625_s1 + $0xf0] ss:$8 sps:$4 sm:$0xff]   ;;  %v5063_v17 = vld [vmem:[%s7625_s1 + $0x104] ss:$8 sps:$4 sm:$0xff]  }
  0x17   :  { %3359 = vmatpush1.bf16.msra.mxu1 %v4998_v22  ;;  %v597_v61 = vrot.slane %v575_v59, %v5971_v51  ;;  %v5056_v13 = vld [vmem:[%s7625_s1 + $0x7f4] ss:$8 sps:$4 sm:$0xff]   ;;  %v5059_v16 = vld [vmem:[%s7625_s1 + $0x7f0] ss:$8 sps:$4 sm:$0xff]   ;;  %v5067_v18 = vld [vmem:[%s7625_s1 + $0x804] ss:$8 sps:$4 sm:$0xff]  }
  0x18   :  { %3646 = vmatpush1.bf16.msra.mxu0 %v4999_v23  ;;  %3360 = vmatprep.subr.bf16.mxu1 %v5000_v24  ;;  %v6010_v4 = vrot.slane %v625_v3, %v5971_v51  ;;  %v655_v20 = vcombine.high %v6039_v14, %v6039_v14  ;;  %v5061_v21 = vld [vmem:[%s7625_s1 + $0x100] ss:$8 sps:$4 sm:$0xff]   ;;  %v5070_v23 = vld [vmem:[%s7625_s1 + $0x114] ss:$8 sps:$4 sm:$0xff]   ;;  %v5103_v46 = vld [vmem:[%s7625_s1 + $0x864] ss:$8 sps:$4 sm:$0xff]  }
  0x19   :  { %3647 = vmatprep.subr.bf16.mxu0 %v5002_v25  ;;  %3380 = vmatprep.mubr.bf16.mxu1 %v597_v61  ;;  %v5065_v22 = vld [vmem:[%s7625_s1 + $0x800] ss:$8 sps:$4 sm:$0xff]   ;;  %v5073_v24 = vld [vmem:[%s7625_s1 + $0x814] ss:$8 sps:$4 sm:$0xff]   ;;  %v607_v25 = vcombine.high %v597_v61, %v597_v61  ;;  %v5104_v56 = vld [vmem:[%s7625_s1 + $0x170] ss:$8 sps:$4 sm:$0xff]  }
  0x1a   :  { %v657_v9 = vcombine.high %v6010_v4, %v6010_v4  ;;  %v5086_v38 = vld [vmem:[%s7625_s1 + $0x140] ss:$8 sps:$4 sm:$0xff]   ;;  %v5094_v40 = vld [vmem:[%s7625_s1 + $0x154] ss:$8 sps:$4 sm:$0xff]   ;;  %v5115_v60 = vld [vmem:[%s7625_s1 + $0x884] ss:$8 sps:$4 sm:$0xff]  }
  0x1b   :  { %3361 = vmatpush1.bf16.msra.mxu1 %v5004_v26  ;;  %v5068_v26 = vld [vmem:[%s7625_s1 + $0x110] ss:$8 sps:$4 sm:$0xff]   ;;  %v5089_v39 = vld [vmem:[%s7625_s1 + $0x840] ss:$8 sps:$4 sm:$0xff]   ;;  %v5109_v54 = vld [vmem:[%s7625_s1 + $0x874] ss:$8 sps:$4 sm:$0xff]  }
  0x1c   :  { %3648 = vmatpush1.bf16.msra.mxu0 %v5005_v27  ;;  %3362 = vmatprep.subr.bf16.mxu1 %v5006_v28  ;;  %v5071_v27 = vld [vmem:[%s7625_s1 + $0x810] ss:$8 sps:$4 sm:$0xff]   ;;  %v5076_v28 = vld [vmem:[%s7625_s1 + $0x124] ss:$8 sps:$4 sm:$0xff]   ;;  %v5110_v61 = vld [vmem:[%s7625_s1 + $0x180] ss:$8 sps:$4 sm:$0xff]  }
  0x1d   :  { %3649 = vmatprep.subr.bf16.mxu0 %v5008_v29  ;;  %3667 = vmatprep.mubr.bf16.mxu0 %v657_v9  ;;  %v5079_v29 = vld [vmem:[%s7625_s1 + $0x824] ss:$8 sps:$4 sm:$0xff]   ;;  %v5113_v62 = vld [vmem:[%s7625_s1 + $0x880] ss:$8 sps:$4 sm:$0xff]   ;;  %v5133_v9 = vld [vmem:[%s7625_s1 + $0x8b4] ss:$8 sps:$4 sm:$0xff]  }
  0x1e   :  { %v5124_v3 = vld [vmem:[%s7625_s1 + $0x1a4] ss:$8 sps:$4 sm:$0xff]  }
  0x1f   :  { %3363 = vmatpush1.bf16.msra.mxu1 %v5010_v30  ;;  %v5074_v30 = vld [vmem:[%s7625_s1 + $0x120] ss:$8 sps:$4 sm:$0xff]  }
  0x20   :  { %3650 = vmatpush1.bf16.msra.mxu0 %v5011_v31  ;;  %3364 = vmatprep.subr.bf16.mxu1 %v5012_v32  ;;  %v5077_v31 = vld [vmem:[%s7625_s1 + $0x820] ss:$8 sps:$4 sm:$0xff]   ;;  %v5082_v32 = vld [vmem:[%s7625_s1 + $0x134] ss:$8 sps:$4 sm:$0xff]  }
  0x21   :  { %3651 = vmatprep.subr.bf16.mxu0 %v5014_v33  ;;  %v5085_v33 = vld [vmem:[%s7625_s1 + $0x834] ss:$8 sps:$4 sm:$0xff]  }
  0x23   :  { %3365 = vmatpush1.bf16.msra.mxu1 %v5016_v34  ;;  %v5080_v34 = vld [vmem:[%s7625_s1 + $0x130] ss:$8 sps:$4 sm:$0xff]  }
  0x24   :  { %3652 = vmatpush1.bf16.msra.mxu0 %v5017_v35  ;;  %3366 = vmatprep.subr.bf16.mxu1 %v5018_v36  ;;  %v5083_v35 = vld [vmem:[%s7625_s1 + $0x830] ss:$8 sps:$4 sm:$0xff]   ;;  %v5088_v36 = vld [vmem:[%s7625_s1 + $0x144] ss:$8 sps:$4 sm:$0xff]  }
  0x25   :  { %3653 = vmatprep.subr.bf16.mxu0 %v5020_v37  ;;  %v5091_v37 = vld [vmem:[%s7625_s1 + $0x844] ss:$8 sps:$4 sm:$0xff]  }
  0x27   :  { %3367 = vmatpush1.bf16.msra.mxu1 %v5022_v41  ;;  %v5097_v41 = vld [vmem:[%s7625_s1 + $0x854] ss:$8 sps:$4 sm:$0xff]  }
  0x28   :  { %3654 = vmatpush1.bf16.msra.mxu0 %v5023_v42  ;;  %3368 = vmatprep.subr.bf16.mxu1 %v5024_v43  ;;  %v5092_v42 = vld [vmem:[%s7625_s1 + $0x150] ss:$8 sps:$4 sm:$0xff]  }
  0x29   :  { %3655 = vmatprep.subr.bf16.mxu0 %v5026_v44  ;;  %v5095_v43 = vld [vmem:[%s7625_s1 + $0x850] ss:$8 sps:$4 sm:$0xff]   ;;  %v5100_v44 = vld [vmem:[%s7625_s1 + $0x164] ss:$8 sps:$4 sm:$0xff]  }
  0x2b   :  { %3369 = vmatpush1.bf16.msra.mxu1 %v5028_v47  ;;  %v5098_v47 = vld [vmem:[%s7625_s1 + $0x160] ss:$8 sps:$4 sm:$0xff]  }
  0x2c   :  { %3656 = vmatpush1.bf16.msra.mxu0 %v5029_v48  ;;  %3370 = vmatprep.subr.bf16.mxu1 %v5030_v49  ;;  %v6137_v48 = vld [vmem:[%s7624_s0 + $0x10] sm:$0xff]  ;;  %v5101_v49 = vld [vmem:[%s7625_s1 + $0x860] ss:$8 sps:$4 sm:$0xff]  }
  0x2d   :  { %3657 = vmatprep.subr.bf16.mxu0 %v5032_v50  ;;  %v5106_v50 = vld [vmem:[%s7625_s1 + $0x174] ss:$8 sps:$4 sm:$0xff]  }
  0x2f   :  { %3371 = vmatpush1.bf16.msra.mxu1 %v5034_v53  ;;  %v6147_v53 = vrot.slane %v6137_v48, %v5971_v51 }
  0x30   :  { %3658 = vmatpush1.bf16.msra.mxu0 %v5035_v55  ;;  %3372 = vmatprep.subr.bf16.mxu1 %v5036_v57  ;;  %v5107_v57 = vld [vmem:[%s7625_s1 + $0x870] ss:$8 sps:$4 sm:$0xff]  }
  0x31   :  { %3659 = vmatprep.subr.bf16.mxu0 %v5038_v58  ;;  %v673_v55 = vcombine.high %v6147_v53, %v6147_v53  ;;  %v5112_v58 = vld [vmem:[%s7625_s1 + $0x184] ss:$8 sps:$4 sm:$0xff]  }
  0x33   :  { %3373 = vmatpush1.bf16.msra.mxu1 %v5040_v63  ;;  %v6164_v59 = vrot.slane %v673_v55, %v5971_v51  ;;  %v5118_v63 = vld [vmem:[%s7625_s1 + $0x194] ss:$8 sps:$4 sm:$0xff]   ;;  %v5184_v55 = vld [vmem:[%s7625_s1 + $0x244] ss:$8 sps:$4 sm:$0xff]  }
  0x34   :  { %3660 = vmatpush1.bf16.msra.mxu0 %v5041_v0  ;;  %3374 = vmatprep.subr.bf16.mxu1 %v5042_v1  ;;  %v5121_v0 = vld [vmem:[%s7625_s1 + $0x894] ss:$8 sps:$4 sm:$0xff]   ;;  %v5116_v1 = vld [vmem:[%s7625_s1 + $0x190] ss:$8 sps:$4 sm:$0xff]  }
  0x35   :  { %3661 = vmatprep.subr.bf16.mxu0 %v5044_v2  ;;  %v5119_v2 = vld [vmem:[%s7625_s1 + $0x890] ss:$8 sps:$4 sm:$0xff]  }
  0x37   :  { %3375 = vmatpush1.bf16.msra.mxu1 %v5046_v5  ;;  %v5127_v5 = vld [vmem:[%s7625_s1 + $0x8a4] ss:$8 sps:$4 sm:$0xff]  }
  0x38   :  { %3662 = vmatpush1.bf16.msra.mxu0 %v5047_v6  ;;  %3376 = vmatprep.subr.bf16.mxu1 %v5048_v7  ;;  %v5122_v6 = vld [vmem:[%s7625_s1 + $0x1a0] ss:$8 sps:$4 sm:$0xff]  }
  0x39   :  { %3663 = vmatprep.subr.bf16.mxu0 %v5050_v8  ;;  %v5125_v7 = vld [vmem:[%s7625_s1 + $0x8a0] ss:$8 sps:$4 sm:$0xff]   ;;  %v5130_v8 = vld [vmem:[%s7625_s1 + $0x1b4] ss:$8 sps:$4 sm:$0xff]  }
  0x3b   :  { %3377 = vmatpush1.bf16.msra.mxu1 %v5052_v10  ;;  %v5128_v10 = vld [vmem:[%s7625_s1 + $0x1b0] ss:$8 sps:$4 sm:$0xff]  }
  0x3c   :  { %3664 = vmatpush1.bf16.msra.mxu0 %v5053_v11  ;;  %3378 = vmatprep.subr.bf16.mxu1 %v5054_v12  ;;  %v5131_v11 = vld [vmem:[%s7625_s1 + $0x8b0] ss:$8 sps:$4 sm:$0xff]   ;;  %v5136_v12 = vld [vmem:[%s7625_s1 + $0x1c4] ss:$8 sps:$4 sm:$0xff]  }
  0x3d   :  { %3665 = vmatprep.subr.bf16.mxu0 %v5056_v13  ;;  %v5139_v13 = vld [vmem:[%s7625_s1 + $0x8c4] ss:$8 sps:$4 sm:$0xff]  }
  0x3f   :  { %3379 = vmatpush1.bf16.msra.mxu1 %v5058_v15  ;;  %v5134_v15 = vld [vmem:[%s7625_s1 + $0x1c0] ss:$8 sps:$4 sm:$0xff]  }
  0x40   :  { %3666 = vmatpush1.bf16.msra.mxu0 %v5059_v16  ;;  %3389 = vmatprep.subr.bf16.mxu1 %v5063_v17  ;;  %v5137_v16 = vld [vmem:[%s7625_s1 + $0x8c0] ss:$8 sps:$4 sm:$0xff]   ;;  %v5142_v17 = vld [vmem:[%s7625_s1 + $0x1d4] ss:$8 sps:$4 sm:$0xff]  }
  0x41   :  { %3676 = vmatprep.subr.bf16.mxu0 %v5067_v18  ;;  %v5145_v18 = vld [vmem:[%s7625_s1 + $0x8d4] ss:$8 sps:$4 sm:$0xff]  }
  0x42   :  { %3381 = vmatmul.mubr.bf16.vlgmr.msra.gmra.mrb[0].mxu1 %v6054_v19 }
  0x43   :  { %3668 = vmatmul.mubr.bf16.vlgmr.msra.gmra.mrb[0].mxu0 %v655_v20  ;;  %3390 = vmatpush1.bf16.msra.mxu1 %v5061_v21  ;;  %v5140_v20 = vld [vmem:[%s7625_s1 + $0x1d0] ss:$8 sps:$4 sm:$0xff]  }
  0x44   :  { %3677 = vmatpush1.bf16.msra.mxu0 %v5065_v22  ;;  %3391 = vmatprep.subr.bf16.mxu1 %v5070_v23  ;;  %v5143_v21 = vld [vmem:[%s7625_s1 + $0x8d0] ss:$8 sps:$4 sm:$0xff]   ;;  %v5148_v22 = vld [vmem:[%s7625_s1 + $0x1e4] ss:$8 sps:$4 sm:$0xff]  }
  0x45   :  { %3678 = vmatprep.subr.bf16.mxu0 %v5073_v24  ;;  %3421 = vmatprep.mubr.bf16.mxu1 %v607_v25  ;;  %v5151_v23 = vld [vmem:[%s7625_s1 + $0x8e4] ss:$8 sps:$4 sm:$0xff]   ;;  %v560_v24 = vcombine.high %v5976_v52, %v5976_v52  ;;  %v5146_v25 = vld [vmem:[%s7625_s1 + $0x1e0] ss:$8 sps:$4 sm:$0xff]   ;;  %v5157_v52 = vld [vmem:[%s7625_s1 + $0x8f4] ss:$8 sps:$4 sm:$0xff]  }
  0x46   :  { %3708 = vmatprep.mubr.bf16.mxu0 %v6164_v59 }
  0x47   :  { %3392 = vmatpush1.bf16.msra.mxu1 %v5068_v26  ;;  %v5149_v26 = vld [vmem:[%s7625_s1 + $0x8e0] ss:$8 sps:$4 sm:$0xff]  }
  0x48   :  { %3679 = vmatpush1.bf16.msra.mxu0 %v5071_v27  ;;  %3393 = vmatprep.subr.bf16.mxu1 %v5076_v28  ;;  %v5154_v27 = vld [vmem:[%s7625_s1 + $0x1f4] ss:$8 sps:$4 sm:$0xff]   ;;  %v6257_v28 = vrot.slane %v560_v24, %v5971_v51  ;;  %v5224_v24 = vld [vmem:[%s7625_s1 + $0x2b0] ss:$8 sps:$4 sm:$0xff]  }
  0x49   :  { %3680 = vmatprep.subr.bf16.mxu0 %v5079_v29  ;;  %v5152_v29 = vld [vmem:[%s7625_s1 + $0x1f0] ss:$8 sps:$4 sm:$0xff]  }
  0x4b   :  { %3394 = vmatpush1.bf16.msra.mxu1 %v5074_v30  ;;  %v5155_v30 = vld [vmem:[%s7625_s1 + $0x8f0] ss:$8 sps:$4 sm:$0xff]  }
  0x4c   :  { %3681 = vmatpush1.bf16.msra.mxu0 %v5077_v31  ;;  %3395 = vmatprep.subr.bf16.mxu1 %v5082_v32  ;;  %v5160_v31 = vld [vmem:[%s7625_s1 + $0x204] ss:$8 sps:$4 sm:$0xff]  }
  0x4d   :  { %3682 = vmatprep.subr.bf16.mxu0 %v5085_v33  ;;  %v5163_v32 = vld [vmem:[%s7625_s1 + $0x904] ss:$8 sps:$4 sm:$0xff]   ;;  %v576_v33 = vcombine.high %v6257_v28, %v6257_v28 }
  0x4f   :  { %3396 = vmatpush1.bf16.msra.mxu1 %v5080_v34  ;;  %v605_v34 = vcombine.high %v6054_v19, %v6054_v19  ;;  %v5169_v19 = vld [vmem:[%s7625_s1 + $0x914] ss:$8 sps:$4 sm:$0xff]  }
  0x50   :  { %3683 = vmatpush1.bf16.msra.mxu0 %v5083_v35  ;;  %3397 = vmatprep.subr.bf16.mxu1 %v5088_v36  ;;  %v5158_v35 = vld [vmem:[%s7625_s1 + $0x200] ss:$8 sps:$4 sm:$0xff]   ;;  %v6280_v36 = vrot.slane %v6147_v53, %v5971_v51  ;;  %v5176_v53 = vld [vmem:[%s7625_s1 + $0x230] ss:$8 sps:$4 sm:$0xff]  }
  0x51   :  { %3684 = vmatprep.subr.bf16.mxu0 %v5091_v37  ;;  %v5161_v37 = vld [vmem:[%s7625_s1 + $0x900] ss:$8 sps:$4 sm:$0xff]  }
  0x53   :  { %3398 = vmatpush1.bf16.msra.mxu1 %v5086_v38  ;;  %v5166_v38 = vld [vmem:[%s7625_s1 + $0x214] ss:$8 sps:$4 sm:$0xff]  }
  0x54   :  { %3685 = vmatpush1.bf16.msra.mxu0 %v5089_v39  ;;  %3399 = vmatprep.subr.bf16.mxu1 %v5094_v40  ;;  %v6292_v39 = vrot.slane %v576_v33, %v5971_v51  ;;  %v705_v40 = vcombine.high %v6164_v59, %v6164_v59  ;;  %v5190_v59 = vld [vmem:[%s7625_s1 + $0x254] ss:$8 sps:$4 sm:$0xff]   ;;  %v5239_v33 = vld [vmem:[%s7625_s1 + $0x9d0] ss:$8 sps:$4 sm:$0xff]  }
  0x55   :  { %3686 = vmatprep.subr.bf16.mxu0 %v5097_v41  ;;  %v5164_v41 = vld [vmem:[%s7625_s1 + $0x210] ss:$8 sps:$4 sm:$0xff]  }
  0x57   :  { %3400 = vmatpush1.bf16.msra.mxu1 %v5092_v42  ;;  %v5167_v42 = vld [vmem:[%s7625_s1 + $0x910] ss:$8 sps:$4 sm:$0xff]  }
  0x58   :  { %3687 = vmatpush1.bf16.msra.mxu0 %v5095_v43  ;;  %3401 = vmatprep.subr.bf16.mxu1 %v5100_v44  ;;  %v5172_v43 = vld [vmem:[%s7625_s1 + $0x224] ss:$8 sps:$4 sm:$0xff]  }
  0x59   :  { %3688 = vmatprep.subr.bf16.mxu0 %v5103_v46  ;;  %v5175_v44 = vld [vmem:[%s7625_s1 + $0x924] ss:$8 sps:$4 sm:$0xff]   ;;  %v5170_v46 = vld [vmem:[%s7625_s1 + $0x220] ss:$8 sps:$4 sm:$0xff]  }
  0x5b   :  { %3402 = vmatpush1.bf16.msra.mxu1 %v5098_v47  ;;  %v5173_v47 = vld [vmem:[%s7625_s1 + $0x920] ss:$8 sps:$4 sm:$0xff]  }
  0x5c   :  { %3689 = vmatpush1.bf16.msra.mxu0 %v5101_v49  ;;  %3403 = vmatprep.subr.bf16.mxu1 %v5106_v50  ;;  %v5178_v49 = vld [vmem:[%s7625_s1 + $0x234] ss:$8 sps:$4 sm:$0xff]  }
  0x5d   :  { %3690 = vmatprep.subr.bf16.mxu0 %v5109_v54  ;;  %v5181_v50 = vld [vmem:[%s7625_s1 + $0x934] ss:$8 sps:$4 sm:$0xff]   ;;  %v5179_v54 = vld [vmem:[%s7625_s1 + $0x930] ss:$8 sps:$4 sm:$0xff]  }
  0x5f   :  { %3404 = vmatpush1.bf16.msra.mxu1 %v5104_v56  ;;  %v5187_v56 = vld [vmem:[%s7625_s1 + $0x944] ss:$8 sps:$4 sm:$0xff]  }
  0x60   :  { %3691 = vmatpush1.bf16.msra.mxu0 %v5107_v57  ;;  %3405 = vmatprep.subr.bf16.mxu1 %v5112_v58  ;;  %v5182_v57 = vld [vmem:[%s7625_s1 + $0x240] ss:$8 sps:$4 sm:$0xff]  }
  0x61   :  { %3692 = vmatprep.subr.bf16.mxu0 %v5115_v60  ;;  %v5185_v58 = vld [vmem:[%s7625_s1 + $0x940] ss:$8 sps:$4 sm:$0xff]   ;;  %v5193_v60 = vld [vmem:[%s7625_s1 + $0x954] ss:$8 sps:$4 sm:$0xff]  }
  0x63   :  { %3406 = vmatpush1.bf16.msra.mxu1 %v5110_v61  ;;  %v5188_v61 = vld [vmem:[%s7625_s1 + $0x250] ss:$8 sps:$4 sm:$0xff]  }
  0x64   :  { %3693 = vmatpush1.bf16.msra.mxu0 %v5113_v62  ;;  %3407 = vmatprep.subr.bf16.mxu1 %v5118_v63  ;;  %v5191_v62 = vld [vmem:[%s7625_s1 + $0x950] ss:$8 sps:$4 sm:$0xff]   ;;  %v5196_v63 = vld [vmem:[%s7625_s1 + $0x264] ss:$8 sps:$4 sm:$0xff]  }
  0x65   :  { %3694 = vmatprep.subr.bf16.mxu0 %v5121_v0  ;;  %v5199_v0 = vld [vmem:[%s7625_s1 + $0x964] ss:$8 sps:$4 sm:$0xff]  }
  0x67   :  { %3408 = vmatpush1.bf16.msra.mxu1 %v5116_v1  ;;  %v5194_v1 = vld [vmem:[%s7625_s1 + $0x260] ss:$8 sps:$4 sm:$0xff]  }
  0x68   :  { %3695 = vmatpush1.bf16.msra.mxu0 %v5119_v2  ;;  %3409 = vmatprep.subr.bf16.mxu1 %v5124_v3  ;;  %v5197_v2 = vld [vmem:[%s7625_s1 + $0x960] ss:$8 sps:$4 sm:$0xff]   ;;  %v5202_v3 = vld [vmem:[%s7625_s1 + $0x274] ss:$8 sps:$4 sm:$0xff]  }
  0x69   :  { %3696 = vmatprep.subr.bf16.mxu0 %v5127_v5  ;;  %v5205_v5 = vld [vmem:[%s7625_s1 + $0x974] ss:$8 sps:$4 sm:$0xff]  }
  0x6b   :  { %3410 = vmatpush1.bf16.msra.mxu1 %v5122_v6  ;;  %v5200_v6 = vld [vmem:[%s7625_s1 + $0x270] ss:$8 sps:$4 sm:$0xff]  }
  0x6c   :  { %3697 = vmatpush1.bf16.msra.mxu0 %v5125_v7  ;;  %3411 = vmatprep.subr.bf16.mxu1 %v5130_v8  ;;  %v5203_v7 = vld [vmem:[%s7625_s1 + $0x970] ss:$8 sps:$4 sm:$0xff]   ;;  %v5208_v8 = vld [vmem:[%s7625_s1 + $0x284] ss:$8 sps:$4 sm:$0xff]  }
  0x6d   :  { %3698 = vmatprep.subr.bf16.mxu0 %v5133_v9  ;;  %v5211_v9 = vld [vmem:[%s7625_s1 + $0x984] ss:$8 sps:$4 sm:$0xff]  }
  0x6f   :  { %3412 = vmatpush1.bf16.msra.mxu1 %v5128_v10  ;;  %v5206_v10 = vld [vmem:[%s7625_s1 + $0x280] ss:$8 sps:$4 sm:$0xff]  }
  0x70   :  { %3699 = vmatpush1.bf16.msra.mxu0 %v5131_v11  ;;  %3413 = vmatprep.subr.bf16.mxu1 %v5136_v12  ;;  %v5209_v11 = vld [vmem:[%s7625_s1 + $0x980] ss:$8 sps:$4 sm:$0xff]   ;;  %v5214_v12 = vld [vmem:[%s7625_s1 + $0x294] ss:$8 sps:$4 sm:$0xff]  }
  0x71   :  { %3700 = vmatprep.subr.bf16.mxu0 %v5139_v13  ;;  %v5217_v13 = vld [vmem:[%s7625_s1 + $0x994] ss:$8 sps:$4 sm:$0xff]  }
  0x73   :  { %3414 = vmatpush1.bf16.msra.mxu1 %v5134_v15  ;;  %v5212_v15 = vld [vmem:[%s7625_s1 + $0x290] ss:$8 sps:$4 sm:$0xff]  }
  0x74   :  { %3701 = vmatpush1.bf16.msra.mxu0 %v5137_v16  ;;  %3415 = vmatprep.subr.bf16.mxu1 %v5142_v17  ;;  %v5215_v16 = vld [vmem:[%s7625_s1 + $0x990] ss:$8 sps:$4 sm:$0xff]   ;;  %v5220_v17 = vld [vmem:[%s7625_s1 + $0x2a4] ss:$8 sps:$4 sm:$0xff]  }
  0x75   :  { %3702 = vmatprep.subr.bf16.mxu0 %v5145_v18  ;;  %v5223_v18 = vld [vmem:[%s7625_s1 + $0x9a4] ss:$8 sps:$4 sm:$0xff]  }
  0x77   :  { %3416 = vmatpush1.bf16.msra.mxu1 %v5140_v20  ;;  %v5218_v20 = vld [vmem:[%s7625_s1 + $0x2a0] ss:$8 sps:$4 sm:$0xff]  }
  0x78   :  { %3703 = vmatpush1.bf16.msra.mxu0 %v5143_v21  ;;  %3417 = vmatprep.subr.bf16.mxu1 %v5148_v22  ;;  %v5221_v21 = vld [vmem:[%s7625_s1 + $0x9a0] ss:$8 sps:$4 sm:$0xff]   ;;  %v5226_v22 = vld [vmem:[%s7625_s1 + $0x2b4] ss:$8 sps:$4 sm:$0xff]  }
  0x79   :  { %3704 = vmatprep.subr.bf16.mxu0 %v5151_v23  ;;  %v5229_v23 = vld [vmem:[%s7625_s1 + $0x9b4] ss:$8 sps:$4 sm:$0xff]  }
  0x7b   :  { %3418 = vmatpush1.bf16.msra.mxu1 %v5146_v25  ;;  %v5227_v25 = vld [vmem:[%s7625_s1 + $0x9b0] ss:$8 sps:$4 sm:$0xff]  }
  0x7c   :  { %3705 = vmatpush1.bf16.msra.mxu0 %v5149_v26  ;;  %3419 = vmatprep.subr.bf16.mxu1 %v5154_v27  ;;  %v5232_v26 = vld [vmem:[%s7625_s1 + $0x2c4] ss:$8 sps:$4 sm:$0xff]  }
  0x7d   :  { %3706 = vmatprep.subr.bf16.mxu0 %v5157_v52  ;;  %v5235_v27 = vld [vmem:[%s7625_s1 + $0x9c4] ss:$8 sps:$4 sm:$0xff]   ;;  %v5230_v52 = vld [vmem:[%s7625_s1 + $0x2c0] ss:$8 sps:$4 sm:$0xff]  }
  0x7f   :  { %3420 = vmatpush1.bf16.msra.mxu1 %v5152_v29  ;;  %v5233_v29 = vld [vmem:[%s7625_s1 + $0x9c0] ss:$8 sps:$4 sm:$0xff]  }
  0x80   :  { %3707 = vmatpush1.bf16.msra.mxu0 %v5155_v30  ;;  %3430 = vmatprep.subr.bf16.mxu1 %v5160_v31  ;;  %v5238_v30 = vld [vmem:[%s7625_s1 + $0x2d4] ss:$8 sps:$4 sm:$0xff]  }
  0x81   :  { %3717 = vmatprep.subr.bf16.mxu0 %v5163_v32  ;;  %v5241_v31 = vld [vmem:[%s7625_s1 + $0x9d4] ss:$8 sps:$4 sm:$0xff]   ;;  %v5236_v32 = vld [vmem:[%s7625_s1 + $0x2d0] ss:$8 sps:$4 sm:$0xff]  }
  0x82   :  { %3422 = vmatmul.mubr.bf16.vlgmr.msra.gmra.mrb[0].mxu1 %v605_v34  ;;  %v5244_v34 = vld [vmem:[%s7625_s1 + $0x2e4] ss:$8 sps:$4 sm:$0xff]  }
  0x83   :  { %3709 = vmatmul.mubr.bf16.vlgmr.msra.gmra.mrb[0].mxu0 %v6280_v36  ;;  %3431 = vmatpush1.bf16.msra.mxu1 %v5158_v35  ;;  %v5247_v35 = vld [vmem:[%s7625_s1 + $0x9e4] ss:$8 sps:$4 sm:$0xff]  }
  0x84   :  { %3718 = vmatpush1.bf16.msra.mxu0 %v5161_v37  ;;  %3432 = vmatprep.subr.bf16.mxu1 %v5166_v38  ;;  %v658_v37 = vcombine.high %v6137_v48, %v6137_v48  ;;  %v5242_v38 = vld [vmem:[%s7625_s1 + $0x2e0] ss:$8 sps:$4 sm:$0xff]   ;;  %v5253_v48 = vld [vmem:[%s7625_s1 + $0x9f4] ss:$8 sps:$4 sm:$0xff]  }
  0x85   :  { %3719 = vmatprep.subr.bf16.mxu0 %v5169_v19  ;;  %3462 = vmatprep.mubr.bf16.mxu1 %v6292_v39  ;;  %v5245_v19 = vld [vmem:[%s7625_s1 + $0x9e0] ss:$8 sps:$4 sm:$0xff]  }
  0x86   :  { %3749 = vmatprep.mubr.bf16.mxu0 %v705_v40  ;;  %v5250_v40 = vld [vmem:[%s7625_s1 + $0x2f4] ss:$8 sps:$4 sm:$0xff]  }
  0x87   :  { %3433 = vmatpush1.bf16.msra.mxu1 %v5164_v41  ;;  %v6469_v41 = vrot.slane %v658_v37, %v5971_v51  ;;  %v5323_v37 = vld [vmem:[%s7625_s1 + $0xab0] ss:$8 sps:$4 sm:$0xff]  }
  0x88   :  { %3720 = vmatpush1.bf16.msra.mxu0 %v5167_v42  ;;  %3434 = vmatprep.subr.bf16.mxu1 %v5172_v43  ;;  %v5248_v42 = vld [vmem:[%s7625_s1 + $0x2f0] ss:$8 sps:$4 sm:$0xff]  }
  0x89   :  { %3721 = vmatprep.subr.bf16.mxu0 %v5175_v44  ;;  %v5251_v43 = vld [vmem:[%s7625_s1 + $0x9f0] ss:$8 sps:$4 sm:$0xff]   ;;  %v5256_v44 = vld [vmem:[%s7625_s1 + $0x304] ss:$8 sps:$4 sm:$0xff]  }
  0x8b   :  { %3435 = vmatpush1.bf16.msra.mxu1 %v5170_v46  ;;  %v5259_v46 = vld [vmem:[%s7625_s1 + $0xa04] ss:$8 sps:$4 sm:$0xff]  }
  0x8c   :  { %3722 = vmatpush1.bf16.msra.mxu0 %v5173_v47  ;;  %3436 = vmatprep.subr.bf16.mxu1 %v5178_v49  ;;  %v674_v47 = vcombine.high %v6469_v41, %v6469_v41  ;;  %v5254_v49 = vld [vmem:[%s7625_s1 + $0x300] ss:$8 sps:$4 sm:$0xff]  }
  0x8d   :  { %3723 = vmatprep.subr.bf16.mxu0 %v5181_v50  ;;  %v6490_v50 = vrot.slane %v6257_v28, %v5971_v51  ;;  %v5265_v28 = vld [vmem:[%s7625_s1 + $0xa14] ss:$8 sps:$4 sm:$0xff]  }
  0x8f   :  { %3437 = vmatpush1.bf16.msra.mxu1 %v5176_v53  ;;  %v703_v53 = vcombine.high %v6280_v36, %v6280_v36  ;;  %v6506_v36 = vrot.slane %v674_v47, %v5971_v51  ;;  %v5340_v47 = vld [vmem:[%s7625_s1 + $0x3e4] ss:$8 sps:$4 sm:$0xff]  }
  0x90   :  { %3724 = vmatpush1.bf16.msra.mxu0 %v5179_v54  ;;  %3438 = vmatprep.subr.bf16.mxu1 %v5184_v55  ;;  %v5257_v54 = vld [vmem:[%s7625_s1 + $0xa00] ss:$8 sps:$4 sm:$0xff]   ;;  %v5262_v55 = vld [vmem:[%s7625_s1 + $0x314] ss:$8 sps:$4 sm:$0xff]  }
  0x91   :  { %3725 = vmatprep.subr.bf16.mxu0 %v5187_v56  ;;  %v608_v56 = vcombine.high %v6292_v39, %v6292_v39  ;;  %v5268_v39 = vld [vmem:[%s7625_s1 + $0x324] ss:$8 sps:$4 sm:$0xff]  }
  0x93   :  { %3439 = vmatpush1.bf16.msra.mxu1 %v5182_v57  ;;  %v5260_v57 = vld [vmem:[%s7625_s1 + $0x310] ss:$8 sps:$4 sm:$0xff]  }
  0x94   :  { %3726 = vmatpush1.bf16.msra.mxu0 %v5185_v58  ;;  %3440 = vmatprep.subr.bf16.mxu1 %v5190_v59  ;;  %v5263_v58 = vld [vmem:[%s7625_s1 + $0xa10] ss:$8 sps:$4 sm:$0xff]   ;;  %v5271_v59 = vld [vmem:[%s7625_s1 + $0xa24] ss:$8 sps:$4 sm:$0xff]  }
  0x95   :  { %3727 = vmatprep.subr.bf16.mxu0 %v5193_v60  ;;  %v5266_v60 = vld [vmem:[%s7625_s1 + $0x320] ss:$8 sps:$4 sm:$0xff]  }
  0x97   :  { %3441 = vmatpush1.bf16.msra.mxu1 %v5188_v61  ;;  %v5269_v61 = vld [vmem:[%s7625_s1 + $0xa20] ss:$8 sps:$4 sm:$0xff]  }
  0x98   :  { %3728 = vmatpush1.bf16.msra.mxu0 %v5191_v62  ;;  %3442 = vmatprep.subr.bf16.mxu1 %v5196_v63  ;;  %v5274_v62 = vld [vmem:[%s7625_s1 + $0x334] ss:$8 sps:$4 sm:$0xff]  }
  0x99   :  { %3729 = vmatprep.subr.bf16.mxu0 %v5199_v0  ;;  %v5277_v63 = vld [vmem:[%s7625_s1 + $0xa34] ss:$8 sps:$4 sm:$0xff]   ;;  %v5272_v0 = vld [vmem:[%s7625_s1 + $0x330] ss:$8 sps:$4 sm:$0xff]  }
  0x9b   :  { %3443 = vmatpush1.bf16.msra.mxu1 %v5194_v1  ;;  %v5275_v1 = vld [vmem:[%s7625_s1 + $0xa30] ss:$8 sps:$4 sm:$0xff]  }
  0x9c   :  { %3730 = vmatpush1.bf16.msra.mxu0 %v5197_v2  ;;  %3444 = vmatprep.subr.bf16.mxu1 %v5202_v3  ;;  %v5280_v2 = vld [vmem:[%s7625_s1 + $0x344] ss:$8 sps:$4 sm:$0xff]  }
  0x9d   :  { %3731 = vmatprep.subr.bf16.mxu0 %v5205_v5  ;;  %v5283_v3 = vld [vmem:[%s7625_s1 + $0xa44] ss:$8 sps:$4 sm:$0xff]   ;;  %v5278_v5 = vld [vmem:[%s7625_s1 + $0x340] ss:$8 sps:$4 sm:$0xff]  }
  0x9f   :  { %3445 = vmatpush1.bf16.msra.mxu1 %v5200_v6  ;;  %v5281_v6 = vld [vmem:[%s7625_s1 + $0xa40] ss:$8 sps:$4 sm:$0xff]  }
  0xa0   :  { %3732 = vmatpush1.bf16.msra.mxu0 %v5203_v7  ;;  %3446 = vmatprep.subr.bf16.mxu1 %v5208_v8  ;;  %v5286_v7 = vld [vmem:[%s7625_s1 + $0x354] ss:$8 sps:$4 sm:$0xff]  }
  0xa1   :  { %3733 = vmatprep.subr.bf16.mxu0 %v5211_v9  ;;  %v5289_v8 = vld [vmem:[%s7625_s1 + $0xa54] ss:$8 sps:$4 sm:$0xff]   ;;  %v5284_v9 = vld [vmem:[%s7625_s1 + $0x350] ss:$8 sps:$4 sm:$0xff]  }
  0xa3   :  { %3447 = vmatpush1.bf16.msra.mxu1 %v5206_v10  ;;  %v5287_v10 = vld [vmem:[%s7625_s1 + $0xa50] ss:$8 sps:$4 sm:$0xff]  }
  0xa4   :  { %3734 = vmatpush1.bf16.msra.mxu0 %v5209_v11  ;;  %3448 = vmatprep.subr.bf16.mxu1 %v5214_v12  ;;  %v5292_v11 = vld [vmem:[%s7625_s1 + $0x364] ss:$8 sps:$4 sm:$0xff]  }
  0xa5   :  { %3735 = vmatprep.subr.bf16.mxu0 %v5217_v13  ;;  %v5295_v12 = vld [vmem:[%s7625_s1 + $0xa64] ss:$8 sps:$4 sm:$0xff]   ;;  %v5290_v13 = vld [vmem:[%s7625_s1 + $0x360] ss:$8 sps:$4 sm:$0xff]  }
  0xa7   :  { %3449 = vmatpush1.bf16.msra.mxu1 %v5212_v15  ;;  %v5293_v15 = vld [vmem:[%s7625_s1 + $0xa60] ss:$8 sps:$4 sm:$0xff]  }
  0xa8   :  { %3736 = vmatpush1.bf16.msra.mxu0 %v5215_v16  ;;  %3450 = vmatprep.subr.bf16.mxu1 %v5220_v17  ;;  %v5298_v16 = vld [vmem:[%s7625_s1 + $0x374] ss:$8 sps:$4 sm:$0xff]  }
  0xa9   :  { %3737 = vmatprep.subr.bf16.mxu0 %v5223_v18  ;;  %v5301_v17 = vld [vmem:[%s7625_s1 + $0xa74] ss:$8 sps:$4 sm:$0xff]   ;;  %v5296_v18 = vld [vmem:[%s7625_s1 + $0x370] ss:$8 sps:$4 sm:$0xff]  }
  0xab   :  { %3451 = vmatpush1.bf16.msra.mxu1 %v5218_v20  ;;  %v5299_v20 = vld [vmem:[%s7625_s1 + $0xa70] ss:$8 sps:$4 sm:$0xff]  }
  0xac   :  { %3738 = vmatpush1.bf16.msra.mxu0 %v5221_v21  ;;  %3452 = vmatprep.subr.bf16.mxu1 %v5226_v22  ;;  %v5304_v21 = vld [vmem:[%s7625_s1 + $0x384] ss:$8 sps:$4 sm:$0xff]  }
  0xad   :  { %3739 = vmatprep.subr.bf16.mxu0 %v5229_v23  ;;  %v5307_v22 = vld [vmem:[%s7625_s1 + $0xa84] ss:$8 sps:$4 sm:$0xff]   ;;  %v5302_v23 = vld [vmem:[%s7625_s1 + $0x380] ss:$8 sps:$4 sm:$0xff]  }
  0xaf   :  { %3453 = vmatpush1.bf16.msra.mxu1 %v5224_v24  ;;  %v5305_v24 = vld [vmem:[%s7625_s1 + $0xa80] ss:$8 sps:$4 sm:$0xff]  }
  0xb0   :  { %3740 = vmatpush1.bf16.msra.mxu0 %v5227_v25  ;;  %3454 = vmatprep.subr.bf16.mxu1 %v5232_v26  ;;  %v5310_v25 = vld [vmem:[%s7625_s1 + $0x394] ss:$8 sps:$4 sm:$0xff]  }
  0xb1   :  { %3741 = vmatprep.subr.bf16.mxu0 %v5235_v27  ;;  %v5313_v26 = vld [vmem:[%s7625_s1 + $0xa94] ss:$8 sps:$4 sm:$0xff]   ;;  %v5308_v27 = vld [vmem:[%s7625_s1 + $0x390] ss:$8 sps:$4 sm:$0xff]  }
  0xb3   :  { %3455 = vmatpush1.bf16.msra.mxu1 %v5230_v52  ;;  %v5311_v52 = vld [vmem:[%s7625_s1 + $0xa90] ss:$8 sps:$4 sm:$0xff]  }
  0xb4   :  { %3742 = vmatpush1.bf16.msra.mxu0 %v5233_v29  ;;  %3456 = vmatprep.subr.bf16.mxu1 %v5238_v30  ;;  %v5316_v29 = vld [vmem:[%s7625_s1 + $0x3a4] ss:$8 sps:$4 sm:$0xff]  }
  0xb5   :  { %3743 = vmatprep.subr.bf16.mxu0 %v5241_v31  ;;  %v5319_v30 = vld [vmem:[%s7625_s1 + $0xaa4] ss:$8 sps:$4 sm:$0xff]   ;;  %v5314_v31 = vld [vmem:[%s7625_s1 + $0x3a0] ss:$8 sps:$4 sm:$0xff]  }
  0xb7   :  { %3457 = vmatpush1.bf16.msra.mxu1 %v5236_v32  ;;  %v5317_v32 = vld [vmem:[%s7625_s1 + $0xaa0] ss:$8 sps:$4 sm:$0xff]  }
  0xb8   :  { %3744 = vmatpush1.bf16.msra.mxu0 %v5239_v33  ;;  %3458 = vmatprep.subr.bf16.mxu1 %v5244_v34  ;;  %v5322_v33 = vld [vmem:[%s7625_s1 + $0x3b4] ss:$8 sps:$4 sm:$0xff]  }
  0xb9   :  { %3745 = vmatprep.subr.bf16.mxu0 %v5247_v35  ;;  %v5325_v34 = vld [vmem:[%s7625_s1 + $0xab4] ss:$8 sps:$4 sm:$0xff]   ;;  %v5320_v35 = vld [vmem:[%s7625_s1 + $0x3b0] ss:$8 sps:$4 sm:$0xff]  }
  0xbb   :  { %3459 = vmatpush1.bf16.msra.mxu1 %v5242_v38  ;;  %v5328_v38 = vld [vmem:[%s7625_s1 + $0x3c4] ss:$8 sps:$4 sm:$0xff]  }
  0xbc   :  { %3746 = vmatpush1.bf16.msra.mxu0 %v5245_v19  ;;  %3460 = vmatprep.subr.bf16.mxu1 %v5250_v40  ;;  %v5331_v19 = vld [vmem:[%s7625_s1 + $0xac4] ss:$8 sps:$4 sm:$0xff]   ;;  %v5326_v40 = vld [vmem:[%s7625_s1 + $0x3c0] ss:$8 sps:$4 sm:$0xff]  }
  0xbd   :  { %3747 = vmatprep.subr.bf16.mxu0 %v5253_v48  ;;  %v5329_v48 = vld [vmem:[%s7625_s1 + $0xac0] ss:$8 sps:$4 sm:$0xff]  }
  0xbf   :  { %3461 = vmatpush1.bf16.msra.mxu1 %v5248_v42  ;;  %v5334_v42 = vld [vmem:[%s7625_s1 + $0x3d4] ss:$8 sps:$4 sm:$0xff]  }
  0xc0   :  { %3748 = vmatpush1.bf16.msra.mxu0 %v5251_v43  ;;  %3471 = vmatprep.subr.bf16.mxu1 %v5256_v44  ;;  %v5337_v43 = vld [vmem:[%s7625_s1 + $0xad4] ss:$8 sps:$4 sm:$0xff]   ;;  %v5332_v44 = vld [vmem:[%s7625_s1 + $0x3d0] ss:$8 sps:$4 sm:$0xff]  }
  0xc1   :  { %3758 = vmatprep.subr.bf16.mxu0 %v5259_v46  ;;  %v5335_v46 = vld [vmem:[%s7625_s1 + $0xad0] ss:$8 sps:$4 sm:$0xff]  }
  0xc2   :  { %3463 = vmatmul.mubr.bf16.vlgmr.msra.gmra.mrb[0].mxu1 %v6490_v50 }
  0xc3   :  { %3750 = vmatmul.mubr.bf16.vlgmr.msra.gmra.mrb[0].mxu0 %v703_v53  ;;  %3472 = vmatpush1.bf16.msra.mxu1 %v5254_v49  ;;  %v5343_v49 = vld [vmem:[%s7625_s1 + $0xae4] ss:$8 sps:$4 sm:$0xff]   ;;  %v5338_v53 = vld [vmem:[%s7625_s1 + $0x3e0] ss:$8 sps:$4 sm:$0xff]  }
  0xc4   :  { %3759 = vmatpush1.bf16.msra.mxu0 %v5257_v54  ;;  %3473 = vmatprep.subr.bf16.mxu1 %v5262_v55  ;;  %v5341_v54 = vld [vmem:[%s7625_s1 + $0xae0] ss:$8 sps:$4 sm:$0xff]   ;;  %v5346_v55 = vld [vmem:[%s7625_s1 + $0x3f4] ss:$8 sps:$4 sm:$0xff]  }
  0xc5   :  { %3760 = vmatprep.subr.bf16.mxu0 %v5265_v28  ;;  %3503 = vmatprep.mubr.bf16.mxu1 %v608_v56  ;;  %v5349_v28 = vld [vmem:[%s7625_s1 + $0xaf4] ss:$8 sps:$4 sm:$0xff]   ;;  %v6681_v56 = vld.sshfl [vmem:[%s7624_s0 + $0x8] sm:$0xff pattern:$0x75316420] }
  0xc6   :  { %3790 = vmatprep.mubr.bf16.mxu0 %v6506_v36 }
  0xc7   :  { %3474 = vmatpush1.bf16.msra.mxu1 %v5260_v57  ;;  %v5344_v57 = vld [vmem:[%s7625_s1 + $0x3f0] ss:$8 sps:$4 sm:$0xff]  }
  0xc8   :  { %3761 = vmatpush1.bf16.msra.mxu0 %v5263_v58  ;;  %3475 = vmatprep.subr.bf16.mxu1 %v5268_v39  ;;  %v5347_v58 = vld [vmem:[%s7625_s1 + $0xaf0] ss:$8 sps:$4 sm:$0xff]   ;;  %v5352_v39 = vld [vmem:[%s7625_s1 + $0x404] ss:$8 sps:$4 sm:$0xff]  }
  0xc9   :  { %3762 = vmatprep.subr.bf16.mxu0 %v5271_v59  ;;  %v5356_v59 = vld [vmem:[%s7625_s1 + $0xb04] ss:$8 sps:$4 sm:$0xff]  }
  0xcb   :  { %3476 = vmatpush1.bf16.msra.mxu1 %v5266_v60  ;;  %v624_v60 = vcombine.high %v6681_v56, %v6681_v56 }
  0xcc   :  { %3763 = vmatpush1.bf16.msra.mxu0 %v5269_v61  ;;  %3477 = vmatprep.subr.bf16.mxu1 %v5274_v62  ;;  %v5350_v61 = vld [vmem:[%s7625_s1 + $0x400] ss:$8 sps:$4 sm:$0xff]   ;;  %v606_v62 = vcombine.high %v6490_v50, %v6490_v50  ;;  %v5362_v50 = vld [vmem:[%s7625_s1 + $0xb14] ss:$8 sps:$4 sm:$0xff]  }
  0xcd   :  { %3764 = vmatprep.subr.bf16.mxu0 %v5277_v63  ;;  %v6704_v63 = vrot.slane %v6469_v41, %v5971_v51  ;;  %v706_v41 = vcombine.high %v6506_v36, %v6506_v36  ;;  %v5368_v36 = vld [vmem:[%s7625_s1 + $0xb24] ss:$8 sps:$4 sm:$0xff]  }
  0xcf   :  { %3478 = vmatpush1.bf16.msra.mxu1 %v5272_v0  ;;  %v5354_v0 = vld [vmem:[%s7625_s1 + $0xb00] ss:$8 sps:$4 sm:$0xff]  }
  0xd0   :  { %3765 = vmatpush1.bf16.msra.mxu0 %v5275_v1  ;;  %3479 = vmatprep.subr.bf16.mxu1 %v5280_v2  ;;  %v5359_v1 = vld [vmem:[%s7625_s1 + $0x414] ss:$8 sps:$4 sm:$0xff]   ;;  %v6716_v2 = vrot.slane %v624_v60, %v5971_v51  ;;  %v5437_v60 = vld [vmem:[%s7625_s1 + $0x4e4] ss:$8 sps:$4 sm:$0xff]  }
  0xd1   :  { %3766 = vmatprep.subr.bf16.mxu0 %v5283_v3  ;;  %v5357_v3 = vld [vmem:[%s7625_s1 + $0x410] ss:$8 sps:$4 sm:$0xff]  }
  0xd3   :  { %3480 = vmatpush1.bf16.msra.mxu1 %v5278_v5  ;;  %v5360_v5 = vld [vmem:[%s7625_s1 + $0xb10] ss:$8 sps:$4 sm:$0xff]  }
  0xd4   :  { %3767 = vmatpush1.bf16.msra.mxu0 %v5281_v6  ;;  %3481 = vmatprep.subr.bf16.mxu1 %v5286_v7  ;;  %v5365_v6 = vld [vmem:[%s7625_s1 + $0x424] ss:$8 sps:$4 sm:$0xff]   ;;  %v5363_v7 = vld [vmem:[%s7625_s1 + $0x420] ss:$8 sps:$4 sm:$0xff]  }
  0xd5   :  { %3768 = vmatprep.subr.bf16.mxu0 %v5289_v8  ;;  %v5366_v8 = vld [vmem:[%s7625_s1 + $0xb20] ss:$8 sps:$4 sm:$0xff]  }
  0xd7   :  { %3482 = vmatpush1.bf16.msra.mxu1 %v5284_v9  ;;  %v5371_v9 = vld [vmem:[%s7625_s1 + $0x434] ss:$8 sps:$4 sm:$0xff]  }
  0xd8   :  { %3769 = vmatpush1.bf16.msra.mxu0 %v5287_v10  ;;  %3483 = vmatprep.subr.bf16.mxu1 %v5292_v11  ;;  %v5374_v10 = vld [vmem:[%s7625_s1 + $0xb34] ss:$8 sps:$4 sm:$0xff]   ;;  %v5369_v11 = vld [vmem:[%s7625_s1 + $0x430] ss:$8 sps:$4 sm:$0xff]  }
  0xd9   :  { %3770 = vmatprep.subr.bf16.mxu0 %v5295_v12  ;;  %v5372_v12 = vld [vmem:[%s7625_s1 + $0xb30] ss:$8 sps:$4 sm:$0xff]  }
  0xdb   :  { %3484 = vmatpush1.bf16.msra.mxu1 %v5290_v13  ;;  %v5377_v13 = vld [vmem:[%s7625_s1 + $0x444] ss:$8 sps:$4 sm:$0xff]  }
  0xdc   :  { %3771 = vmatpush1.bf16.msra.mxu0 %v5293_v15  ;;  %3485 = vmatprep.subr.bf16.mxu1 %v5298_v16  ;;  %v5380_v15 = vld [vmem:[%s7625_s1 + $0xb44] ss:$8 sps:$4 sm:$0xff]   ;;  %v5375_v16 = vld [vmem:[%s7625_s1 + $0x440] ss:$8 sps:$4 sm:$0xff]  }
  0xdd   :  { %3772 = vmatprep.subr.bf16.mxu0 %v5301_v17  ;;  %v5378_v17 = vld [vmem:[%s7625_s1 + $0xb40] ss:$8 sps:$4 sm:$0xff]  }
  0xdf   :  { %3486 = vmatpush1.bf16.msra.mxu1 %v5296_v18  ;;  %v5383_v18 = vld [vmem:[%s7625_s1 + $0x454] ss:$8 sps:$4 sm:$0xff]  }
  0xe0   :  { %3773 = vmatpush1.bf16.msra.mxu0 %v5299_v20  ;;  %3487 = vmatprep.subr.bf16.mxu1 %v5304_v21  ;;  %v5386_v20 = vld [vmem:[%s7625_s1 + $0xb54] ss:$8 sps:$4 sm:$0xff]   ;;  %v5381_v21 = vld [vmem:[%s7625_s1 + $0x450] ss:$8 sps:$4 sm:$0xff]  }
  0xe1   :  { %3774 = vmatprep.subr.bf16.mxu0 %v5307_v22  ;;  %v5384_v22 = vld [vmem:[%s7625_s1 + $0xb50] ss:$8 sps:$4 sm:$0xff]  }
  0xe3   :  { %3488 = vmatpush1.bf16.msra.mxu1 %v5302_v23  ;;  %v5389_v23 = vld [vmem:[%s7625_s1 + $0x464] ss:$8 sps:$4 sm:$0xff]  }
  0xe4   :  { %3775 = vmatpush1.bf16.msra.mxu0 %v5305_v24  ;;  %3489 = vmatprep.subr.bf16.mxu1 %v5310_v25  ;;  %v5392_v24 = vld [vmem:[%s7625_s1 + $0xb64] ss:$8 sps:$4 sm:$0xff]   ;;  %v5387_v25 = vld [vmem:[%s7625_s1 + $0x460] ss:$8 sps:$4 sm:$0xff]  }
  0xe5   :  { %3776 = vmatprep.subr.bf16.mxu0 %v5313_v26  ;;  %v5390_v26 = vld [vmem:[%s7625_s1 + $0xb60] ss:$8 sps:$4 sm:$0xff]  }
  0xe7   :  { %3490 = vmatpush1.bf16.msra.mxu1 %v5308_v27  ;;  %v5395_v27 = vld [vmem:[%s7625_s1 + $0x474] ss:$8 sps:$4 sm:$0xff]  }
  0xe8   :  { %3777 = vmatpush1.bf16.msra.mxu0 %v5311_v52  ;;  %3491 = vmatprep.subr.bf16.mxu1 %v5316_v29  ;;  %v5398_v52 = vld [vmem:[%s7625_s1 + $0xb74] ss:$8 sps:$4 sm:$0xff]   ;;  %v5393_v29 = vld [vmem:[%s7625_s1 + $0x470] ss:$8 sps:$4 sm:$0xff]  }
  0xe9   :  { %3778 = vmatprep.subr.bf16.mxu0 %v5319_v30  ;;  %v5396_v30 = vld [vmem:[%s7625_s1 + $0xb70] ss:$8 sps:$4 sm:$0xff]  }
  0xeb   :  { %3492 = vmatpush1.bf16.msra.mxu1 %v5314_v31  ;;  %v5401_v31 = vld [vmem:[%s7625_s1 + $0x484] ss:$8 sps:$4 sm:$0xff]  }
  0xec   :  { %3779 = vmatpush1.bf16.msra.mxu0 %v5317_v32  ;;  %3493 = vmatprep.subr.bf16.mxu1 %v5322_v33  ;;  %v5404_v32 = vld [vmem:[%s7625_s1 + $0xb84] ss:$8 sps:$4 sm:$0xff]   ;;  %v5399_v33 = vld [vmem:[%s7625_s1 + $0x480] ss:$8 sps:$4 sm:$0xff]  }
  0xed   :  { %3780 = vmatprep.subr.bf16.mxu0 %v5325_v34  ;;  %v5402_v34 = vld [vmem:[%s7625_s1 + $0xb80] ss:$8 sps:$4 sm:$0xff]  }
  0xef   :  { %3494 = vmatpush1.bf16.msra.mxu1 %v5320_v35  ;;  %v5407_v35 = vld [vmem:[%s7625_s1 + $0x494] ss:$8 sps:$4 sm:$0xff]  }
  0xf0   :  { %3781 = vmatpush1.bf16.msra.mxu0 %v5323_v37  ;;  %3495 = vmatprep.subr.bf16.mxu1 %v5328_v38  ;;  %v5410_v37 = vld [vmem:[%s7625_s1 + $0xb94] ss:$8 sps:$4 sm:$0xff]   ;;  %v5405_v38 = vld [vmem:[%s7625_s1 + $0x490] ss:$8 sps:$4 sm:$0xff]  }
  0xf1   :  { %3782 = vmatprep.subr.bf16.mxu0 %v5331_v19  ;;  %v5408_v19 = vld [vmem:[%s7625_s1 + $0xb90] ss:$8 sps:$4 sm:$0xff]  }
  0xf3   :  { %3496 = vmatpush1.bf16.msra.mxu1 %v5326_v40  ;;  %v5413_v40 = vld [vmem:[%s7625_s1 + $0x4a4] ss:$8 sps:$4 sm:$0xff]  }
  0xf4   :  { %3783 = vmatpush1.bf16.msra.mxu0 %v5329_v48  ;;  %3497 = vmatprep.subr.bf16.mxu1 %v5334_v42  ;;  %v5416_v48 = vld [vmem:[%s7625_s1 + $0xba4] ss:$8 sps:$4 sm:$0xff]   ;;  %v5411_v42 = vld [vmem:[%s7625_s1 + $0x4a0] ss:$8 sps:$4 sm:$0xff]  }
  0xf5   :  { %3784 = vmatprep.subr.bf16.mxu0 %v5337_v43  ;;  %v5414_v43 = vld [vmem:[%s7625_s1 + $0xba0] ss:$8 sps:$4 sm:$0xff]  }
  0xf7   :  { %3498 = vmatpush1.bf16.msra.mxu1 %v5332_v44  ;;  %v5419_v44 = vld [vmem:[%s7625_s1 + $0x4b4] ss:$8 sps:$4 sm:$0xff]  }
  0xf8   :  { %3785 = vmatpush1.bf16.msra.mxu0 %v5335_v46  ;;  %3499 = vmatprep.subr.bf16.mxu1 %v5340_v47  ;;  %v5422_v46 = vld [vmem:[%s7625_s1 + $0xbb4] ss:$8 sps:$4 sm:$0xff]   ;;  %v5417_v47 = vld [vmem:[%s7625_s1 + $0x4b0] ss:$8 sps:$4 sm:$0xff]  }
  0xf9   :  { %3786 = vmatprep.subr.bf16.mxu0 %v5343_v49  ;;  %v5420_v49 = vld [vmem:[%s7625_s1 + $0xbb0] ss:$8 sps:$4 sm:$0xff]  }
  0xfb   :  { %3500 = vmatpush1.bf16.msra.mxu1 %v5338_v53  ;;  %v5425_v53 = vld [vmem:[%s7625_s1 + $0x4c4] ss:$8 sps:$4 sm:$0xff]  }
  0xfc   :  { %3787 = vmatpush1.bf16.msra.mxu0 %v5341_v54  ;;  %3501 = vmatprep.subr.bf16.mxu1 %v5346_v55  ;;  %v5428_v54 = vld [vmem:[%s7625_s1 + $0xbc4] ss:$8 sps:$4 sm:$0xff]   ;;  %v5423_v55 = vld [vmem:[%s7625_s1 + $0x4c0] ss:$8 sps:$4 sm:$0xff]  }
  0xfd   :  { %3788 = vmatprep.subr.bf16.mxu0 %v5349_v28  ;;  %v5426_v28 = vld [vmem:[%s7625_s1 + $0xbc0] ss:$8 sps:$4 sm:$0xff]  }
  0xff   :  { %3502 = vmatpush1.bf16.msra.mxu1 %v5344_v57  ;;  %v5431_v57 = vld [vmem:[%s7625_s1 + $0x4d4] ss:$8 sps:$4 sm:$0xff]  }
 0x100   :  { %3789 = vmatpush1.bf16.msra.mxu0 %v5347_v58  ;;  %3512 = vmatprep.subr.bf16.mxu1 %v5352_v39  ;;  %v5434_v58 = vld [vmem:[%s7625_s1 + $0xbd4] ss:$8 sps:$4 sm:$0xff]   ;;  %v5429_v39 = vld [vmem:[%s7625_s1 + $0x4d0] ss:$8 sps:$4 sm:$0xff]  }
 0x101   :  { %3799 = vmatprep.subr.bf16.mxu0 %v5356_v59  ;;  %v5432_v59 = vld [vmem:[%s7625_s1 + $0xbd0] ss:$8 sps:$4 sm:$0xff]  }
 0x102   :  { %3504 = vmatmul.mubr.bf16.vlgmr.msra.gmra.mrb[0].mxu1 %v606_v62  ;;  %v6881_v62 = vld [vmem:[%s7624_s0 + $0x18] sm:$0xff] }
 0x103   :  { %3791 = vmatmul.mubr.bf16.vlgmr.msra.gmra.mrb[0].mxu0 %v6704_v63  ;;  %3513 = vmatpush1.bf16.msra.mxu1 %v5350_v61  ;;  %v5440_v61 = vld [vmem:[%s7625_s1 + $0xbe4] ss:$8 sps:$4 sm:$0xff]  }
 0x104   :  { %3800 = vmatpush1.bf16.msra.mxu0 %v5354_v0  ;;  %3514 = vmatprep.subr.bf16.mxu1 %v5359_v1  ;;  %v5435_v0 = vld [vmem:[%s7625_s1 + $0x4e0] ss:$8 sps:$4 sm:$0xff]  }
 0x105   :  { %3801 = vmatprep.subr.bf16.mxu0 %v5362_v50  ;;  %3544 = vmatprep.mubr.bf16.mxu1 %v6716_v2  ;;  %v5438_v1 = vld [vmem:[%s7625_s1 + $0xbe0] ss:$8 sps:$4 sm:$0xff]   ;;  %v5443_v50 = vld [vmem:[%s7625_s1 + $0x4f4] ss:$8 sps:$4 sm:$0xff]  }
 0x106   :  { %3831 = vmatprep.mubr.bf16.mxu0 %v706_v41  ;;  %v5446_v41 = vld [vmem:[%s7625_s1 + $0xbf4] ss:$8 sps:$4 sm:$0xff]  }
 0x107   :  { %3515 = vmatpush1.bf16.msra.mxu1 %v5357_v3  ;;  %v6897_v3 = vrot.slane %v6881_v62, %v5971_v51 }
 0x108   :  { %3802 = vmatpush1.bf16.msra.mxu0 %v5360_v5  ;;  %3516 = vmatprep.subr.bf16.mxu1 %v5365_v6  ;;  %v5441_v5 = vld [vmem:[%s7625_s1 + $0x4f0] ss:$8 sps:$4 sm:$0xff]  }
 0x109   :  { %3803 = vmatprep.subr.bf16.mxu0 %v5368_v36  ;;  %v5444_v6 = vld [vmem:[%s7625_s1 + $0xbf0] ss:$8 sps:$4 sm:$0xff]   ;;  %v5449_v36 = vld [vmem:[%s7625_s1 + $0x504] ss:$8 sps:$4 sm:$0xff]  }
 0x10b   :  { %3517 = vmatpush1.bf16.msra.mxu1 %v5363_v7  ;;  %v5452_v7 = vld [vmem:[%s7625_s1 + $0xc04] ss:$8 sps:$4 sm:$0xff]  }
 0x10c   :  { %3804 = vmatpush1.bf16.msra.mxu0 %v5366_v8  ;;  %3518 = vmatprep.subr.bf16.mxu1 %v5371_v9  ;;  %v5447_v8 = vld [vmem:[%s7625_s1 + $0x500] ss:$8 sps:$4 sm:$0xff]  }
 0x10d   :  { %3805 = vmatprep.subr.bf16.mxu0 %v5374_v10  ;;  %v5450_v9 = vld [vmem:[%s7625_s1 + $0xc00] ss:$8 sps:$4 sm:$0xff]   ;;  %v722_v10 = vcombine.high %v6897_v3, %v6897_v3 }
 0x10f   :  { %3519 = vmatpush1.bf16.msra.mxu1 %v5369_v11  ;;  %v6921_v11 = vrot.slane %v6681_v56, %v5971_v51  ;;  %v5453_v56 = vld [vmem:[%s7625_s1 + $0x510] ss:$8 sps:$4 sm:$0xff]  }
 0x110   :  { %3806 = vmatpush1.bf16.msra.mxu0 %v5372_v12  ;;  %3520 = vmatprep.subr.bf16.mxu1 %v5377_v13  ;;  %v704_v12 = vcombine.high %v6704_v63, %v6704_v63  ;;  %v5455_v13 = vld [vmem:[%s7625_s1 + $0x514] ss:$8 sps:$4 sm:$0xff]   ;;  %v5456_v63 = vld [vmem:[%s7625_s1 + $0xc10] ss:$8 sps:$4 sm:$0xff]  }
 0x111   :  { %3807 = vmatprep.subr.bf16.mxu0 %v5380_v15  ;;  %v5458_v15 = vld [vmem:[%s7625_s1 + $0xc14] ss:$8 sps:$4 sm:$0xff]  }
 0x113   :  { %3521 = vmatpush1.bf16.msra.mxu1 %v5375_v16  ;;  %v656_v16 = vcombine.high %v6716_v2, %v6716_v2  ;;  %v5459_v2 = vld [vmem:[%s7625_s1 + $0x520] ss:$8 sps:$4 sm:$0xff]  }
 0x114   :  { %3808 = vmatpush1.bf16.msra.mxu0 %v5378_v17  ;;  %3522 = vmatprep.subr.bf16.mxu1 %v5383_v18  ;;  %v6940_v17 = vrot.slane %v722_v10, %v5971_v51  ;;  %v5461_v18 = vld [vmem:[%s7625_s1 + $0x524] ss:$8 sps:$4 sm:$0xff]  }
 0x115   :  { %3809 = vmatprep.subr.bf16.mxu0 %v5386_v20  ;;  %v5464_v20 = vld [vmem:[%s7625_s1 + $0xc24] ss:$8 sps:$4 sm:$0xff]  }
 0x117   :  { %3523 = vmatpush1.bf16.msra.mxu1 %v5381_v21  ;;  %v5462_v21 = vld [vmem:[%s7625_s1 + $0xc20] ss:$8 sps:$4 sm:$0xff]  }
 0x118   :  { %3810 = vmatpush1.bf16.msra.mxu0 %v5384_v22  ;;  %3524 = vmatprep.subr.bf16.mxu1 %v5389_v23  ;;  %v5467_v22 = vld [vmem:[%s7625_s1 + $0x534] ss:$8 sps:$4 sm:$0xff]  }
 0x119   :  { %3811 = vmatprep.subr.bf16.mxu0 %v5392_v24  ;;  %v5470_v23 = vld [vmem:[%s7625_s1 + $0xc34] ss:$8 sps:$4 sm:$0xff]   ;;  %v5465_v24 = vld [vmem:[%s7625_s1 + $0x530] ss:$8 sps:$4 sm:$0xff]  }
 0x11b   :  { %3525 = vmatpush1.bf16.msra.mxu1 %v5387_v25  ;;  %v5468_v25 = vld [vmem:[%s7625_s1 + $0xc30] ss:$8 sps:$4 sm:$0xff]  }
 0x11c   :  { %3812 = vmatpush1.bf16.msra.mxu0 %v5390_v26  ;;  %3526 = vmatprep.subr.bf16.mxu1 %v5395_v27  ;;  %v5473_v26 = vld [vmem:[%s7625_s1 + $0x544] ss:$8 sps:$4 sm:$0xff]  }
 0x11d   :  { %3813 = vmatprep.subr.bf16.mxu0 %v5398_v52  ;;  %v5476_v27 = vld [vmem:[%s7625_s1 + $0xc44] ss:$8 sps:$4 sm:$0xff]   ;;  %v5471_v52 = vld [vmem:[%s7625_s1 + $0x540] ss:$8 sps:$4 sm:$0xff]  }
 0x11f   :  { %3527 = vmatpush1.bf16.msra.mxu1 %v5393_v29  ;;  %v5474_v29 = vld [vmem:[%s7625_s1 + $0xc40] ss:$8 sps:$4 sm:$0xff]  }
 0x120   :  { %3814 = vmatpush1.bf16.msra.mxu0 %v5396_v30  ;;  %3528 = vmatprep.subr.bf16.mxu1 %v5401_v31  ;;  %v5479_v30 = vld [vmem:[%s7625_s1 + $0x554] ss:$8 sps:$4 sm:$0xff]  }
 0x121   :  { %3815 = vmatprep.subr.bf16.mxu0 %v5404_v32  ;;  %v5482_v31 = vld [vmem:[%s7625_s1 + $0xc54] ss:$8 sps:$4 sm:$0xff]   ;;  %v5477_v32 = vld [vmem:[%s7625_s1 + $0x550] ss:$8 sps:$4 sm:$0xff]  }
 0x123   :  { %3529 = vmatpush1.bf16.msra.mxu1 %v5399_v33  ;;  %v5480_v33 = vld [vmem:[%s7625_s1 + $0xc50] ss:$8 sps:$4 sm:$0xff]  }
 0x124   :  { %3816 = vmatpush1.bf16.msra.mxu0 %v5402_v34  ;;  %3530 = vmatprep.subr.bf16.mxu1 %v5407_v35  ;;  %v5485_v34 = vld [vmem:[%s7625_s1 + $0x564] ss:$8 sps:$4 sm:$0xff]  }
 0x125   :  { %3817 = vmatprep.subr.bf16.mxu0 %v5410_v37  ;;  %v5488_v35 = vld [vmem:[%s7625_s1 + $0xc64] ss:$8 sps:$4 sm:$0xff]  }
 0x127   :  { %3531 = vmatpush1.bf16.msra.mxu1 %v5405_v38 }
 0x128   :  { %3818 = vmatpush1.bf16.msra.mxu0 %v5408_v19  ;;  %3532 = vmatprep.subr.bf16.mxu1 %v5413_v40 }
 0x129   :  { %3819 = vmatprep.subr.bf16.mxu0 %v5416_v48 }
 0x12b   :  { %3533 = vmatpush1.bf16.msra.mxu1 %v5411_v42 }
 0x12c   :  { %3820 = vmatpush1.bf16.msra.mxu0 %v5414_v43  ;;  %3534 = vmatprep.subr.bf16.mxu1 %v5419_v44 }
 0x12d   :  { %3821 = vmatprep.subr.bf16.mxu0 %v5422_v46 }
 0x12f   :  { %3535 = vmatpush1.bf16.msra.mxu1 %v5417_v47 }
 0x130   :  { %3822 = vmatpush1.bf16.msra.mxu0 %v5420_v49  ;;  %3536 = vmatprep.subr.bf16.mxu1 %v5425_v53 }
 0x131   :  { %3823 = vmatprep.subr.bf16.mxu0 %v5428_v54 }
 0x133   :  { %3537 = vmatpush1.bf16.msra.mxu1 %v5423_v55 }
 0x134   :  { %3824 = vmatpush1.bf16.msra.mxu0 %v5426_v28  ;;  %3538 = vmatprep.subr.bf16.mxu1 %v5431_v57 }
 0x135   :  { %3825 = vmatprep.subr.bf16.mxu0 %v5434_v58 }
 0x137   :  { %3539 = vmatpush1.bf16.msra.mxu1 %v5429_v39 }
 0x138   :  { %3826 = vmatpush1.bf16.msra.mxu0 %v5432_v59  ;;  %3540 = vmatprep.subr.bf16.mxu1 %v5437_v60 }
 0x139   :  { %3827 = vmatprep.subr.bf16.mxu0 %v5440_v61 }
 0x13b   :  { %3541 = vmatpush1.bf16.msra.mxu1 %v5435_v0 }
 0x13c   :  { %3828 = vmatpush1.bf16.msra.mxu0 %v5438_v1  ;;  %3542 = vmatprep.subr.bf16.mxu1 %v5443_v50 }
 0x13d   :  { %3829 = vmatprep.subr.bf16.mxu0 %v5446_v41 }
 0x13f   :  { %3543 = vmatpush1.bf16.msra.mxu1 %v5441_v5 }
 0x140   :  { %3830 = vmatpush1.bf16.msra.mxu0 %v5444_v6  ;;  %3553 = vmatprep.subr.bf16.mxu1 %v5449_v36 }
 0x141   :  { %3840 = vmatprep.subr.bf16.mxu0 %v5452_v7 }
 0x142   :  { %3545 = vmatmul.mubr.bf16.vlgmr.msra.gmra.mrb[0].mxu1 %v6921_v11 }
 0x143   :  { %3832 = vmatmul.mubr.bf16.vlgmr.msra.gmra.mrb[0].mxu0 %v704_v12  ;;  %3554 = vmatpush1.bf16.msra.mxu1 %v5447_v8 }
 0x144   :  { %3841 = vmatpush1.bf16.msra.mxu0 %v5450_v9  ;;  %3555 = vmatprep.subr.bf16.mxu1 %v5455_v13 }
 0x145   :  { %3842 = vmatprep.subr.bf16.mxu0 %v5458_v15  ;;  %3585 = vmatprep.mubr.bf16.mxu1 %v656_v16 }
 0x146   :  { %3872 = vmatprep.mubr.bf16.mxu0 %v6940_v17 }
 0x147   :  { %3556 = vmatpush1.bf16.msra.mxu1 %v5453_v56 }
 0x148   :  { %3843 = vmatpush1.bf16.msra.mxu0 %v5456_v63  ;;  %3557 = vmatprep.subr.bf16.mxu1 %v5461_v18 }
 0x149   :  { %3844 = vmatprep.subr.bf16.mxu0 %v5464_v20 }
 0x14b   :  { %3558 = vmatpush1.bf16.msra.mxu1 %v5459_v2 }
 0x14c   :  { %3845 = vmatpush1.bf16.msra.mxu0 %v5462_v21  ;;  %3559 = vmatprep.subr.bf16.mxu1 %v5467_v22 }
 0x14d   :  { %3846 = vmatprep.subr.bf16.mxu0 %v5470_v23 }
 0x14f   :  { %3560 = vmatpush1.bf16.msra.mxu1 %v5465_v24 }
 0x150   :  { %3847 = vmatpush1.bf16.msra.mxu0 %v5468_v25  ;;  %3561 = vmatprep.subr.bf16.mxu1 %v5473_v26 }
 0x151   :  { %3848 = vmatprep.subr.bf16.mxu0 %v5476_v27 }
 0x153   :  { %3562 = vmatpush1.bf16.msra.mxu1 %v5471_v52 }
 0x154   :  { %3849 = vmatpush1.bf16.msra.mxu0 %v5474_v29  ;;  %3563 = vmatprep.subr.bf16.mxu1 %v5479_v30 }
 0x155   :  { %3850 = vmatprep.subr.bf16.mxu0 %v5482_v31 }
 0x156   :  { %12 = vsyncpa [#allocation3], 0  ;;  %v5483_v37 = vld [vmem:[%s7625_s1 + $0x560] ss:$8 sps:$4 sm:$0xff]   ;;  %v5491_v19 = vld [vmem:[%s7625_s1 + $0x574] ss:$8 sps:$4 sm:$0xff]   ;;  %v654_v2 = vcombine.high %v6921_v11, %v6921_v11  ;;  %v7122_v21 = vrot.slane %v6897_v3, %v5971_v51  ;;  %v754_v24 = vcombine.high %v6940_v17, %v6940_v17 }
 0x157   :  { %3564 = vmatpush1.bf16.msra.mxu1 %v5477_v32  ;;  %v5486_v38 = vld [vmem:[%s7625_s1 + $0xc60] ss:$8 sps:$4 sm:$0xff]   ;;  %v5494_v40 = vld [vmem:[%s7625_s1 + $0xc74] ss:$8 sps:$4 sm:$0xff]   ;;  %v5489_v48 = vld [vmem:[%s7625_s1 + $0x570] ss:$8 sps:$4 sm:$0xff]  }
 0x158   :  { %3851 = vmatpush1.bf16.msra.mxu0 %v5480_v33  ;;  %3565 = vmatprep.subr.bf16.mxu1 %v5485_v34  ;;  %v5492_v42 = vld [vmem:[%s7625_s1 + $0xc70] ss:$8 sps:$4 sm:$0xff]   ;;  %v5497_v43 = vld [vmem:[%s7625_s1 + $0x584] ss:$8 sps:$4 sm:$0xff]   ;;  %v5495_v46 = vld [vmem:[%s7625_s1 + $0x580] ss:$8 sps:$4 sm:$0xff]  }
 0x159   :  { %3852 = vmatprep.subr.bf16.mxu0 %v5488_v35  ;;  %v5500_v44 = vld [vmem:[%s7625_s1 + $0xc84] ss:$8 sps:$4 sm:$0xff]   ;;  %v5498_v47 = vld [vmem:[%s7625_s1 + $0xc80] ss:$8 sps:$4 sm:$0xff]   ;;  %v5503_v49 = vld [vmem:[%s7625_s1 + $0x594] ss:$8 sps:$4 sm:$0xff]  }
 0x15a   :  { %v5506_v53 = vld [vmem:[%s7625_s1 + $0xc94] ss:$8 sps:$4 sm:$0xff]   ;;  %v5501_v54 = vld [vmem:[%s7625_s1 + $0x590] ss:$8 sps:$4 sm:$0xff]   ;;  %v5509_v28 = vld [vmem:[%s7625_s1 + $0x5a4] ss:$8 sps:$4 sm:$0xff]  }
 0x15b   :  { %3566 = vmatpush1.bf16.msra.mxu1 %v5483_v37  ;;  %v5504_v55 = vld [vmem:[%s7625_s1 + $0xc90] ss:$8 sps:$4 sm:$0xff]   ;;  %v5512_v57 = vld [vmem:[%s7625_s1 + $0xca4] ss:$8 sps:$4 sm:$0xff]   ;;  %v5507_v58 = vld [vmem:[%s7625_s1 + $0x5a0] ss:$8 sps:$4 sm:$0xff]  }
 0x15c   :  { %3853 = vmatpush1.bf16.msra.mxu0 %v5486_v38  ;;  %3567 = vmatprep.subr.bf16.mxu1 %v5491_v19  ;;  %v5510_v39 = vld [vmem:[%s7625_s1 + $0xca0] ss:$8 sps:$4 sm:$0xff]   ;;  %v5515_v59 = vld [vmem:[%s7625_s1 + $0x5b4] ss:$8 sps:$4 sm:$0xff]   ;;  %v5513_v61 = vld [vmem:[%s7625_s1 + $0x5b0] ss:$8 sps:$4 sm:$0xff]  }
 0x15d   :  { %3854 = vmatprep.subr.bf16.mxu0 %v5494_v40  ;;  %v5518_v60 = vld [vmem:[%s7625_s1 + $0xcb4] ss:$8 sps:$4 sm:$0xff]   ;;  %v5516_v0 = vld [vmem:[%s7625_s1 + $0xcb0] ss:$8 sps:$4 sm:$0xff]   ;;  %v5521_v1 = vld [vmem:[%s7625_s1 + $0x5c4] ss:$8 sps:$4 sm:$0xff]  }
 0x15e   :  { %v5524_v50 = vld [vmem:[%s7625_s1 + $0xcc4] ss:$8 sps:$4 sm:$0xff]   ;;  %v5519_v41 = vld [vmem:[%s7625_s1 + $0x5c0] ss:$8 sps:$4 sm:$0xff]   ;;  %v5527_v6 = vld [vmem:[%s7625_s1 + $0x5d4] ss:$8 sps:$4 sm:$0xff]  }
 0x15f   :  { %3568 = vmatpush1.bf16.msra.mxu1 %v5489_v48  ;;  %v5522_v5 = vld [vmem:[%s7625_s1 + $0xcc0] ss:$8 sps:$4 sm:$0xff]   ;;  %v5530_v36 = vld [vmem:[%s7625_s1 + $0xcd4] ss:$8 sps:$4 sm:$0xff]   ;;  %v5525_v7 = vld [vmem:[%s7625_s1 + $0x5d0] ss:$8 sps:$4 sm:$0xff]  }
 0x160   :  { %3855 = vmatpush1.bf16.msra.mxu0 %v5492_v42  ;;  %3569 = vmatprep.subr.bf16.mxu1 %v5497_v43  ;;  %v5528_v8 = vld [vmem:[%s7625_s1 + $0xcd0] ss:$8 sps:$4 sm:$0xff]   ;;  %v5533_v9 = vld [vmem:[%s7625_s1 + $0x5e4] ss:$8 sps:$4 sm:$0xff]   ;;  %v5531_v12 = vld [vmem:[%s7625_s1 + $0x5e0] ss:$8 sps:$4 sm:$0xff]  }
 0x161   :  { %3856 = vmatprep.subr.bf16.mxu0 %v5500_v44  ;;  %v5536_v10 = vld [vmem:[%s7625_s1 + $0xce4] ss:$8 sps:$4 sm:$0xff]   ;;  %v5534_v13 = vld [vmem:[%s7625_s1 + $0xce0] ss:$8 sps:$4 sm:$0xff]   ;;  %v5539_v15 = vld [vmem:[%s7625_s1 + $0x5f4] ss:$8 sps:$4 sm:$0xff]  }
 0x162   :  { %v5542_v56 = vld [vmem:[%s7625_s1 + $0xcf4] ss:$8 sps:$4 sm:$0xff]   ;;  %v5537_v63 = vld [vmem:[%s7625_s1 + $0x5f0] ss:$8 sps:$4 sm:$0xff]   ;;  %v5545_v18 = vld [vmem:[%s7625_s1 + $0x604] ss:$8 sps:$4 sm:$0xff]  }
 0x163   :  { %3570 = vmatpush1.bf16.msra.mxu1 %v5495_v46  ;;  %v5540_v16 = vld [vmem:[%s7625_s1 + $0xcf0] ss:$8 sps:$4 sm:$0xff]   ;;  %v5548_v20 = vld [vmem:[%s7625_s1 + $0xd04] ss:$8 sps:$4 sm:$0xff]   ;;  %v5543_v22 = vld [vmem:[%s7625_s1 + $0x600] ss:$8 sps:$4 sm:$0xff]  }
 0x164   :  { %3857 = vmatpush1.bf16.msra.mxu0 %v5498_v47  ;;  %3571 = vmatprep.subr.bf16.mxu1 %v5503_v49  ;;  %v5546_v23 = vld [vmem:[%s7625_s1 + $0xd00] ss:$8 sps:$4 sm:$0xff]   ;;  %v5551_v11 = vld [vmem:[%s7625_s1 + $0x614] ss:$8 sps:$4 sm:$0xff]   ;;  %v5549_v25 = vld [vmem:[%s7625_s1 + $0x610] ss:$8 sps:$4 sm:$0xff]  }
 0x165   :  { %3858 = vmatprep.subr.bf16.mxu0 %v5506_v53  ;;  %v5554_v3 = vld [vmem:[%s7625_s1 + $0xd14] ss:$8 sps:$4 sm:$0xff]   ;;  %v5552_v26 = vld [vmem:[%s7625_s1 + $0xd10] ss:$8 sps:$4 sm:$0xff]   ;;  %v5557_v27 = vld [vmem:[%s7625_s1 + $0x624] ss:$8 sps:$4 sm:$0xff]  }
 0x166   :  { %v5560_v17 = vld [vmem:[%s7625_s1 + $0xd24] ss:$8 sps:$4 sm:$0xff]   ;;  %v5555_v52 = vld [vmem:[%s7625_s1 + $0x620] ss:$8 sps:$4 sm:$0xff]   ;;  %v5563_v30 = vld [vmem:[%s7625_s1 + $0x634] ss:$8 sps:$4 sm:$0xff]  }
 0x167   :  { %3572 = vmatpush1.bf16.msra.mxu1 %v5501_v54  ;;  %v5558_v29 = vld [vmem:[%s7625_s1 + $0xd20] ss:$8 sps:$4 sm:$0xff]   ;;  %v5561_v31 = vld [vmem:[%s7625_s1 + $0x630] ss:$8 sps:$4 sm:$0xff]   ;;  %v5569_v33 = vld [vmem:[%s7625_s1 + $0x644] ss:$8 sps:$4 sm:$0xff]  }
 0x168   :  { %3859 = vmatpush1.bf16.msra.mxu0 %v5504_v55  ;;  %3573 = vmatprep.subr.bf16.mxu1 %v5509_v28  ;;  %v5564_v32 = vld [vmem:[%s7625_s1 + $0xd30] ss:$8 sps:$4 sm:$0xff]   ;;  %v5572_v34 = vld [vmem:[%s7625_s1 + $0xd44] ss:$8 sps:$4 sm:$0xff]   ;;  %v5567_v35 = vld [vmem:[%s7625_s1 + $0x640] ss:$8 sps:$4 sm:$0xff]  }
 0x169   :  { %3860 = vmatprep.subr.bf16.mxu0 %v5512_v57  ;;  %v5570_v37 = vld [vmem:[%s7625_s1 + $0xd40] ss:$8 sps:$4 sm:$0xff]   ;;  %v5575_v38 = vld [vmem:[%s7625_s1 + $0x654] ss:$8 sps:$4 sm:$0xff]   ;;  %v5573_v40 = vld [vmem:[%s7625_s1 + $0x650] ss:$8 sps:$4 sm:$0xff]  }
 0x16a   :  { %v5578_v19 = vld [vmem:[%s7625_s1 + $0xd54] ss:$8 sps:$4 sm:$0xff]   ;;  %v5576_v48 = vld [vmem:[%s7625_s1 + $0xd50] ss:$8 sps:$4 sm:$0xff]   ;;  %v5581_v42 = vld [vmem:[%s7625_s1 + $0x664] ss:$8 sps:$4 sm:$0xff]  }
 0x16b   :  { %3574 = vmatpush1.bf16.msra.mxu1 %v5507_v58  ;;  %v5584_v43 = vld [vmem:[%s7625_s1 + $0xd64] ss:$8 sps:$4 sm:$0xff]   ;;  %v5579_v44 = vld [vmem:[%s7625_s1 + $0x660] ss:$8 sps:$4 sm:$0xff]   ;;  %v5587_v47 = vld [vmem:[%s7625_s1 + $0x674] ss:$8 sps:$4 sm:$0xff]  }
 0x16c   :  { %3861 = vmatpush1.bf16.msra.mxu0 %v5510_v39  ;;  %3575 = vmatprep.subr.bf16.mxu1 %v5515_v59  ;;  %v5582_v46 = vld [vmem:[%s7625_s1 + $0xd60] ss:$8 sps:$4 sm:$0xff]   ;;  %v5590_v49 = vld [vmem:[%s7625_s1 + $0xd74] ss:$8 sps:$4 sm:$0xff]   ;;  %v5585_v53 = vld [vmem:[%s7625_s1 + $0x670] ss:$8 sps:$4 sm:$0xff]  }
 0x16d   :  { %3862 = vmatprep.subr.bf16.mxu0 %v5518_v60  ;;  %v5588_v54 = vld [vmem:[%s7625_s1 + $0xd70] ss:$8 sps:$4 sm:$0xff]   ;;  %v5593_v55 = vld [vmem:[%s7625_s1 + $0x684] ss:$8 sps:$4 sm:$0xff]   ;;  %v5591_v57 = vld [vmem:[%s7625_s1 + $0x680] ss:$8 sps:$4 sm:$0xff]  }
 0x16e   :  { %v5596_v28 = vld [vmem:[%s7625_s1 + $0xd84] ss:$8 sps:$4 sm:$0xff]   ;;  %v5594_v58 = vld [vmem:[%s7625_s1 + $0xd80] ss:$8 sps:$4 sm:$0xff]   ;;  %v5599_v39 = vld [vmem:[%s7625_s1 + $0x694] ss:$8 sps:$4 sm:$0xff]  }
 0x16f   :  { %3576 = vmatpush1.bf16.msra.mxu1 %v5513_v61  ;;  %v5602_v59 = vld [vmem:[%s7625_s1 + $0xd94] ss:$8 sps:$4 sm:$0xff]   ;;  %v5597_v60 = vld [vmem:[%s7625_s1 + $0x690] ss:$8 sps:$4 sm:$0xff]   ;;  %vm5788_vm0 = vmmov 0  }
 0x170   :  { %3863 = vmatpush1.bf16.msra.mxu0 %v5516_v0  ;;  %3577 = vmatprep.subr.bf16.mxu1 %v5521_v1  ;;  %v5600_v61 = vld [vmem:[%s7625_s1 + $0xd90] ss:$8 sps:$4 sm:$0xff]   ;;  %v5605_v0 = vld [vmem:[%s7625_s1 + $0x6a4] ss:$8 sps:$4 sm:$0xff]  }
 0x171   :  { %3864 = vmatprep.subr.bf16.mxu0 %v5524_v50  ;;  %v5608_v1 = vld [vmem:[%s7625_s1 + $0xda4] ss:$8 sps:$4 sm:$0xff]   ;;  %v5603_v50 = vld [vmem:[%s7625_s1 + $0x6a0] ss:$8 sps:$4 sm:$0xff]  }
 0x173   :  { %3578 = vmatpush1.bf16.msra.mxu1 %v5519_v41  ;;  %v5606_v41 = vld [vmem:[%s7625_s1 + $0xda0] ss:$8 sps:$4 sm:$0xff]  }
 0x174   :  { %3865 = vmatpush1.bf16.msra.mxu0 %v5522_v5  ;;  %3579 = vmatprep.subr.bf16.mxu1 %v5527_v6  ;;  %v5611_v5 = vld [vmem:[%s7625_s1 + $0x6b4] ss:$8 sps:$4 sm:$0xff]  }
 0x175   :  { %3866 = vmatprep.subr.bf16.mxu0 %v5530_v36  ;;  %v5614_v6 = vld [vmem:[%s7625_s1 + $0xdb4] ss:$8 sps:$4 sm:$0xff]   ;;  %v5609_v36 = vld [vmem:[%s7625_s1 + $0x6b0] ss:$8 sps:$4 sm:$0xff]  }
 0x177   :  { %3580 = vmatpush1.bf16.msra.mxu1 %v5525_v7  ;;  %v5612_v7 = vld [vmem:[%s7625_s1 + $0xdb0] ss:$8 sps:$4 sm:$0xff]  }
 0x178   :  { %3867 = vmatpush1.bf16.msra.mxu0 %v5528_v8  ;;  %3581 = vmatprep.subr.bf16.mxu1 %v5533_v9  ;;  %v5617_v8 = vld [vmem:[%s7625_s1 + $0x6c4] ss:$8 sps:$4 sm:$0xff]  }
 0x179   :  { %3868 = vmatprep.subr.bf16.mxu0 %v5536_v10  ;;  %v5620_v9 = vld [vmem:[%s7625_s1 + $0xdc4] ss:$8 sps:$4 sm:$0xff]   ;;  %v5615_v10 = vld [vmem:[%s7625_s1 + $0x6c0] ss:$8 sps:$4 sm:$0xff]  }
 0x17b   :  { %3582 = vmatpush1.bf16.msra.mxu1 %v5531_v12  ;;  %v5618_v12 = vld [vmem:[%s7625_s1 + $0xdc0] ss:$8 sps:$4 sm:$0xff]  }
 0x17c   :  { %3869 = vmatpush1.bf16.msra.mxu0 %v5534_v13  ;;  %3583 = vmatprep.subr.bf16.mxu1 %v5539_v15  ;;  %v5623_v13 = vld [vmem:[%s7625_s1 + $0x6d4] ss:$8 sps:$4 sm:$0xff]  }
 0x17d   :  { %3870 = vmatprep.subr.bf16.mxu0 %v5542_v56  ;;  %v5626_v15 = vld [vmem:[%s7625_s1 + $0xdd4] ss:$8 sps:$4 sm:$0xff]   ;;  %v5621_v56 = vld [vmem:[%s7625_s1 + $0x6d0] ss:$8 sps:$4 sm:$0xff]  }
 0x17f   :  { %3584 = vmatpush1.bf16.msra.mxu1 %v5537_v63  ;;  %v5624_v63 = vld [vmem:[%s7625_s1 + $0xdd0] ss:$8 sps:$4 sm:$0xff]  }
 0x180   :  { %3871 = vmatpush1.bf16.msra.mxu0 %v5540_v16  ;;  %3594 = vmatprep.subr.bf16.mxu1 %v5545_v18  ;;  %v707_v16 = vcombine.high %v6881_v62, %v6881_v62  ;;  %v5629_v18 = vld [vmem:[%s7625_s1 + $0x6e4] ss:$8 sps:$4 sm:$0xff]   ;;  %v5630_v62 = vld [vmem:[%s7625_s1 + $0xde0] ss:$8 sps:$4 sm:$0xff]  }
 0x181   :  { %3881 = vmatprep.subr.bf16.mxu0 %v5548_v20  ;;  %v5632_v20 = vld [vmem:[%s7625_s1 + $0xde4] ss:$8 sps:$4 sm:$0xff]  }
 0x182   :  { %3586 = vmatmul.mubr.bf16.vlgmr.msra.gmra.mrb[0].mxu1 %v654_v2  ;;  %v5627_v2 = vld [vmem:[%s7625_s1 + $0x6e0] ss:$8 sps:$4 sm:$0xff]  }
 0x183   :  { %3873 = vmatmul.mubr.bf16.vlgmr.msra.gmra.mrb[0].mxu0 %v7122_v21  ;;  %3595 = vmatpush1.bf16.msra.mxu1 %v5543_v22  ;;  %v7305_v22 = vrot.slane %v707_v16, %v5971_v51  ;;  %v5737_v16 = vld [vmem:[%s7627_s3] sm:$0xff]  }
 0x184   :  { %3882 = vmatpush1.bf16.msra.mxu0 %v5546_v23  ;;  %3596 = vmatprep.subr.bf16.mxu1 %v5551_v11  ;;  %v5635_v23 = vld [vmem:[%s7625_s1 + $0x6f4] ss:$8 sps:$4 sm:$0xff]  }
 0x185   :  { %3883 = vmatprep.subr.bf16.mxu0 %v5554_v3  ;;  %3626 = vmatprep.mubr.bf16.mxu1 %v6010_v4  ;;  %v5566_v4 = vld [vmem:[%s7625_s1 + $0xd34] ss:$8 sps:$4 sm:$0xff]   ;;  %v5633_v3 = vld [vmem:[%s7625_s1 + $0x6f0] ss:$8 sps:$4 sm:$0xff]  }
 0x186   :  { %3913 = vmatprep.mubr.bf16.mxu0 %v754_v24  ;;  %v5638_v11 = vld [vmem:[%s7625_s1 + $0xdf4] ss:$8 sps:$4 sm:$0xff]   ;;  %v5636_v24 = vld [vmem:[%s7625_s1 + $0xdf0] ss:$8 sps:$4 sm:$0xff]  }
 0x187   :  { %3597 = vmatpush1.bf16.msra.mxu1 %v5549_v25  ;;  %v723_v25 = vcombine.high %v7305_v22, %v7305_v22 }
 0x188   :  { %3884 = vmatpush1.bf16.msra.mxu0 %v5552_v26  ;;  %3598 = vmatprep.subr.bf16.mxu1 %v5557_v27  ;;  %v5641_v26 = vld [vmem:[%s7625_s1 + $0xe04] ss:$8 sps:$4 sm:$0xff]   ;;  %v752_v27 = vcombine.high %v7122_v21, %v7122_v21  ;;  %v5642_v21 = vld [vmem:[%s7625_s1 + $0xe10] ss:$8 sps:$4 sm:$0xff]  }
 0x189   :  { %3885 = vmatprep.subr.bf16.mxu0 %v5560_v17  ;;  %v5639_v17 = vld [vmem:[%s7625_s1 + $0xe00] ss:$8 sps:$4 sm:$0xff]  }
 0x18b   :  { %3599 = vmatpush1.bf16.msra.mxu1 %v5555_v52  ;;  %v7330_v52 = vrot.slane %v723_v25, %v5971_v51  ;;  %v5715_v25 = vld [vmem:[%s7625_s1 + $0xf90] ss:$8 sps:$4 sm:$0xff]  }
 0x18c   :  { %3886 = vmatpush1.bf16.msra.mxu0 %v5558_v29  ;;  %3600 = vmatprep.subr.bf16.mxu1 %v5563_v30  ;;  %v5644_v29 = vld [vmem:[%s7625_s1 + $0xe14] ss:$8 sps:$4 sm:$0xff]   ;;  %v5647_v30 = vld [vmem:[%s7625_s1 + $0xe24] ss:$8 sps:$4 sm:$0xff]  }
 0x18d   :  { %3887 = vmatprep.subr.bf16.mxu0 %v5566_v4  ;;  %v5645_v4 = vld [vmem:[%s7625_s1 + $0xe20] ss:$8 sps:$4 sm:$0xff]  }
 0x18f   :  { %3601 = vmatpush1.bf16.msra.mxu1 %v5561_v31  ;;  %v5648_v31 = vld [vmem:[%s7625_s1 + $0xe30] ss:$8 sps:$4 sm:$0xff]  }
 0x190   :  { %3888 = vmatpush1.bf16.msra.mxu0 %v5564_v32  ;;  %3602 = vmatprep.subr.bf16.mxu1 %v5569_v33  ;;  %v5653_v32 = vld [vmem:[%s7625_s1 + $0xe44] ss:$8 sps:$4 sm:$0xff]   ;;  %v5651_v33 = vld [vmem:[%s7625_s1 + $0xe40] ss:$8 sps:$4 sm:$0xff]  }
 0x191   :  { %3889 = vmatprep.subr.bf16.mxu0 %v5572_v34  ;;  %v5656_v34 = vld [vmem:[%s7625_s1 + $0xe54] ss:$8 sps:$4 sm:$0xff]  }
 0x193   :  { %3603 = vmatpush1.bf16.msra.mxu1 %v5567_v35  ;;  %v5654_v35 = vld [vmem:[%s7625_s1 + $0xe50] ss:$8 sps:$4 sm:$0xff]  }
 0x194   :  { %3890 = vmatpush1.bf16.msra.mxu0 %v5570_v37  ;;  %3604 = vmatprep.subr.bf16.mxu1 %v5575_v38  ;;  %v5659_v37 = vld [vmem:[%s7625_s1 + $0xe64] ss:$8 sps:$4 sm:$0xff]   ;;  %v5657_v38 = vld [vmem:[%s7625_s1 + $0xe60] ss:$8 sps:$4 sm:$0xff]  }
 0x195   :  { %3891 = vmatprep.subr.bf16.mxu0 %v5578_v19  ;;  %v5662_v19 = vld [vmem:[%s7625_s1 + $0xe74] ss:$8 sps:$4 sm:$0xff]  }
 0x197   :  { %3605 = vmatpush1.bf16.msra.mxu1 %v5573_v40  ;;  %v5660_v40 = vld [vmem:[%s7625_s1 + $0xe70] ss:$8 sps:$4 sm:$0xff]  }
 0x198   :  { %3892 = vmatpush1.bf16.msra.mxu0 %v5576_v48  ;;  %3606 = vmatprep.subr.bf16.mxu1 %v5581_v42  ;;  %v5665_v48 = vld [vmem:[%s7625_s1 + $0xe84] ss:$8 sps:$4 sm:$0xff]   ;;  %v5663_v42 = vld [vmem:[%s7625_s1 + $0xe80] ss:$8 sps:$4 sm:$0xff]  }
 0x199   :  { %3893 = vmatprep.subr.bf16.mxu0 %v5584_v43  ;;  %v5668_v43 = vld [vmem:[%s7625_s1 + $0xe94] ss:$8 sps:$4 sm:$0xff]  }
 0x19b   :  { %3607 = vmatpush1.bf16.msra.mxu1 %v5579_v44  ;;  %v5666_v44 = vld [vmem:[%s7625_s1 + $0xe90] ss:$8 sps:$4 sm:$0xff]  }
 0x19c   :  { %3894 = vmatpush1.bf16.msra.mxu0 %v5582_v46  ;;  %3608 = vmatprep.subr.bf16.mxu1 %v5587_v47  ;;  %v5671_v46 = vld [vmem:[%s7625_s1 + $0xea4] ss:$8 sps:$4 sm:$0xff]   ;;  %v5669_v47 = vld [vmem:[%s7625_s1 + $0xea0] ss:$8 sps:$4 sm:$0xff]  }
 0x19d   :  { %3895 = vmatprep.subr.bf16.mxu0 %v5590_v49  ;;  %v5674_v49 = vld [vmem:[%s7625_s1 + $0xeb4] ss:$8 sps:$4 sm:$0xff]  }
 0x19f   :  { %3609 = vmatpush1.bf16.msra.mxu1 %v5585_v53  ;;  %v5672_v53 = vld [vmem:[%s7625_s1 + $0xeb0] ss:$8 sps:$4 sm:$0xff]  }
 0x1a0   :  { %3896 = vmatpush1.bf16.msra.mxu0 %v5588_v54  ;;  %3610 = vmatprep.subr.bf16.mxu1 %v5593_v55  ;;  %v5677_v54 = vld [vmem:[%s7625_s1 + $0xec4] ss:$8 sps:$4 sm:$0xff]   ;;  %v5675_v55 = vld [vmem:[%s7625_s1 + $0xec0] ss:$8 sps:$4 sm:$0xff]  }
 0x1a1   :  { %3897 = vmatprep.subr.bf16.mxu0 %v5596_v28  ;;  %v5680_v28 = vld [vmem:[%s7625_s1 + $0xed4] ss:$8 sps:$4 sm:$0xff]  }
 0x1a3   :  { %3611 = vmatpush1.bf16.msra.mxu1 %v5591_v57  ;;  %v5678_v57 = vld [vmem:[%s7625_s1 + $0xed0] ss:$8 sps:$4 sm:$0xff]  }
 0x1a4   :  { %3898 = vmatpush1.bf16.msra.mxu0 %v5594_v58  ;;  %3612 = vmatprep.subr.bf16.mxu1 %v5599_v39  ;;  %v5683_v58 = vld [vmem:[%s7625_s1 + $0xee4] ss:$8 sps:$4 sm:$0xff]   ;;  %v5681_v39 = vld [vmem:[%s7625_s1 + $0xee0] ss:$8 sps:$4 sm:$0xff]  }
 0x1a5   :  { %3899 = vmatprep.subr.bf16.mxu0 %v5602_v59  ;;  %v5686_v59 = vld [vmem:[%s7625_s1 + $0xef4] ss:$8 sps:$4 sm:$0xff]  }
 0x1a7   :  { %3613 = vmatpush1.bf16.msra.mxu1 %v5597_v60  ;;  %v5684_v60 = vld [vmem:[%s7625_s1 + $0xef0] ss:$8 sps:$4 sm:$0xff]  }
 0x1a8   :  { %3900 = vmatpush1.bf16.msra.mxu0 %v5600_v61  ;;  %3614 = vmatprep.subr.bf16.mxu1 %v5605_v0  ;;  %v5690_v61 = vld [vmem:[%s7625_s1 + $0xf04] ss:$8 sps:$4 sm:$0xff]   ;;  %v7429_v0 = vrot.slane %v7305_v22, %v5971_v51  ;;  %v5691_v51 = vld [vmem:[%s7625_s1 + $0xf10] ss:$8 sps:$4 sm:$0xff]  }
 0x1a9   :  { %3901 = vmatprep.subr.bf16.mxu0 %v5608_v1  ;;  %v5688_v1 = vld [vmem:[%s7625_s1 + $0xf00] ss:$8 sps:$4 sm:$0xff]   ;;  %v5740_v22 = vld [vmem:[%s7627_s3 + $0x50] sm:$0xff]  }
 0x1ab   :  { %3615 = vmatpush1.bf16.msra.mxu1 %v5603_v50  ;;  %v755_v50 = vcombine.high %v7330_v52, %v7330_v52 }
 0x1ac   :  { %3902 = vmatpush1.bf16.msra.mxu0 %v5606_v41  ;;  %3616 = vmatprep.subr.bf16.mxu1 %v5611_v5  ;;  %v5693_v41 = vld [vmem:[%s7625_s1 + $0xf14] ss:$8 sps:$4 sm:$0xff]   ;;  %v5696_v5 = vld [vmem:[%s7625_s1 + $0xf24] ss:$8 sps:$4 sm:$0xff]  }
 0x1ad   :  { %3903 = vmatprep.subr.bf16.mxu0 %v5614_v6  ;;  %v5694_v6 = vld [vmem:[%s7625_s1 + $0xf20] ss:$8 sps:$4 sm:$0xff]  }
 0x1af   :  { %3617 = vmatpush1.bf16.msra.mxu1 %v5609_v36  ;;  %v5699_v36 = vld [vmem:[%s7625_s1 + $0xf34] ss:$8 sps:$4 sm:$0xff]  }
 0x1b0   :  { %3904 = vmatpush1.bf16.msra.mxu0 %v5612_v7  ;;  %3618 = vmatprep.subr.bf16.mxu1 %v5617_v8  ;;  %v5697_v7 = vld [vmem:[%s7625_s1 + $0xf30] ss:$8 sps:$4 sm:$0xff]   ;;  %v5702_v8 = vld [vmem:[%s7625_s1 + $0xf44] ss:$8 sps:$4 sm:$0xff]  }
 0x1b1   :  { %3905 = vmatprep.subr.bf16.mxu0 %v5620_v9  ;;  %v5700_v9 = vld [vmem:[%s7625_s1 + $0xf40] ss:$8 sps:$4 sm:$0xff]  }
 0x1b3   :  { %3619 = vmatpush1.bf16.msra.mxu1 %v5615_v10  ;;  %v5705_v10 = vld [vmem:[%s7625_s1 + $0xf54] ss:$8 sps:$4 sm:$0xff]  }
 0x1b4   :  { %3906 = vmatpush1.bf16.msra.mxu0 %v5618_v12  ;;  %3620 = vmatprep.subr.bf16.mxu1 %v5623_v13  ;;  %v5703_v12 = vld [vmem:[%s7625_s1 + $0xf50] ss:$8 sps:$4 sm:$0xff]   ;;  %v5708_v13 = vld [vmem:[%s7625_s1 + $0xf64] ss:$8 sps:$4 sm:$0xff]  }
 0x1b5   :  { %3907 = vmatprep.subr.bf16.mxu0 %v5626_v15  ;;  %v5706_v15 = vld [vmem:[%s7625_s1 + $0xf60] ss:$8 sps:$4 sm:$0xff]  }
 0x1b7   :  { %3621 = vmatpush1.bf16.msra.mxu1 %v5621_v56  ;;  %v5711_v56 = vld [vmem:[%s7625_s1 + $0xf74] ss:$8 sps:$4 sm:$0xff]  }
 0x1b8   :  { %3908 = vmatpush1.bf16.msra.mxu0 %v5624_v63  ;;  %3622 = vmatprep.subr.bf16.mxu1 %v5629_v18  ;;  %v5736_v63 = vld [vmem:[%s7627_s3 + $0x40] sm:$0xff]   ;;  %v5738_v18 = vld [vmem:[%s7627_s3 + $0x48] sm:$0xff]  }
 0x1b9   :  { %3909 = vmatprep.subr.bf16.mxu0 %v5632_v20  ;;  %v5709_v20 = vld [vmem:[%s7625_s1 + $0xf70] ss:$8 sps:$4 sm:$0xff]  }
 0x1bb   :  { %3623 = vmatpush1.bf16.msra.mxu1 %v5627_v2  ;;  %v5739_v2 = vld [vmem:[%s7627_s3 + $0x8] sm:$0xff]  }
 0x1bc   :  { %3910 = vmatpush1.bf16.msra.mxu0 %v5630_v62  ;;  %3624 = vmatprep.subr.bf16.mxu1 %v5635_v23  ;;  %v5714_v62 = vld [vmem:[%s7625_s1 + $0xf84] ss:$8 sps:$4 sm:$0xff]   ;;  %v5712_v23 = vld [vmem:[%s7625_s1 + $0xf80] ss:$8 sps:$4 sm:$0xff]  }
 0x1bd   :  { %3911 = vmatprep.subr.bf16.mxu0 %v5638_v11  ;;  %v5741_v11 = vld [vmem:[%s7627_s3 + $0x10] sm:$0xff]  }
 0x1bf   :  { %3625 = vmatpush1.bf16.msra.mxu1 %v5633_v3  ;;  %v5717_v3 = vld [vmem:[%s7625_s1 + $0xf94] ss:$8 sps:$4 sm:$0xff]  }
 0x1c0   :  { %3912 = vmatpush1.bf16.msra.mxu0 %v5636_v24  ;;  %4849 = vmatprep.subr.bf16.mxu1 %v5736_v63  ;;  %v5742_v24 = vld [vmem:[%s7627_s3 + $0x58] sm:$0xff]  }
 0x1c1   :  { %3922 = vmatprep.subr.bf16.mxu0 %v5641_v26  ;;  %v5743_v26 = vld [vmem:[%s7627_s3 + $0x18] sm:$0xff]  }
 0x1c2   :  { %3627 = vmatmul.mubr.bf16.vlgmr.msra.gmra.mrb[0].mxu1 %v6039_v14  ;;  %v5650_v14 = vld [vmem:[%s7625_s1 + $0xe34] ss:$8 sps:$4 sm:$0xff]  }
 0x1c3   :  { %3914 = vmatmul.mubr.bf16.vlgmr.msra.gmra.mrb[0].mxu0 %v752_v27  ;;  %4850 = vmatpush3.bf16.msra.mxu1 %v5737_v16  ;;  %v5720_v27 = vld [vmem:[%s7625_s1 + $0xfa4] ss:$8 sps:$4 sm:$0xff]   ;;  %v4823_v16 = vld [vmem:[%s7628_s4] ss:$0 sm:$0xff] }
 0x1c4   :  { %3923 = vmatpush1.bf16.msra.mxu0 %v5639_v17  ;;  %3954 = vmatprep.mubr.bf16.mxu0 %v7330_v52  ;;  %v5744_v17 = vld [vmem:[%s7627_s3 + $0x60] sm:$0xff]  }
 0x1c5   :  { %3924 = vmatprep.subr.bf16.mxu0 %v5644_v29  ;;  %4851 = vmatprep.subr.bf16.mxu1 %v5738_v18  ;;  %v5718_v52 = vld [vmem:[%s7625_s1 + $0xfa0] ss:$8 sps:$4 sm:$0xff]  }
 0x1c6   :  { %v5745_v29 = vld [vmem:[%s7627_s3 + $0x20] sm:$0xff]  }
 0x1c7   :  { %4852 = vmatpush3.bf16.msra.mxu1 %v5739_v2 }
 0x1c8   :  { %3925 = vmatpush1.bf16.msra.mxu0 %v5642_v21  ;;  %4853 = vmatprep.subr.bf16.mxu1 %v5740_v22  ;;  %v5723_v21 = vld [vmem:[%s7625_s1 + $0xfb4] ss:$8 sps:$4 sm:$0xff]  }
 0x1c9   :  { %3926 = vmatprep.subr.bf16.mxu0 %v5647_v30  ;;  %v5746_v30 = vld [vmem:[%s7627_s3 + $0x68] sm:$0xff]  }
 0x1cb   :  { %4854 = vmatpush3.bf16.msra.mxu1 %v5741_v11 }
 0x1cc   :  { %3927 = vmatpush1.bf16.msra.mxu0 %v5645_v4  ;;  %4855 = vmatprep.subr.bf16.mxu1 %v5742_v24  ;;  %v5721_v4 = vld [vmem:[%s7625_s1 + $0xfb0] ss:$8 sps:$4 sm:$0xff]  }
 0x1cd   :  { %3928 = vmatprep.subr.bf16.mxu0 %v5650_v14  ;;  %v5747_v14 = vld [vmem:[%s7627_s3 + $0x28] sm:$0xff]  }
 0x1cf   :  { %4856 = vmatpush3.bf16.msra.mxu1 %v5743_v26 }
 0x1d0   :  { %3929 = vmatpush1.bf16.msra.mxu0 %v5648_v31  ;;  %4857 = vmatprep.subr.bf16.mxu1 %v5744_v17  ;;  %v5726_v31 = vld [vmem:[%s7625_s1 + $0xfc4] ss:$8 sps:$4 sm:$0xff]  }
 0x1d1   :  { %3930 = vmatprep.subr.bf16.mxu0 %v5653_v32  ;;  %v5724_v32 = vld [vmem:[%s7625_s1 + $0xfc0] ss:$8 sps:$4 sm:$0xff]  }
 0x1d3   :  { %4858 = vmatpush3.bf16.msra.mxu1 %v5745_v29 }
 0x1d4   :  { %3931 = vmatpush1.bf16.msra.mxu0 %v5651_v33  ;;  %4859 = vmatprep.subr.bf16.mxu1 %v5746_v30  ;;  %v5729_v33 = vld [vmem:[%s7625_s1 + $0xfd4] ss:$8 sps:$4 sm:$0xff]  }
 0x1d5   :  { %3932 = vmatprep.subr.bf16.mxu0 %v5656_v34  ;;  %v5727_v34 = vld [vmem:[%s7625_s1 + $0xfd0] ss:$8 sps:$4 sm:$0xff]  }
 0x1d7   :  { %4860 = vmatpush3.bf16.msra.mxu1 %v5747_v14 }
 0x1d8   :  { %3933 = vmatpush1.bf16.msra.mxu0 %v5654_v35  ;;  %v5732_v35 = vld [vmem:[%s7625_s1 + $0xfe4] ss:$8 sps:$4 sm:$0xff]  }
 0x1d9   :  { %3934 = vmatprep.subr.bf16.mxu0 %v5659_v37  ;;  %v5730_v37 = vld [vmem:[%s7625_s1 + $0xfe0] ss:$8 sps:$4 sm:$0xff]  }
 0x1dc   :  { %3935 = vmatpush1.bf16.msra.mxu0 %v5657_v38  ;;  %v5735_v38 = vld [vmem:[%s7625_s1 + $0xff4] ss:$8 sps:$4 sm:$0xff]  }
 0x1dd   :  { %3936 = vmatprep.subr.bf16.mxu0 %v5662_v19  ;;  %v5733_v19 = vld [vmem:[%s7625_s1 + $0xff0] ss:$8 sps:$4 sm:$0xff]  }
 0x1e0   :  { %3937 = vmatpush1.bf16.msra.mxu0 %v5660_v40  ;;  %v753_v40 = vcombine.high %v7429_v0, %v7429_v0 }
 0x1e1   :  { %3938 = vmatprep.subr.bf16.mxu0 %v5665_v48  ;;  %v5748_v48 = vld [vmem:[%s7627_s3 + $0x70] sm:$0xff]  }
 0x1e2   :  { %4861 = vmatprep.subr.bf16.mxu1 %v5748_v48 }
 0x1e4   :  { %3939 = vmatpush1.bf16.msra.mxu0 %v5663_v42 }
 0x1e5   :  { %3940 = vmatprep.subr.bf16.mxu0 %v5668_v43  ;;  %v5749_v43 = vld [vmem:[%s7627_s3 + $0x30] sm:$0xff]  }
 0x1e6   :  { %4862 = vmatpush3.bf16.msra.mxu1 %v5749_v43 }
 0x1e8   :  { %3941 = vmatpush1.bf16.msra.mxu0 %v5666_v44 }
 0x1e9   :  { %3942 = vmatprep.subr.bf16.mxu0 %v5671_v46 }
 0x1ec   :  { %3943 = vmatpush1.bf16.msra.mxu0 %v5669_v47 }
 0x1ed   :  { %3944 = vmatprep.subr.bf16.mxu0 %v5674_v49  ;;  %v5750_v49 = vld [vmem:[%s7627_s3 + $0x78] sm:$0xff]  }
 0x1ee   :  { %4863 = vmatprep.subr.bf16.mxu1 %v5750_v49 }
 0x1f0   :  { %3945 = vmatpush1.bf16.msra.mxu0 %v5672_v53  ;;  %v5751_v53 = vld [vmem:[%s7627_s3 + $0x38] sm:$0xff]  }
 0x1f1   :  { %3946 = vmatprep.subr.bf16.mxu0 %v5677_v54  ;;  %4864 = vmatpush3.bf16.msra.mxu1 %v5751_v53  ;;  %v5787_v54 = vmov 0.0  }
 0x1f2   :  { %4880 = vmatprep.subr.bf16.mxu1 %v5787_v54 }
 0x1f4   :  { %3947 = vmatpush1.bf16.msra.mxu0 %v5675_v55  ;;  %v548_v55 = vsub.s32 0, %v5956_v45 }
 0x1f5   :  { %3948 = vmatprep.subr.bf16.mxu0 %v5680_v28  ;;  %v544_v28 = vld [vmem:[%s7626_s2] sm:$0x3] }
 0x1f8   :  { %3949 = vmatpush1.bf16.msra.mxu0 %v5678_v57  ;;  %v552_v57 = vsub.s32 1, %v5956_v45  ;;  %v5753_v45 = vld [vmem:[%s7629_s5 + $0x8] sm:$0xff]  }
 0x1f9   :  { %3950 = vmatprep.subr.bf16.mxu0 %v5683_v58  ;;  %v549_v58 = vrot.slane %v544_v28, %v548_v55 }
 0x1fc   :  { %3951 = vmatpush1.bf16.msra.mxu0 %v5681_v39  ;;  %v553_v39 = vrot.slane %v544_v28, %v552_v57 }
 0x1fd   :  { %3952 = vmatprep.subr.bf16.mxu0 %v5686_v59 }
 0x200   :  { %3953 = vmatpush1.bf16.msra.mxu0 %v5684_v60 }
 0x201   :  { %3963 = vmatprep.subr.bf16.mxu0 %v5690_v61 }
 0x203   :  { %3955 = vmatmul.mubr.bf16.vlgmr.msra.gmra.mrb[0].mxu0 %v7429_v0 }
 0x204   :  { %3964 = vmatpush1.bf16.msra.mxu0 %v5688_v1  ;;  %3995 = vmatprep.mubr.bf16.mxu0 %v755_v50 }
 0x205   :  { %3965 = vmatprep.subr.bf16.mxu0 %v5693_v41 }
 0x208   :  { %3966 = vmatpush1.bf16.msra.mxu0 %v5691_v51 }
 0x209   :  { %3967 = vmatprep.subr.bf16.mxu0 %v5696_v5 }
 0x20c   :  { %3968 = vmatpush1.bf16.msra.mxu0 %v5694_v6 }
 0x20d   :  { %3969 = vmatprep.subr.bf16.mxu0 %v5699_v36 }
 0x210   :  { %3970 = vmatpush1.bf16.msra.mxu0 %v5697_v7  ;;  %v5752_v7 = vld [vmem:[%s7629_s5] sm:$0xff]  }
 0x211   :  { %3971 = vmatprep.subr.bf16.mxu0 %v5702_v8 }
 0x214   :  { %3972 = vmatpush1.bf16.msra.mxu0 %v5700_v9  ;;  %v5754_v9 = vld [vmem:[%s7629_s5 + $0x10] sm:$0xff]  }
 0x215   :  { %3973 = vmatprep.subr.bf16.mxu0 %v5705_v10  ;;  %v5755_v10 = vld [vmem:[%s7629_s5 + $0x18] sm:$0xff]  }
 0x218   :  { %3974 = vmatpush1.bf16.msra.mxu0 %v5703_v12  ;;  %v5756_v12 = vld [vmem:[%s7629_s5 + $0x20] sm:$0xff]  }
 0x219   :  { %3975 = vmatprep.subr.bf16.mxu0 %v5708_v13  ;;  %v5757_v13 = vld [vmem:[%s7629_s5 + $0x28] sm:$0xff]  }
 0x21c   :  { %3976 = vmatpush1.bf16.msra.mxu0 %v5706_v15  ;;  %v5758_v15 = vld [vmem:[%s7629_s5 + $0x30] sm:$0xff]  }
 0x21d   :  { %3977 = vmatprep.subr.bf16.mxu0 %v5711_v56  ;;  %v5759_v56 = vld [vmem:[%s7629_s5 + $0x38] sm:$0xff]   ;;  %s5789_s5 = smov [#allocation2]  }
 0x21e   :  { %s4303_s9 = sshll.u32 %s5789_s5, 4  ;;  %s4304_s9 = int_to_ptr.vmem [resolvable:$true] %s4303_s9 }
 0x21f   :  { %s5762_s4 = scalar_lea.vmem %s4304_s9, 32  ;;  %p5767_p1 = scmp.lt.s32.totalorder %s4304_s9, %s4304_s9 }
 0x220   :  { %3978 = vmatpush1.bf16.msra.mxu0 %v5709_v20  ;;  %p5763_p0 = scmp.ne.s32.totalorder %s4304_s9, %s5762_s4  ;;  %p5768_p2 = scmp.lt.s32.totalorder %s5762_s4, %s5762_s4 }
 0x221   :  { %3979 = vmatprep.subr.bf16.mxu0 %v5714_v62 }
 0x222   :  { %p5769_p3 = por %p5768_p2, %p5767_p1 }
 0x224   :  { %3980 = vmatpush1.bf16.msra.mxu0 %v5712_v23  ;;  %p5770_p4 = pnand %p5769_p3, %p5763_p0 }
 0x225   :  { %3981 = vmatprep.subr.bf16.mxu0 %v5717_v3  ;;  %v4840_v3 = vld [vmem:[%s7630_s6] ss:$0 sm:$0xff] }
 0x228   :  { %3982 = vmatpush1.bf16.msra.mxu0 %v5715_v25 }
 0x229   :  { %3983 = vmatprep.subr.bf16.mxu0 %v5720_v27 }
 0x22c   :  { %3984 = vmatpush1.bf16.msra.mxu0 %v5718_v52 }
 0x22d   :  { %3985 = vmatprep.subr.bf16.mxu0 %v5723_v21 }
 0x230   :  { %3986 = vmatpush1.bf16.msra.mxu0 %v5721_v4 }
 0x231   :  { %3987 = vmatprep.subr.bf16.mxu0 %v5726_v31 }
 0x234   :  { %3988 = vmatpush1.bf16.msra.mxu0 %v5724_v32 }
 0x235   :  { %3989 = vmatprep.subr.bf16.mxu0 %v5729_v33 }
 0x238   :  { %3990 = vmatpush1.bf16.msra.mxu0 %v5727_v34 }
 0x239   :  { %3991 = vmatprep.subr.bf16.mxu0 %v5732_v35 }
 0x23c   :  { %3992 = vmatpush1.bf16.msra.mxu0 %v5730_v37 }
 0x23d   :  { %3993 = vmatprep.subr.bf16.mxu0 %v5735_v38 }
 0x240   :  { %3994 = vmatpush1.bf16.msra.mxu0 %v5733_v19 }
 0x243   :  { %3996 = vmatmul.mubr.bf16.vlgmr.msra.gmra.mrb[0].mxu0 %v753_v40 }
 0x295   :  { %v3628_v42 = vpop.f32.mrb[0].mxu1 }
 0x296   :  { %v3630_v44 = vpop.f32.mrb[1].mxu1  ;;  %v4900_v59 = vadd.f32 %v3628_v42, %v549_v58 }
 0x297   :  { %v3632_v46 = vpop.f32.mrb[2].mxu1  ;;  %v4902_v60 = vadd.f32 %v3630_v44, %v553_v39 }
 0x298   :  { %v3633_v47 = vpop.f32.mrb[3].mxu1 }
 0x316   :  { %v3997_v61 = vpop.f32.mrb[0].mxu0 }
 0x317   :  { %v4901_v0 = vadd.f32 %v4900_v59, %v3997_v61  ;;  %v3999_v1 = vpop.f32.mrb[1].mxu0 }
 0x318   :  { %v4903_v50 = vadd.f32 %v4902_v60, %v3999_v1  ;;  %v4001_v41 = vpop.f32.mrb[2].mxu0 }
 0x319   :  { %v4004_v51 = vmax.f32 %v4901_v0, 0.0  ;;  %v4002_v5 = vpop.f32.mrb[3].mxu0 }
 0x31a   :  { %v4005_v6 = vmax.f32 %v4903_v50, 0.0 }
 0x31b   :  { %v4006_v8 = vpack.c.bf16 %v4004_v51, %v4004_v51 }
 0x31c   :  { %v4007_v36 = vpack.c.bf16 %v4005_v6, %v4005_v6 }
 0x31e   :  { %4175 = vmatprep.mubr.bf16.mxu1 %v4007_v36 }
 0x31f   :  { %4176 = vmatmul.mubr.bf16.vlgmr.msra.gmra.mrb[4].mxu1 %v4006_v8 }
 0x320   :  { %4881 = vmatpush3.bf16.msra.mxu1 %v5752_v7  ;;  %4896 = vmatprep.mubr.msk.bf16.mxu1 %vm5788_vm0, %v5787_v54 }
 0x321   :  { %4882 = vmatprep.subr.bf16.mxu1 %v5787_v54 }
 0x324   :  { %4883 = vmatpush3.bf16.msra.mxu1 %v5753_v45 }
 0x325   :  { %4884 = vmatprep.subr.bf16.mxu1 %v5787_v54 }
 0x328   :  { %4885 = vmatpush3.bf16.msra.mxu1 %v5754_v9 }
 0x329   :  { %4886 = vmatprep.subr.bf16.mxu1 %v5787_v54 }
 0x32c   :  { %4887 = vmatpush3.bf16.msra.mxu1 %v5755_v10 }
 0x32d   :  { %4888 = vmatprep.subr.bf16.mxu1 %v5787_v54 }
 0x330   :  { %4889 = vmatpush3.bf16.msra.mxu1 %v5756_v12 }
 0x331   :  { %4890 = vmatprep.subr.bf16.mxu1 %v5787_v54 }
 0x334   :  { %4891 = vmatpush3.bf16.msra.mxu1 %v5757_v13 }
 0x335   :  { %4892 = vmatprep.subr.bf16.mxu1 %v5787_v54 }
 0x338   :  { %4893 = vmatpush3.bf16.msra.mxu1 %v5758_v15 }
 0x339   :  { %4894 = vmatprep.subr.bf16.mxu1 %v5787_v54 }
 0x33c   :  { %4895 = vmatpush3.bf16.msra.mxu1 %v5759_v56 }
 0x3f2   :  { %v4865_v63 = vpop.f32.mrb[4].mxu1 }
 0x3f3   :  { %v4866_v18 = vpop.f32.mrb[5].mxu1 }
 0x3f4   :  { %v4867_v20 = vadd.f32 %v4866_v18, %v4865_v63  ;;  %v4868_v2 = vpop.f32.mrb[6].mxu1 }
 0x3f5   :  { %v4869_v62 = vpop.f32.mrb[7].mxu1 }
 0x3f6   :  { %v4178_v22 = vadd.f32 %v4867_v20, %v4823_v16 }
 0x3f8   :  { %v4183_v23 = vmax.f32 %v4178_v22, 0.0 }
 0x3fa   :  { %v4184_v11 = vpack.c.bf16 %v4183_v23, %v4183_v23 }
 0x3fc   :  { %4897 = vmatmul.mubr.bf16.vlgmr.msra.gmra.mrb[8].mxu1 %v4184_v11 }
 0x4cf   :  { %v4290_v24 = vpop.f32.mrb[8].mxu1 }
 0x4d0   :  { %v4291_v25 = vadd.f32 %v4840_v3, %v4290_v24  ;;  %v4898_v26 = vpop.f32.mrb[9].mxu1 }
 0x4d1   :  { %v4293_v27 = vpop.f32.mrb[10].mxu1 }
 0x4d2   :  { %4296 = vst [vmem:[#allocation2] sm:$0x3] %v4291_v25  ;;  %v4899_v17 = vpop.f32.mrb[11].mxu1 }
 0x4d3   :  { %5773 = shalt.err (!%p5770_p4)
}
 0x4d4   :  { %s5774_s6 = scalar_lea.hbm %s7631_s7, 32 }
 0x4d5   :  { %p5775_p5 = scmp.ne.s32.totalorder %s7631_s7, %s5774_s6  ;;  %p5778_p6 = scmp.lt.u32.totalorder %s5774_s6, %s7631_s7 }
 0x4d7   :  { %p5780_p7 = pnand %p5778_p6, %p5775_p5 }
 0x4d9   :  { %5783 = shalt.err (!%p5780_p7)
}
 0x4da   :  { %4306 = dma.vmem_to_hbm [thread:$0]  %s4304_s9, 32, %s7631_s7, [#allocation3]  }
 0x4db   :  { %5784 = dma.done.wait [#allocation3], 32  }
 0x4dc   :  { %5785 = vsyncadd [#allocation3], 4294967264 }
 0x4dd   :  { %4310 = vsyncpa [#allocation3], 1 }

// kernel: _lenet_logits.2
= control target key start
LH: loop header
LB: loop body
LE: loop exit
PB: predicated region body
PF: predicated region fallthrough
CT: control target
= control target key end

     0   :  { %s9263_s21 = smov 0   ;;  %s12481_s0 = inlined_call_operand.vmem [shape: bf16[2,896,128], index: 0, kind: input, shape index: {}]   ;;  %s12482_s1 = inlined_call_operand.vmem [shape: bf16[128,128], index: 1, kind: input, shape index: {}]   ;;  %s12483_s2 = inlined_call_operand.vmem [shape: f32[1,128], index: 2, kind: input, shape index: {}]   ;;  %s12484_s3 = inlined_call_operand.vmem [shape: bf16[13,256,128], index: 3, kind: input, shape index: {}]   ;;  %s12485_s4 = inlined_call_operand.vmem [shape: f32[1,128], index: 4, kind: input, shape index: {}]   ;;  %s12486_s5 = inlined_call_operand.vmem [shape: bf16[32,128], index: 5, kind: input, shape index: {}]   ;;  %s12487_s6 = inlined_call_operand.vmem [shape: bf16[2,32,128], index: 6, kind: output, shape index: {}]  }
   0x1 LB: > { %s6764_s22 = sadd.s32 4294967295, %s9224_s21   ;;  %p6768_p0 = scmp.ge.s32.totalorder %s9224_s21, 1  ;;  %s9224_s21 = sphi %s9263_s21, %s16_s21  }
   0x2   : > { %p212_p1 = scmp.lt.s32.totalorder %s9224_s21, 3 }
   0x4   : > { %p213_p2 = pnand %p6768_p0, %p212_p1 }
   0x6   : > { %216 = sbr.rel (%p213_p2) target bundleno = 1378 (0x562), region = 44 }
   0xd   : > { %v8902_v0 = vld [vmem:[%s12482_s1] sm:$0xff]   ;;  %v9226_v1 = vmov 0.0   ;;  %v8903_v2 = vld [vmem:[%s12482_s1 + $0x8] sm:$0xff]   ;;  %p242_p3 = scmp.lt.s32.totalorder %s6764_s22, 1  ;;  %vm9227_vm0 = vmmov 0   ;;  %v8904_v3 = vld [vmem:[%s12482_s1 + $0x10] sm:$0xff]  }
   0xe   : > { %8503 = vmatprep.subr.bf16.mxu0 %v9226_v1  ;;  %8547 = vmatprep.subr.bf16.mxu1 %v9226_v1  ;;  %v8905_v4 = vld [vmem:[%s12482_s1 + $0x18] sm:$0xff]   ;;  %v8906_v5 = vld [vmem:[%s12482_s1 + $0x20] sm:$0xff]   ;;  %v8907_v6 = vld [vmem:[%s12482_s1 + $0x28] sm:$0xff]   ;;  %vm1789_vm1 = vsmask.f32 7424  ;;  %vm1968_vm2 = vcmask 1046528  }
   0xf   : > { %8504 = vmatpush3.bf16.msra.mxu0 %v8902_v0  ;;  %8548 = vmatpush3.bf16.msra.mxu1 %v8902_v0  ;;  %s12772_s22 = smov (!%p242_p3, %s6764_s22), 1  ;;  %v8908_v7 = vld [vmem:[%s12482_s1 + $0x30] sm:$0xff]   ;;  %v8909_v8 = vld [vmem:[%s12482_s1 + $0x38] sm:$0xff]   ;;  %v9388_v25 = vld [vmem:[%s12482_s1] sm:$0xff]   ;;  %vm2432_vm3 = vcmask 1042432   ;;  %vm2487_vm4 = vcmask 1045504  }
  0x10   : > { %8505 = vmatprep.subr.bf16.mxu0 %v9226_v1  ;;  %8549 = vmatprep.subr.bf16.mxu1 %v9226_v1  ;;  %s8891_s29 = smul.u32 448, %s12772_s22  ;;  %v9397_v26 = vld [vmem:[%s12482_s1 + $0x8] sm:$0xff]   ;;  %v9408_v29 = vld [vmem:[%s12482_s1 + $0x10] sm:$0xff]   ;;  %v9421_v30 = vld [vmem:[%s12482_s1 + $0x18] sm:$0xff]   ;;  %vm2805_vm5 = vsmask.f32 256 }
  0x11   : > { %8519 = vmatprep.mubr.msk.bf16.mxu0 %vm9227_vm0, %v9226_v1  ;;  %8563 = vmatprep.mubr.msk.bf16.mxu1 %vm9227_vm0, %v9226_v1  ;;  %v9432_v33 = vld [vmem:[%s12482_s1 + $0x20] sm:$0xff]   ;;  %v9445_v34 = vld [vmem:[%s12482_s1 + $0x28] sm:$0xff]   ;;  %v9456_v37 = vld [vmem:[%s12482_s1 + $0x30] sm:$0xff]   ;;  %vm3980_vm6 = vcmask 1040384   ;;  %vm5092_vm7 = vsmask.f32 1280 }
  0x12   : > { %s9296_s8 = scalar_lea.vmem %s12481_s0, %s8891_s29  ;;  %v9465_v38 = vld [vmem:[%s12482_s1 + $0x38] sm:$0xff]   ;;  %v8974_v55 = vld [vmem:[%s12484_s3 + $0xc0] sm:$0xff]   ;;  %v8976_v63 = vld [vmem:[%s12484_s3 + $0xc8] sm:$0xff]   ;;  %vm3655_vm8 = vcmask 1041408   ;;  %vm4670_vm9 = vsmask.f32 2304 }
  0x13   : > { %8506 = vmatpush3.bf16.msra.mxu0 %v8903_v2  ;;  %8550 = vmatpush3.bf16.msra.mxu1 %v8903_v2  ;;  %v8910_v9 = vld [vmem:[%s9296_s8] sm:$0xff]   ;;  %v8911_v10 = vld [vmem:[%s9296_s8 + $0x70] sm:$0xff]   ;;  %v8912_v11 = vld [vmem:[%s9296_s8 + $0x8] sm:$0xff]   ;;  %vm5556_vm10 = vcmask 1043456   ;;  %s7447_s25 = sshll.u32 %s12772_s22, 4 }
  0x14   : > { %8507 = vmatprep.subr.bf16.mxu0 %v9226_v1  ;;  %8551 = vmatprep.subr.bf16.mxu1 %v9226_v1  ;;  %v8913_v12 = vld [vmem:[%s9296_s8 + $0x78] sm:$0xff]   ;;  %v8914_v13 = vld [vmem:[%s9296_s8 + $0x10] sm:$0xff]   ;;  %v8915_v14 = vld [vmem:[%s9296_s8 + $0x80] sm:$0xff]   ;;  %s251_s28 = scalar_lea.vmem %s12487_s6, %s7447_s25 }
  0x15   : > { %v8916_v15 = vld [vmem:[%s9296_s8 + $0x18] sm:$0xff]   ;;  %v8917_v16 = vld [vmem:[%s9296_s8 + $0x88] sm:$0xff]   ;;  %v8918_v17 = vld [vmem:[%s9296_s8 + $0x20] sm:$0xff]  }
  0x16   : > { %v8919_v18 = vld [vmem:[%s9296_s8 + $0x90] sm:$0xff]   ;;  %v8920_v19 = vld [vmem:[%s9296_s8 + $0x28] sm:$0xff]   ;;  %v8921_v20 = vld [vmem:[%s9296_s8 + $0x98] sm:$0xff]  }
  0x17   : > { %8508 = vmatpush3.bf16.msra.mxu0 %v8904_v3  ;;  %8552 = vmatpush3.bf16.msra.mxu1 %v8904_v3  ;;  %v8922_v21 = vld [vmem:[%s9296_s8 + $0x30] sm:$0xff]   ;;  %v8923_v22 = vld [vmem:[%s9296_s8 + $0xa0] sm:$0xff]   ;;  %v8926_v27 = vld [vmem:[%s9296_s8 + $0xe8] sm:$0xff]  }
  0x18   : > { %8509 = vmatprep.subr.bf16.mxu0 %v9226_v1  ;;  %8553 = vmatprep.subr.bf16.mxu1 %v9226_v1  ;;  %v8924_v23 = vld [vmem:[%s9296_s8 + $0xe0] sm:$0xff]   ;;  %v8925_v24 = vld [vmem:[%s9296_s8 + $0x150] sm:$0xff]   ;;  %v8927_v28 = vld [vmem:[%s9296_s8 + $0x158] sm:$0xff]  }
  0x19   : > { %v8929_v31 = vld [vmem:[%s9296_s8 + $0xf0] sm:$0xff]   ;;  %v8930_v32 = vld [vmem:[%s9296_s8 + $0x160] sm:$0xff]   ;;  %v8932_v35 = vld [vmem:[%s9296_s8 + $0xf8] sm:$0xff]  }
  0x1a   : > { %v8933_v36 = vld [vmem:[%s9296_s8 + $0x168] sm:$0xff]   ;;  %v8935_v39 = vld [vmem:[%s9296_s8 + $0x100] sm:$0xff]   ;;  %v8936_v40 = vld [vmem:[%s9296_s8 + $0x170] sm:$0xff]  }
  0x1b   : > { %8510 = vmatpush3.bf16.msra.mxu0 %v8905_v4  ;;  %8554 = vmatpush3.bf16.msra.mxu1 %v8905_v4  ;;  %v8938_v41 = vld [vmem:[%s9296_s8 + $0x108] sm:$0xff]   ;;  %v8939_v42 = vld [vmem:[%s9296_s8 + $0x178] sm:$0xff]   ;;  %v8942_v43 = vld [vmem:[%s9296_s8 + $0x110] sm:$0xff]  }
  0x1c   : > { %8511 = vmatprep.subr.bf16.mxu0 %v9226_v1  ;;  %8555 = vmatprep.subr.bf16.mxu1 %v9226_v1  ;;  %v8943_v44 = vld [vmem:[%s9296_s8 + $0x180] sm:$0xff]   ;;  %v8946_v45 = vld [vmem:[%s9296_s8 + $0x38] sm:$0xff]   ;;  %v8947_v46 = vld [vmem:[%s9296_s8 + $0xa8] sm:$0xff]  }
  0x1d   : > { %v8948_v47 = vld [vmem:[%s9296_s8 + $0x40] sm:$0xff]   ;;  %v8949_v48 = vld [vmem:[%s9296_s8 + $0xb0] sm:$0xff]   ;;  %v8950_v49 = vld [vmem:[%s9296_s8 + $0x48] sm:$0xff]  }
  0x1e   : > { %v8951_v50 = vld [vmem:[%s9296_s8 + $0xb8] sm:$0xff]   ;;  %v8952_v51 = vld [vmem:[%s9296_s8 + $0x50] sm:$0xff]   ;;  %v8953_v52 = vld [vmem:[%s9296_s8 + $0xc0] sm:$0xff]  }
  0x1f   : > { %8512 = vmatpush3.bf16.msra.mxu0 %v8906_v5  ;;  %8556 = vmatpush3.bf16.msra.mxu1 %v8906_v5  ;;  %v8954_v53 = vld [vmem:[%s9296_s8 + $0x58] sm:$0xff]   ;;  %v8955_v54 = vld [vmem:[%s9296_s8 + $0xc8] sm:$0xff]   ;;  %v8956_v56 = vld [vmem:[%s9296_s8 + $0x60] sm:$0xff]  }
  0x20   : > { %8513 = vmatprep.subr.bf16.mxu0 %v9226_v1  ;;  %8557 = vmatprep.subr.bf16.mxu1 %v9226_v1  ;;  %v8957_v57 = vld [vmem:[%s9296_s8 + $0xd0] sm:$0xff]   ;;  %v8958_v58 = vld [vmem:[%s9296_s8 + $0x68] sm:$0xff]   ;;  %v8959_v59 = vld [vmem:[%s9296_s8 + $0xd8] sm:$0xff]  }
  0x21   : > { %v8960_v60 = vld [vmem:[%s9296_s8 + $0x118] sm:$0xff]   ;;  %v8961_v61 = vld [vmem:[%s9296_s8 + $0x188] sm:$0xff]   ;;  %v8975_v62 = vld [vmem:[%s12484_s3 + $0x80] sm:$0xff]  }
  0x23   : > { %8514 = vmatpush3.bf16.msra.mxu0 %v8907_v6  ;;  %8558 = vmatpush3.bf16.msra.mxu1 %v8907_v6 }
  0x24   : > { %8515 = vmatprep.subr.bf16.mxu0 %v9226_v1  ;;  %8559 = vmatprep.subr.bf16.mxu1 %v9226_v1 }
  0x27   : > { %8516 = vmatpush3.bf16.msra.mxu0 %v8908_v7  ;;  %8560 = vmatpush3.bf16.msra.mxu1 %v8908_v7 }
  0x28   : > { %8517 = vmatprep.subr.bf16.mxu0 %v9226_v1  ;;  %8561 = vmatprep.subr.bf16.mxu1 %v9226_v1 }
  0x2b   : > { %8518 = vmatpush3.bf16.msra.mxu0 %v8909_v8  ;;  %8562 = vmatpush3.bf16.msra.mxu1 %v8909_v8 }
  0x2c   : > { %8591 = vmatprep.subr.bf16.mxu0 %v9226_v1  ;;  %8635 = vmatprep.subr.bf16.mxu1 %v9226_v1 }
  0x2e   : > { %8520 = vmatmul.mubr.bf16.vlgmr.msra.gmra.mrb[0].mxu0 %v8910_v9  ;;  %8564 = vmatmul.mubr.bf16.vlgmr.msra.gmra.mrb[0].mxu1 %v8911_v10  ;;  %v8964_v9 = vld [vmem:[%s9296_s8 + $0x128] sm:$0xff]   ;;  %v8965_v10 = vld [vmem:[%s9296_s8 + $0x198] sm:$0xff]  }
  0x2f   : > { %8523 = vmatprep.mubr.msk.bf16.mxu0 %vm9227_vm0, %v9226_v1  ;;  %8567 = vmatprep.mubr.msk.bf16.mxu1 %vm9227_vm0, %v9226_v1 }
  0x30   : > { %8592 = vmatpush3.bf16.msra.mxu0 %v8902_v0  ;;  %8636 = vmatpush3.bf16.msra.mxu1 %v8902_v0  ;;  %v8977_v0 = vld [vmem:[%s12484_s3 + $0x88] sm:$0xff]  }
  0x31   : > { %8593 = vmatprep.subr.bf16.mxu0 %v9226_v1  ;;  %8637 = vmatprep.subr.bf16.mxu1 %v9226_v1 }
  0x34   : > { %8594 = vmatpush3.bf16.msra.mxu0 %v8903_v2  ;;  %8638 = vmatpush3.bf16.msra.mxu1 %v8903_v2  ;;  %v8978_v2 = vld [vmem:[%s12484_s3 + $0xd0] sm:$0xff]  }
  0x35   : > { %8595 = vmatprep.subr.bf16.mxu0 %v9226_v1  ;;  %8639 = vmatprep.subr.bf16.mxu1 %v9226_v1 }
  0x36   : > { %8524 = vmatmul.mubr.bf16.gmra.mrb[4].mxu0 %v8912_v11  ;;  %8568 = vmatmul.mubr.bf16.gmra.mrb[4].mxu1 %v8913_v12  ;;  %v8983_v11 = vld [vmem:[%s12484_s3 + $0xa0] sm:$0xff]   ;;  %v8984_v12 = vld [vmem:[%s12484_s3 + $0xe8] sm:$0xff]  }
  0x37   : > { %8527 = vmatprep.mubr.msk.bf16.mxu0 %vm9227_vm0, %v9226_v1  ;;  %8571 = vmatprep.mubr.msk.bf16.mxu1 %vm9227_vm0, %v9226_v1 }
  0x38   : > { %8596 = vmatpush3.bf16.msra.mxu0 %v8904_v3  ;;  %8640 = vmatpush3.bf16.msra.mxu1 %v8904_v3  ;;  %v8962_v3 = vld [vmem:[%s9296_s8 + $0x120] sm:$0xff]  }
  0x39   : > { %8597 = vmatprep.subr.bf16.mxu0 %v9226_v1  ;;  %8641 = vmatprep.subr.bf16.mxu1 %v9226_v1 }
  0x3c   : > { %8598 = vmatpush3.bf16.msra.mxu0 %v8905_v4  ;;  %8642 = vmatpush3.bf16.msra.mxu1 %v8905_v4  ;;  %v8963_v4 = vld [vmem:[%s9296_s8 + $0x190] sm:$0xff]  }
  0x3d   : > { %8599 = vmatprep.subr.bf16.mxu0 %v9226_v1  ;;  %8643 = vmatprep.subr.bf16.mxu1 %v9226_v1 }
  0x3e   : > { %8528 = vmatmul.mubr.bf16.gmra.mrb[8].mxu0 %v8914_v13  ;;  %8572 = vmatmul.mubr.bf16.gmra.mrb[8].mxu1 %v8915_v14  ;;  %v8985_v13 = vld [vmem:[%s12484_s3 + $0xa8] sm:$0xff]   ;;  %v8986_v14 = vld [vmem:[%s12484_s3 + $0xf0] sm:$0xff]  }
  0x3f   : > { %8531 = vmatprep.mubr.msk.bf16.mxu0 %vm9227_vm0, %v9226_v1  ;;  %8575 = vmatprep.mubr.msk.bf16.mxu1 %vm9227_vm0, %v9226_v1 }
  0x40   : > { %8600 = vmatpush3.bf16.msra.mxu0 %v8906_v5  ;;  %8644 = vmatpush3.bf16.msra.mxu1 %v8906_v5  ;;  %v8979_v5 = vld [vmem:[%s12484_s3 + $0x90] sm:$0xff]  }
  0x41   : > { %8601 = vmatprep.subr.bf16.mxu0 %v9226_v1  ;;  %8645 = vmatprep.subr.bf16.mxu1 %v9226_v1 }
  0x44   : > { %8602 = vmatpush3.bf16.msra.mxu0 %v8907_v6  ;;  %8646 = vmatpush3.bf16.msra.mxu1 %v8907_v6  ;;  %v8980_v6 = vld [vmem:[%s12484_s3 + $0xd8] sm:$0xff]  }
  0x45   : > { %8603 = vmatprep.subr.bf16.mxu0 %v9226_v1  ;;  %8647 = vmatprep.subr.bf16.mxu1 %v9226_v1 }
  0x46   : > { %8532 = vmatmul.mubr.bf16.gmra.mrb[12].mxu0 %v8916_v15  ;;  %8576 = vmatmul.mubr.bf16.gmra.mrb[12].mxu1 %v8917_v16  ;;  %v8966_v15 = vld [vmem:[%s9296_s8 + $0x130] sm:$0xff]   ;;  %v8967_v16 = vld [vmem:[%s9296_s8 + $0x1a0] sm:$0xff]  }
  0x47   : > { %8535 = vmatprep.mubr.msk.bf16.mxu0 %vm9227_vm0, %v9226_v1  ;;  %8579 = vmatprep.mubr.msk.bf16.mxu1 %vm9227_vm0, %v9226_v1 }
  0x48   : > { %8604 = vmatpush3.bf16.msra.mxu0 %v8908_v7  ;;  %8648 = vmatpush3.bf16.msra.mxu1 %v8908_v7  ;;  %v8981_v7 = vld [vmem:[%s12484_s3 + $0x98] sm:$0xff]  }
  0x49   : > { %8605 = vmatprep.subr.bf16.mxu0 %v9226_v1  ;;  %8649 = vmatprep.subr.bf16.mxu1 %v9226_v1 }
  0x4c   : > { %8606 = vmatpush3.bf16.msra.mxu0 %v8909_v8  ;;  %8650 = vmatpush3.bf16.msra.mxu1 %v8909_v8  ;;  %v8982_v8 = vld [vmem:[%s12484_s3 + $0xe0] sm:$0xff]  }
  0x4d   : > { %8679 = vmatprep.subr.bf16.mxu0 %v9226_v1  ;;  %8723 = vmatprep.subr.bf16.mxu1 %v9226_v1 }
  0x4e   : > { %8536 = vmatmul.mubr.bf16.gmra.mrb[16].mxu0 %v8918_v17  ;;  %8580 = vmatmul.mubr.bf16.gmra.mrb[16].mxu1 %v8919_v18  ;;  %v8987_v17 = vld [vmem:[%s12484_s3 + $0xb0] sm:$0xff]   ;;  %v8988_v18 = vld [vmem:[%s12484_s3 + $0xf8] sm:$0xff]  }
  0x4f   : > { %8539 = vmatprep.mubr.msk.bf16.mxu0 %vm9227_vm0, %v9226_v1  ;;  %8583 = vmatprep.mubr.msk.bf16.mxu1 %vm9227_vm0, %v9226_v1 }
  0x56   : > { %8540 = vmatmul.mubr.bf16.gmra.mrb[20].mxu0 %v8920_v19  ;;  %8584 = vmatmul.mubr.bf16.gmra.mrb[20].mxu1 %v8921_v20  ;;  %v8989_v19 = vld [vmem:[%s12484_s3 + $0xb8] sm:$0xff]   ;;  %v8990_v20 = vld [vmem:[%s12484_s3 + $0x140] sm:$0xff]  }
  0x57   : > { %8543 = vmatprep.mubr.msk.bf16.mxu0 %vm9227_vm0, %v9226_v1  ;;  %8587 = vmatprep.mubr.msk.bf16.mxu1 %vm9227_vm0, %v9226_v1 }
  0x5e   : > { %8544 = vmatmul.mubr.bf16.gmra.mrb[24].mxu0 %v8922_v21  ;;  %8588 = vmatmul.mubr.bf16.gmra.mrb[24].mxu1 %v8923_v22  ;;  %v8968_v21 = vld [vmem:[%s9296_s8 + $0x138] sm:$0xff]   ;;  %v8969_v22 = vld [vmem:[%s9296_s8 + $0x1a8] sm:$0xff]  }
  0x5f   : > { %8607 = vmatprep.mubr.msk.bf16.mxu0 %vm9227_vm0, %v9226_v1  ;;  %8651 = vmatprep.mubr.msk.bf16.mxu1 %vm9227_vm0, %v9226_v1 }
  0x66   : > { %8608 = vmatmul.mubr.bf16.vlgmr.msra.gmra.mrb[28].mxu0 %v8924_v23  ;;  %8652 = vmatmul.mubr.bf16.vlgmr.msra.gmra.mrb[28].mxu1 %v8925_v24  ;;  %v8970_v23 = vld [vmem:[%s9296_s8 + $0x140] sm:$0xff]   ;;  %v8971_v24 = vld [vmem:[%s9296_s8 + $0x1b0] sm:$0xff]  }
  0x67   : > { %8611 = vmatprep.mubr.msk.bf16.mxu0 %vm9227_vm0, %v9226_v1  ;;  %8655 = vmatprep.mubr.msk.bf16.mxu1 %vm9227_vm0, %v9226_v1 }
  0x68   : > { %8680 = vmatpush3.bf16.msra.mxu0 %v9388_v25  ;;  %8724 = vmatpush3.bf16.msra.mxu1 %v9388_v25 }
  0x69   : > { %8681 = vmatprep.subr.bf16.mxu0 %v9226_v1  ;;  %8725 = vmatprep.subr.bf16.mxu1 %v9226_v1 }
  0x6c   : > { %8682 = vmatpush3.bf16.msra.mxu0 %v9397_v26  ;;  %8726 = vmatpush3.bf16.msra.mxu1 %v9397_v26 }
  0x6d   : > { %8683 = vmatprep.subr.bf16.mxu0 %v9226_v1  ;;  %8727 = vmatprep.subr.bf16.mxu1 %v9226_v1 }
  0x6e   : > { %8612 = vmatmul.mubr.bf16.gmra.mrb[32].mxu0 %v8926_v27  ;;  %8656 = vmatmul.mubr.bf16.gmra.mrb[32].mxu1 %v8927_v28 }
  0x6f   : > { %8615 = vmatprep.mubr.msk.bf16.mxu0 %vm9227_vm0, %v9226_v1  ;;  %8659 = vmatprep.mubr.msk.bf16.mxu1 %vm9227_vm0, %v9226_v1 }
  0x70   : > { %8684 = vmatpush3.bf16.msra.mxu0 %v9408_v29  ;;  %8728 = vmatpush3.bf16.msra.mxu1 %v9408_v29 }
  0x71   : > { %8685 = vmatprep.subr.bf16.mxu0 %v9226_v1  ;;  %8729 = vmatprep.subr.bf16.mxu1 %v9226_v1 }
  0x74   : > { %8686 = vmatpush3.bf16.msra.mxu0 %v9421_v30  ;;  %8730 = vmatpush3.bf16.msra.mxu1 %v9421_v30 }
  0x75   : > { %8687 = vmatprep.subr.bf16.mxu0 %v9226_v1  ;;  %8731 = vmatprep.subr.bf16.mxu1 %v9226_v1 }
  0x76   : > { %8616 = vmatmul.mubr.bf16.gmra.mrb[36].mxu0 %v8929_v31  ;;  %8660 = vmatmul.mubr.bf16.gmra.mrb[36].mxu1 %v8930_v32  ;;  %v8972_v32 = vld [vmem:[%s9296_s8 + $0x148] sm:$0xff]  }
  0x77   : > { %8619 = vmatprep.mubr.msk.bf16.mxu0 %vm9227_vm0, %v9226_v1  ;;  %8663 = vmatprep.mubr.msk.bf16.mxu1 %vm9227_vm0, %v9226_v1 }
  0x78   : > { %8688 = vmatpush3.bf16.msra.mxu0 %v9432_v33  ;;  %8732 = vmatpush3.bf16.msra.mxu1 %v9432_v33 }
  0x79   : > { %8689 = vmatprep.subr.bf16.mxu0 %v9226_v1  ;;  %8733 = vmatprep.subr.bf16.mxu1 %v9226_v1 }
  0x7c   : > { %8690 = vmatpush3.bf16.msra.mxu0 %v9445_v34  ;;  %8734 = vmatpush3.bf16.msra.mxu1 %v9445_v34 }
  0x7d   : > { %8691 = vmatprep.subr.bf16.mxu0 %v9226_v1  ;;  %8735 = vmatprep.subr.bf16.mxu1 %v9226_v1 }
  0x7e   : > { %8620 = vmatmul.mubr.bf16.gmra.mrb[40].mxu0 %v8932_v35  ;;  %8664 = vmatmul.mubr.bf16.gmra.mrb[40].mxu1 %v8933_v36 }
  0x7f   : > { %8623 = vmatprep.mubr.msk.bf16.mxu0 %vm9227_vm0, %v9226_v1  ;;  %8667 = vmatprep.mubr.msk.bf16.mxu1 %vm9227_vm0, %v9226_v1 }
  0x80   : > { %8692 = vmatpush3.bf16.msra.mxu0 %v9456_v37  ;;  %8736 = vmatpush3.bf16.msra.mxu1 %v9456_v37 }
  0x81   : > { %8693 = vmatprep.subr.bf16.mxu0 %v9226_v1  ;;  %8737 = vmatprep.subr.bf16.mxu1 %v9226_v1 }
  0x84   : > { %8694 = vmatpush3.bf16.msra.mxu0 %v9465_v38  ;;  %8738 = vmatpush3.bf16.msra.mxu1 %v9465_v38 }
  0x85   : > { %8767 = vmatprep.subr.bf16.mxu0 %v9226_v1  ;;  %8811 = vmatprep.subr.bf16.mxu1 %v9226_v1 }
  0x86   : > { %8624 = vmatmul.mubr.bf16.gmra.mrb[44].mxu0 %v8935_v39  ;;  %8668 = vmatmul.mubr.bf16.gmra.mrb[44].mxu1 %v8936_v40 }
  0x87   : > { %8627 = vmatprep.mubr.msk.bf16.mxu0 %vm9227_vm0, %v9226_v1  ;;  %8671 = vmatprep.mubr.msk.bf16.mxu1 %vm9227_vm0, %v9226_v1 }
  0x8e   : > { %8628 = vmatmul.mubr.bf16.gmra.mrb[48].mxu0 %v8938_v41  ;;  %8672 = vmatmul.mubr.bf16.gmra.mrb[48].mxu1 %v8939_v42 }
  0x8f   : > { %8631 = vmatprep.mubr.msk.bf16.mxu0 %vm9227_vm0, %v9226_v1  ;;  %8675 = vmatprep.mubr.msk.bf16.mxu1 %vm9227_vm0, %v9226_v1 }
  0x96   : > { %8632 = vmatmul.mubr.bf16.gmra.mrb[52].mxu0 %v8942_v43  ;;  %8676 = vmatmul.mubr.bf16.gmra.mrb[52].mxu1 %v8943_v44 }
  0x97   : > { %8695 = vmatprep.mubr.msk.bf16.mxu0 %vm9227_vm0, %v9226_v1  ;;  %8739 = vmatprep.mubr.msk.bf16.mxu1 %vm9227_vm0, %v9226_v1 }
  0x9e   : > { %8696 = vmatmul.mubr.bf16.vlgmr.msra.gmra.mrb[56].mxu0 %v8946_v45  ;;  %8740 = vmatmul.mubr.bf16.vlgmr.msra.gmra.mrb[56].mxu1 %v8947_v46 }
  0x9f   : > { %8699 = vmatprep.mubr.msk.bf16.mxu0 %vm9227_vm0, %v9226_v1  ;;  %8743 = vmatprep.mubr.msk.bf16.mxu1 %vm9227_vm0, %v9226_v1 }
  0xa0   : > { %8768 = vmatpush3.bf16.msra.mxu0 %v9388_v25  ;;  %8812 = vmatpush3.bf16.msra.mxu1 %v9388_v25  ;;  %v9655_v25 = vld [vmem:[%s12483_s2] ss:$0 sm:$0xff] }
  0xa1   : > { %8769 = vmatprep.subr.bf16.mxu0 %v9226_v1  ;;  %8813 = vmatprep.subr.bf16.mxu1 %v9226_v1 }
  0xa4   : > { %8770 = vmatpush3.bf16.msra.mxu0 %v9397_v26  ;;  %8814 = vmatpush3.bf16.msra.mxu1 %v9397_v26 }
  0xa5   : > { %8771 = vmatprep.subr.bf16.mxu0 %v9226_v1  ;;  %8815 = vmatprep.subr.bf16.mxu1 %v9226_v1 }
  0xa6   : > { %8700 = vmatmul.mubr.bf16.gmra.mrb[60].mxu0 %v8948_v47  ;;  %8744 = vmatmul.mubr.bf16.gmra.mrb[60].mxu1 %v8949_v48 }
  0xa7   : > { %8703 = vmatprep.mubr.msk.bf16.mxu0 %vm9227_vm0, %v9226_v1  ;;  %8747 = vmatprep.mubr.msk.bf16.mxu1 %vm9227_vm0, %v9226_v1 }
  0xa8   : > { %8772 = vmatpush3.bf16.msra.mxu0 %v9408_v29  ;;  %8816 = vmatpush3.bf16.msra.mxu1 %v9408_v29 }
  0xa9   : > { %8773 = vmatprep.subr.bf16.mxu0 %v9226_v1  ;;  %8817 = vmatprep.subr.bf16.mxu1 %v9226_v1 }
  0xac   : > { %8774 = vmatpush3.bf16.msra.mxu0 %v9421_v30  ;;  %8818 = vmatpush3.bf16.msra.mxu1 %v9421_v30 }
  0xad   : > { %8775 = vmatprep.subr.bf16.mxu0 %v9226_v1  ;;  %8819 = vmatprep.subr.bf16.mxu1 %v9226_v1 }
  0xae   : > { %8704 = vmatmul.mubr.bf16.gmra.mrb[64].mxu0 %v8950_v49  ;;  %8748 = vmatmul.mubr.bf16.gmra.mrb[64].mxu1 %v8951_v50 }
  0xaf   : > { %8707 = vmatprep.mubr.msk.bf16.mxu0 %vm9227_vm0, %v9226_v1  ;;  %8751 = vmatprep.mubr.msk.bf16.mxu1 %vm9227_vm0, %v9226_v1 }
  0xb0   : > { %8776 = vmatpush3.bf16.msra.mxu0 %v9432_v33  ;;  %8820 = vmatpush3.bf16.msra.mxu1 %v9432_v33  ;;  %v8973_v33 = vld [vmem:[%s9296_s8 + $0x1b8] sm:$0xff]  }
  0xb1   : > { %8777 = vmatprep.subr.bf16.mxu0 %v9226_v1  ;;  %8821 = vmatprep.subr.bf16.mxu1 %v9226_v1 }
  0xb4   : > { %8778 = vmatpush3.bf16.msra.mxu0 %v9445_v34  ;;  %8822 = vmatpush3.bf16.msra.mxu1 %v9445_v34 }
  0xb5   : > { %8779 = vmatprep.subr.bf16.mxu0 %v9226_v1  ;;  %8823 = vmatprep.subr.bf16.mxu1 %v9226_v1 }
  0xb6   : > { %8708 = vmatmul.mubr.bf16.gmra.mrb[68].mxu0 %v8952_v51  ;;  %8752 = vmatmul.mubr.bf16.gmra.mrb[68].mxu1 %v8953_v52 }
  0xb7   : > { %8711 = vmatprep.mubr.msk.bf16.mxu0 %vm9227_vm0, %v9226_v1  ;;  %8755 = vmatprep.mubr.msk.bf16.mxu1 %vm9227_vm0, %v9226_v1 }
  0xb8   : > { %8780 = vmatpush3.bf16.msra.mxu0 %v9456_v37  ;;  %8824 = vmatpush3.bf16.msra.mxu1 %v9456_v37 }
  0xb9   : > { %8781 = vmatprep.subr.bf16.mxu0 %v9226_v1  ;;  %8825 = vmatprep.subr.bf16.mxu1 %v9226_v1 }
  0xbc   : > { %8782 = vmatpush3.bf16.msra.mxu0 %v9465_v38  ;;  %8826 = vmatpush3.bf16.msra.mxu1 %v9465_v38 }
  0xbd   : > { %7583 = vmatprep.subr.bf16.mxu0 %v8974_v55  ;;  %8875 = vmatprep.subr.bf16.mxu1 %v8974_v55 }
  0xbe   : > { %8712 = vmatmul.mubr.bf16.gmra.mrb[72].mxu0 %v8954_v53  ;;  %8756 = vmatmul.mubr.bf16.gmra.mrb[72].mxu1 %v8955_v54 }
  0xbf   : > { %8715 = vmatprep.mubr.msk.bf16.mxu0 %vm9227_vm0, %v9226_v1  ;;  %8759 = vmatprep.mubr.msk.bf16.mxu1 %vm9227_vm0, %v9226_v1 }
  0xc6   : > { %8716 = vmatmul.mubr.bf16.gmra.mrb[76].mxu0 %v8956_v56  ;;  %8760 = vmatmul.mubr.bf16.gmra.mrb[76].mxu1 %v8957_v57 }
  0xc7   : > { %8719 = vmatprep.mubr.msk.bf16.mxu0 %vm9227_vm0, %v9226_v1  ;;  %8763 = vmatprep.mubr.msk.bf16.mxu1 %vm9227_vm0, %v9226_v1 }
  0xce   : > { %8720 = vmatmul.mubr.bf16.gmra.mrb[80].mxu0 %v8958_v58  ;;  %8764 = vmatmul.mubr.bf16.gmra.mrb[80].mxu1 %v8959_v59 }
  0xcf   : > { %8783 = vmatprep.mubr.msk.bf16.mxu0 %vm9227_vm0, %v9226_v1  ;;  %8827 = vmatprep.mubr.msk.bf16.mxu1 %vm9227_vm0, %v9226_v1 }
  0xd6   : > { %8784 = vmatmul.mubr.bf16.vlgmr.msra.gmra.mrb[84].mxu0 %v8960_v60  ;;  %8828 = vmatmul.mubr.bf16.vlgmr.msra.gmra.mrb[84].mxu1 %v8961_v61 }
  0xd7   : > { %8787 = vmatprep.mubr.msk.bf16.mxu0 %vm9227_vm0, %v9226_v1  ;;  %8831 = vmatprep.mubr.msk.bf16.mxu1 %vm9227_vm0, %v9226_v1 }
  0xd8   : > { %7584 = vmatpush3.bf16.msra.mxu0 %v8975_v62  ;;  %8883 = vmatpush3.bf16.msra.mxu1 %v8975_v62 }
  0xd9   : > { %7585 = vmatprep.subr.bf16.mxu0 %v8976_v63  ;;  %8876 = vmatprep.subr.bf16.mxu1 %v8976_v63 }
  0xdc   : > { %7586 = vmatpush3.bf16.msra.mxu0 %v8977_v0  ;;  %8884 = vmatpush3.bf16.msra.mxu1 %v8977_v0 }
  0xdd   : > { %7587 = vmatprep.subr.bf16.mxu0 %v8978_v2  ;;  %8877 = vmatprep.subr.bf16.mxu1 %v8978_v2 }
  0xde   : > { %8788 = vmatmul.mubr.bf16.gmra.mrb[88].mxu0 %v8962_v3  ;;  %8832 = vmatmul.mubr.bf16.gmra.mrb[88].mxu1 %v8963_v4 }
  0xdf   : > { %8791 = vmatprep.mubr.msk.bf16.mxu0 %vm9227_vm0, %v9226_v1  ;;  %8835 = vmatprep.mubr.msk.bf16.mxu1 %vm9227_vm0, %v9226_v1 }
  0xe0   : > { %7588 = vmatpush3.bf16.msra.mxu0 %v8979_v5  ;;  %8885 = vmatpush3.bf16.msra.mxu1 %v8979_v5 }
  0xe1   : > { %7589 = vmatprep.subr.bf16.mxu0 %v8980_v6  ;;  %8878 = vmatprep.subr.bf16.mxu1 %v8980_v6 }
  0xe4   : > { %7590 = vmatpush3.bf16.msra.mxu0 %v8981_v7  ;;  %8886 = vmatpush3.bf16.msra.mxu1 %v8981_v7 }
  0xe5   : > { %7591 = vmatprep.subr.bf16.mxu0 %v8982_v8  ;;  %8879 = vmatprep.subr.bf16.mxu1 %v8982_v8 }
  0xe6   : > { %8792 = vmatmul.mubr.bf16.gmra.mrb[92].mxu0 %v8964_v9  ;;  %8836 = vmatmul.mubr.bf16.gmra.mrb[92].mxu1 %v8965_v10 }
  0xe7   : > { %8795 = vmatprep.mubr.msk.bf16.mxu0 %vm9227_vm0, %v9226_v1  ;;  %8839 = vmatprep.mubr.msk.bf16.mxu1 %vm9227_vm0, %v9226_v1 }
  0xe8   : > { %7592 = vmatpush3.bf16.msra.mxu0 %v8983_v11  ;;  %8887 = vmatpush3.bf16.msra.mxu1 %v8983_v11 }
  0xe9   : > { %7593 = vmatprep.subr.bf16.mxu0 %v8984_v12  ;;  %8880 = vmatprep.subr.bf16.mxu1 %v8984_v12 }
  0xec   : > { %7594 = vmatpush3.bf16.msra.mxu0 %v8985_v13  ;;  %8888 = vmatpush3.bf16.msra.mxu1 %v8985_v13 }
  0xed   : > { %7595 = vmatprep.subr.bf16.mxu0 %v8986_v14  ;;  %8881 = vmatprep.subr.bf16.mxu1 %v8986_v14 }
  0xee   : > { %8796 = vmatmul.mubr.bf16.gmra.mrb[96].mxu0 %v8966_v15  ;;  %8840 = vmatmul.mubr.bf16.gmra.mrb[96].mxu1 %v8967_v16 }
  0xef   : > { %8799 = vmatprep.mubr.msk.bf16.mxu0 %vm9227_vm0, %v9226_v1  ;;  %8843 = vmatprep.mubr.msk.bf16.mxu1 %vm9227_vm0, %v9226_v1 }
  0xf0   : > { %7596 = vmatpush3.bf16.msra.mxu0 %v8987_v17  ;;  %8889 = vmatpush3.bf16.msra.mxu1 %v8987_v17 }
  0xf1   : > { %7597 = vmatprep.subr.bf16.mxu0 %v8988_v18  ;;  %8882 = vmatprep.subr.bf16.mxu1 %v8988_v18 }
  0xf4   : > { %7598 = vmatpush3.bf16.msra.mxu0 %v8989_v19  ;;  %8890 = vmatpush3.bf16.msra.mxu1 %v8989_v19 }
  0xf5   : > { %7723 = vmatprep.subr.bf16.mxu0 %v8990_v20 }
  0xf6   : > { %8800 = vmatmul.mubr.bf16.gmra.mrb[100].mxu0 %v8968_v21  ;;  %8844 = vmatmul.mubr.bf16.gmra.mrb[100].mxu1 %v8969_v22 }
  0xf7   : > { %8803 = vmatprep.mubr.msk.bf16.mxu0 %vm9227_vm0, %v9226_v1  ;;  %8847 = vmatprep.mubr.msk.bf16.mxu1 %vm9227_vm0, %v9226_v1 }
  0xfe   : > { %8804 = vmatmul.mubr.bf16.gmra.mrb[104].mxu0 %v8970_v23  ;;  %8848 = vmatmul.mubr.bf16.gmra.mrb[104].mxu1 %v8971_v24 }
  0xff   : > { %8807 = vmatprep.mubr.msk.bf16.mxu0 %vm9227_vm0, %v9226_v1  ;;  %8851 = vmatprep.mubr.msk.bf16.mxu1 %vm9227_vm0, %v9226_v1 }
 0x101   : > { %v414_v26 = vpop.f32.mrb[0].mxu0  ;;  %v573_v27 = vpop.f32.mrb[0].mxu1 }
 0x102   : > { %v415_v28 = vadd.f32 %v9655_v25, %v414_v26  ;;  %v574_v29 = vadd.f32 %v9655_v25, %v573_v27  ;;  %v8521_v30 = vpop.f32.mrb[1].mxu0  ;;  %v8565_v31 = vpop.f32.mrb[1].mxu1 }
 0x103   : > { %v417_v34 = vpop.f32.mrb[2].mxu0  ;;  %v576_v35 = vpop.f32.mrb[2].mxu1 }
 0x104   : > { %v469_v36 = vmax.f32 %v415_v28, 0.0  ;;  %v628_v37 = vmax.f32 %v574_v29, 0.0  ;;  %v418_v38 = vadd.f32 %v9655_v25, %v417_v34  ;;  %v577_v39 = vadd.f32 %v9655_v25, %v576_v35  ;;  %v8522_v40 = vpop.f32.mrb[3].mxu0  ;;  %v8566_v1 = vpop.f32.mrb[3].mxu1 }
 0x106   : > { %v9667_v41 = vmax.f32 %v469_v36, %v628_v37  ;;  %v470_v42 = vmax.f32 %v418_v38, 0.0  ;;  %v629_v43 = vmax.f32 %v577_v39, 0.0  ;;  %8808 = vmatmul.mubr.bf16.gmra.mrb[108].mxu0 %v8972_v32  ;;  %8852 = vmatmul.mubr.bf16.gmra.mrb[108].mxu1 %v8973_v33 }
 0x108   : > { %v9669_v44 = vmax.f32 %v470_v42, %v629_v43 }
 0x109   : > { %v422_v45 = vpop.f32.mrb[4].mxu0  ;;  %v581_v46 = vpop.f32.mrb[4].mxu1 }
 0x10a   : > { %v423_v47 = vadd.f32 %v9655_v25, %v422_v45  ;;  %v582_v48 = vadd.f32 %v9655_v25, %v581_v46  ;;  %v8525_v49 = vpop.f32.mrb[5].mxu0  ;;  %v8569_v50 = vpop.f32.mrb[5].mxu1 }
 0x10b   : > { %v425_v51 = vpop.f32.mrb[6].mxu0  ;;  %v584_v52 = vpop.f32.mrb[6].mxu1 }
 0x10c   : > { %v471_v53 = vmax.f32 %v423_v47, 0.0  ;;  %v630_v54 = vmax.f32 %v582_v48, 0.0  ;;  %v426_v55 = vadd.f32 %v9655_v25, %v425_v51  ;;  %v585_v56 = vadd.f32 %v9655_v25, %v584_v52  ;;  %v8526_v57 = vpop.f32.mrb[7].mxu0  ;;  %v8570_v58 = vpop.f32.mrb[7].mxu1 }
 0x10e   : > { %v9675_v59 = vmax.f32 %v471_v53, %v630_v54  ;;  %v472_v60 = vmax.f32 %v426_v55, 0.0  ;;  %v631_v61 = vmax.f32 %v585_v56, 0.0 }
 0x110   : > { %v9677_v62 = vmax.f32 %v472_v60, %v631_v61 }
 0x111   : > { %v430_v63 = vpop.f32.mrb[8].mxu0  ;;  %v589_v0 = vpop.f32.mrb[8].mxu1 }
 0x112   : > { %v431_v2 = vadd.f32 %v9655_v25, %v430_v63  ;;  %v590_v3 = vadd.f32 %v9655_v25, %v589_v0  ;;  %v8529_v4 = vpop.f32.mrb[9].mxu0  ;;  %v8573_v5 = vpop.f32.mrb[9].mxu1 }
 0x113   : > { %v433_v6 = vpop.f32.mrb[10].mxu0  ;;  %v592_v7 = vpop.f32.mrb[10].mxu1 }
 0x114   : > { %v473_v8 = vmax.f32 %v431_v2, 0.0  ;;  %v632_v9 = vmax.f32 %v590_v3, 0.0  ;;  %v434_v10 = vadd.f32 %v9655_v25, %v433_v6  ;;  %v593_v11 = vadd.f32 %v9655_v25, %v592_v7  ;;  %v8530_v12 = vpop.f32.mrb[11].mxu0  ;;  %v8574_v13 = vpop.f32.mrb[11].mxu1 }
 0x116   : > { %v9683_v14 = vmax.f32 %v473_v8, %v632_v9  ;;  %v474_v15 = vmax.f32 %v434_v10, 0.0  ;;  %v633_v16 = vmax.f32 %v593_v11, 0.0 }
 0x118   : > { %v9685_v17 = vmax.f32 %v474_v15, %v633_v16 }
 0x119   : > { %v438_v18 = vpop.f32.mrb[12].mxu0  ;;  %v597_v19 = vpop.f32.mrb[12].mxu1 }
 0x11a   : > { %v439_v20 = vadd.f32 %v9655_v25, %v438_v18  ;;  %v598_v21 = vadd.f32 %v9655_v25, %v597_v19  ;;  %v8533_v22 = vpop.f32.mrb[13].mxu0  ;;  %v8577_v23 = vpop.f32.mrb[13].mxu1 }
 0x11b   : > { %v441_v24 = vpop.f32.mrb[14].mxu0  ;;  %v600_v26 = vpop.f32.mrb[14].mxu1 }
 0x11c   : > { %v475_v27 = vmax.f32 %v439_v20, 0.0  ;;  %v634_v28 = vmax.f32 %v598_v21, 0.0  ;;  %v442_v29 = vadd.f32 %v9655_v25, %v441_v24  ;;  %v601_v30 = vadd.f32 %v9655_v25, %v600_v26  ;;  %v8534_v31 = vpop.f32.mrb[15].mxu0  ;;  %v8578_v32 = vpop.f32.mrb[15].mxu1 }
 0x11e   : > { %v9691_v33 = vmax.f32 %v475_v27, %v634_v28  ;;  %v476_v34 = vmax.f32 %v442_v29, 0.0  ;;  %v635_v35 = vmax.f32 %v601_v30, 0.0 }
 0x120   : > { %v9693_v36 = vmax.f32 %v476_v34, %v635_v35 }
 0x121   : > { %v446_v37 = vpop.f32.mrb[16].mxu0  ;;  %v605_v38 = vpop.f32.mrb[16].mxu1 }
 0x122   : > { %v447_v39 = vadd.f32 %v9655_v25, %v446_v37  ;;  %v606_v40 = vadd.f32 %v9655_v25, %v605_v38  ;;  %v8537_v1 = vpop.f32.mrb[17].mxu0  ;;  %v8581_v42 = vpop.f32.mrb[17].mxu1 }
 0x123   : > { %v449_v43 = vpop.f32.mrb[18].mxu0  ;;  %v608_v45 = vpop.f32.mrb[18].mxu1 }
 0x124   : > { %v477_v46 = vmax.f32 %v447_v39, 0.0  ;;  %v636_v47 = vmax.f32 %v606_v40, 0.0  ;;  %v450_v48 = vadd.f32 %v9655_v25, %v449_v43  ;;  %v609_v49 = vadd.f32 %v9655_v25, %v608_v45  ;;  %v8538_v50 = vpop.f32.mrb[19].mxu0  ;;  %v8582_v51 = vpop.f32.mrb[19].mxu1 }
 0x126   : > { %v9699_v52 = vmax.f32 %v477_v46, %v636_v47  ;;  %v478_v53 = vmax.f32 %v450_v48, 0.0  ;;  %v637_v54 = vmax.f32 %v609_v49, 0.0 }
 0x128   : > { %v9701_v55 = vmax.f32 %v478_v53, %v637_v54 }
 0x129   : > { %v454_v56 = vpop.f32.mrb[20].mxu0  ;;  %v613_v57 = vpop.f32.mrb[20].mxu1 }
 0x12a   : > { %v455_v58 = vadd.f32 %v9655_v25, %v454_v56  ;;  %v614_v60 = vadd.f32 %v9655_v25, %v613_v57  ;;  %v8541_v61 = vpop.f32.mrb[21].mxu0  ;;  %v8585_v63 = vpop.f32.mrb[21].mxu1 }
 0x12b   : > { %v457_v0 = vpop.f32.mrb[22].mxu0  ;;  %v616_v2 = vpop.f32.mrb[22].mxu1 }
 0x12c   : > { %v479_v3 = vmax.f32 %v455_v58, 0.0  ;;  %v638_v4 = vmax.f32 %v614_v60, 0.0  ;;  %v458_v5 = vadd.f32 %v9655_v25, %v457_v0  ;;  %v617_v6 = vadd.f32 %v9655_v25, %v616_v2  ;;  %v8542_v7 = vpop.f32.mrb[23].mxu0  ;;  %v8586_v8 = vpop.f32.mrb[23].mxu1 }
 0x12e   : > { %v9707_v9 = vmax.f32 %v479_v3, %v638_v4  ;;  %v480_v10 = vmax.f32 %v458_v5, 0.0  ;;  %v639_v11 = vmax.f32 %v617_v6, 0.0 }
 0x130   : > { %v9709_v12 = vmax.f32 %v480_v10, %v639_v11 }
 0x131   : > { %v462_v13 = vpop.f32.mrb[24].mxu0  ;;  %v621_v15 = vpop.f32.mrb[24].mxu1 }
 0x132   : > { %v463_v16 = vadd.f32 %v9655_v25, %v462_v13  ;;  %v622_v18 = vadd.f32 %v9655_v25, %v621_v15  ;;  %v8545_v19 = vpop.f32.mrb[25].mxu0  ;;  %v8589_v20 = vpop.f32.mrb[25].mxu1 }
 0x133   : > { %v465_v21 = vpop.f32.mrb[26].mxu0  ;;  %v624_v22 = vpop.f32.mrb[26].mxu1 }
 0x134   : > { %v481_v23 = vmax.f32 %v463_v16, 0.0  ;;  %v640_v24 = vmax.f32 %v622_v18, 0.0  ;;  %v466_v26 = vadd.f32 %v9655_v25, %v465_v21  ;;  %v625_v27 = vadd.f32 %v9655_v25, %v624_v22  ;;  %v8546_v28 = vpop.f32.mrb[27].mxu0  ;;  %v8590_v29 = vpop.f32.mrb[27].mxu1 }
 0x135   : > { %v9008_v28 = vld [vmem:[%s12484_s3 + $0x40] sm:$0xff]  }
 0x136   : > { %v9715_v30 = vmax.f32 %v481_v23, %v640_v24  ;;  %v482_v31 = vmax.f32 %v466_v26, 0.0  ;;  %v641_v32 = vmax.f32 %v625_v27, 0.0  ;;  %7653 = vmatprep.subr.bf16.mxu1 %v9008_v28 }
 0x138   : > { %v9717_v34 = vmax.f32 %v482_v31, %v641_v32 }
 0x139   : > { %v746_v35 = vpop.f32.mrb[28].mxu0  ;;  %v919_v37 = vpop.f32.mrb[28].mxu1 }
 0x13a   : > { %v747_v38 = vadd.f32 %v9655_v25, %v746_v35  ;;  %v920_v39 = vadd.f32 %v9655_v25, %v919_v37  ;;  %v8609_v40 = vpop.f32.mrb[29].mxu0  ;;  %v8653_v1 = vpop.f32.mrb[29].mxu1 }
 0x13b   : > { %v749_v42 = vpop.f32.mrb[30].mxu0  ;;  %v922_v43 = vpop.f32.mrb[30].mxu1 }
 0x13c   : > { %v801_v45 = vmax.f32 %v747_v38, 0.0  ;;  %v974_v46 = vmax.f32 %v920_v39, 0.0  ;;  %v750_v47 = vadd.f32 %v9655_v25, %v749_v42  ;;  %v923_v48 = vadd.f32 %v9655_v25, %v922_v43  ;;  %v8610_v49 = vpop.f32.mrb[31].mxu0  ;;  %v8654_v50 = vpop.f32.mrb[31].mxu1 }
 0x13e   : > { %v815_v51 = vmax.f32 %v9667_v41, %v801_v45  ;;  %v802_v53 = vmax.f32 %v750_v47, 0.0  ;;  %v975_v57 = vmax.f32 %v923_v48, 0.0 }
 0x140   : > { %v988_v54 = vmax.f32 %v815_v51, %v974_v46  ;;  %v816_v56 = vmax.f32 %v9669_v44, %v802_v53 }
 0x141   : > { %v754_v58 = vpop.f32.mrb[32].mxu0  ;;  %v927_v60 = vpop.f32.mrb[32].mxu1 }
 0x142   : > { %v989_v61 = vmax.f32 %v816_v56, %v975_v57  ;;  %v755_v63 = vadd.f32 %v9655_v25, %v754_v58  ;;  %v928_v0 = vadd.f32 %v9655_v25, %v927_v60  ;;  %v8613_v2 = vpop.f32.mrb[33].mxu0  ;;  %v8657_v3 = vpop.f32.mrb[33].mxu1 }
 0x143   : > { %v757_v4 = vpop.f32.mrb[34].mxu0  ;;  %v930_v5 = vpop.f32.mrb[34].mxu1 }
 0x144   : > { %v1002_v6 = vpack.c.bf16 %v989_v61, %v988_v54  ;;  %v803_v7 = vmax.f32 %v755_v63, 0.0  ;;  %v976_v8 = vmax.f32 %v928_v0, 0.0  ;;  %v758_v41 = vadd.f32 %v9655_v25, %v757_v4  ;;  %v8614_v10 = vpop.f32.mrb[35].mxu0  ;;  %v8658_v11 = vpop.f32.mrb[35].mxu1 }
 0x145   : > { %v931_v44 = vadd.f32 %v9655_v25, %v930_v5 }
 0x146   : > { %1009 = vst [vmem:[#allocation2] sm:$0xff] %v1002_v6  ;;  %v817_v13 = vmax.f32 %v9675_v59, %v803_v7  ;;  %v804_v15 = vmax.f32 %v758_v41, 0.0 }
 0x147   : > { %v977_v19 = vmax.f32 %v931_v44, 0.0 }
 0x148   : > { %v990_v16 = vmax.f32 %v817_v13, %v976_v8  ;;  %v818_v18 = vmax.f32 %v9677_v62, %v804_v15 }
 0x149   : > { %v762_v20 = vpop.f32.mrb[36].mxu0  ;;  %v935_v21 = vpop.f32.mrb[36].mxu1 }
 0x14a   : > { %v991_v22 = vmax.f32 %v818_v18, %v977_v19  ;;  %v763_v23 = vadd.f32 %v9655_v25, %v762_v20  ;;  %v936_v24 = vadd.f32 %v9655_v25, %v935_v21  ;;  %v8617_v26 = vpop.f32.mrb[37].mxu0  ;;  %v8661_v27 = vpop.f32.mrb[37].mxu1 }
 0x14b   : > { %v765_v29 = vpop.f32.mrb[38].mxu0  ;;  %v938_v59 = vpop.f32.mrb[38].mxu1 }
 0x14c   : > { %v9736_v31 = vpack.c.bf16 %v991_v22, %v990_v16  ;;  %v805_v32 = vmax.f32 %v763_v23, 0.0  ;;  %v978_v62 = vmax.f32 %v936_v24, 0.0  ;;  %v766_v35 = vadd.f32 %v9655_v25, %v765_v29  ;;  %v8618_v37 = vpop.f32.mrb[39].mxu0  ;;  %v8662_v38 = vpop.f32.mrb[39].mxu1 }
 0x14d   : > { %v939_v39 = vadd.f32 %v9655_v25, %v938_v59  ;;  %v9740_v40 = vld [vmem:[#allocation2] sm:$0xfe] }
 0x14e   : > { %1010 = vst [vmem:[#allocation2 + $0x8] sm:$0xff] %v9736_v31  ;;  %v819_v1 = vmax.f32 %v9683_v14, %v805_v32  ;;  %v806_v42 = vmax.f32 %v766_v35, 0.0  ;;  %v1798_v43 = vshll.u32 %v9736_v31, 16  ;;  %v1912_v45 = vshll.u32 %v9740_v40, 16 }
 0x14f   : > { %v979_v48 = vmax.f32 %v939_v39, 0.0  ;;  %v1910_v51 = vshrl.u32 %v9740_v40, 16  ;;  %v1802_v8 = vshrl.u32 %v9736_v31, 16  ;;  %v1970_v22 = vrot.slane %v9736_v31, 1 }
 0x150   : > { %v992_v46 = vmax.f32 %v819_v1, %v978_v62  ;;  %v820_v47 = vmax.f32 %v9685_v17, %v806_v42  ;;  %v1914_v53 = vrot.slane %v1912_v45, 1  ;;  %v9752_v63 = vrot.slane %v1798_v43, 1  ;;  %v8991_v42 = vld [vmem:[%s12484_s3 + $0x100] sm:$0xff]  }
 0x151   : > { %v770_v49 = vpop.f32.mrb[40].mxu0  ;;  %v943_v50 = vpop.f32.mrb[40].mxu1 }
 0x152   : > { %v993_v54 = vmax.f32 %v820_v47, %v979_v48  ;;  %v771_v56 = vadd.f32 %v9655_v25, %v770_v49  ;;  %v944_v57 = vadd.f32 %v9655_v25, %v943_v50  ;;  %v8621_v14 = vpop.f32.mrb[41].mxu0  ;;  %v8665_v58 = vpop.f32.mrb[41].mxu1  ;;  %v1915_v17 = vor.u32 %v1914_v53, %v1910_v51  ;;  %v8992_v48 = vld [vmem:[%s12484_s3 + $0x148] sm:$0xff]  }
 0x153   : > { %v773_v60 = vpop.f32.mrb[42].mxu0  ;;  %v946_v61 = vpop.f32.mrb[42].mxu1  ;;  %v1804_v44 = vor.u32 %v1802_v8, %v9752_v63 }
 0x154   : > { %v9754_v0 = vpack.c.bf16 %v993_v54, %v992_v46  ;;  %v807_v2 = vmax.f32 %v771_v56, 0.0  ;;  %v980_v3 = vmax.f32 %v944_v57, 0.0  ;;  %v774_v4 = vadd.f32 %v9655_v25, %v773_v60  ;;  %v8622_v5 = vpop.f32.mrb[43].mxu0  ;;  %v8666_v6 = vpop.f32.mrb[43].mxu1 }
 0x155   : > { %v947_v7 = vadd.f32 %v9655_v25, %v946_v61  ;;  %v1916_v13 = vsel %vm1789_vm1, %v1915_v17, %v9752_v63 }
 0x156   : > { %1011 = vst [vmem:[#allocation2 + $0x10] sm:$0xff] %v9754_v0  ;;  %v821_v41 = vmax.f32 %v9691_v33, %v807_v2  ;;  %v808_v10 = vmax.f32 %v774_v4, 0.0  ;;  %v1806_v11 = vshll.u32 %v9754_v0, 16  ;;  %v1969_v33 = vrot.slane %v9740_v40, 1  ;;  %v8994_v2 = vld [vmem:[%s12484_s3 + $0x150] sm:$0xff]  }
 0x157   : > { %v981_v18 = vmax.f32 %v947_v7, 0.0  ;;  %v1972_v32 = vrot.slane %v1916_v13, 1  ;;  %v1810_v47 = vshrl.u32 %v9754_v0, 16  ;;  %v1975_v17 = vrot.slane %v9754_v0, 1 }
 0x158   : > { %v994_v15 = vmax.f32 %v821_v41, %v980_v3  ;;  %v822_v16 = vmax.f32 %v9693_v36, %v808_v10  ;;  %v1808_v19 = vrot.slane %v1806_v11, 1  ;;  %v1971_v51 = vsel %vm1968_vm2, %v1969_v33, %v1970_v22 }
 0x159   : > { %v778_v20 = vpop.f32.mrb[44].mxu0  ;;  %v951_v21 = vpop.f32.mrb[44].mxu1 }
 0x15a   : > { %v995_v23 = vmax.f32 %v822_v16, %v981_v18  ;;  %v779_v24 = vadd.f32 %v9655_v25, %v778_v20  ;;  %v952_v26 = vadd.f32 %v9655_v25, %v951_v21  ;;  %v8625_v27 = vpop.f32.mrb[45].mxu0  ;;  %v8669_v28 = vpop.f32.mrb[45].mxu1  ;;  %v9775_v29 = vsel %vm1789_vm1, %v1804_v44, %v1808_v19  ;;  %v8995_v21 = vld [vmem:[%s12484_s3 + $0x110] sm:$0xff]  }
 0x15b   : > { %v781_v36 = vpop.f32.mrb[46].mxu0  ;;  %v954_v59 = vpop.f32.mrb[46].mxu1  ;;  %v1973_v62 = vrot.slane %v9775_v29, 1  ;;  %v1812_v54 = vor.u32 %v1810_v47, %v1808_v19 }
 0x15c   : > { %v9778_v35 = vpack.c.bf16 %v995_v23, %v994_v15  ;;  %v809_v37 = vmax.f32 %v779_v24, 0.0  ;;  %v982_v38 = vmax.f32 %v952_v26, 0.0  ;;  %v782_v39 = vadd.f32 %v9655_v25, %v781_v36  ;;  %v8626_v40 = vpop.f32.mrb[47].mxu0  ;;  %v8670_v1 = vpop.f32.mrb[47].mxu1  ;;  %v8996_v26 = vld [vmem:[%s12484_s3 + $0x158] sm:$0xff]  }
 0x15d   : > { %v955_v45 = vadd.f32 %v9655_v25, %v954_v59  ;;  %v1974_v46 = vsel %vm1968_vm2, %v1972_v32, %v1973_v62  ;;  %v1976_v36 = vsel %vm1968_vm2, %v1970_v22, %v1975_v17 }
 0x15e   : > { %1012 = vst [vmem:[#allocation2 + $0x18] sm:$0xff] %v9778_v35  ;;  %v823_v49 = vmax.f32 %v9699_v52, %v809_v37  ;;  %v810_v50 = vmax.f32 %v782_v39, 0.0  ;;  %2153 = vmatprep.mubr.bf16.mxu0 %v1974_v46  ;;  %v1814_v53 = vshll.u32 %v9778_v35, 16  ;;  %v8993_v52 = vld [vmem:[%s12484_s3 + $0x108] sm:$0xff]   ;;  %v1818_v24 = vshrl.u32 %v9778_v35, 16  ;;  %v8997_v39 = vld [vmem:[%s12484_s3 + $0x118] sm:$0xff]  }
 0x15f   : > { %2154 = vmatmul.mubr.bf16.vlgmr.msra.gmra.mrb[112].mxu0 %v1971_v51  ;;  %v983_v14 = vmax.f32 %v955_v45, 0.0  ;;  %v1979_v1 = vrot.slane %v9778_v35, 1 }
 0x160   : > { %v996_v56 = vmax.f32 %v823_v49, %v982_v38  ;;  %v824_v57 = vmax.f32 %v9701_v55, %v810_v50  ;;  %v1816_v58 = vrot.slane %v1814_v53, 1  ;;  %7724 = vmatpush3.bf16.msra.mxu0 %v8991_v42  ;;  %v8998_v42 = vld [vmem:[%s12484_s3 + $0x160] sm:$0xff]  }
 0x161   : > { %v786_v60 = vpop.f32.mrb[48].mxu0  ;;  %v959_v61 = vpop.f32.mrb[48].mxu1  ;;  %7725 = vmatprep.subr.bf16.mxu0 %v8992_v48 }
 0x162   : > { %v997_v3 = vmax.f32 %v824_v57, %v983_v14  ;;  %v787_v55 = vadd.f32 %v9655_v25, %v786_v60  ;;  %v960_v4 = vadd.f32 %v9655_v25, %v959_v61  ;;  %v8629_v5 = vpop.f32.mrb[49].mxu0  ;;  %v8673_v6 = vpop.f32.mrb[49].mxu1  ;;  %v9811_v7 = vsel %vm1789_vm1, %v1812_v54, %v1816_v58 }
 0x163   : > { %v789_v41 = vpop.f32.mrb[50].mxu0  ;;  %v962_v10 = vpop.f32.mrb[50].mxu1  ;;  %v1977_v44 = vrot.slane %v9811_v7, 1  ;;  %v1820_v32 = vor.u32 %v1818_v24, %v1816_v58  ;;  %v9000_v5 = vld [vmem:[%s12484_s3 + $0x168] sm:$0xff]  }
 0x164   : > { %v9814_v13 = vpack.c.bf16 %v997_v3, %v996_v56  ;;  %v811_v15 = vmax.f32 %v787_v55, 0.0  ;;  %v984_v16 = vmax.f32 %v960_v4, 0.0  ;;  %v790_v18 = vadd.f32 %v9655_v25, %v789_v41  ;;  %v8630_v19 = vpop.f32.mrb[51].mxu0  ;;  %v8674_v20 = vpop.f32.mrb[51].mxu1  ;;  %7726 = vmatpush3.bf16.msra.mxu0 %v8993_v52 }
 0x165   : > { %v963_v33 = vadd.f32 %v9655_v25, %v962_v10  ;;  %v1978_v23 = vsel %vm1968_vm2, %v1973_v62, %v1977_v44  ;;  %7727 = vmatprep.subr.bf16.mxu0 %v8994_v2  ;;  %v8999_v2 = vld [vmem:[%s12484_s3 + $0x120] sm:$0xff]   ;;  %v1980_v10 = vsel %vm1968_vm2, %v1975_v17, %v1979_v1  ;;  %v9001_v20 = vld [vmem:[%s12484_s3 + $0x128] sm:$0xff]  }
 0x166   : > { %1013 = vst [vmem:[#allocation2 + $0x20] sm:$0xff] %v9814_v13  ;;  %v825_v27 = vmax.f32 %v9707_v9, %v811_v15  ;;  %v812_v28 = vmax.f32 %v790_v18, 0.0  ;;  %2161 = vmatprep.mubr.bf16.mxu0 %v1978_v23  ;;  %v1822_v59 = vshll.u32 %v9814_v13, 16  ;;  %v1826_v4 = vshrl.u32 %v9814_v13, 16 }
 0x167   : > { %2162 = vmatmul.mubr.bf16.gmra.mrb[116].mxu0 %v1976_v36  ;;  %v985_v38 = vmax.f32 %v963_v33, 0.0  ;;  %v1983_v23 = vrot.slane %v9814_v13, 1 }
 0x168   : > { %v998_v62 = vmax.f32 %v825_v27, %v984_v16  ;;  %v826_v37 = vmax.f32 %v9709_v12, %v812_v28  ;;  %v1824_v9 = vrot.slane %v1822_v59, 1  ;;  %7728 = vmatpush3.bf16.msra.mxu0 %v8995_v21  ;;  %v9880_v21 = vld [vmem:[#allocation2] sm:$0x80] }
 0x169   : > { %v794_v40 = vpop.f32.mrb[52].mxu0  ;;  %v967_v22 = vpop.f32.mrb[52].mxu1  ;;  %7729 = vmatprep.subr.bf16.mxu0 %v8996_v26 }
 0x16a   : > { %v999_v45 = vmax.f32 %v826_v37, %v985_v38  ;;  %v795_v12 = vadd.f32 %v9655_v25, %v794_v40  ;;  %v968_v46 = vadd.f32 %v9655_v25, %v967_v22  ;;  %v8633_v48 = vpop.f32.mrb[53].mxu0  ;;  %v8677_v49 = vpop.f32.mrb[53].mxu1  ;;  %v9849_v50 = vsel %vm1789_vm1, %v1820_v32, %v1824_v9 }
 0x16b   : > { %v797_v51 = vpop.f32.mrb[54].mxu0  ;;  %v970_v54 = vpop.f32.mrb[54].mxu1  ;;  %v1981_v56 = vrot.slane %v9849_v50, 1  ;;  %v1828_v15 = vor.u32 %v1826_v4, %v1824_v9  ;;  %v2436_v40 = vrot.slane %v9754_v0, 5  ;;  %v9003_v49 = vld [vmem:[%s12484_s3 + $0x130] sm:$0xff]  }
 0x16c   : > { %v9852_v57 = vpack.c.bf16 %v999_v45, %v998_v62  ;;  %v813_v14 = vmax.f32 %v795_v12, 0.0  ;;  %v986_v58 = vmax.f32 %v968_v46, 0.0  ;;  %v798_v52 = vadd.f32 %v9655_v25, %v797_v51  ;;  %v8634_v60 = vpop.f32.mrb[55].mxu0  ;;  %v8678_v61 = vpop.f32.mrb[55].mxu1  ;;  %7730 = vmatpush3.bf16.msra.mxu0 %v8997_v39 }
 0x16d   : > { %v971_v3 = vadd.f32 %v9655_v25, %v970_v54  ;;  %v1982_v55 = vsel %vm1968_vm2, %v1977_v44, %v1981_v56  ;;  %7731 = vmatprep.subr.bf16.mxu0 %v8998_v42  ;;  %v2433_v39 = vrot.slane %v9880_v21, 5 }
 0x16e   : > { %1014 = vst [vmem:[#allocation2 + $0x28] sm:$0xff] %v9852_v57  ;;  %v827_v6 = vmax.f32 %v9715_v30, %v813_v14  ;;  %v814_v41 = vmax.f32 %v798_v52, 0.0  ;;  %2169 = vmatprep.mubr.bf16.mxu0 %v1982_v55  ;;  %v1830_v44 = vshll.u32 %v9852_v57, 16  ;;  %v1984_v14 = vsel %vm1968_vm2, %v1979_v1, %v1983_v23  ;;  %v9004_v52 = vld [vmem:[%s12484_s3 + $0x178] sm:$0xff]  }
 0x16f   : > { %2170 = vmatmul.mubr.bf16.gmra.mrb[120].mxu0 %v1980_v10  ;;  %v987_v19 = vmax.f32 %v971_v3, 0.0 }
 0x170   : > { %v1000_v16 = vmax.f32 %v827_v6, %v986_v58  ;;  %v828_v18 = vmax.f32 %v9717_v34, %v814_v41  ;;  %v1832_v30 = vrot.slane %v1830_v44, 1  ;;  %7732 = vmatpush3.bf16.msra.mxu0 %v8999_v2  ;;  %v9002_v34 = vld [vmem:[%s12484_s3 + $0x170] sm:$0xff]   ;;  %v2434_v58 = vrot.slane %v9736_v31, 5  ;;  %v9005_v6 = vld [vmem:[%s12484_s3 + $0x138] sm:$0xff]  }
 0x171   : > { %v1177_v17 = vpop.f32.mrb[56].mxu0  ;;  %v1336_v33 = vpop.f32.mrb[56].mxu1  ;;  %7733 = vmatprep.subr.bf16.mxu0 %v9000_v5 }
 0x172   : > { %v1001_v26 = vmax.f32 %v828_v18, %v987_v19  ;;  %v1178_v27 = vadd.f32 %v9655_v25, %v1177_v17  ;;  %v1337_v28 = vadd.f32 %v9655_v25, %v1336_v33  ;;  %v8697_v36 = vpop.f32.mrb[57].mxu0  ;;  %v8741_v32 = vpop.f32.mrb[57].mxu1  ;;  %v9889_v62 = vsel %vm1789_vm1, %v1828_v15, %v1832_v30  ;;  %v9006_v18 = vld [vmem:[%s12484_s3 + $0x240] sm:$0xff]  }
 0x173   : > { %v1180_v37 = vpop.f32.mrb[58].mxu0  ;;  %v1339_v38 = vpop.f32.mrb[58].mxu1  ;;  %v1985_v9 = vrot.slane %v9889_v62, 1  ;;  %v9925_v5 = vsel %vm2432_vm3, %v2434_v58, %v2436_v40  ;;  %v2438_v32 = vrot.slane %v9778_v35, 5 }
 0x174   : > { %v9894_v22 = vpack.c.bf16 %v1001_v26, %v1000_v16  ;;  %v1232_v42 = vmax.f32 %v1178_v27, 0.0  ;;  %v1391_v45 = vmax.f32 %v1337_v28, 0.0  ;;  %v1181_v12 = vadd.f32 %v9655_v25, %v1180_v37  ;;  %v8698_v46 = vpop.f32.mrb[59].mxu0  ;;  %v8742_v48 = vpop.f32.mrb[59].mxu1  ;;  %7734 = vmatpush3.bf16.msra.mxu0 %v9001_v20 }
 0x175   : > { %v1340_v51 = vadd.f32 %v9655_v25, %v1339_v38  ;;  %v1986_v54 = vsel %vm1968_vm2, %v1981_v56, %v1985_v9  ;;  %7735 = vmatprep.subr.bf16.mxu0 %v9002_v34  ;;  %v1834_v56 = vshrl.u32 %v9852_v57, 16  ;;  %v2435_v16 = vsel %vm2432_vm3, %v2433_v39, %v2434_v58 }
 0x176   : > { %1015 = vst [vmem:[#allocation2 + $0x30] sm:$0xff] %v9894_v22  ;;  %v9912_v60 = vmax.f32 %v1232_v42, %v1391_v45  ;;  %v1233_v61 = vmax.f32 %v1181_v12, 0.0  ;;  %2177 = vmatprep.mubr.bf16.mxu0 %v1986_v54  ;;  %v1838_v2 = vshll.u32 %v9894_v22, 16  ;;  %v1987_v34 = vrot.slane %v9852_v57, 1 }
 0x177   : > { %v1392_v3 = vmax.f32 %v1340_v51, 0.0  ;;  %2178 = vmatmul.mubr.bf16.gmra.mrb[124].mxu0 %v1984_v14  ;;  %v1836_v1 = vor.u32 %v1834_v56, %v1832_v30  ;;  %v2492_v36 = vrot.slane %v9925_v5, 2  ;;  %v2491_v48 = vrot.slane %v2435_v16, 2 }
 0x178   : > { %v9920_v55 = vrot.slane %v1838_v2, 1  ;;  %7736 = vmatpush3.bf16.msra.mxu0 %v9003_v49  ;;  %v1988_v14 = vsel %vm1968_vm2, %v1983_v23, %v1987_v34  ;;  %v2489_v16 = vrot.slane %v9736_v31, 2  ;;  %v9026_v31 = vld [vmem:[%s12484_s3 + $0x268] sm:$0xff]  }
 0x179   : > { %v9930_v41 = vmax.f32 %v1233_v61, %v1392_v3  ;;  %v1185_v10 = vpop.f32.mrb[60].mxu0  ;;  %v1344_v15 = vpop.f32.mrb[60].mxu1  ;;  %7737 = vmatprep.subr.bf16.mxu0 %v9004_v52  ;;  %v2493_v58 = vsel %vm2487_vm4, %v2491_v48, %v2492_v36  ;;  %v2427_v52 = vld [vmem:[#allocation2] sm:$0xfc] }
 0x17a   : > { %v1186_v19 = vadd.f32 %v9655_v25, %v1185_v10  ;;  %v1345_v30 = vadd.f32 %v9655_v25, %v1344_v15  ;;  %v8701_v20 = vpop.f32.mrb[61].mxu0  ;;  %v8745_v17 = vpop.f32.mrb[61].mxu1  ;;  %v9940_v33 = vsel %vm1789_vm1, %v1836_v1, %v9920_v55  ;;  %v2488_v23 = vrot.slane %v2427_v52, 2 }
 0x17b   : > { %v1188_v26 = vpop.f32.mrb[62].mxu0  ;;  %v1347_v27 = vpop.f32.mrb[62].mxu1  ;;  %v1989_v28 = vrot.slane %v9940_v33, 1  ;;  %v2440_v20 = vrot.slane %v9814_v13, 5 }
 0x17c   : > { %v1234_v37 = vmax.f32 %v1186_v19, 0.0  ;;  %v1393_v38 = vmax.f32 %v1345_v30, 0.0  ;;  %v1189_v39 = vadd.f32 %v9655_v25, %v1188_v26  ;;  %v1348_v42 = vadd.f32 %v9655_v25, %v1347_v27  ;;  %v8702_v45 = vpop.f32.mrb[63].mxu0  ;;  %v8746_v12 = vpop.f32.mrb[63].mxu1  ;;  %7738 = vmatpush3.bf16.msra.mxu0 %v9005_v6 }
 0x17d   : > { %v1990_v46 = vsel %vm1968_vm2, %v1985_v9, %v1989_v28  ;;  %7863 = vmatprep.subr.bf16.mxu0 %v9006_v18  ;;  %v2439_v9 = vsel %vm2432_vm3, %v2436_v40, %v2438_v32 }
 0x17e   : > { %v9951_v49 = vmax.f32 %v1234_v37, %v1393_v38  ;;  %v1235_v51 = vmax.f32 %v1189_v39, 0.0  ;;  %v1394_v54 = vmax.f32 %v1348_v42, 0.0  ;;  %2185 = vmatprep.mubr.bf16.mxu0 %v1990_v46  ;;  %v2496_v30 = vrot.slane %v2439_v9, 2  ;;  %v9007_v39 = vld [vmem:[%s12484_s3 + $0x200] sm:$0xff]   ;;  %v9010_v42 = vld [vmem:[%s12484_s3 + $0x248] sm:$0xff]  }
 0x17f   : > { %2186 = vmatmul.mubr.bf16.gmra.mrb[128].mxu0 %v1988_v14  ;;  %v2490_v46 = vsel %vm2487_vm4, %v2488_v23, %v2489_v16 }
 0x180   : > { %v9959_v61 = vmax.f32 %v1235_v51, %v1394_v54  ;;  %2672 = vmatprep.mubr.bf16.mxu0 %v2493_v58  ;;  %v2497_v51 = vsel %vm2487_vm4, %v2492_v36, %v2496_v30  ;;  %v9981_v54 = vsel %vm2432_vm3, %v2438_v32, %v2440_v20  ;;  %v9011_v58 = vld [vmem:[%s12484_s3 + $0x208] sm:$0xff]  }
 0x181   : > { %v1193_v3 = vpop.f32.mrb[64].mxu0  ;;  %v1352_v1 = vpop.f32.mrb[64].mxu1  ;;  %v2500_v23 = vrot.slane %v9981_v54, 2 }
 0x182   : > { %v1194_v5 = vadd.f32 %v9655_v25, %v1193_v3  ;;  %v1353_v6 = vadd.f32 %v9655_v25, %v1352_v1  ;;  %v8705_v10 = vpop.f32.mrb[65].mxu0  ;;  %v8749_v15 = vpop.f32.mrb[65].mxu1  ;;  %v9014_v3 = vld [vmem:[%s12484_s3 + $0x250] sm:$0xff]  }
 0x183   : > { %v1196_v18 = vpop.f32.mrb[66].mxu0  ;;  %v1355_v19 = vpop.f32.mrb[66].mxu1 }
 0x184   : > { %v1236_v17 = vmax.f32 %v1194_v5, 0.0  ;;  %v1395_v26 = vmax.f32 %v1353_v6, 0.0  ;;  %v1197_v40 = vadd.f32 %v9655_v25, %v1196_v18  ;;  %v1356_v27 = vadd.f32 %v9655_v25, %v1355_v19  ;;  %v8706_v37 = vpop.f32.mrb[67].mxu0  ;;  %v8750_v38 = vpop.f32.mrb[67].mxu1 }
 0x185   : > { %v2494_v6 = vrot.slane %v9754_v0, 2  ;;  %v2442_v18 = vrot.slane %v9852_v57, 5  ;;  %v9015_v38 = vld [vmem:[%s12484_s3 + $0x210] sm:$0xff]  }
 0x186   : > { %v1237_v45 = vmax.f32 %v1197_v40, 0.0  ;;  %v1396_v12 = vmax.f32 %v1356_v27, 0.0  ;;  %v9977_v48 = vmax.f32 %v1236_v17, %v1395_v26 }
 0x187   : > { %2673 = vmatmul.mubr.bf16.vlgmr.msra.gmra.mrb[132].mxu0 %v2490_v46  ;;  %v10009_v54 = vsel %vm2432_vm3, %v2440_v20, %v2442_v18  ;;  %v2810_v20 = vrot.slane %v1802_v8, 7 }
 0x188   : > { %2680 = vmatprep.mubr.bf16.mxu0 %v2497_v51  ;;  %v9983_v14 = vmax.f32 %v1237_v45, %v1396_v12  ;;  %7864 = vmatpush3.bf16.msra.mxu0 %v9007_v39  ;;  %v9018_v39 = vld [vmem:[%s12484_s3 + $0x258] sm:$0xff]   ;;  %v2495_v12 = vsel %vm2487_vm4, %v2489_v16, %v2494_v6  ;;  %v2501_v51 = vsel %vm2487_vm4, %v2496_v30, %v2500_v23  ;;  %v9022_v16 = vld [vmem:[%s12484_s3 + $0x260] sm:$0xff]   ;;  %v2807_v30 = vshrl.u32 %v9880_v21, 16 }
 0x189   : > { %v1201_v52 = vpop.f32.mrb[68].mxu0  ;;  %v1360_v9 = vpop.f32.mrb[68].mxu1  ;;  %7865 = vmatprep.subr.bf16.mxu0 %v9010_v42  ;;  %v2811_v21 = vor.u32 %v2810_v20, %v1798_v43 }
 0x18a   : > { %v1202_v36 = vadd.f32 %v9655_v25, %v1201_v52  ;;  %v1361_v1 = vadd.f32 %v9655_v25, %v1360_v9  ;;  %v8709_v32 = vpop.f32.mrb[69].mxu0  ;;  %v8753_v5 = vpop.f32.mrb[69].mxu1  ;;  %v9019_v52 = vld [vmem:[%s12484_s3 + $0x218] sm:$0xff]  }
 0x18b   : > { %v1204_v10 = vpop.f32.mrb[70].mxu0  ;;  %v1363_v15 = vpop.f32.mrb[70].mxu1 }
 0x18c   : > { %v1238_v19 = vmax.f32 %v1202_v36, 0.0  ;;  %v1397_v17 = vmax.f32 %v1361_v1, 0.0  ;;  %v1205_v26 = vadd.f32 %v9655_v25, %v1204_v10  ;;  %v1364_v40 = vadd.f32 %v9655_v25, %v1363_v15  ;;  %v8710_v27 = vpop.f32.mrb[71].mxu0  ;;  %v8754_v37 = vpop.f32.mrb[71].mxu1  ;;  %7866 = vmatpush3.bf16.msra.mxu0 %v9011_v58 }
 0x18d   : > { %7867 = vmatprep.subr.bf16.mxu0 %v9014_v3  ;;  %v2498_v10 = vrot.slane %v9778_v35, 2  ;;  %v2847_v35 = vrot.slane %v1826_v4, 7 }
 0x18e   : > { %v1239_v42 = vmax.f32 %v1205_v26, 0.0  ;;  %v1398_v45 = vmax.f32 %v1364_v40, 0.0  ;;  %v10005_v46 = vmax.f32 %v1238_v19, %v1397_v17  ;;  %v2504_v17 = vrot.slane %v10009_v54, 2 }
 0x18f   : > { %2681 = vmatmul.mubr.bf16.gmra.mrb[136].mxu0 %v2495_v12  ;;  %v2444_v26 = vrot.slane %v9894_v22, 5  ;;  %v2809_v40 = vrot.slane %v2807_v30, 7  ;;  %v2499_v54 = vsel %vm2487_vm4, %v2494_v6, %v2498_v10  ;;  %v9027_v6 = vld [vmem:[%s12484_s3 + $0x228] sm:$0xff]   ;;  %v2848_v4 = vor.u32 %v2847_v35, %v1822_v59 }
 0x190   : > { %2688 = vmatprep.mubr.bf16.mxu0 %v2501_v51  ;;  %v10011_v58 = vmax.f32 %v1239_v42, %v1398_v45  ;;  %7868 = vmatpush3.bf16.msra.mxu0 %v9015_v38  ;;  %v9023_v45 = vld [vmem:[%s12484_s3 + $0x220] sm:$0xff]  }
 0x191   : > { %v1209_v9 = vpop.f32.mrb[72].mxu0  ;;  %v1368_v3 = vpop.f32.mrb[72].mxu1  ;;  %7869 = vmatprep.subr.bf16.mxu0 %v9018_v39  ;;  %v10043_v43 = vsel %vm2805_vm5, %v2809_v40, %v2811_v21 }
 0x192   : > { %v1210_v36 = vadd.f32 %v9655_v25, %v1209_v9  ;;  %v1369_v1 = vadd.f32 %v9655_v25, %v1368_v3  ;;  %v8713_v32 = vpop.f32.mrb[73].mxu0  ;;  %v8757_v5 = vpop.f32.mrb[73].mxu1  ;;  %v10032_v25 = vld [vmem:[%s12483_s2] ss:$0 sm:$0xff]  ;;  %v2825_v3 = vrot.slane %v1810_v47, 7  ;;  %v9030_v47 = vld [vmem:[%s12484_s3 + $0x270] sm:$0xff]  }
 0x193   : > { %v1212_v15 = vpop.f32.mrb[74].mxu0  ;;  %v1371_v19 = vpop.f32.mrb[74].mxu1 }
 0x194   : > { %v1240_v8 = vmax.f32 %v1210_v36, 0.0  ;;  %v1399_v27 = vmax.f32 %v1369_v1, 0.0  ;;  %v1213_v37 = vadd.f32 %v10032_v25, %v1212_v15  ;;  %v1372_v38 = vadd.f32 %v10032_v25, %v1371_v19  ;;  %v8714_v39 = vpop.f32.mrb[75].mxu0  ;;  %v8758_v42 = vpop.f32.mrb[75].mxu1  ;;  %7870 = vmatpush3.bf16.msra.mxu0 %v9019_v52 }
 0x195   : > { %7871 = vmatprep.subr.bf16.mxu0 %v9022_v16  ;;  %v2505_v52 = vsel %vm2487_vm4, %v2500_v23, %v2504_v17  ;;  %v10054_v16 = vsel %vm2432_vm3, %v2442_v18, %v2444_v26  ;;  %v2826_v23 = vor.u32 %v2825_v3, %v1806_v11  ;;  %v2502_v19 = vrot.slane %v9814_v13, 2 }
 0x196   : > { %v1241_v12 = vmax.f32 %v1213_v37, 0.0  ;;  %v1400_v51 = vmax.f32 %v1372_v38, 0.0  ;;  %v10046_v9 = vmax.f32 %v1240_v8, %v1399_v27  ;;  %v2508_v8 = vrot.slane %v10054_v16, 2 }
 0x197   : > { %2689 = vmatmul.mubr.bf16.gmra.mrb[140].mxu0 %v2499_v54  ;;  %v10071_v27 = vsel %vm2805_vm5, %v2810_v20, %v2826_v23  ;;  %v2836_v37 = vrot.slane %v1818_v24, 7  ;;  %v9034_v20 = vld [vmem:[%s12484_s3 + $0x278] sm:$0xff]   ;;  %v2503_v54 = vsel %vm2487_vm4, %v2498_v10, %v2502_v19 }
 0x198   : > { %2696 = vmatprep.mubr.bf16.mxu0 %v2505_v52  ;;  %v10056_v30 = vmax.f32 %v1241_v12, %v1400_v51  ;;  %7872 = vmatpush3.bf16.msra.mxu0 %v9023_v45  ;;  %v9035_v10 = vld [vmem:[%s12484_s3 + $0x238] sm:$0xff]  }
 0x199   : > { %v1217_v36 = vpop.f32.mrb[76].mxu0  ;;  %v1376_v1 = vpop.f32.mrb[76].mxu1  ;;  %7873 = vmatprep.subr.bf16.mxu0 %v9026_v31  ;;  %v9031_v31 = vld [vmem:[%s12484_s3 + $0x230] sm:$0xff]   ;;  %v2837_v24 = vor.u32 %v2836_v37, %v1814_v53 }
 0x19a   : > { %v1218_v18 = vadd.f32 %v10032_v25, %v1217_v36  ;;  %v1377_v32 = vadd.f32 %v10032_v25, %v1376_v1  ;;  %v8717_v5 = vpop.f32.mrb[77].mxu0  ;;  %v8761_v15 = vpop.f32.mrb[77].mxu1  ;;  %v1842_v36 = vshrl.u32 %v9894_v22, 16 }
 0x19b   : > { %v1220_v40 = vpop.f32.mrb[78].mxu0  ;;  %v1379_v21 = vpop.f32.mrb[78].mxu1  ;;  %v10093_v1 = vsel %vm2805_vm5, %v2825_v3, %v2837_v24  ;;  %v9044_v3 = vld [vmem:[%s12484_s3 + $0x340] sm:$0xff]   ;;  %v10110_v15 = vld [vmem:[#allocation2 + $0x10] sm:$0xc0] }
 0x19c   : > { %v1242_v0 = vmax.f32 %v1218_v18, 0.0  ;;  %v1401_v11 = vmax.f32 %v1377_v32, 0.0  ;;  %v1221_v38 = vadd.f32 %v10032_v25, %v1220_v40  ;;  %v1380_v39 = vadd.f32 %v10032_v25, %v1379_v21  ;;  %v8718_v42 = vpop.f32.mrb[79].mxu0  ;;  %v8762_v45 = vpop.f32.mrb[79].mxu1  ;;  %7874 = vmatpush3.bf16.msra.mxu0 %v9027_v6  ;;  %12556 = vst [vmem:[#allocation4_spill] sm:$0xff] %v10110_v15 }
 0x19d   : > { %7875 = vmatprep.subr.bf16.mxu0 %v9030_v47  ;;  %v2509_v6 = vsel %vm2487_vm4, %v2504_v17, %v2508_v8  ;;  %v2506_v17 = vrot.slane %v9852_v57, 2  ;;  %v2858_v18 = vrot.slane %v1834_v56, 7  ;;  %v12489_v42 = vshll.u32 %v10110_v15, 16 }
 0x19e   : > { %v1243_v12 = vmax.f32 %v1221_v38, 0.0  ;;  %v1402_v51 = vmax.f32 %v1380_v39, 0.0  ;;  %v10086_v52 = vmax.f32 %v1242_v0, %v1401_v11  ;;  %v10113_v0 = vsel %vm2805_vm5, %v2836_v37, %v2848_v4 }
 0x19f   : > { %2697 = vmatmul.mubr.bf16.gmra.mrb[144].mxu0 %v2503_v54  ;;  %v2859_v11 = vor.u32 %v2858_v18, %v1830_v44  ;;  %v10119_v38 = vrot.slane %v1842_v36, 7  ;;  %v2507_v56 = vsel %vm2487_vm4, %v2502_v19, %v2506_v17  ;;  %v12488_v44 = vshrl.u32 %v10110_v15, 16 }
 0x1a0   : > { %2704 = vmatprep.mubr.bf16.mxu0 %v2509_v6  ;;  %v10097_v53 = vmax.f32 %v1243_v12, %v1402_v51  ;;  %7876 = vmatpush3.bf16.msra.mxu0 %v9031_v31  ;;  %v10141_v19 = vrot.slane %v12489_v42, 7 }
 0x1a1   : > { %v1225_v47 = vpop.f32.mrb[80].mxu0  ;;  %v1384_v23 = vpop.f32.mrb[80].mxu1  ;;  %7877 = vmatprep.subr.bf16.mxu0 %v9034_v20  ;;  %v10125_v39 = vsel %vm2805_vm5, %v2847_v35, %v2859_v11  ;;  %v2870_v37 = vor.u32 %v10119_v38, %v1838_v2  ;;  %v10137_v31 = vrot.slane %v12488_v44, 6 }
 0x1a2   : > { %v8721_v32 = vpop.f32.mrb[81].mxu0  ;;  %v8765_v5 = vpop.f32.mrb[81].mxu1 }
 0x1a3   : > { %v1228_v40 = vpop.f32.mrb[82].mxu0  ;;  %v1387_v21 = vpop.f32.mrb[82].mxu1  ;;  %v10133_v45 = vsel %vm2805_vm5, %v2858_v18, %v2870_v37  ;;  %v3160_v5 = vld [vmem:[#allocation2 + $0x8] sm:$0xfe] }
 0x1a4   : > { %v8722_v13 = vpop.f32.mrb[83].mxu0  ;;  %v8766_v59 = vpop.f32.mrb[83].mxu1  ;;  %7878 = vmatpush3.bf16.msra.mxu0 %v9035_v10  ;;  %v3164_v11 = vshll.u32 %v3160_v5, 16 }
 0x1a5   : > { %8003 = vmatprep.subr.bf16.mxu0 %v9044_v3 }
 0x1a7   : > { %2705 = vmatmul.mubr.bf16.gmra.mrb[148].mxu0 %v2507_v56 }
 0x1a9   : > { %v1509_v20 = vpop.f32.mrb[84].mxu0  ;;  %v1682_v24 = vpop.f32.mrb[84].mxu1 }
 0x1aa   : > { %v1510_v2 = vadd.f32 %v10032_v25, %v1509_v20  ;;  %v1683_v12 = vadd.f32 %v10032_v25, %v1682_v24  ;;  %v8785_v51 = vpop.f32.mrb[85].mxu0  ;;  %v8829_v54 = vpop.f32.mrb[85].mxu1 }
 0x1ab   : > { %v1512_v35 = vpop.f32.mrb[86].mxu0  ;;  %v1685_v10 = vpop.f32.mrb[86].mxu1 }
 0x1ac   : > { %v1564_v47 = vmax.f32 %v1510_v2, 0.0  ;;  %v1737_v23 = vmax.f32 %v1683_v12, 0.0  ;;  %v1513_v3 = vadd.f32 %v10032_v25, %v1512_v35  ;;  %v1686_v4 = vadd.f32 %v10032_v25, %v1685_v10  ;;  %v8786_v18 = vpop.f32.mrb[87].mxu0  ;;  %v8830_v32 = vpop.f32.mrb[87].mxu1  ;;  %v10153_v35 = vld [vmem:[#allocation2 + $0x10] sm:$0xff] }
 0x1ae   : > { %v1578_v40 = vmax.f32 %v9912_v60, %v1564_v47  ;;  %v1565_v21 = vmax.f32 %v1513_v3, 0.0  ;;  %v1738_v56 = vmax.f32 %v1686_v4, 0.0  ;;  %v3166_v60 = vrot.slane %v3164_v11, 1 }
 0x1b0   : > { %v1751_v13 = vmax.f32 %v1578_v40, %v1737_v23  ;;  %v1579_v59 = vmax.f32 %v9930_v41, %v1565_v21  ;;  %v3162_v21 = vshrl.u32 %v3160_v5, 16 }
 0x1b1   : > { %v1517_v37 = vpop.f32.mrb[88].mxu0  ;;  %v1690_v20 = vpop.f32.mrb[88].mxu1 }
 0x1b2   : > { %v1752_v24 = vmax.f32 %v1579_v59, %v1738_v56  ;;  %v1518_v2 = vadd.f32 %v10032_v25, %v1517_v37  ;;  %v1691_v12 = vadd.f32 %v10032_v25, %v1690_v20  ;;  %v8789_v51 = vpop.f32.mrb[89].mxu0  ;;  %v8833_v54 = vpop.f32.mrb[89].mxu1  ;;  %v3169_v59 = vshll.u32 %v10153_v35, 16 }
 0x1b3   : > { %v1520_v10 = vpop.f32.mrb[90].mxu0  ;;  %v1693_v18 = vpop.f32.mrb[90].mxu1 }
 0x1b4   : > { %v10155_v47 = vpack.c.bf16 %v1752_v24, %v1751_v13  ;;  %v1566_v23 = vmax.f32 %v1518_v2, 0.0  ;;  %v1739_v3 = vmax.f32 %v1691_v12, 0.0  ;;  %v1521_v41 = vadd.f32 %v10032_v25, %v1520_v10  ;;  %v8790_v4 = vpop.f32.mrb[91].mxu0  ;;  %v8834_v32 = vpop.f32.mrb[91].mxu1  ;;  %v10178_v10 = vld [vmem:[#allocation2 + $0x18] sm:$0xff] }
 0x1b5   : > { %v1694_v40 = vadd.f32 %v10032_v25, %v1693_v18  ;;  %v2510_v24 = vrot.slane %v9894_v22, 2  ;;  %v1844_v2 = vor.u32 %v1842_v36, %v9920_v55  ;;  %v3167_v12 = vor.u32 %v3166_v60, %v3162_v21 }
 0x1b6   : > { %1772 = vst [vmem:[#allocation2 + $0x38] sm:$0xff] %v10155_v47  ;;  %v1580_v56 = vmax.f32 %v9951_v49, %v1566_v23  ;;  %v1567_v37 = vmax.f32 %v1521_v41, 0.0  ;;  %v2446_v11 = vrot.slane %v10155_v47, 5  ;;  %v12491_v13 = vshll.u32 %v10155_v47, 16 }
 0x1b7   : > { %v1740_v20 = vmax.f32 %v1694_v40, 0.0  ;;  %v1991_v55 = vrot.slane %v9894_v22, 1  ;;  %v10182_v36 = vrot.slane %v3169_v59, 1  ;;  %v2514_v57 = vrot.slane %v10155_v47, 2 }
 0x1b8   : > { %v1753_v5 = vmax.f32 %v1580_v56, %v1739_v3  ;;  %v1581_v51 = vmax.f32 %v9959_v61, %v1567_v37  ;;  %v10172_v49 = vsel %vm2432_vm3, %v2444_v26, %v2446_v11  ;;  %v10176_v54 = vrot.slane %v12491_v13, 1 }
 0x1b9   : > { %v1525_v18 = vpop.f32.mrb[92].mxu0  ;;  %v1698_v23 = vpop.f32.mrb[92].mxu1  ;;  %v2512_v41 = vrot.slane %v10172_v49, 2  ;;  %12557 = vst [vmem:[#allocation5_spill] sm:$0xff] %v10182_v36  ;;  %v3173_v61 = vshrl.u32 %v10153_v35, 16  ;;  %v2511_v37 = vsel %vm2487_vm4, %v2506_v17, %v2510_v24 }
 0x1ba   : > { %v1754_v60 = vmax.f32 %v1581_v51, %v1740_v20  ;;  %v1526_v26 = vadd.f32 %v10032_v25, %v1525_v18  ;;  %v1699_v3 = vadd.f32 %v10032_v25, %v1698_v23  ;;  %v8793_v4 = vpop.f32.mrb[93].mxu0  ;;  %v8837_v32 = vpop.f32.mrb[93].mxu1  ;;  %v10189_v40 = vsel %vm1789_vm1, %v1844_v2, %v10176_v54 }
 0x1bb   : > { %v1528_v21 = vpop.f32.mrb[94].mxu0  ;;  %v1701_v56 = vpop.f32.mrb[94].mxu1  ;;  %v2513_v59 = vsel %vm2487_vm4, %v2508_v8, %v2512_v41  ;;  %v1993_v20 = vrot.slane %v10189_v40, 1  ;;  %v3177_v51 = vshll.u32 %v10178_v10, 16  ;;  %v9009_v8 = vld [vmem:[%s12484_s3] sm:$0xff]  }
 0x1bc   : > { %v10203_v2 = vpack.c.bf16 %v1754_v60, %v1753_v5  ;;  %v1568_v18 = vmax.f32 %v1526_v26, 0.0  ;;  %v1741_v23 = vmax.f32 %v1699_v3, 0.0  ;;  %v1529_v4 = vadd.f32 %v10032_v25, %v1528_v21  ;;  %v8794_v32 = vpop.f32.mrb[95].mxu0  ;;  %v8838_v16 = vpop.f32.mrb[95].mxu1  ;;  %2712 = vmatprep.mubr.bf16.mxu0 %v2513_v59  ;;  %v9012_v60 = vld [vmem:[%s12484_s3 + $0x48] sm:$0xff]  }
 0x1bd   : > { %v1702_v44 = vadd.f32 %v10032_v25, %v1701_v56  ;;  %2713 = vmatmul.mubr.bf16.gmra.mrb[152].mxu0 %v2511_v37  ;;  %v1994_v17 = vsel %vm1968_vm2, %v1989_v28, %v1993_v20  ;;  %v1992_v5 = vsel %vm1968_vm2, %v1987_v34, %v1991_v55  ;;  %v12492_v26 = vshrl.u32 %v10155_v47, 16 }
 0x1be   : > { %1773 = vst [vmem:[#allocation2 + $0x40] sm:$0xff] %v10203_v2  ;;  %v1582_v3 = vmax.f32 %v9977_v48, %v1568_v18  ;;  %v1569_v21 = vmax.f32 %v1529_v4, 0.0  ;;  %2193 = vmatprep.mubr.bf16.mxu1 %v1994_v17  ;;  %v2448_v28 = vrot.slane %v10203_v2, 5  ;;  %v12490_v56 = vshll.u32 %v10203_v2, 16  ;;  %v9013_v48 = vld [vmem:[%s12484_s3 + $0x8] sm:$0xff]  }
 0x1bf   : > { %v1742_v59 = vmax.f32 %v1702_v44, 0.0  ;;  %2194 = vmatmul.mubr.bf16.vlgmr.msra.gmra.mrb[112].mxu1 %v1992_v5  ;;  %v1852_v34 = vor.u32 %v12492_v26, %v10176_v54  ;;  %v10232_v37 = vrot.slane %v3177_v51, 1  ;;  %v10254_v17 = vsel %vm1789_vm1, %v3167_v12, %v10182_v36 }
 0x1c0   : > { %v1755_v32 = vmax.f32 %v1582_v3, %v1741_v23  ;;  %v1583_v16 = vmax.f32 %v9983_v14, %v1569_v21  ;;  %7654 = vmatpush3.bf16.msra.mxu1 %v9009_v8  ;;  %v10241_v44 = vsel %vm2432_vm3, %v2446_v11, %v2448_v28  ;;  %v10245_v18 = vrot.slane %v12490_v56, 1  ;;  %v9016_v8 = vld [vmem:[%s12484_s3 + $0x50] sm:$0xff]  }
 0x1c1   : > { %v1533_v4 = vpop.f32.mrb[96].mxu0  ;;  %v1706_v51 = vpop.f32.mrb[96].mxu1  ;;  %7655 = vmatprep.subr.bf16.mxu1 %v9012_v60  ;;  %v2516_v23 = vrot.slane %v10241_v44, 2  ;;  %v12493_v14 = vrot.slane %v10155_v47, 1  ;;  %v3175_v11 = vor.u32 %v3173_v61, %v10182_v36  ;;  %v2515_v61 = vsel %vm2487_vm4, %v2510_v24, %v2514_v57  ;;  %v9017_v24 = vld [vmem:[%s12484_s3 + $0x10] sm:$0xff]  }
 0x1c2   : > { %v1756_v5 = vmax.f32 %v1583_v16, %v1742_v59  ;;  %v1534_v3 = vadd.f32 %v10032_v25, %v1533_v4  ;;  %v8797_v21 = vpop.f32.mrb[97].mxu0  ;;  %v1707_v60 = vadd.f32 %v10032_v25, %v1706_v51  ;;  %v8841_v42 = vpop.f32.mrb[97].mxu1  ;;  %v10261_v6 = vsel %vm1789_vm1, %v1852_v34, %v10245_v18  ;;  %v9033_v44 = vld [vmem:[%s12484_s3 + $0x30] sm:$0xff]  }
 0x1c3   : > { %v1536_v56 = vpop.f32.mrb[98].mxu0  ;;  %v1709_v13 = vpop.f32.mrb[98].mxu1  ;;  %v2517_v12 = vsel %vm2487_vm4, %v2512_v41, %v2516_v23  ;;  %v12495_v42 = vrot.slane %v10261_v6, 1  ;;  %v10276_v59 = vsel %vm1789_vm1, %v3175_v11, %v10232_v37 }
 0x1c4   : > { %12558 = vst [vmem:[#allocation6_spill] sm:$0xff] %v10276_v59  ;;  %v10278_v34 = vpack.c.bf16 %v1756_v5, %v1755_v32  ;;  %v1570_v16 = vmax.f32 %v1534_v3, 0.0  ;;  %v1537_v4 = vadd.f32 %v10032_v25, %v1536_v56  ;;  %v1743_v49 = vmax.f32 %v1707_v60, 0.0  ;;  %v8798_v51 = vpop.f32.mrb[99].mxu0  ;;  %v8842_v41 = vpop.f32.mrb[99].mxu1  ;;  %7656 = vmatpush3.bf16.msra.mxu1 %v9013_v48  ;;  %2720 = vmatprep.mubr.bf16.mxu0 %v2517_v12  ;;  %v9020_v56 = vld [vmem:[%s12484_s3 + $0x58] sm:$0xff]  }
 0x1c5   : > { %v1710_v21 = vadd.f32 %v10032_v25, %v1709_v13  ;;  %2721 = vmatmul.mubr.bf16.gmra.mrb[156].mxu0 %v2515_v61  ;;  %v1998_v32 = vsel %vm1968_vm2, %v1993_v20, %v12495_v42  ;;  %7657 = vmatprep.subr.bf16.mxu1 %v9016_v8  ;;  %v1996_v13 = vsel %vm1968_vm2, %v1991_v55, %v12493_v14  ;;  %v3283_v20 = vshll.u32 %v10254_v17, 16  ;;  %v10306_v12 = vld [vmem:[#allocation2] sm:$0xff] }
 0x1c6   : > { %1774 = vst [vmem:[#allocation2 + $0x48] sm:$0xff] %v10278_v34  ;;  %v1584_v48 = vmax.f32 %v10005_v46, %v1570_v16  ;;  %v1571_v11 = vmax.f32 %v1537_v4, 0.0  ;;  %2201 = vmatprep.mubr.bf16.mxu1 %v1998_v32  ;;  %v3288_v8 = vshll.u32 %v10276_v59, 16  ;;  %v9021_v46 = vld [vmem:[%s12484_s3 + $0x18] sm:$0xff]   ;;  %v10308_v61 = vld [vmem:[#allocation2 + $0x20] sm:$0xff] }
 0x1c7   : > { %v1744_v5 = vmax.f32 %v1710_v21, 0.0  ;;  %2202 = vmatmul.mubr.bf16.gmra.mrb[116].mxu1 %v1996_v13  ;;  %v9024_v16 = vld [vmem:[%s12484_s3 + $0x60] sm:$0xff]   ;;  %v3185_v13 = vshll.u32 %v10308_v61, 16 }
 0x1c8   : > { %v1585_v3 = vmax.f32 %v10011_v58, %v1571_v11  ;;  %v1757_v60 = vmax.f32 %v1584_v48, %v1743_v49  ;;  %7658 = vmatpush3.bf16.msra.mxu1 %v9017_v24  ;;  %v10316_v48 = vrot.slane %v3283_v20, 1  ;;  %v10318_v11 = vrot.slane %v3288_v8, 1  ;;  %v9028_v20 = vld [vmem:[%s12484_s3 + $0x68] sm:$0xff]  }
 0x1c9   : > { %v1541_v22 = vpop.f32.mrb[100].mxu0  ;;  %v1714_v55 = vpop.f32.mrb[100].mxu1  ;;  %7659 = vmatprep.subr.bf16.mxu1 %v9020_v56  ;;  %v2518_v56 = vrot.slane %v10203_v2, 2  ;;  %v10342_v14 = vrot.slane %v3185_v13, 1 }
 0x1ca   : > { %v1758_v4 = vmax.f32 %v1585_v3, %v1744_v5  ;;  %v1542_v58 = vadd.f32 %v10032_v25, %v1541_v22  ;;  %v8801_v49 = vpop.f32.mrb[101].mxu0  ;;  %v1715_v51 = vadd.f32 %v10032_v25, %v1714_v55  ;;  %v8845_v41 = vpop.f32.mrb[101].mxu1 }
 0x1cb   : > { %v1544_v21 = vpop.f32.mrb[102].mxu0  ;;  %v1717_v32 = vpop.f32.mrb[102].mxu1  ;;  %v9025_v41 = vld [vmem:[%s12484_s3 + $0x20] sm:$0xff]  }
 0x1cc   : > { %v1768_v26 = vpack.c.bf16 %v1758_v4, %v1757_v60  ;;  %v1572_v5 = vmax.f32 %v1542_v58, 0.0  ;;  %v1545_v3 = vadd.f32 %v10032_v25, %v1544_v21  ;;  %v1745_v22 = vmax.f32 %v1715_v51, 0.0  ;;  %v8802_v49 = vpop.f32.mrb[103].mxu0  ;;  %v8846_v55 = vpop.f32.mrb[103].mxu1  ;;  %7660 = vmatpush3.bf16.msra.mxu1 %v9021_v46 }
 0x1cd   : > { %v1718_v8 = vadd.f32 %v10032_v25, %v1717_v32  ;;  %v2429_v24 = vld [vmem:[#allocation2 + $0x48] sm:$0x7f]  ;;  %v12494_v60 = vshrl.u32 %v10203_v2, 16  ;;  %7661 = vmatprep.subr.bf16.mxu1 %v9024_v16 }
 0x1ce   : > { %v10331_v4 = vld [vmem:[#allocation2 + $0x48] sm:$0x3]  ;;  %1775 = vst [vmem:[#allocation2 + $0x50] sm:$0xff] %v1768_v26  ;;  %v1586_v46 = vmax.f32 %v10046_v9, %v1572_v5  ;;  %v1573_v51 = vmax.f32 %v1545_v3, 0.0  ;;  %v2450_v21 = vrot.slane %v2429_v24, 5 }
 0x1cf   : > { %v1918_v49 = vshll.u32 %v10331_v4, 16  ;;  %v1746_v55 = vmax.f32 %v1718_v8, 0.0  ;;  %v10340_v32 = vor.u32 %v12494_v60, %v10245_v18  ;;  %v9029_v24 = vld [vmem:[%s12484_s3 + $0x28] sm:$0xff]   ;;  %v9032_v18 = vld [vmem:[%s12484_s3 + $0x70] sm:$0xff]  }
 0x1d0   : > { %v1587_v16 = vmax.f32 %v10056_v30, %v1573_v51  ;;  %v1759_v58 = vmax.f32 %v1586_v46, %v1745_v22  ;;  %v2451_v9 = vsel %vm2432_vm3, %v2448_v28, %v2450_v21  ;;  %7662 = vmatpush3.bf16.msra.mxu1 %v9025_v41  ;;  %v2524_v8 = vrot.slane %v2450_v21, 2 }
 0x1d1   : > { %v1920_v26 = vrot.slane %v1918_v49, 1  ;;  %v1549_v5 = vpop.f32.mrb[104].mxu0  ;;  %v1722_v13 = vpop.f32.mrb[104].mxu1  ;;  %v2520_v3 = vrot.slane %v2451_v9, 2  ;;  %v1922_v22 = vshrl.u32 %v10331_v4, 16  ;;  %7663 = vmatprep.subr.bf16.mxu1 %v9028_v20  ;;  %v2519_v20 = vsel %vm2487_vm4, %v2514_v57, %v2518_v56 }
 0x1d2   : > { %v1760_v28 = vmax.f32 %v1587_v16, %v1746_v55  ;;  %v1550_v41 = vadd.f32 %v10032_v25, %v1549_v5  ;;  %v8805_v46 = vpop.f32.mrb[105].mxu0  ;;  %v1723_v51 = vadd.f32 %v10032_v25, %v1722_v13  ;;  %v8849_v49 = vpop.f32.mrb[105].mxu1  ;;  %v12559_v57 = vrot.slane %v10261_v6, 1 }
 0x1d3   : > { %v1921_v60 = vsel %vm1789_vm1, %v10340_v32, %v1920_v26  ;;  %v1552_v42 = vpop.f32.mrb[106].mxu0  ;;  %v2521_v21 = vsel %vm2487_vm4, %v2516_v23, %v2520_v3  ;;  %v1725_v9 = vpop.f32.mrb[106].mxu1  ;;  %v1924_v16 = vor.u32 %v1922_v22, %v1920_v26 }
 0x1d4   : > { %v2001_v55 = vrot.slane %v1921_v60, 1  ;;  %v1769_v5 = vpack.c.bf16 %v1760_v28, %v1759_v58  ;;  %v1574_v13 = vmax.f32 %v1550_v41, 0.0  ;;  %v1553_v46 = vadd.f32 %v10032_v25, %v1552_v42  ;;  %2728 = vmatprep.mubr.bf16.mxu0 %v2521_v21  ;;  %v8806_v30 = vpop.f32.mrb[107].mxu0  ;;  %v8850_v15 = vpop.f32.mrb[107].mxu1  ;;  %7664 = vmatpush3.bf16.msra.mxu1 %v9029_v24  ;;  %v10388_v28 = vld [vmem:[#allocation2 + $0x28] sm:$0xff] }
 0x1d5   : > { %v1747_v49 = vmax.f32 %v1723_v51, 0.0  ;;  %v1726_v23 = vadd.f32 %v10032_v25, %v1725_v9  ;;  %2729 = vmatmul.mubr.bf16.gmra.mrb[160].mxu0 %v2519_v20  ;;  %v2525_v58 = vsel %vm2487_vm4, %v2520_v3, %v2524_v8  ;;  %v2005_v26 = vrot.slane %v1924_v16, 1  ;;  %7665 = vmatprep.subr.bf16.mxu1 %v9032_v18  ;;  %v9036_v15 = vld [vmem:[%s12484_s3 + $0x78] sm:$0xff]   ;;  %v3150_v18 = vld [vmem:[#allocation2 + $0x8] sm:$0xff] }
 0x1d6   : > { %v2002_v60 = vsel %vm1968_vm2, %v12559_v57, %v2001_v55  ;;  %1776 = vst [vmem:[#allocation2 + $0x58] sm:$0xff] %v1769_v5  ;;  %v1588_v42 = vmax.f32 %v10086_v52, %v1574_v13  ;;  %v1575_v24 = vmax.f32 %v1553_v46, 0.0  ;;  %2736 = vmatprep.mubr.bf16.mxu0 %v2525_v58  ;;  %v12560_v25 = vrot.slane %v10203_v2, 1  ;;  %v10392_v21 = vld [vmem:[#allocation2 + $0x48] sm:$0x1] }
 0x1d7   : > { %2209 = vmatprep.mubr.bf16.mxu1 %v2002_v60  ;;  %v12561_v30 = vrot.slane %v10155_v47, 1  ;;  %v12562_v3 = vshll.u32 %v10306_v12, 16  ;;  %v1748_v41 = vmax.f32 %v1726_v23, 0.0  ;;  %v2006_v51 = vsel %vm1968_vm2, %v2001_v55, %v2005_v26  ;;  %v9037_v55 = vld [vmem:[%s12484_s3 + $0x38] sm:$0xff]  }
 0x1d8   : > { %v2522_v52 = vrot.slane %v10331_v4, 2  ;;  %v12563_v9 = vshrl.u32 %v10178_v10, 16  ;;  %v1589_v16 = vmax.f32 %v10097_v53, %v1575_v24  ;;  %v1761_v5 = vmax.f32 %v1588_v42, %v1747_v49  ;;  %7666 = vmatpush3.bf16.msra.mxu1 %v9033_v44 }
 0x1d9   : > { %v2000_v22 = vsel %vm1968_vm2, %v12561_v30, %v12560_v25  ;;  %v1795_v8 = vrot.slane %v12562_v3, 1  ;;  %v12564_v13 = vshrl.u32 %v10254_v17, 16  ;;  %v1557_v4 = vpop.f32.mrb[108].mxu0  ;;  %v1730_v23 = vpop.f32.mrb[108].mxu1  ;;  %v1791_v57 = vshrl.u32 %v10306_v12, 16  ;;  %7667 = vmatprep.subr.bf16.mxu1 %v9036_v15  ;;  %v9038_v17 = vld [vmem:[%s12484_s3 + $0x1c0] sm:$0xff]  }
 0x1da   : > { %2210 = vmatmul.mubr.bf16.gmra.mrb[120].mxu1 %v2000_v22  ;;  %v3183_v20 = vor.u32 %v12563_v9, %v10232_v37  ;;  %v3275_v60 = vshll.u32 %v3150_v18, 16  ;;  %v3193_v37 = vshll.u32 %v10388_v28, 16  ;;  %v8809_v49 = vpop.f32.mrb[109].mxu0  ;;  %v8853_v44 = vpop.f32.mrb[109].mxu1  ;;  %v2003_v58 = vrot.slane %v10392_v21, 1 }
 0x1db   : > { %2217 = vmatprep.mubr.bf16.mxu1 %v2006_v51  ;;  %v3286_v46 = vor.u32 %v10316_v48, %v12564_v13  ;;  %v1762_v48 = vmax.f32 %v1589_v16, %v1748_v41  ;;  %v1560_v26 = vpop.f32.mrb[110].mxu0  ;;  %v1733_v42 = vpop.f32.mrb[110].mxu1  ;;  %v2523_v15 = vsel %vm2487_vm4, %v2518_v56, %v2522_v52  ;;  %v1796_v25 = vor.u32 %v1795_v8, %v1791_v57  ;;  %v10426_v16 = vld [vmem:[#allocation2 + $0x30] sm:$0xff] }
 0x1dc   : > { %v10407_v53 = vsel %vm1789_vm1, %v3183_v20, %v10342_v14  ;;  %7668 = vmatpush3.bf16.msra.mxu1 %v9037_v55  ;;  %v8810_v22 = vpop.f32.mrb[111].mxu0  ;;  %v8854_v3 = vpop.f32.mrb[111].mxu1  ;;  %v3277_v41 = vrot.slane %v3275_v60, 1  ;;  %v3189_v9 = vshrl.u32 %v10308_v61, 16  ;;  %v12566_v20 = vrot.slane %v10203_v2, 1 }
 0x1dd   : > { %12565 = vst [vmem:[#allocation7_spill] sm:$0xff] %v10407_v53  ;;  %v3291_v24 = vsel %vm1789_vm1, %v3286_v46, %v10318_v11  ;;  %v1770_v30 = vpack.c.bf16 %v1762_v48, %v1761_v5  ;;  %2737 = vmatmul.mubr.bf16.gmra.mrb[164].mxu0 %v2523_v15  ;;  %v3296_v51 = vshll.u32 %v10407_v53, 16  ;;  %7793 = vmatprep.subr.bf16.mxu1 %v9038_v17  ;;  %v3195_v52 = vrot.slane %v3193_v37, 1  ;;  %v9046_v17 = vld [vmem:[%s12484_s3 + $0x300] sm:$0xff]   ;;  %v9049_v3 = vld [vmem:[%s12484_s3 + $0x308] sm:$0xff]  }
 0x1de   : > { %3502 = vmatprep.mubr.bf16.mxu0 %v3291_v24  ;;  %v2004_v56 = vsel %vm1968_vm2, %v12566_v20, %v2003_v58  ;;  %v1801_v8 = vsel %vm1789_vm1, %v1796_v25, %v9752_v63  ;;  %v3273_v5 = vshrl.u32 %v3150_v18, 16  ;;  %v3191_v13 = vor.u32 %v3189_v9, %v10342_v14  ;;  %v9048_v14 = vld [vmem:[%s12484_s3 + $0x348] sm:$0xff]   ;;  %v9039_v58 = vld [vmem:[%s12484_s3 + $0x180] sm:$0xff]  }
 0x1df   : > { %1777 = vst [vmem:[#allocation2 + $0x60] sm:$0xff] %v1770_v30  ;;  %v3292_v46 = vshrl.u32 %v10276_v59, 16  ;;  %v3298_v55 = vrot.slane %v3296_v51, 1  ;;  %v12567_v4 = vshrl.u32 %v10155_v47, 16  ;;  %v3201_v37 = vshll.u32 %v10426_v16, 16  ;;  %v9041_v20 = vld [vmem:[%s12484_s3 + $0x188] sm:$0xff]  }
 0x1e0   : > { %v3278_v57 = vor.u32 %v3277_v41, %v3273_v5  ;;  %v10433_v60 = vsel %vm1789_vm1, %v3191_v13, %v3195_v52  ;;  %v12568_v48 = vshll.u32 %v10155_v47, 16  ;;  %v12570_v24 = vshrl.u32 %v10203_v2, 16 }
 0x1e1   : > { %v2880_v23 = vrot.slane %v12567_v4, 7  ;;  %v3294_v18 = vor.u32 %v3292_v46, %v10318_v11  ;;  %v3304_v42 = vshll.u32 %v10433_v60, 16  ;;  %v9040_v11 = vld [vmem:[%s12484_s3 + $0x1c8] sm:$0xff]   ;;  %v3197_v30 = vshrl.u32 %v10388_v28, 16  ;;  %v9054_v4 = vld [vmem:[%s12484_s3 + $0x358] sm:$0xff]  }
 0x1e2   : > { %2218 = vmatmul.mubr.bf16.gmra.mrb[124].mxu1 %v2004_v56  ;;  %v3279_v44 = vsel %vm1789_vm1, %v3278_v57, %v10182_v36  ;;  %v10461_v25 = vrot.slane %v12570_v24, 7  ;;  %v3203_v22 = vrot.slane %v3201_v37, 1  ;;  %v12572_v41 = vshll.u32 %v10203_v2, 16  ;;  %v9057_v24 = vld [vmem:[%s12484_s3 + $0x320] sm:$0xff]  }
 0x1e3   : > { %2354 = vmatprep.mubr.bf16.mxu1 %v1801_v8  ;;  %v2881_v49 = vor.u32 %v2880_v23, %v12568_v48  ;;  %v3299_v26 = vsel %vm1789_vm1, %v3294_v18, %v3298_v55  ;;  %v3199_v9 = vor.u32 %v3197_v30, %v3195_v52  ;;  %v3300_v56 = vshrl.u32 %v10407_v53, 16  ;;  %v9042_v8 = vld [vmem:[%s12484_s3 + $0x1d0] sm:$0xff]   ;;  %v9055_v18 = vld [vmem:[%s12484_s3 + $0x318] sm:$0xff]   ;;  %v9056_v48 = vld [vmem:[%s12484_s3 + $0x360] sm:$0xff]  }
 0x1e4   : > { %12571 = vst [vmem:[#allocation9_spill] sm:$0xff] %v10461_v25  ;;  %v2892_v51 = vor.u32 %v10461_v25, %v12572_v41  ;;  %v9051_v52 = vld [vmem:[%s12484_s3 + $0x310] sm:$0xff]   ;;  %v9058_v41 = vld [vmem:[%s12484_s3 + $0x1e8] sm:$0xff]  }
 0x1e5   : > { %3503 = vmatmul.mubr.bf16.vlgmr.msra.gmra.mrb[168].mxu0 %v3279_v44  ;;  %v10457_v15 = vsel %vm2805_vm5, %v10119_v38, %v2881_v49  ;;  %v9050_v38 = vld [vmem:[%s12484_s3 + $0x350] sm:$0xff]   ;;  %v10486_v13 = vsel %vm1789_vm1, %v3199_v9, %v3203_v22  ;;  %v3302_v46 = vor.u32 %v3300_v56, %v3298_v55  ;;  %v9045_v55 = vld [vmem:[%s12484_s3 + $0x1d8] sm:$0xff]   ;;  %v9059_v56 = vld [vmem:[%s12484_s3 + $0x1a8] sm:$0xff]  }
 0x1e6   : > { %12569 = vst [vmem:[#allocation8_spill] sm:$0xff] %v10457_v15  ;;  %3510 = vmatprep.mubr.bf16.mxu0 %v3299_v26  ;;  %8004 = vmatpush3.bf16.msra.mxu0 %v9046_v17  ;;  %v10483_v5 = vsel %vm2805_vm5, %v2880_v23, %v2892_v51  ;;  %v9043_v23 = vld [vmem:[%s12484_s3 + $0x190] sm:$0xff]   ;;  %v3312_v37 = vshll.u32 %v10486_v13, 16  ;;  %v3205_v17 = vshrl.u32 %v10426_v16, 16  ;;  %v9047_v44 = vld [vmem:[%s12484_s3 + $0x198] sm:$0xff]   ;;  %v9061_v51 = vld [vmem:[%s12484_s3 + $0x328] sm:$0xff]  }
 0x1e7   : > { %8005 = vmatprep.subr.bf16.mxu0 %v9048_v14  ;;  %12573 = vst [vmem:[#allocation10_spill] sm:$0xff] %v10483_v5  ;;  %v9185_v14 = vld [vmem:[#allocation2 + $0x8] sm:$0xff]  ;;  %v9186_v9 = vld [vmem:[#allocation2 + $0x10] sm:$0xff]  ;;  %v12582_v5 = vrot.slane %v10178_v10, 7 }
 0x1e8   : > { %v3207_v49 = vor.u32 %v3205_v17, %v3203_v22  ;;  %v3314_v26 = vrot.slane %v3312_v37, 1  ;;  %v9060_v22 = vld [vmem:[%s12484_s3 + $0x368] sm:$0xff]   ;;  %v9065_v37 = vld [vmem:[%s12484_s3 + $0x1b0] sm:$0xff]   ;;  %v12498_v17 = vshll.u32 %v10261_v6, 16 }
 0x1ea   : > { %2355 = vmatmul.mubr.bf16.vlgmr.msra.gmra.mrb[128].mxu1 %v10306_v12  ;;  %v3306_v12 = vrot.slane %v3304_v42, 1  ;;  %8006 = vmatpush3.bf16.msra.mxu0 %v9049_v3  ;;  %v9052_v42 = vld [vmem:[%s12484_s3 + $0x1e0] sm:$0xff]  }
 0x1eb   : > { %2362 = vmatprep.mubr.bf16.mxu1 %v9775_v29  ;;  %7794 = vmatpush3.bf16.msra.mxu1 %v9039_v58  ;;  %v3308_v58 = vshrl.u32 %v10433_v60, 16  ;;  %v9053_v3 = vld [vmem:[%s12484_s3 + $0x1a0] sm:$0xff]  }
 0x1ec   : > { %7795 = vmatprep.subr.bf16.mxu1 %v9040_v11  ;;  %8007 = vmatprep.subr.bf16.mxu0 %v9050_v38  ;;  %v3307_v57 = vsel %vm1789_vm1, %v3302_v46, %v3306_v12  ;;  %v10520_v11 = vsel %vm1789_vm1, %v3207_v49, %v10176_v54  ;;  %v3225_v46 = vshll.u32 %v10278_v34, 16  ;;  %v9187_v49 = vld [vmem:[#allocation2 + $0x18] sm:$0xff] }
 0x1ed   : > { %3511 = vmatmul.mubr.bf16.gmra.mrb[172].mxu0 %v10276_v59  ;;  %v3310_v30 = vor.u32 %v3308_v58, %v3306_v12  ;;  %v3320_v38 = vshll.u32 %v10520_v11, 16  ;;  %v3316_v12 = vshrl.u32 %v10486_v13, 16  ;;  %v9076_v58 = vld [vmem:[%s12484_s3 + $0x440] sm:$0xff]  }
 0x1ee   : > { %3518 = vmatprep.mubr.bf16.mxu0 %v3307_v57  ;;  %8008 = vmatpush3.bf16.msra.mxu0 %v9051_v52  ;;  %v9064_v52 = vld [vmem:[%s12484_s3 + $0x1f0] sm:$0xff]   ;;  %v9066_v57 = vld [vmem:[%s12484_s3 + $0x378] sm:$0xff]  }
 0x1ef   : > { %7796 = vmatpush3.bf16.msra.mxu1 %v9041_v20  ;;  %8009 = vmatprep.subr.bf16.mxu0 %v9054_v4  ;;  %v3315_v54 = vsel %vm1789_vm1, %v3310_v30, %v3314_v26  ;;  %v9062_v20 = vld [vmem:[%s12484_s3 + $0x370] sm:$0xff]   ;;  %v9070_v30 = vld [vmem:[%s12484_s3 + $0x2c0] sm:$0xff]  }
 0x1f0   : > { %7797 = vmatprep.subr.bf16.mxu1 %v9042_v8  ;;  %v3322_v8 = vrot.slane %v3320_v38, 1  ;;  %v9063_v4 = vld [vmem:[%s12484_s3 + $0x330] sm:$0xff]  }
 0x1f2   : > { %2363 = vmatmul.mubr.bf16.gmra.mrb[132].mxu1 %v9185_v14  ;;  %8010 = vmatpush3.bf16.msra.mxu0 %v9055_v18  ;;  %v9068_v18 = vld [vmem:[%s12484_s3 + $0x1f8] sm:$0xff]   ;;  %v3227_v14 = vrot.slane %v3225_v46, 1 }
 0x1f3   : > { %2370 = vmatprep.mubr.bf16.mxu1 %v9811_v7  ;;  %7798 = vmatpush3.bf16.msra.mxu1 %v9043_v23  ;;  %v3318_v23 = vor.u32 %v3316_v12, %v3314_v26  ;;  %v9069_v26 = vld [vmem:[%s12484_s3 + $0x1b8] sm:$0xff]   ;;  %v12499_v12 = vshrl.u32 %v10261_v6, 16 }
 0x1f4   : > { %7799 = vmatprep.subr.bf16.mxu1 %v9045_v55  ;;  %8011 = vmatprep.subr.bf16.mxu0 %v9056_v48  ;;  %v9067_v48 = vld [vmem:[%s12484_s3 + $0x338] sm:$0xff]  }
 0x1f5   : > { %3519 = vmatmul.mubr.bf16.gmra.mrb[176].mxu0 %v10407_v53  ;;  %v3323_v55 = vsel %vm1789_vm1, %v3318_v23, %v3322_v8  ;;  %v9189_v23 = vld [vmem:[#allocation2 + $0x28] sm:$0xff] }
 0x1f6   : > { %3526 = vmatprep.mubr.bf16.mxu0 %v3315_v54  ;;  %8012 = vmatpush3.bf16.msra.mxu0 %v9057_v24  ;;  %v3330_v24 = vrot.slane %v12498_v17, 1  ;;  %v4262_v17 = vld [vmem:[#allocation2 + $0x40] sm:$0xff] }
 0x1f7   : > { %7800 = vmatpush3.bf16.msra.mxu1 %v9047_v44  ;;  %8013 = vmatprep.subr.bf16.mxu0 %v9060_v22  ;;  %v3159_v44 = vld [vmem:[#allocation2 + $0x50] sm:$0x1]  ;;  %v10585_v22 = vsel %vm1789_vm1, %v10340_v32, %v3227_v14 }
 0x1f8   : > { %7801 = vmatprep.subr.bf16.mxu1 %v9052_v42  ;;  %v3324_v42 = vshrl.u32 %v10520_v11, 16  ;;  %v3334_v46 = vor.u32 %v12499_v12, %v3330_v24 }
 0x1fa   : > { %2371 = vmatmul.mubr.bf16.gmra.mrb[136].mxu1 %v9186_v9  ;;  %8014 = vmatpush3.bf16.msra.mxu0 %v9061_v51  ;;  %v3326_v54 = vor.u32 %v3324_v42, %v3322_v8  ;;  %v3229_v51 = vshrl.u32 %v10278_v34, 16  ;;  %v4258_v42 = vld [vmem:[#allocation2 + $0x20] sm:$0xff] }
 0x1fb   : > { %2378 = vmatprep.mubr.bf16.mxu1 %v9849_v50  ;;  %7802 = vmatpush3.bf16.msra.mxu1 %v9053_v3  ;;  %v3233_v3 = vshll.u32 %v3159_v44, 16 }
 0x1fc   : > { %7803 = vmatprep.subr.bf16.mxu1 %v9058_v41  ;;  %8015 = vmatprep.subr.bf16.mxu0 %v9062_v20  ;;  %v3331_v38 = vsel %vm1789_vm1, %v3326_v54, %v3330_v24  ;;  %v3336_v41 = vshll.u32 %v10585_v22, 16  ;;  %v9188_v20 = vld [vmem:[#allocation2 + $0x20] sm:$0xff]  ;;  %v3985_v24 = vrot.slane %v10276_v59, 7 }
 0x1fd   : > { %3527 = vmatmul.mubr.bf16.gmra.mrb[180].mxu0 %v10433_v60  ;;  %v3235_v9 = vrot.slane %v3233_v3, 1 }
 0x1fe   : > { %3534 = vmatprep.mubr.bf16.mxu0 %v3323_v55  ;;  %8016 = vmatpush3.bf16.msra.mxu0 %v9063_v4  ;;  %v3338_v8 = vrot.slane %v3336_v41, 1 }
 0x1ff   : > { %7804 = vmatpush3.bf16.msra.mxu1 %v9059_v56  ;;  %8017 = vmatprep.subr.bf16.mxu0 %v9066_v57  ;;  %v10592_v56 = vor.u32 %v3229_v51, %v3227_v14  ;;  %v3931_v57 = vld [vmem:[#allocation2 + $0x8] sm:$0x80]  ;;  %v3237_v14 = vshrl.u32 %v3159_v44, 16  ;;  %v1862_v44 = vshll.u32 %v10392_v21, 16  ;;  %v2814_v51 = vshrl.u32 %v9752_v63, 16 }
 0x200   : > { %7805 = vmatprep.subr.bf16.mxu1 %v9064_v52  ;;  %v3339_v34 = vsel %vm1789_vm1, %v3334_v46, %v3338_v8  ;;  %v3982_v63 = vrot.slane %v10153_v35, 7 }
 0x201   : > { %v10597_v52 = vsel %vm1789_vm1, %v10592_v56, %v3235_v9  ;;  %v3352_v54 = vshll.u32 %v3237_v14, 16  ;;  %v1864_v14 = vrot.slane %v1862_v44, 1 }
 0x202   : > { %2379 = vmatmul.mubr.bf16.gmra.mrb[140].mxu1 %v9187_v49  ;;  %8018 = vmatpush3.bf16.msra.mxu0 %v9067_v48  ;;  %v3344_v4 = vshll.u32 %v10597_v52, 16  ;;  %v3934_v48 = vshrl.u32 %v3931_v57, 16  ;;  %v2818_v49 = vshrl.u32 %v9775_v29, 16  ;;  %v3348_v3 = vshrl.u32 %v10597_v52, 16 }
 0x203   : > { %2386 = vmatprep.mubr.bf16.mxu1 %v9889_v62  ;;  %7806 = vmatpush3.bf16.msra.mxu1 %v9065_v37  ;;  %v3340_v37 = vshrl.u32 %v10585_v22, 16 }
 0x204   : > { %7807 = vmatprep.subr.bf16.mxu1 %v9068_v18  ;;  %8143 = vmatprep.subr.bf16.mxu0 %v9076_v58  ;;  %v3346_v55 = vrot.slane %v3344_v4, 1  ;;  %v10616_v9 = vrot.slane %v2818_v49, 7  ;;  %v2829_v4 = vshrl.u32 %v9811_v7, 16  ;;  %v2816_v49 = vrot.slane %v2814_v51, 7 }
 0x205   : > { %3535 = vmatmul.mubr.bf16.gmra.mrb[184].mxu0 %v10486_v13  ;;  %v3342_v18 = vor.u32 %v3340_v37, %v3338_v8  ;;  %v4260_v37 = vld [vmem:[#allocation2 + $0x30] sm:$0xff] }
 0x206   : > { %3542 = vmatprep.mubr.bf16.mxu0 %v3331_v38  ;;  %v4259_v38 = vld [vmem:[#allocation2 + $0x28] sm:$0xff]  ;;  %v3350_v8 = vor.u32 %v3348_v3, %v3346_v55  ;;  %v10637_v44 = vshll.u32 %v4260_v37, 16  ;;  %v10639_v35 = vrot.slane %v2829_v4, 7  ;;  %v10676_v59 = vshrl.u32 %v4260_v37, 16 }
 0x207   : > { %7808 = vmatpush3.bf16.msra.mxu1 %v9069_v26  ;;  %v3347_v58 = vsel %vm1789_vm1, %v3342_v18, %v3346_v55  ;;  %v3936_v26 = vsel %vm1789_vm1, %v3934_v48, %v10182_v36  ;;  %v10623_v21 = vshll.u32 %v4259_v38, 16  ;;  %v3354_v18 = vrot.slane %v3352_v54, 1 }
 0x208   : > { %7933 = vmatprep.subr.bf16.mxu1 %v9070_v30  ;;  %v9190_v30 = vld [vmem:[#allocation2 + $0x30] sm:$0xff]  ;;  %v3984_v41 = vrot.slane %v3936_v26, 7  ;;  %v3989_v48 = vrot.slane %v10407_v53, 7  ;;  %12577 = vst [vmem:[#allocation14_spill] sm:$0xff] %v10637_v44  ;;  %v10665_v12 = vshrl.u32 %v4259_v38, 16  ;;  %12581 = vst [vmem:[#allocation18_spill] sm:$0xff] %v10676_v59 }
 0x209   : > { %12575 = vst [vmem:[#allocation12_spill] sm:$0xff] %v10623_v21  ;;  %v4584_v51 = vrot.slane %v10623_v21, 1  ;;  %v10679_v38 = vshll.u32 %v4262_v17, 16 }
 0x20a   : > { %2387 = vmatmul.mubr.bf16.gmra.mrb[144].mxu1 %v9188_v20  ;;  %v10618_v20 = vshll.u32 %v4258_v42, 16  ;;  %v3986_v46 = vsel %vm3980_vm6, %v3984_v41, %v3985_v24  ;;  %v2840_v41 = vshrl.u32 %v9849_v50, 16  ;;  %12579 = vst [vmem:[#allocation16_spill] sm:$0xff] %v10665_v12 }
 0x20b   : > { %2394 = vmatprep.mubr.bf16.mxu1 %v9940_v33  ;;  %v4588_v25 = vor.u32 %v10665_v12, %v4584_v51 }
 0x20c   : > { %12574 = vst [vmem:[#allocation11_spill] sm:$0xff] %v10618_v20  ;;  %v10629_v26 = vrot.slane %v10618_v20, 1 }
 0x20d   : > { %3543 = vmatmul.mubr.bf16.gmra.mrb[188].mxu0 %v10520_v11 }
 0x20e   : > { %3550 = vmatprep.mubr.bf16.mxu0 %v3339_v34  ;;  %v2821_v34 = vshll.u32 %v9775_v29, 16  ;;  %12576 = vst [vmem:[#allocation13_spill] sm:$0xff] %v10629_v26  ;;  %v4261_v29 = vld [vmem:[#allocation2 + $0x38] sm:$0xff] }
 0x210   : > { %v2823_v55 = vor.u32 %v2821_v34, %v10616_v9 }
 0x212   : > { %2395 = vmatmul.mubr.bf16.gmra.mrb[148].mxu1 %v9189_v23  ;;  %v4257_v23 = vld [vmem:[#allocation2 + $0x18] sm:$0xff]  ;;  %v2824_v4 = vsel %vm2805_vm5, %v2816_v49, %v2823_v55  ;;  %v10670_v55 = vrot.slane %v2840_v41, 7  ;;  %v2843_v41 = vshll.u32 %v9849_v50, 16  ;;  %v12586_v50 = vrot.slane %v10433_v60, 7 }
 0x213   : > { %2402 = vmatprep.mubr.bf16.mxu1 %v10189_v40  ;;  %v10633_v3 = vshll.u32 %v4257_v23, 16  ;;  %v10635_v54 = vshrl.u32 %v4257_v23, 16  ;;  %v10652_v23 = vsel %vm3980_vm6, %v3985_v24, %v3989_v48 }
 0x215   : > { %3551 = vmatmul.mubr.bf16.gmra.mrb[192].mxu0 %v10261_v6  ;;  %v5097_v24 = vrot.slane %v10633_v3, 7 }
 0x216   : > { %3558 = vmatprep.mubr.bf16.mxu0 %v3347_v58  ;;  %v3981_v58 = vrot.slane %v3931_v57, 7  ;;  %v10642_v57 = vshrl.u32 %v4258_v42, 16  ;;  %v2832_v42 = vshll.u32 %v9811_v7, 16 }
 0x218   : > { %12578 = vst [vmem:[#allocation15_spill] sm:$0xff] %v10642_v57  ;;  %v10649_v34 = vsel %vm3980_vm6, %v3981_v58, %v3982_v63  ;;  %v5096_v58 = vrot.slane %v10635_v54, 6  ;;  %v2834_v49 = vor.u32 %v2832_v42, %v10639_v35  ;;  %v10684_v42 = vsel %vm3980_vm6, %v3982_v63, %v12582_v5 }
 0x219   : > { %v10703_v63 = vsel %vm3980_vm6, %v3989_v48, %v12586_v50  ;;  %v5112_v48 = vrot.slane %v10642_v57, 6 }
 0x21a   : > { %2403 = vmatmul.mubr.bf16.gmra.mrb[152].mxu1 %v9190_v30  ;;  %v3355_v30 = vsel %vm1789_vm1, %v3350_v8, %v3354_v18  ;;  %v1865_v8 = vsel %vm1789_vm1, %v10340_v32, %v1864_v14  ;;  %v10654_v18 = vshll.u32 %v4261_v29, 16  ;;  %v10661_v14 = vld [vmem:[#allocation2 + $0x50] sm:$0xff]  ;;  %v2835_v5 = vsel %vm2805_vm5, %v10616_v9, %v2834_v49 }
 0x21b   : > { %2410 = vmatprep.mubr.bf16.mxu1 %v10261_v6  ;;  %v4608_v9 = vrot.slane %v10679_v38, 1 }
 0x21c   : > { %v4600_v36 = vrot.slane %v10654_v18, 1 }
 0x21d   : > { %3559 = vmatmul.mubr.bf16.gmra.mrb[196].mxu0 %v10585_v22 }
 0x21e   : > { %3566 = vmatprep.mubr.bf16.mxu0 %v3355_v30  ;;  %v2763_v30 = vld [vmem:[#allocation2 + $0x48] sm:$0xff] }
 0x21f   : > { %v10692_v37 = vshll.u32 %v2763_v30, 16  ;;  %v10723_v49 = vshrl.u32 %v2763_v30, 16 }
 0x221   : > { %12584 = vst [vmem:[#allocation20_spill] sm:$0xff] %v10692_v37  ;;  %12588 = vst [vmem:[#allocation23_spill] sm:$0xff] %v10723_v49 }
 0x222   : > { %2411 = vmatmul.mubr.bf16.gmra.mrb[156].mxu1 %v10155_v47  ;;  %v4580_v47 = vor.u32 %v10642_v57, %v10629_v26  ;;  %v5098_v26 = vor.u32 %v5097_v24, %v5096_v58  ;;  %v10736_v24 = vshrl.u32 %v4262_v17, 16  ;;  %v5113_v17 = vrot.slane %v10618_v20, 7  ;;  %v9072_v20 = vld [vmem:[%s12484_s3 + $0x2c8] sm:$0xff]  }
 0x223   : > { %2418 = vmatprep.mubr.bf16.mxu1 %v1865_v8  ;;  %v4592_v8 = vrot.slane %v10637_v44, 1 }
 0x224   : > { %v10673_v53 = vsel %vm1789_vm1, %v4580_v47, %v4584_v51  ;;  %v10689_v47 = vshll.u32 %v10661_v14, 16  ;;  %v10755_v50 = vor.u32 %v10736_v24, %v4608_v9 }
 0x225   : > { %12580 = vst [vmem:[#allocation17_spill] sm:$0xff] %v10673_v53  ;;  %3567 = vmatmul.mubr.bf16.gmra.mrb[200].mxu0 %v10597_v52  ;;  %v10695_v51 = vsel %vm1789_vm1, %v4588_v25, %v4592_v8  ;;  %v4596_v15 = vor.u32 %v10676_v59, %v4592_v8  ;;  %v12506_v7 = vshrl.u32 %v10673_v53, 16  ;;  %v12507_v52 = vshll.u32 %v10673_v53, 16 }
 0x226   : > { %12583 = vst [vmem:[#allocation19_spill] sm:$0xff] %v10689_v47  ;;  %12585 = vst [vmem:[#allocation21_spill] sm:$0xff] %v10695_v51  ;;  %4165 = vmatprep.mubr.bf16.mxu0 %v3986_v46  ;;  %v2845_v25 = vor.u32 %v2843_v41, %v10670_v55  ;;  %v10712_v46 = vshrl.u32 %v4261_v29, 16  ;;  %v10716_v58 = vrot.slane %v10689_v47, 1  ;;  %v12589_v29 = vor.u32 %v10141_v19, %v10137_v31  ;;  %v9078_v41 = vld [vmem:[%s12484_s3 + $0x400] sm:$0xff]   ;;  %v9080_v31 = vld [vmem:[%s12484_s3 + $0x448] sm:$0xff]  }
 0x227   : > { %v10710_v8 = vsel %vm1789_vm1, %v4596_v15, %v4600_v36  ;;  %v5116_v30 = vrot.slane %v12506_v7, 6  ;;  %v9071_v7 = vld [vmem:[%s12484_s3 + $0x280] sm:$0xff]   ;;  %v12594_v19 = vshll.u32 %v10695_v51, 16 }
 0x228   : > { %12587 = vst [vmem:[#allocation22_spill] sm:$0xff] %v10710_v8  ;;  %v4604_v15 = vor.u32 %v10712_v46, %v4600_v36  ;;  %v5117_v36 = vrot.slane %v12507_v52, 7 }
 0x22a   : > { %2419 = vmatmul.mubr.bf16.gmra.mrb[160].mxu1 %v10203_v2  ;;  %v10721_v2 = vrot.slane %v10692_v37, 1  ;;  %v10757_v52 = vor.u32 %v5117_v36, %v5116_v30  ;;  %v5114_v30 = vor.u32 %v5113_v17, %v5112_v48  ;;  %v5120_v36 = vrot.slane %v10665_v12, 6 }
 0x22b   : > { %3059 = vmatprep.mubr.bf16.mxu1 %v2824_v4  ;;  %v10730_v4 = vsel %vm5092_vm7, %v12589_v29, %v5098_v26  ;;  %v10747_v29 = vsel %vm1789_vm1, %v4604_v15, %v4608_v9  ;;  %v5125_v15 = vrot.slane %v12594_v19, 7  ;;  %v2851_v48 = vshrl.u32 %v9889_v62, 16 }
 0x22c   : > { %12590 = vst [vmem:[#allocation24_spill] sm:$0xff] %v10730_v4  ;;  %12591 = vst [vmem:[#allocation25_spill] sm:$0xff] %v10747_v29  ;;  %v12593_v4 = vshrl.u32 %v10695_v51, 16  ;;  %v10770_v9 = vor.u32 %v10723_v49, %v10721_v2  ;;  %v10782_v57 = vsel %vm1789_vm1, %v10755_v50, %v10721_v2  ;;  %v5121_v17 = vrot.slane %v10623_v21, 7 }
 0x22d   : > { %12592 = vst [vmem:[#allocation26_spill] sm:$0xff] %v10757_v52  ;;  %4166 = vmatmul.mubr.bf16.vlgmr.msra.gmra.mrb[204].mxu0 %v10649_v34  ;;  %v9081_v34 = vld [vmem:[%s12484_s3 + $0x408] sm:$0xff]   ;;  %v12596_v19 = vshrl.u32 %v10710_v8, 16 }
 0x22e   : > { %v5124_v47 = vrot.slane %v12593_v4, 6  ;;  %4173 = vmatprep.mubr.bf16.mxu0 %v10652_v23  ;;  %8144 = vmatpush3.bf16.msra.mxu0 %v9078_v41  ;;  %v9082_v23 = vld [vmem:[%s12484_s3 + $0x450] sm:$0xff]   ;;  %v10790_v41 = vsel %vm5092_vm7, %v5098_v26, %v5114_v30  ;;  %v10803_v26 = vsel %vm1789_vm1, %v10770_v9, %v10716_v58 }
 0x22f   : > { %8145 = vmatprep.subr.bf16.mxu0 %v9080_v31  ;;  %12595 = vst [vmem:[#allocation27_spill] sm:$0xff] %v10790_v41  ;;  %v5132_v4 = vrot.slane %v12596_v19, 6  ;;  %v5128_v19 = vrot.slane %v10676_v59, 6  ;;  %v5129_v41 = vrot.slane %v10637_v44, 7  ;;  %v10827_v59 = vrot.slane %v2851_v48, 7  ;;  %v9075_v48 = vld [vmem:[%s12484_s3 + $0x290] sm:$0xff]  }
 0x230   : > { %v5126_v51 = vor.u32 %v5125_v15, %v5124_v47  ;;  %v2846_v47 = vsel %vm2805_vm5, %v10639_v35, %v2845_v25  ;;  %v9074_v35 = vld [vmem:[%s12484_s3 + $0x2d0] sm:$0xff]   ;;  %v5122_v25 = vor.u32 %v5121_v17, %v5120_v36  ;;  %v12601_v36 = vshll.u32 %v10747_v29, 16 }
 0x232   : > { %3060 = vmatmul.mubr.bf16.vlgmr.msra.gmra.mrb[164].mxu1 %v10043_v43  ;;  %v9073_v43 = vld [vmem:[%s12484_s3 + $0x288] sm:$0xff]   ;;  %v10807_v31 = vsel %vm5092_vm7, %v10757_v52, %v5126_v51  ;;  %v7599_v21 = vpop.f32.mrb[112].mxu0  ;;  %8146 = vmatpush3.bf16.msra.mxu0 %v9081_v34  ;;  %v5141_v17 = vrot.slane %v12601_v36, 7  ;;  %v9086_v34 = vld [vmem:[%s12484_s3 + $0x458] sm:$0xff]   ;;  %v10842_v36 = vld [vmem:[#allocation2 + $0x50] sm:$0xff] }
 0x233   : > { %3067 = vmatprep.mubr.bf16.mxu1 %v2835_v5  ;;  %7934 = vmatpush3.bf16.msra.mxu1 %v9071_v7  ;;  %12597 = vst [vmem:[#allocation28_spill] sm:$0xff] %v10807_v31  ;;  %v12598_v5 = vshll.u32 %v10710_v8, 16  ;;  %v9083_v31 = vld [vmem:[%s12484_s3 + $0x410] sm:$0xff]   ;;  %v12600_v8 = vshrl.u32 %v10747_v29, 16  ;;  %v7600_v7 = vpop.f32.mrb[113].mxu0 }
 0x234   : > { %7935 = vmatprep.subr.bf16.mxu1 %v9072_v20  ;;  %v10821_v20 = vld [vmem:[#allocation2 + $0x48] sm:$0xff]  ;;  %8147 = vmatprep.subr.bf16.mxu0 %v9082_v23 }
 0x235   : > { %v5133_v15 = vrot.slane %v12598_v5, 7  ;;  %12599 = vst [vmem:[#allocation29_spill] sm:$0xff] %v10821_v20  ;;  %v5140_v12 = vrot.slane %v12600_v8, 6  ;;  %v10834_v5 = vsel %vm5092_vm7, %v5114_v30, %v5122_v25  ;;  %v7602_v8 = vpop.f32.mrb[114].mxu0  ;;  %4174 = vmatmul.mubr.bf16.gmra.mrb[208].mxu0 %v10684_v42  ;;  %v9087_v42 = vld [vmem:[%s12484_s3 + $0x418] sm:$0xff]  }
 0x236   : > { %12602 = vst [vmem:[#allocation30_spill] sm:$0xff] %v10834_v5  ;;  %v7603_v30 = vpop.f32.mrb[115].mxu0  ;;  %4181 = vmatprep.mubr.bf16.mxu0 %v10703_v63  ;;  %8148 = vmatpush3.bf16.msra.mxu0 %v9083_v31  ;;  %v9088_v63 = vld [vmem:[%s12484_s3 + $0x460] sm:$0xff]  }
 0x237   : > { %v5134_v52 = vor.u32 %v5133_v15, %v5132_v4  ;;  %v5130_v4 = vor.u32 %v5129_v41, %v5128_v19  ;;  %v10836_v15 = vadd.f32 %v7600_v7, %v7599_v21  ;;  %7936 = vmatpush3.bf16.msra.mxu1 %v9073_v43  ;;  %v5142_v44 = vor.u32 %v5141_v17, %v5140_v12  ;;  %v9077_v21 = vld [vmem:[%s12484_s3 + $0x2d8] sm:$0xff]  }
 0x238   : > { %7937 = vmatprep.subr.bf16.mxu1 %v9074_v35  ;;  %v10851_v41 = vld [vmem:[#allocation2 + $0x58] sm:$0xff]  ;;  %v5136_v19 = vrot.slane %v10712_v46, 6  ;;  %v10860_v12 = vadd.f32 %v7603_v30, %v7602_v8  ;;  %v12608_v7 = vshll.u32 %v10782_v57, 16  ;;  %8149 = vmatprep.subr.bf16.mxu0 %v9086_v34  ;;  %v6209_v8 = vrot.slane %v10842_v36, 6 }
 0x239   : > { %v10845_v29 = vsel %vm5092_vm7, %v5126_v51, %v5134_v52  ;;  %12604 = vst [vmem:[#allocation32_spill] sm:$0xff] %v10851_v41  ;;  %v10854_v43 = vsel %vm5092_vm7, %v5122_v25, %v5130_v4  ;;  %v5137_v51 = vrot.slane %v10654_v18, 7  ;;  %v10866_v35 = vsel %vm5092_vm7, %v5134_v52, %v5142_v44 }
 0x23a   : > { %12603 = vst [vmem:[#allocation31_spill] sm:$0xff] %v10845_v29  ;;  %12605 = vst [vmem:[#allocation33_spill] sm:$0xff] %v10854_v43  ;;  %v12607_v25 = vshrl.u32 %v10782_v57, 16  ;;  %v5149_v23 = vrot.slane %v12608_v7, 7  ;;  %3068 = vmatmul.mubr.bf16.gmra.mrb[168].mxu1 %v10071_v27  ;;  %v5144_v30 = vrot.slane %v10736_v24, 6  ;;  %v5145_v52 = vrot.slane %v10679_v38, 7  ;;  %8150 = vmatpush3.bf16.msra.mxu0 %v9087_v42 }
 0x23b   : > { %12606 = vst [vmem:[#allocation34_spill] sm:$0xff] %v10866_v35  ;;  %v5138_v31 = vor.u32 %v5137_v51, %v5136_v19  ;;  %3075 = vmatprep.mubr.bf16.mxu1 %v2846_v47  ;;  %7938 = vmatpush3.bf16.msra.mxu1 %v9075_v48  ;;  %v9079_v7 = vld [vmem:[%s12484_s3 + $0x298] sm:$0xff]   ;;  %v12609_v27 = vshrl.u32 %v10803_v26, 16  ;;  %v12610_v35 = vshll.u32 %v10803_v26, 16  ;;  %v2854_v51 = vshll.u32 %v9889_v62, 16  ;;  %v9084_v47 = vld [vmem:[%s12484_s3 + $0x2e0] sm:$0xff]  }
 0x23c   : > { %v5148_v17 = vrot.slane %v12607_v25, 6  ;;  %7939 = vmatprep.subr.bf16.mxu1 %v9077_v21  ;;  %v9089_v62 = vld [vmem:[%s12484_s3 + $0x420] sm:$0xff]   ;;  %8151 = vmatprep.subr.bf16.mxu0 %v9088_v63  ;;  %v9092_v42 = vld [vmem:[%s12484_s3 + $0x468] sm:$0xff]  }
 0x23d   : > { %v5156_v34 = vrot.slane %v12609_v27, 6  ;;  %v5157_v43 = vrot.slane %v12610_v35, 7  ;;  %v10892_v48 = vsel %vm5092_vm7, %v5130_v4, %v5138_v31  ;;  %v10899_v27 = vor.u32 %v5145_v52, %v5144_v30  ;;  %v7605_v35 = vpop.f32.mrb[116].mxu0  ;;  %v9085_v63 = vld [vmem:[%s12484_s3 + $0x2a0] sm:$0xff]  }
 0x23e   : > { %v5150_v25 = vor.u32 %v5149_v23, %v5148_v17  ;;  %12611 = vst [vmem:[#allocation35_spill] sm:$0xff] %v10892_v48  ;;  %v12612_v23 = vrot.slane %v10821_v20, 6  ;;  %v12617_v4 = vrot.slane %v10851_v41, 6  ;;  %v7606_v30 = vpop.f32.mrb[117].mxu0  ;;  %v2862_v52 = vshrl.u32 %v9940_v33, 16  ;;  %8152 = vmatpush3.bf16.msra.mxu0 %v9089_v62 }
 0x23f   : > { %12614 = vst [vmem:[#allocation37_spill] sm:$0xff] %v10899_v27  ;;  %v10907_v19 = vor.u32 %v5157_v43, %v5156_v34  ;;  %v12620_v43 = vrot.slane %v10308_v61, 7  ;;  %v12621_v34 = vrot.slane %v10178_v10, 7  ;;  %7940 = vmatpush3.bf16.msra.mxu1 %v9079_v7  ;;  %v12624_v10 = vrot.slane %v10433_v60, 7  ;;  %v9090_v7 = vld [vmem:[%s12484_s3 + $0x2e8] sm:$0xff]   ;;  %8153 = vmatprep.subr.bf16.mxu0 %v9092_v42  ;;  %v9096_v42 = vld [vmem:[%s12484_s3 + $0x2f0] sm:$0xff]  }
 0x240   : > { %v10897_v17 = vsel %vm3655_vm8, %v12612_v23, %v6209_v8  ;;  %v10905_v21 = vsel %vm5092_vm7, %v5142_v44, %v5150_v25  ;;  %v10912_v48 = vsel %vm3655_vm8, %v6209_v8, %v12617_v4  ;;  %v2856_v23 = vor.u32 %v2854_v51, %v10827_v59  ;;  %v7608_v51 = vpop.f32.mrb[118].mxu0  ;;  %7941 = vmatprep.subr.bf16.mxu1 %v9084_v47 }
 0x241   : > { %12613 = vst [vmem:[#allocation36_spill] sm:$0xff] %v10897_v17  ;;  %12615 = vst [vmem:[#allocation38_spill] sm:$0xff] %v10905_v21  ;;  %v10921_v44 = vsel %vm5092_vm7, %v5138_v31, %v10899_v27  ;;  %v3992_v8 = vsel %vm3980_vm6, %v12621_v34, %v12620_v43  ;;  %v10928_v4 = vadd.f32 %v7606_v30, %v7605_v35  ;;  %v12623_v27 = vrot.slane %v10486_v13, 7  ;;  %v7609_v30 = vpop.f32.mrb[119].mxu0  ;;  %v10990_v17 = vld [vmem:[#allocation2 + $0x60] sm:$0x3f] }
 0x242   : > { %12616 = vst [vmem:[#allocation39_spill] sm:$0xff] %v10907_v19  ;;  %12618 = vst [vmem:[#allocation40_spill] sm:$0xff] %v10912_v48  ;;  %v5482_v48 = vshll.u32 %v10821_v20, 16  ;;  %v10936_v31 = vsel %vm5092_vm7, %v5150_v25, %v10907_v19  ;;  %4182 = vmatmul.mubr.bf16.gmra.mrb[212].mxu0 %v3992_v8  ;;  %v5490_v43 = vshll.u32 %v10842_v36, 16  ;;  %v10947_v34 = vadd.f32 %v7609_v30, %v7608_v51  ;;  %v9093_v25 = vld [vmem:[%s12484_s3 + $0x428] sm:$0xff]   ;;  %v9094_v8 = vld [vmem:[%s12484_s3 + $0x470] sm:$0xff]  }
 0x243   : > { %12619 = vst [vmem:[#allocation41_spill] sm:$0xff] %v10921_v44  ;;  %12622 = vst [vmem:[#allocation42_spill] sm:$0xff] %v10936_v31  ;;  %v3998_v35 = vsel %vm3980_vm6, %v12624_v10, %v12623_v27  ;;  %3076 = vmatmul.mubr.bf16.gmra.mrb[172].mxu1 %v10093_v1  ;;  %v2857_v27 = vsel %vm2805_vm5, %v10670_v55, %v2856_v23  ;;  %v10955_v47 = vrot.slane %v2862_v52, 7  ;;  %v5498_v51 = vshll.u32 %v10851_v41, 16  ;;  %v9091_v1 = vld [vmem:[%s12484_s3 + $0x2a8] sm:$0xff]   ;;  %v7611_v30 = vpop.f32.mrb[120].mxu0 }
 0x244   : > { %4189 = vmatprep.mubr.bf16.mxu0 %v3998_v35  ;;  %3083 = vmatprep.mubr.bf16.mxu1 %v2857_v27  ;;  %v5484_v10 = vrot.slane %v5482_v48, 1  ;;  %v2865_v23 = vshll.u32 %v9940_v33, 16  ;;  %v2873_v52 = vshrl.u32 %v10189_v40, 16  ;;  %v5492_v35 = vrot.slane %v5490_v43, 1  ;;  %v7612_v55 = vpop.f32.mrb[121].mxu0  ;;  %v9098_v33 = vld [vmem:[%s12484_s3 + $0x478] sm:$0xff]  }
 0x245   : > { %7942 = vmatpush3.bf16.msra.mxu1 %v9085_v63  ;;  %8154 = vmatpush3.bf16.msra.mxu0 %v9093_v25  ;;  %v9095_v63 = vld [vmem:[%s12484_s3 + $0x430] sm:$0xff]   ;;  %v5486_v48 = vshrl.u32 %v10821_v20, 16  ;;  %v5500_v62 = vrot.slane %v5498_v51, 1  ;;  %v12625_v43 = vrot.slane %v10388_v28, 7  ;;  %v12626_v25 = vrot.slane %v10308_v61, 7  ;;  %v7614_v44 = vpop.f32.mrb[122].mxu0 }
 0x246   : > { %7943 = vmatprep.subr.bf16.mxu1 %v9090_v7  ;;  %v2867_v27 = vor.u32 %v2865_v23, %v10955_v47  ;;  %8155 = vmatprep.subr.bf16.mxu0 %v9094_v8  ;;  %v5494_v7 = vshrl.u32 %v10842_v36, 16  ;;  %v10985_v31 = vadd.f32 %v7612_v55, %v7611_v30  ;;  %v9097_v8 = vld [vmem:[%s12484_s3 + $0x2b0] sm:$0xff]   ;;  %v12627_v51 = vrot.slane %v10520_v11, 7  ;;  %v7615_v29 = vpop.f32.mrb[123].mxu0 }
 0x247   : > { %v3996_v19 = vsel %vm3980_vm6, %v12626_v25, %v12625_v43  ;;  %v5488_v23 = vor.u32 %v5486_v48, %v5484_v10  ;;  %v12628_v21 = vrot.slane %v10486_v13, 7  ;;  %v10997_v43 = vrot.slane %v2873_v52, 7  ;;  %v9102_v48 = vld [vmem:[%s12484_s3 + $0x3c0] sm:$0xff]  }
 0x248   : > { %v5496_v55 = vor.u32 %v5494_v7, %v5492_v35  ;;  %v11002_v30 = vadd.f32 %v7615_v29, %v7614_v44  ;;  %v2876_v29 = vshll.u32 %v10189_v40, 16  ;;  %v9108_v44 = vld [vmem:[%s12484_s3 + $0x540] sm:$0xff]   ;;  %v9101_v40 = vld [vmem:[%s12484_s3 + $0x2b8] sm:$0xff]  }
 0x249   : > { %7944 = vmatpush3.bf16.msra.mxu1 %v9091_v1  ;;  %v4002_v61 = vsel %vm3980_vm6, %v12628_v21, %v12627_v51  ;;  %v9100_v1 = vld [vmem:[%s12484_s3 + $0x2f8] sm:$0xff]   ;;  %8156 = vmatpush3.bf16.msra.mxu0 %v9095_v63  ;;  %v11009_v21 = vsel %vm1789_vm1, %v10755_v50, %v5484_v10  ;;  %v11012_v52 = vsel %vm1789_vm1, %v5488_v23, %v5492_v35  ;;  %v5843_v50 = vshll.u32 %v10990_v17, 16 }
 0x24a   : > { %4190 = vmatmul.mubr.bf16.gmra.mrb[216].mxu0 %v3996_v19  ;;  %7945 = vmatprep.subr.bf16.mxu1 %v9096_v42  ;;  %v9099_v19 = vld [vmem:[%s12484_s3 + $0x438] sm:$0xff]   ;;  %12629 = vst [vmem:[#allocation43_spill] sm:$0xff] %v11009_v21  ;;  %12630 = vst [vmem:[#allocation44_spill] sm:$0xff] %v11012_v52  ;;  %v2868_v42 = vsel %vm2805_vm5, %v10827_v59, %v2867_v27  ;;  %v11022_v63 = vsel %vm1789_vm1, %v5496_v55, %v5500_v62  ;;  %v3999_v10 = vrot.slane %v10426_v16, 7  ;;  %v5433_v59 = vld [vmem:[#allocation2 + $0x60] sm:$0x1f] }
 0x24b   : > { %4197 = vmatprep.mubr.bf16.mxu0 %v4002_v61  ;;  %3084 = vmatmul.mubr.bf16.gmra.mrb[176].mxu1 %v10113_v0  ;;  %12631 = vst [vmem:[#allocation45_spill] sm:$0xff] %v11022_v63  ;;  %v4005_v0 = vrot.slane %v10261_v6, 7  ;;  %v2878_v35 = vor.u32 %v2876_v29, %v10997_v43  ;;  %v5502_v27 = vshrl.u32 %v10851_v41, 16  ;;  %v5909_v16 = vrot.slane %v11012_v52, 5  ;;  %v7617_v7 = vpop.f32.mrb[124].mxu0 }
 0x24c   : > { %8157 = vmatprep.subr.bf16.mxu0 %v9098_v33  ;;  %3091 = vmatprep.mubr.bf16.mxu1 %v2868_v42  ;;  %v12527_v33 = vrot.slane %v11009_v21, 5  ;;  %v5911_v23 = vrot.slane %v10842_v36, 5  ;;  %v7618_v51 = vpop.f32.mrb[125].mxu0  ;;  %v5845_v42 = vrot.slane %v5843_v50, 1  ;;  %v12634_v29 = vrot.slane %v10388_v28, 7 }
 0x24d   : > { %7946 = vmatpush3.bf16.msra.mxu1 %v9097_v8  ;;  %8158 = vmatpush3.bf16.msra.mxu0 %v9099_v19  ;;  %v5913_v8 = vrot.slane %v11022_v63, 5  ;;  %v11040_v61 = vor.u32 %v5502_v27, %v5500_v62  ;;  %v11050_v25 = vadd.f32 %v7618_v51, %v7617_v7  ;;  %v7620_v5 = vpop.f32.mrb[126].mxu0  ;;  %v12637_v62 = vrot.slane %v10821_v20, 5 }
 0x24e   : > { %7947 = vmatprep.subr.bf16.mxu1 %v9100_v1  ;;  %8283 = vmatprep.subr.bf16.mxu0 %v9108_v44  ;;  %v5919_v1 = vrot.slane %v5433_v59, 5  ;;  %v11045_v55 = vsel %vm2432_vm3, %v12527_v33, %v5909_v16  ;;  %v4000_v19 = vsel %vm3980_vm6, %v12634_v29, %v3999_v10  ;;  %v12639_v59 = vrot.slane %v10520_v11, 7  ;;  %v7621_v28 = vpop.f32.mrb[127].mxu0 }
 0x24f   : > { %12632 = vst [vmem:[#allocation46_spill] sm:$0xff] %v11040_v61  ;;  %12633 = vst [vmem:[#allocation47_spill] sm:$0xff] %v11045_v55  ;;  %v11053_v36 = vsel %vm2432_vm3, %v5909_v16, %v5913_v8  ;;  %v11058_v44 = vsel %vm2432_vm3, %v12637_v62, %v5911_v23  ;;  %v5846_v27 = vsel %vm1789_vm1, %v11040_v61, %v5845_v42  ;;  %v5847_v16 = vshrl.u32 %v10990_v17, 16  ;;  %v11080_v17 = vld [vmem:[#allocation2 + $0x38] sm:$0xff] }
 0x250   : > { %12635 = vst [vmem:[#allocation48_spill] sm:$0xff] %v11050_v25  ;;  %12636 = vst [vmem:[#allocation49_spill] sm:$0xff] %v11053_v36  ;;  %v4006_v50 = vsel %vm3980_vm6, %v12639_v59, %v4005_v0  ;;  %v2879_v7 = vsel %vm2805_vm5, %v10955_v47, %v2878_v35  ;;  %v11069_v51 = vadd.f32 %v7621_v28, %v7620_v5  ;;  %v5917_v29 = vrot.slane %v5846_v27, 5 }
 0x251   : > { %7948 = vmatpush3.bf16.msra.mxu1 %v9101_v40  ;;  %12638 = vst [vmem:[#allocation50_spill] sm:$0xff] %v11058_v44  ;;  %v5915_v40 = vrot.slane %v10851_v41, 5  ;;  %v5849_v59 = vor.u32 %v5847_v16, %v5845_v42  ;;  %v4003_v47 = vrot.slane %v11080_v17, 7  ;;  %v2768_v5 = vsel %vm1789_vm1, %v10340_v32, %v10721_v2 }
 0x252   : > { %4198 = vmatmul.mubr.bf16.gmra.mrb[220].mxu0 %v4000_v19  ;;  %8073 = vmatprep.subr.bf16.mxu1 %v9102_v48  ;;  %12640 = vst [vmem:[#allocation51_spill] sm:$0xff] %v11069_v51  ;;  %v12641_v19 = vshrl.u32 %v10261_v6, 16  ;;  %v4009_v35 = vrot.slane %v10585_v22, 7  ;;  %v12645_v42 = vshll.u32 %v10261_v6, 16  ;;  %v2895_v27 = vshrl.u32 %v2768_v5, 16  ;;  %v12677_v51 = vld [vmem:[#allocation22_spill] sm:$0xff] }
 0x253   : > { %4205 = vmatprep.mubr.bf16.mxu0 %v4006_v50  ;;  %3092 = vmatmul.mubr.bf16.gmra.mrb[180].mxu1 %v10125_v39  ;;  %v11075_v48 = vsel %vm2432_vm3, %v5911_v23, %v5915_v40  ;;  %v11078_v33 = vsel %vm2432_vm3, %v5915_v40, %v5919_v1  ;;  %v11087_v39 = vsel %vm2432_vm3, %v5913_v8, %v5917_v29  ;;  %v5921_v23 = vrot.slane %v5849_v59, 5  ;;  %v7623_v50 = vpop.f32.mrb[128].mxu0 }
 0x254   : > { %v2886_v62 = vrot.slane %v12641_v19, 7  ;;  %12642 = vst [vmem:[#allocation52_spill] sm:$0xff] %v11075_v48  ;;  %12643 = vst [vmem:[#allocation53_spill] sm:$0xff] %v11078_v33  ;;  %3099 = vmatprep.mubr.bf16.mxu1 %v2879_v7  ;;  %v7624_v28 = vpop.f32.mrb[129].mxu0  ;;  %v4004_v16 = vsel %vm3980_vm6, %v3999_v10, %v4003_v47  ;;  %v4010_v2 = vsel %vm3980_vm6, %v4005_v0, %v4009_v35  ;;  %v2897_v10 = vrot.slane %v2895_v27, 7 }
 0x255   : > { %12644 = vst [vmem:[#allocation54_spill] sm:$0xff] %v11087_v39  ;;  %v11093_v40 = vsel %vm2432_vm3, %v5917_v29, %v5921_v23  ;;  %v11096_v7 = vadd.f32 %v7624_v28, %v7623_v50  ;;  %v7626_v32 = vpop.f32.mrb[130].mxu0  ;;  %v3941_v59 = vsel %vm1789_vm1, %v10592_v56, %v10716_v58  ;;  %v11107_v23 = vld [vmem:[#allocation2 + $0x40] sm:$0xff]  ;;  %v11111_v0 = vrot.slane %v10633_v3, 1 }
 0x256   : > { %v2889_v1 = vor.u32 %v12645_v42, %v2886_v62  ;;  %12646 = vst [vmem:[#allocation55_spill] sm:$0xff] %v11093_v40  ;;  %v7627_v8 = vpop.f32.mrb[131].mxu0  ;;  %v4007_v50 = vrot.slane %v11107_v23, 7  ;;  %v4013_v42 = vrot.slane %v3941_v59, 7  ;;  %v2898_v28 = vshll.u32 %v2768_v5, 16 }
 0x257   : > { %12647 = vst [vmem:[#allocation56_spill] sm:$0xff] %v11096_v7  ;;  %v11099_v19 = vadd.f32 %v7627_v8, %v7626_v32  ;;  %12649 = vst [vmem:[#allocation58_spill] sm:$0xff] %v11111_v0  ;;  %v12650_v32 = vld [vmem:[#allocation4_spill] sm:$0xff]  ;;  %v11116_v40 = vshrl.u32 %v10661_v14, 16  ;;  %v4572_v59 = vor.u32 %v10635_v54, %v11111_v0  ;;  %v11129_v14 = vld [vmem:[#allocation2 + $0x8] sm:$0xc0] }
 0x258   : > { %v2890_v29 = vsel %vm2805_vm5, %v10997_v43, %v2889_v1  ;;  %v2900_v33 = vor.u32 %v2898_v28, %v2897_v10  ;;  %v2906_v43 = vshrl.u32 %v10770_v9, 16  ;;  %v4008_v1 = vsel %vm3980_vm6, %v4003_v47, %v4007_v50  ;;  %v11191_v7 = vld [vmem:[#allocation2 + $0x10] sm:$0xff] }
 0x259   : > { %12648 = vst [vmem:[#allocation57_spill] sm:$0xff] %v11099_v19  ;;  %12652 = vst [vmem:[#allocation4_spill] sm:$0xff] %v11116_v40  ;;  %v4014_v5 = vsel %vm3980_vm6, %v4009_v35, %v4013_v42  ;;  %v11127_v28 = vor.u32 %v11116_v40, %v10716_v58  ;;  %v12654_v47 = vshrl.u32 %v12650_v32, 16  ;;  %v11141_v58 = vld [vmem:[#allocation2 + $0x48] sm:$0xff]  ;;  %v12678_v25 = vshrl.u32 %v12677_v51, 16 }
 0x25a   : > { %4206 = vmatmul.mubr.bf16.gmra.mrb[224].mxu0 %v4004_v16  ;;  %v7739_v16 = vpop.f32.mrb[132].mxu0  ;;  %v2901_v35 = vsel %vm2805_vm5, %v2886_v62, %v2900_v33  ;;  %v2908_v44 = vrot.slane %v2906_v43, 7  ;;  %v4011_v36 = vrot.slane %v11141_v58, 7 }
 0x25b   : > { %4213 = vmatprep.mubr.bf16.mxu0 %v4010_v2  ;;  %3100 = vmatmul.mubr.bf16.gmra.mrb[184].mxu1 %v10133_v45  ;;  %v12651_v2 = vshll.u32 %v12650_v32, 16  ;;  %v7740_v45 = vpop.f32.mrb[133].mxu0  ;;  %12653 = vst [vmem:[#allocation59_spill] sm:$0xff] %v11127_v28  ;;  %v3599_v32 = vshll.u32 %v11129_v14, 16 }
 0x25c   : > { %3107 = vmatprep.mubr.bf16.mxu1 %v2890_v29  ;;  %v11120_v27 = vadd.f32 %v7740_v45, %v7739_v16  ;;  %v7742_v29 = vpop.f32.mrb[134].mxu0  ;;  %v12655_v45 = vld [vmem:[#allocation13_spill] sm:$0xff] }
 0x25d   : > { %v4563_v8 = vrot.slane %v12651_v2, 1  ;;  %v7743_v48 = vpop.f32.mrb[135].mxu0  ;;  %v11137_v39 = vsel %vm1789_vm1, %v4572_v59, %v12655_v45  ;;  %v3601_v41 = vrot.slane %v3599_v32, 1  ;;  %v12659_v32 = vld [vmem:[#allocation10_spill] sm:$0xff] }
 0x25e   : > { %v11131_v2 = vadd.f32 %v7743_v48, %v7742_v29  ;;  %12656 = vst [vmem:[#allocation60_spill] sm:$0xff] %v11137_v39  ;;  %v2909_v29 = vshll.u32 %v10770_v9, 16  ;;  %v12532_v59 = vshrl.u32 %v11137_v39, 16  ;;  %v11155_v9 = vld [vmem:[#allocation2 + $0x50] sm:$0x7f] }
 0x25f   : > { %v4564_v16 = vor.u32 %v4563_v8, %v12654_v47  ;;  %v4017_v8 = vrot.slane %v11127_v28, 7 }
 0x260   : > { %v2911_v62 = vor.u32 %v2909_v29, %v2908_v44  ;;  %v12658_v44 = vshll.u32 %v11137_v39, 16 }
 0x261   : > { %v4569_v48 = vsel %vm1789_vm1, %v4564_v16, %v11111_v0  ;;  %v4018_v20 = vsel %vm3980_vm6, %v4013_v42, %v4017_v8 }
 0x262   : > { %4214 = vmatmul.mubr.bf16.gmra.mrb[228].mxu0 %v4008_v1  ;;  %v12657_v1 = vld [vmem:[#allocation8_spill] sm:$0xff]  ;;  %v7745_v33 = vpop.f32.mrb[136].mxu0  ;;  %v4684_v47 = vshrl.u32 %v4569_v48, 16  ;;  %v4697_v29 = vrot.slane %v12658_v44, 6  ;;  %v2912_v42 = vsel %vm2805_vm5, %v2897_v10, %v2911_v62  ;;  %v12661_v62 = vld [vmem:[#allocation6_spill] sm:$0xff] }
 0x263   : > { %4221 = vmatprep.mubr.bf16.mxu0 %v4014_v5  ;;  %3108 = vmatmul.mubr.bf16.gmra.mrb[188].mxu1 %v12657_v1  ;;  %v7746_v43 = vpop.f32.mrb[137].mxu0  ;;  %v4687_v1 = vshll.u32 %v4569_v48, 16  ;;  %v4694_v5 = vrot.slane %v12532_v59, 5  ;;  %v4015_v59 = vrot.slane %v11155_v9, 7 }
 0x264   : > { %3115 = vmatprep.mubr.bf16.mxu1 %v2901_v35  ;;  %v4012_v35 = vsel %vm3980_vm6, %v4007_v50, %v4011_v36  ;;  %v11152_v55 = vadd.f32 %v7746_v43, %v7745_v33  ;;  %v7748_v16 = vpop.f32.mrb[138].mxu0  ;;  %v2902_v50 = vrot.slane %v10723_v49, 7  ;;  %v3597_v33 = vshrl.u32 %v11129_v14, 16 }
 0x265   : > { %v7749_v0 = vpop.f32.mrb[139].mxu0  ;;  %v4686_v8 = vrot.slane %v4684_v47, 5  ;;  %v4689_v43 = vrot.slane %v4687_v1, 6  ;;  %v4698_v44 = vor.u32 %v4697_v29, %v4694_v5  ;;  %v3660_v47 = vrot.slane %v12661_v62, 6 }
 0x266   : > { %v11161_v48 = vadd.f32 %v7749_v0, %v7748_v16  ;;  %v3602_v39 = vor.u32 %v3601_v41, %v3597_v33  ;;  %v12660_v0 = vld [vmem:[#allocation5_spill] sm:$0xff]  ;;  %v4679_v5 = vrot.slane %v10635_v54, 5  ;;  %v4680_v29 = vrot.slane %v10633_v3, 6 }
 0x267   : > { %v4690_v10 = vor.u32 %v4689_v43, %v4686_v8  ;;  %v12663_v43 = vshll.u32 %v10673_v53, 16 }
 0x268   : > { %v3603_v16 = vsel %vm1789_vm1, %v3602_v39, %v12660_v0  ;;  %v12662_v0 = vshrl.u32 %v10673_v53, 16 }
 0x269   : > { %v4699_v39 = vsel %vm4670_vm9, %v4690_v10, %v4698_v44  ;;  %v4710_v62 = vrot.slane %v12663_v43, 6 }
 0x26a   : > { %4222 = vmatmul.mubr.bf16.gmra.mrb[232].mxu0 %v4012_v35  ;;  %v11167_v35 = vld [vmem:[#allocation2 + $0x10] sm:$0xe0]  ;;  %v7751_v61 = vpop.f32.mrb[140].mxu0  ;;  %v4707_v8 = vrot.slane %v12662_v0, 5  ;;  %v3657_v0 = vrot.slane %v11191_v7, 6 }
 0x26b   : > { %4229 = vmatprep.mubr.bf16.mxu0 %v4018_v20  ;;  %3116 = vmatmul.mubr.bf16.gmra.mrb[192].mxu1 %v12659_v32  ;;  %v2903_v20 = vor.u32 %v2902_v50, %v10692_v37  ;;  %v4672_v63 = vshrl.u32 %v11167_v35, 16  ;;  %v4675_v32 = vshll.u32 %v11167_v35, 16  ;;  %v7752_v1 = vpop.f32.mrb[141].mxu0  ;;  %v3659_v50 = vrot.slane %v3603_v16, 6 }
 0x26c   : > { %3123 = vmatprep.mubr.bf16.mxu1 %v2912_v42  ;;  %v4016_v42 = vsel %vm3980_vm6, %v4011_v36, %v4015_v59  ;;  %v11177_v19 = vadd.f32 %v7752_v1, %v7751_v61  ;;  %v7754_v41 = vpop.f32.mrb[142].mxu0  ;;  %v12664_v36 = vld [vmem:[#allocation9_spill] sm:$0xff]  ;;  %v4681_v16 = vor.u32 %v4680_v29, %v4679_v5  ;;  %v4711_v10 = vor.u32 %v4710_v62, %v4707_v8  ;;  %v12668_v8 = vld [vmem:[#allocation15_spill] sm:$0xff] }
 0x26d   : > { %v7755_v33 = vpop.f32.mrb[143].mxu0  ;;  %v2904_v61 = vsel %vm2805_vm5, %v12664_v36, %v2903_v20  ;;  %v4674_v54 = vrot.slane %v4672_v63, 5  ;;  %v4677_v1 = vrot.slane %v4675_v32, 6  ;;  %v3661_v3 = vsel %vm3655_vm8, %v3659_v50, %v3660_v47  ;;  %v9110_v20 = vld [vmem:[%s12484_s3 + $0x500] sm:$0xff]   ;;  %v12666_v63 = vld [vmem:[#allocation7_spill] sm:$0xff]  ;;  %v9112_v5 = vld [vmem:[%s12484_s3 + $0x548] sm:$0xff]  }
 0x26e   : > { %v11188_v59 = vadd.f32 %v7755_v33, %v7754_v41  ;;  %v3656_v41 = vrot.slane %v11129_v14, 6  ;;  %v3664_v32 = vrot.slane %v12666_v63, 6  ;;  %v4700_v62 = vrot.slane %v12668_v8, 5  ;;  %v12669_v36 = vld [vmem:[#allocation11_spill] sm:$0xff]  ;;  %v9103_v14 = vld [vmem:[%s12484_s3 + $0x380] sm:$0xff]  }
 0x270   : > { %12665 = vst [vmem:[#allocation8_spill] sm:$0xff] %v11188_v59  ;;  %v3658_v8 = vsel %vm3655_vm8, %v3656_v41, %v3657_v0  ;;  %v9105_v41 = vld [vmem:[%s12484_s3 + $0x388] sm:$0xff]   ;;  %v4733_v59 = vrot.slane %v12678_v25, 5 }
 0x272   : > { %4230 = vmatmul.mubr.bf16.gmra.mrb[236].mxu0 %v4016_v42  ;;  %v4678_v42 = vor.u32 %v4677_v1, %v4674_v54  ;;  %v7757_v43 = vpop.f32.mrb[144].mxu0  ;;  %v4712_v54 = vsel %vm4670_vm9, %v4698_v44, %v4711_v10  ;;  %v9113_v44 = vld [vmem:[%s12484_s3 + $0x508] sm:$0xff]  }
 0x273   : > { %4950 = vmatprep.mubr.bf16.mxu0 %v4699_v39  ;;  %3124 = vmatmul.mubr.bf16.gmra.mrb[196].mxu1 %v2904_v61  ;;  %v7758_v39 = vpop.f32.mrb[145].mxu0  ;;  %v4701_v61 = vrot.slane %v12669_v36, 6 }
 0x274   : > { %3840 = vmatprep.mubr.bf16.mxu1 %v3661_v3  ;;  %v4682_v29 = vsel %vm4670_vm9, %v4678_v42, %v4681_v16  ;;  %v11203_v50 = vadd.f32 %v7758_v39, %v7757_v43  ;;  %v7760_v33 = vpop.f32.mrb[146].mxu0  ;;  %v12670_v3 = vld [vmem:[#allocation21_spill] sm:$0xff] }
 0x275   : > { %v7761_v1 = vpop.f32.mrb[147].mxu0  ;;  %v12671_v63 = vshrl.u32 %v12670_v3, 16  ;;  %v12672_v42 = vshll.u32 %v12670_v3, 16  ;;  %v9104_v39 = vld [vmem:[%s12484_s3 + $0x3c8] sm:$0xff]  }
 0x276   : > { %12667 = vst [vmem:[#allocation10_spill] sm:$0xff] %v11203_v50  ;;  %v11219_v36 = vadd.f32 %v7761_v1, %v7760_v33  ;;  %v9106_v33 = vld [vmem:[%s12484_s3 + $0x3d0] sm:$0xff]  }
 0x277   : > { %v4720_v52 = vrot.slane %v12671_v63, 5  ;;  %v4723_v43 = vrot.slane %v12672_v42, 6  ;;  %v9114_v63 = vld [vmem:[%s12484_s3 + $0x550] sm:$0xff]   ;;  %v4702_v42 = vor.u32 %v4701_v61, %v4700_v62  ;;  %v3668_v61 = vrot.slane %v10433_v60, 6 }
 0x278   : > { %12673 = vst [vmem:[#allocation5_spill] sm:$0xff] %v11219_v36  ;;  %v9115_v62 = vld [vmem:[%s12484_s3 + $0x510] sm:$0xff]  }
 0x279   : > { %v4703_v1 = vsel %vm4670_vm9, %v4681_v16, %v4702_v42  ;;  %v9107_v60 = vld [vmem:[%s12484_s3 + $0x390] sm:$0xff]   ;;  %v12679_v16 = vshll.u32 %v12677_v51, 16  ;;  %v3669_v25 = vsel %vm3655_vm8, %v3664_v32, %v3668_v61 }
 0x27a   : > { %4951 = vmatmul.mubr.bf16.vlgmr.msra.gmra.mrb[240].mxu0 %v4682_v29  ;;  %v3665_v29 = vsel %vm3655_vm8, %v3660_v47, %v3664_v32 }
 0x27b   : > { %4958 = vmatprep.mubr.bf16.mxu0 %v4712_v54  ;;  %8284 = vmatpush3.bf16.msra.mxu0 %v9110_v20  ;;  %v4724_v20 = vor.u32 %v4723_v43, %v4720_v52  ;;  %v11234_v54 = vld [vmem:[#allocation2 + $0x18] sm:$0xff] }
 0x27c   : > { %3841 = vmatmul.mubr.bf16.vlgmr.msra.gmra.mrb[200].mxu1 %v3658_v8  ;;  %8285 = vmatprep.subr.bf16.mxu0 %v9112_v5  ;;  %v3662_v47 = vrot.slane %v11234_v54, 6  ;;  %v7763_v5 = vpop.f32.mrb[148].mxu0  ;;  %v9118_v52 = vld [vmem:[%s12484_s3 + $0x558] sm:$0xff]   ;;  %v12675_v8 = vld [vmem:[#allocation16_spill] sm:$0xff] }
 0x27d   : > { %3848 = vmatprep.mubr.bf16.mxu1 %v3665_v29  ;;  %8074 = vmatpush3.bf16.msra.mxu1 %v9103_v14  ;;  %v7764_v14 = vpop.f32.mrb[149].mxu0  ;;  %v4713_v29 = vrot.slane %v12675_v8, 5 }
 0x27e   : > { %8075 = vmatprep.subr.bf16.mxu1 %v9104_v39  ;;  %v11245_v43 = vadd.f32 %v7764_v14, %v7763_v5  ;;  %v7766_v39 = vpop.f32.mrb[150].mxu0  ;;  %v4736_v5 = vrot.slane %v12679_v16, 6  ;;  %v9109_v14 = vld [vmem:[%s12484_s3 + $0x3d8] sm:$0xff]  }
 0x27f   : > { %8286 = vmatpush3.bf16.msra.mxu0 %v9113_v44  ;;  %v12676_v44 = vld [vmem:[#allocation12_spill] sm:$0xff]  ;;  %v7767_v50 = vpop.f32.mrb[151].mxu0 }
 0x280   : > { %8287 = vmatprep.subr.bf16.mxu0 %v9114_v63  ;;  %12674 = vst [vmem:[#allocation6_spill] sm:$0xff] %v11245_v43  ;;  %v4714_v36 = vrot.slane %v12676_v44, 6  ;;  %v4725_v63 = vsel %vm4670_vm9, %v4711_v10, %v4724_v20  ;;  %v11261_v8 = vadd.f32 %v7767_v50, %v7766_v39  ;;  %v9119_v10 = vld [vmem:[%s12484_s3 + $0x518] sm:$0xff]   ;;  %v4737_v50 = vor.u32 %v4736_v5, %v4733_v59  ;;  %v11276_v39 = vld [vmem:[#allocation2 + $0x20] sm:$0xff]  ;;  %v9124_v59 = vld [vmem:[%s12484_s3 + $0x568] sm:$0xff]  }
 0x281   : > { %8076 = vmatpush3.bf16.msra.mxu1 %v9105_v41  ;;  %v3663_v41 = vsel %vm3655_vm8, %v3657_v0, %v3662_v47  ;;  %v9111_v0 = vld [vmem:[%s12484_s3 + $0x398] sm:$0xff]   ;;  %v3666_v32 = vrot.slane %v11276_v39, 6  ;;  %v12681_v44 = vld [vmem:[#allocation18_spill] sm:$0xff]  ;;  %v9117_v5 = vld [vmem:[%s12484_s3 + $0x3a0] sm:$0xff]  }
 0x282   : > { %4959 = vmatmul.mubr.bf16.gmra.mrb[244].mxu0 %v4703_v1  ;;  %8077 = vmatprep.subr.bf16.mxu1 %v9106_v33  ;;  %12680 = vst [vmem:[#allocation9_spill] sm:$0xff] %v11261_v8  ;;  %v9120_v33 = vld [vmem:[%s12484_s3 + $0x560] sm:$0xff]   ;;  %v4715_v1 = vor.u32 %v4714_v36, %v4713_v29 }
 0x283   : > { %4966 = vmatprep.mubr.bf16.mxu0 %v4725_v63  ;;  %8288 = vmatpush3.bf16.msra.mxu0 %v9115_v62  ;;  %v9116_v62 = vld [vmem:[%s12484_s3 + $0x3e0] sm:$0xff]   ;;  %v12682_v63 = vld [vmem:[#allocation14_spill] sm:$0xff] }
 0x284   : > { %3849 = vmatmul.mubr.bf16.gmra.mrb[204].mxu1 %v3663_v41  ;;  %8289 = vmatprep.subr.bf16.mxu0 %v9118_v52  ;;  %v9121_v36 = vld [vmem:[%s12484_s3 + $0x520] sm:$0xff]   ;;  %v3672_v52 = vrot.slane %v10486_v13, 6  ;;  %v4716_v29 = vsel %vm4670_vm9, %v4702_v42, %v4715_v1  ;;  %v4727_v16 = vrot.slane %v12682_v63, 6  ;;  %v12683_v13 = vld [vmem:[#allocation25_spill] sm:$0xff]  ;;  %v9128_v63 = vld [vmem:[%s12484_s3 + $0x3f0] sm:$0xff]  }
 0x285   : > { %3856 = vmatprep.mubr.bf16.mxu1 %v3669_v25  ;;  %8078 = vmatpush3.bf16.msra.mxu1 %v9107_v60  ;;  %v4726_v60 = vrot.slane %v12681_v44, 5  ;;  %v12684_v41 = vshrl.u32 %v12683_v13, 16  ;;  %v12685_v25 = vshll.u32 %v12683_v13, 16  ;;  %v9122_v42 = vld [vmem:[%s12484_s3 + $0x3e8] sm:$0xff]  }
 0x286   : > { %8079 = vmatprep.subr.bf16.mxu1 %v9109_v14  ;;  %v4738_v14 = vsel %vm4670_vm9, %v4724_v20, %v4737_v50  ;;  %v3673_v20 = vsel %vm3655_vm8, %v3668_v61, %v3672_v52 }
 0x287   : > { %8290 = vmatpush3.bf16.msra.mxu0 %v9119_v10  ;;  %v4746_v10 = vrot.slane %v12684_v41, 5  ;;  %v4728_v44 = vor.u32 %v4727_v16, %v4726_v60  ;;  %v12538_v60 = vrot.slane %v10520_v11, 6  ;;  %v11321_v16 = vld [vmem:[#allocation2 + $0x58] sm:$0x3f] }
 0x288   : > { %8291 = vmatprep.subr.bf16.mxu0 %v9120_v33  ;;  %v4749_v33 = vrot.slane %v12685_v25, 6  ;;  %v4740_v25 = vrot.slane %v10654_v18, 6 }
 0x289   : > { %8080 = vmatpush3.bf16.msra.mxu1 %v9111_v0  ;;  %v3667_v0 = vsel %vm3655_vm8, %v3662_v47, %v3666_v32  ;;  %v9123_v47 = vld [vmem:[%s12484_s3 + $0x3a8] sm:$0xff]   ;;  %v4729_v41 = vsel %vm4670_vm9, %v4715_v1, %v4728_v44  ;;  %v12539_v1 = vshll.u32 %v11321_v16, 16 }
 0x28a   : > { %4967 = vmatmul.mubr.bf16.gmra.mrb[248].mxu0 %v4716_v29  ;;  %8081 = vmatprep.subr.bf16.mxu1 %v9116_v62  ;;  %v9125_v29 = vld [vmem:[%s12484_s3 + $0x528] sm:$0xff]   ;;  %v9126_v62 = vld [vmem:[%s12484_s3 + $0x570] sm:$0xff]  }
 0x28b   : > { %4974 = vmatprep.mubr.bf16.mxu0 %v4738_v14  ;;  %8292 = vmatpush3.bf16.msra.mxu0 %v9121_v36  ;;  %v4750_v36 = vor.u32 %v4749_v33, %v4746_v10  ;;  %v11314_v14 = vld [vmem:[#allocation2 + $0x28] sm:$0xff]  ;;  %v4739_v10 = vrot.slane %v10712_v46, 5  ;;  %v9129_v33 = vld [vmem:[%s12484_s3 + $0x3b0] sm:$0xff]   ;;  %v9132_v46 = vld [vmem:[%s12484_s3 + $0x3f8] sm:$0xff]  }
 0x28c   : > { %3857 = vmatmul.mubr.bf16.gmra.mrb[208].mxu1 %v3667_v0  ;;  %8293 = vmatprep.subr.bf16.mxu0 %v9124_v59  ;;  %v3670_v61 = vrot.slane %v11314_v14, 6  ;;  %v9127_v59 = vld [vmem:[%s12484_s3 + $0x530] sm:$0xff]   ;;  %v12686_v0 = vshrl.u32 %v10782_v57, 16 }
 0x28d   : > { %3864 = vmatprep.mubr.bf16.mxu1 %v3673_v20  ;;  %8082 = vmatpush3.bf16.msra.mxu1 %v9117_v5  ;;  %v9130_v5 = vld [vmem:[%s12484_s3 + $0x578] sm:$0xff]   ;;  %v12687_v20 = vshll.u32 %v10782_v57, 16  ;;  %v3677_v57 = vsel %vm3655_vm8, %v3672_v52, %v12538_v60  ;;  %v9134_v52 = vld [vmem:[%s12484_s3 + $0x4c0] sm:$0xff]  }
 0x28e   : > { %8083 = vmatprep.subr.bf16.mxu1 %v9122_v42  ;;  %v4751_v42 = vsel %vm4670_vm9, %v4737_v50, %v4750_v36  ;;  %v3671_v18 = vsel %vm3655_vm8, %v3666_v32, %v3670_v61  ;;  %v9131_v50 = vld [vmem:[%s12484_s3 + $0x538] sm:$0xff]  }
 0x28f   : > { %8294 = vmatpush3.bf16.msra.mxu0 %v9125_v29  ;;  %v4759_v29 = vrot.slane %v12686_v0, 5 }
 0x290   : > { %8295 = vmatprep.subr.bf16.mxu0 %v9126_v62  ;;  %v4762_v62 = vrot.slane %v12687_v20, 6  ;;  %v7769_v32 = vpop.f32.mrb[152].mxu0 }
 0x291   : > { %8084 = vmatpush3.bf16.msra.mxu1 %v9123_v47  ;;  %v9140_v47 = vld [vmem:[%s12484_s3 + $0x640] sm:$0xff]  }
 0x292   : > { %4975 = vmatmul.mubr.bf16.gmra.mrb[252].mxu0 %v4729_v41  ;;  %8085 = vmatprep.subr.bf16.mxu1 %v9128_v63  ;;  %v4741_v63 = vor.u32 %v4740_v25, %v4739_v10  ;;  %v4763_v41 = vor.u32 %v4762_v62, %v4759_v29  ;;  %v7629_v10 = vpop.f32.mrb[112].mxu1  ;;  %v3680_v29 = vrot.slane %v10261_v6, 6  ;;  %v12689_v6 = vshrl.u32 %v10803_v26, 16 }
 0x293   : > { %4982 = vmatprep.mubr.bf16.mxu0 %v4751_v42  ;;  %8296 = vmatpush3.bf16.msra.mxu0 %v9127_v59  ;;  %v9133_v59 = vld [vmem:[%s12484_s3 + $0x3b8] sm:$0xff]   ;;  %v7770_v42 = vpop.f32.mrb[153].mxu0  ;;  %v7630_v62 = vpop.f32.mrb[113].mxu1 }
 0x294   : > { %3865 = vmatmul.mubr.bf16.gmra.mrb[212].mxu1 %v3671_v18  ;;  %8297 = vmatprep.subr.bf16.mxu0 %v9130_v5  ;;  %v11357_v5 = vld [vmem:[#allocation2 + $0x30] sm:$0xff]  ;;  %v11360_v20 = vadd.f32 %v7770_v42, %v7769_v32  ;;  %v7772_v25 = vpop.f32.mrb[154].mxu0  ;;  %v4752_v18 = vrot.slane %v10736_v24, 5  ;;  %v4742_v60 = vsel %vm4670_vm9, %v4728_v44, %v4741_v63  ;;  %v11368_v8 = vadd.f32 %v7630_v62, %v7629_v10  ;;  %v7632_v42 = vpop.f32.mrb[114].mxu1 }
 0x295   : > { %3872 = vmatprep.mubr.bf16.mxu1 %v3677_v57  ;;  %8086 = vmatpush3.bf16.msra.mxu1 %v9129_v33  ;;  %v3674_v0 = vrot.slane %v11357_v5, 6  ;;  %v4632_v33 = vrot.slane %v12539_v1, 1  ;;  %v4753_v57 = vrot.slane %v10679_v38, 6  ;;  %v7633_v1 = vpop.f32.mrb[115].mxu1  ;;  %v12690_v24 = vshll.u32 %v10803_v26, 16 }
 0x296   : > { %8087 = vmatprep.subr.bf16.mxu1 %v9132_v46  ;;  %12688 = vst [vmem:[#allocation7_spill] sm:$0xff] %v11360_v20  ;;  %v7773_v46 = vpop.f32.mrb[155].mxu0  ;;  %v4772_v20 = vrot.slane %v12689_v6, 5  ;;  %v11378_v44 = vadd.f32 %v7633_v1, %v7632_v42  ;;  %v3605_v10 = vshll.u32 %v11155_v9, 16 }
 0x297   : > { %8298 = vmatpush3.bf16.msra.mxu0 %v9131_v50  ;;  %v11370_v32 = vadd.f32 %v7773_v46, %v7772_v25  ;;  %v4764_v50 = vsel %vm4670_vm9, %v4750_v36, %v4763_v41  ;;  %v4775_v43 = vrot.slane %v12690_v24, 6  ;;  %v3675_v38 = vsel %vm3655_vm8, %v3670_v61, %v3674_v0 }
 0x298   : > { %8423 = vmatprep.subr.bf16.mxu0 %v9140_v47  ;;  %v4633_v47 = vsel %vm1789_vm1, %v11127_v28, %v4632_v33  ;;  %v7775_v26 = vpop.f32.mrb[156].mxu0  ;;  %v3678_v61 = vrot.slane %v11080_v17, 6  ;;  %v4766_v17 = vrot.slane %v10692_v37, 6 }
 0x299   : > { %8088 = vmatpush3.bf16.msra.mxu1 %v9133_v59  ;;  %v4754_v59 = vor.u32 %v4753_v57, %v4752_v18  ;;  %v4776_v25 = vor.u32 %v4775_v43, %v4772_v20  ;;  %v4783_v62 = vshrl.u32 %v4633_v47, 16  ;;  %v4786_v46 = vshll.u32 %v4633_v47, 16 }
 0x29a   : > { %4983 = vmatmul.mubr.bf16.gmra.mrb[0].mxu0 %v4742_v60  ;;  %8213 = vmatprep.subr.bf16.mxu1 %v9134_v52  ;;  %v12691_v60 = vrot.slane %v10520_v11, 6  ;;  %v7776_v52 = vpop.f32.mrb[157].mxu0  ;;  %v7635_v42 = vpop.f32.mrb[116].mxu1  ;;  %v3684_v11 = vrot.slane %v10585_v22, 6  ;;  %v4765_v57 = vrot.slane %v10723_v49, 5  ;;  %v3679_v49 = vsel %vm3655_vm8, %v3674_v0, %v3678_v61 }
 0x29b   : > { %4990 = vmatprep.mubr.bf16.mxu0 %v4764_v50  ;;  %v11387_v1 = vadd.f32 %v7776_v52, %v7775_v26  ;;  %v7778_v50 = vpop.f32.mrb[158].mxu0  ;;  %v4755_v6 = vsel %vm4670_vm9, %v4741_v63, %v4754_v59  ;;  %v7636_v24 = vpop.f32.mrb[117].mxu1  ;;  %v4785_v26 = vrot.slane %v4783_v62, 5  ;;  %v4788_v22 = vrot.slane %v4786_v46, 6 }
 0x29c   : > { %3873 = vmatmul.mubr.bf16.gmra.mrb[216].mxu1 %v3675_v38  ;;  %v3681_v36 = vsel %vm3655_vm8, %v12691_v60, %v3680_v29  ;;  %v7779_v18 = vpop.f32.mrb[159].mxu0  ;;  %v4634_v38 = vshrl.u32 %v11321_v16, 16  ;;  %v11393_v43 = vadd.f32 %v7636_v24, %v7635_v42  ;;  %v7638_v47 = vpop.f32.mrb[118].mxu1  ;;  %v3607_v60 = vrot.slane %v3605_v10, 1 }
 0x29d   : > { %3880 = vmatprep.mubr.bf16.mxu1 %v3681_v36  ;;  %v11395_v20 = vadd.f32 %v7779_v18, %v7778_v50  ;;  %v4777_v36 = vsel %vm4670_vm9, %v4763_v41, %v4776_v25  ;;  %v7639_v63 = vpop.f32.mrb[119].mxu1  ;;  %v3685_v42 = vsel %vm3655_vm8, %v3680_v29, %v3684_v11  ;;  %v4767_v50 = vor.u32 %v4766_v17, %v4765_v57  ;;  %v12692_v18 = vld [vmem:[#allocation19_spill] sm:$0xff] }
 0x29e   : > { %v4636_v52 = vor.u32 %v4634_v38, %v4632_v33  ;;  %v11400_v28 = vadd.f32 %v7639_v63, %v7638_v47  ;;  %v3608_v10 = vsel %vm1789_vm1, %v10592_v56, %v3607_v60  ;;  %v3682_v62 = vrot.slane %v11107_v23, 6  ;;  %v11408_v47 = vld [vmem:[#allocation2 + $0x18] sm:$0xf0] }
 0x29f   : > { %v3688_v46 = vrot.slane %v3608_v10, 6  ;;  %v4778_v33 = vrot.slane %v11116_v40, 5  ;;  %v4779_v0 = vrot.slane %v12692_v18, 6  ;;  %v3609_v56 = vshrl.u32 %v11155_v9, 16 }
 0x2a0   : > { %v4796_v24 = vshrl.u32 %v4636_v52, 16  ;;  %v4799_v41 = vshll.u32 %v4636_v52, 16  ;;  %v5437_v23 = vshll.u32 %v11408_v47, 16  ;;  %v3686_v9 = vrot.slane %v11141_v58, 6 }
 0x2a1   : > { %v3689_v63 = vsel %vm3655_vm8, %v3684_v11, %v3688_v46 }
 0x2a2   : > { %4991 = vmatmul.mubr.bf16.gmra.mrb[4].mxu0 %v4755_v6  ;;  %v4789_v6 = vor.u32 %v4788_v22, %v4785_v26  ;;  %v4798_v57 = vrot.slane %v4796_v24, 5  ;;  %v4801_v17 = vrot.slane %v4799_v41, 6  ;;  %v4780_v26 = vor.u32 %v4779_v0, %v4778_v33 }
 0x2a3   : > { %4998 = vmatprep.mubr.bf16.mxu0 %v4777_v36  ;;  %v3683_v36 = vsel %vm3655_vm8, %v3678_v61, %v3682_v62  ;;  %v3611_v22 = vor.u32 %v3609_v56, %v3607_v60  ;;  %v5439_v41 = vrot.slane %v5437_v23, 1  ;;  %v12693_v0 = vshll.u32 %v11321_v16, 16 }
 0x2a4   : > { %3881 = vmatmul.mubr.bf16.gmra.mrb[220].mxu1 %v3679_v49  ;;  %v4768_v49 = vsel %vm4670_vm9, %v4754_v59, %v4767_v50  ;;  %v4790_v29 = vsel %vm4670_vm9, %v4776_v25, %v4789_v6 }
 0x2a5   : > { %3888 = vmatprep.mubr.bf16.mxu1 %v3685_v42  ;;  %v4802_v42 = vor.u32 %v4801_v17, %v4798_v57  ;;  %v3692_v18 = vrot.slane %v3611_v22, 6  ;;  %v4792_v57 = vrot.slane %v12693_v0, 6  ;;  %v5435_v17 = vshrl.u32 %v11408_v47, 16  ;;  %v3594_v22 = vld [vmem:[#allocation2 + $0x50] sm:$0x3f] }
 0x2a7   : > { %v4803_v58 = vsel %vm4670_vm9, %v4789_v6, %v4802_v42 }
 0x2a8   : > { %v7781_v52 = vpop.f32.mrb[160].mxu0 }
 0x2a9   : > { %v7782_v59 = vpop.f32.mrb[161].mxu0 }
 0x2aa   : > { %4999 = vmatmul.mubr.bf16.gmra.mrb[8].mxu0 %v4768_v49  ;;  %v11416_v10 = vadd.f32 %v7782_v59, %v7781_v52  ;;  %v7784_v24 = vpop.f32.mrb[162].mxu0 }
 0x2ab   : > { %5006 = vmatprep.mubr.bf16.mxu0 %v4790_v29  ;;  %v7785_v61 = vpop.f32.mrb[163].mxu0  ;;  %v4781_v29 = vsel %vm4670_vm9, %v4767_v50, %v4780_v26  ;;  %v5440_v50 = vor.u32 %v5439_v41, %v5435_v17 }
 0x2ac   : > { %3889 = vmatmul.mubr.bf16.gmra.mrb[224].mxu1 %v3683_v36  ;;  %v4791_v36 = vrot.slane %v4634_v38, 5  ;;  %v11422_v60 = vadd.f32 %v7785_v61, %v7784_v24  ;;  %v3687_v38 = vsel %vm3655_vm8, %v3682_v62, %v3686_v9  ;;  %v5561_v24 = vrot.slane %v10673_v53, 4 }
 0x2ad   : > { %3896 = vmatprep.mubr.bf16.mxu1 %v3689_v63  ;;  %v7641_v25 = vpop.f32.mrb[120].mxu1  ;;  %v3693_v63 = vsel %vm3655_vm8, %v3688_v46, %v3692_v18  ;;  %v5445_v59 = vsel %vm1789_vm1, %v5440_v50, %v12655_v45  ;;  %v3690_v61 = vrot.slane %v3594_v22, 6  ;;  %v11448_v22 = vld [vmem:[#allocation2 + $0x20] sm:$0xff]  ;;  %v12708_v45 = vld [vmem:[#allocation9_spill] sm:$0xff] }
 0x2ae   : > { %v7642_v49 = vpop.f32.mrb[121].mxu1  ;;  %v4793_v16 = vor.u32 %v4792_v57, %v4791_v36 }
 0x2af   : > { %v11420_v11 = vadd.f32 %v7642_v49, %v7641_v25  ;;  %v7644_v33 = vpop.f32.mrb[122].mxu1  ;;  %v3691_v50 = vsel %vm3655_vm8, %v3686_v9, %v3690_v61  ;;  %v9142_v9 = vld [vmem:[%s12484_s3 + $0x600] sm:$0xff]   ;;  %v11459_v61 = vrot.slane %v11448_v22, 5 }
 0x2b0   : > { %v7645_v56 = vpop.f32.mrb[123].mxu1  ;;  %v7787_v52 = vpop.f32.mrb[164].mxu0  ;;  %v4794_v57 = vsel %vm4670_vm9, %v4780_v26, %v4793_v16 }
 0x2b1   : > { %v11428_v23 = vadd.f32 %v7645_v56, %v7644_v33  ;;  %v7788_v25 = vpop.f32.mrb[165].mxu0  ;;  %v9199_v33 = vld [vmem:[#allocation2 + $0x18] sm:$0xff]  ;;  %12694 = vst [vmem:[#allocation15_spill] sm:$0xff] %v11459_v61 }
 0x2b2   : > { %5007 = vmatmul.mubr.bf16.gmra.mrb[12].mxu0 %v4781_v29  ;;  %v11435_v6 = vadd.f32 %v7788_v25, %v7787_v52  ;;  %v7790_v49 = vpop.f32.mrb[166].mxu0  ;;  %v5560_v29 = vrot.slane %v5445_v59, 4  ;;  %v4277_v46 = vrot.slane %v9199_v33, 5  ;;  %v5558_v52 = vrot.slane %v11448_v22, 4 }
 0x2b3   : > { %5014 = vmatprep.mubr.bf16.mxu0 %v4803_v58  ;;  %v7791_v41 = vpop.f32.mrb[167].mxu0  ;;  %v4276_v58 = vrot.slane %v11167_v35, 5  ;;  %v5565_v59 = vrot.slane %v12670_v3, 4  ;;  %v5557_v25 = vrot.slane %v11408_v47, 4  ;;  %v11668_v3 = vld [vmem:[#allocation2 + $0x60] sm:$0x1f] }
 0x2b4   : > { %3897 = vmatmul.mubr.bf16.gmra.mrb[228].mxu1 %v3687_v38  ;;  %v11439_v0 = vadd.f32 %v7791_v41, %v7790_v49  ;;  %v5562_v56 = vsel %vm5556_vm10, %v5560_v29, %v5561_v24  ;;  %v9144_v29 = vld [vmem:[%s12484_s3 + $0x648] sm:$0xff]   ;;  %v5506_v53 = vshll.u32 %v11668_v3, 16 }
 0x2b5   : > { %3904 = vmatprep.mubr.bf16.mxu1 %v3693_v63  ;;  %v7647_v42 = vpop.f32.mrb[124].mxu1  ;;  %v4278_v63 = vsel %vm2432_vm3, %v4276_v58, %v4277_v46  ;;  %v5566_v58 = vsel %vm5556_vm10, %v5561_v24, %v5565_v59  ;;  %v9146_v24 = vld [vmem:[%s12484_s3 + $0x650] sm:$0xff]  }
 0x2b6   : > { %v7648_v62 = vpop.f32.mrb[125].mxu1 }
 0x2b7   : > { %v11437_v18 = vadd.f32 %v7648_v62, %v7647_v42  ;;  %v7650_v36 = vpop.f32.mrb[126].mxu1 }
 0x2b8   : > { %v7651_v17 = vpop.f32.mrb[127].mxu1  ;;  %v7879_v26 = vpop.f32.mrb[168].mxu0 }
 0x2b9   : > { %v11444_v38 = vadd.f32 %v7651_v17, %v7650_v36  ;;  %v7880_v16 = vpop.f32.mrb[169].mxu0  ;;  %v9135_v17 = vld [vmem:[%s12484_s3 + $0x480] sm:$0xff]  }
 0x2ba   : > { %5015 = vmatmul.mubr.bf16.gmra.mrb[16].mxu0 %v4794_v57  ;;  %v11453_v35 = vadd.f32 %v7880_v16, %v7879_v26  ;;  %v7882_v49 = vpop.f32.mrb[170].mxu0  ;;  %v5559_v57 = vsel %vm5556_vm10, %v5557_v25, %v5558_v52  ;;  %v9145_v16 = vld [vmem:[%s12484_s3 + $0x608] sm:$0xff]   ;;  %v4280_v25 = vsel %vm2432_vm3, %v4277_v46, %v11459_v61 }
 0x2bb   : > { %5741 = vmatprep.mubr.bf16.mxu0 %v5562_v56  ;;  %v7883_v41 = vpop.f32.mrb[171].mxu0 }
 0x2bc   : > { %3905 = vmatmul.mubr.bf16.gmra.mrb[232].mxu1 %v3691_v50  ;;  %v11464_v36 = vadd.f32 %v7883_v41, %v7882_v49  ;;  %v9136_v50 = vld [vmem:[%s12484_s3 + $0x4c8] sm:$0xff]   ;;  %v5569_v41 = vrot.slane %v12677_v51, 4 }
 0x2bd   : > { %4465 = vmatprep.mubr.bf16.mxu1 %v4278_v63  ;;  %v7669_v42 = vpop.f32.mrb[128].mxu1  ;;  %v11485_v49 = vld [vmem:[#allocation2 + $0x28] sm:$0xff] }
 0x2be   : > { %v7670_v62 = vpop.f32.mrb[129].mxu1 }
 0x2bf   : > { %v7671_v33 = vadd.f32 %v7670_v62, %v7669_v42  ;;  %v7672_v47 = vpop.f32.mrb[130].mxu1 }
 0x2c0   : > { %v7673_v56 = vpop.f32.mrb[131].mxu1 }
 0x2c1   : > { %v2357_v63 = vadd.f32 %v7671_v33, %v10836_v15  ;;  %v7674_v26 = vadd.f32 %v7673_v56, %v7672_v47  ;;  %v7885_v15 = vpop.f32.mrb[172].mxu0 }
 0x2c2   : > { %5742 = vmatmul.mubr.bf16.vlgmr.msra.gmra.mrb[20].mxu0 %v5559_v57  ;;  %v7886_v62 = vpop.f32.mrb[173].mxu0  ;;  %v9147_v57 = vld [vmem:[%s12484_s3 + $0x610] sm:$0xff]  }
 0x2c3   : > { %5749 = vmatprep.mubr.bf16.mxu0 %v5566_v58  ;;  %8424 = vmatpush3.bf16.msra.mxu0 %v9142_v9  ;;  %v2360_v42 = vadd.f32 %v7674_v26, %v10860_v12  ;;  %v5563_v9 = vrot.slane %v11485_v49, 4  ;;  %v11492_v46 = vadd.f32 %v11120_v27, %v2357_v63  ;;  %v9138_v12 = vld [vmem:[%s12484_s3 + $0x4d0] sm:$0xff]   ;;  %v7888_v47 = vpop.f32.mrb[174].mxu0  ;;  %v4281_v58 = vrot.slane %v11485_v49, 5 }
 0x2c4   : > { %4466 = vmatmul.mubr.bf16.vlgmr.msra.gmra.mrb[236].mxu1 %v11191_v7  ;;  %8425 = vmatprep.subr.bf16.mxu0 %v9144_v29  ;;  %v9137_v7 = vld [vmem:[%s12484_s3 + $0x488] sm:$0xff]   ;;  %v11498_v29 = vadd.f32 %v7886_v62, %v7885_v15  ;;  %v7889_v56 = vpop.f32.mrb[175].mxu0  ;;  %v9141_v15 = vld [vmem:[%s12484_s3 + $0x4d8] sm:$0xff]  }
 0x2c5   : > { %4473 = vmatprep.mubr.bf16.mxu1 %v4280_v25  ;;  %8214 = vmatpush3.bf16.msra.mxu1 %v9135_v17  ;;  %v7675_v33 = vpop.f32.mrb[132].mxu1  ;;  %v11504_v27 = vadd.f32 %v11131_v2, %v2360_v42  ;;  %v11510_v26 = vadd.f32 %v7889_v56, %v7888_v47  ;;  %v5564_v25 = vsel %vm5556_vm10, %v5558_v52, %v5563_v9  ;;  %v9139_v2 = vld [vmem:[%s12484_s3 + $0x490] sm:$0xff]   ;;  %v9151_v52 = vld [vmem:[%s12484_s3 + $0x618] sm:$0xff]  }
 0x2c6   : > { %8215 = vmatprep.subr.bf16.mxu1 %v9136_v50  ;;  %v7676_v17 = vpop.f32.mrb[133].mxu1  ;;  %v9150_v50 = vld [vmem:[%s12484_s3 + $0x658] sm:$0xff]   ;;  %v11537_v47 = vld [vmem:[#allocation2 + $0x30] sm:$0xff] }
 0x2c7   : > { %8426 = vmatpush3.bf16.msra.mxu0 %v9145_v16  ;;  %v7677_v63 = vadd.f32 %v7676_v17, %v7675_v33  ;;  %v7678_v16 = vpop.f32.mrb[134].mxu1 }
 0x2c8   : > { %8427 = vmatprep.subr.bf16.mxu0 %v9146_v24  ;;  %v7679_v42 = vpop.f32.mrb[135].mxu1  ;;  %v5570_v24 = vsel %vm5556_vm10, %v5565_v59, %v5569_v41  ;;  %v4282_v59 = vsel %vm2432_vm3, %v11459_v61, %v4281_v58 }
 0x2c9   : > { %8216 = vmatpush3.bf16.msra.mxu1 %v9137_v7  ;;  %v2365_v62 = vadd.f32 %v7677_v63, %v10928_v4  ;;  %v7680_v33 = vadd.f32 %v7679_v42, %v7678_v16  ;;  %v9152_v7 = vld [vmem:[%s12484_s3 + $0x660] sm:$0xff]  }
 0x2ca   : > { %5750 = vmatmul.mubr.bf16.gmra.mrb[24].mxu0 %v5564_v25  ;;  %8217 = vmatprep.subr.bf16.mxu1 %v9138_v12  ;;  %v7891_v12 = vpop.f32.mrb[176].mxu0 }
 0x2cb   : > { %5757 = vmatprep.mubr.bf16.mxu0 %v5570_v24  ;;  %8428 = vmatpush3.bf16.msra.mxu0 %v9147_v57  ;;  %v2368_v4 = vadd.f32 %v7680_v33, %v10947_v34  ;;  %v5567_v57 = vrot.slane %v11537_v47, 4  ;;  %v11544_v17 = vadd.f32 %v11152_v55, %v2365_v62  ;;  %v7892_v56 = vpop.f32.mrb[177].mxu0  ;;  %v9148_v34 = vld [vmem:[%s12484_s3 + $0x4e0] sm:$0xff]   ;;  %v9156_v62 = vld [vmem:[%s12484_s3 + $0x668] sm:$0xff]  }
 0x2cc   : > { %4474 = vmatmul.mubr.bf16.gmra.mrb[240].mxu1 %v11234_v54  ;;  %8429 = vmatprep.subr.bf16.mxu0 %v9150_v50  ;;  %v9143_v54 = vld [vmem:[%s12484_s3 + $0x498] sm:$0xff]   ;;  %v5573_v50 = vrot.slane %v12683_v13, 4  ;;  %v11550_v63 = vadd.f32 %v7892_v56, %v7891_v12  ;;  %v7894_v25 = vpop.f32.mrb[178].mxu0  ;;  %v9154_v56 = vld [vmem:[%s12484_s3 + $0x4e8] sm:$0xff]  }
 0x2cd   : > { %4481 = vmatprep.mubr.bf16.mxu1 %v4282_v59  ;;  %8218 = vmatpush3.bf16.msra.mxu1 %v9139_v2  ;;  %v7681_v16 = vpop.f32.mrb[136].mxu1  ;;  %v9153_v2 = vld [vmem:[%s12484_s3 + $0x620] sm:$0xff]   ;;  %v11556_v55 = vadd.f32 %v11161_v48, %v2368_v4  ;;  %v7895_v24 = vpop.f32.mrb[179].mxu0  ;;  %v5568_v48 = vsel %vm5556_vm10, %v5563_v9, %v5567_v57 }
 0x2ce   : > { %8219 = vmatprep.subr.bf16.mxu1 %v9141_v15  ;;  %v7682_v42 = vpop.f32.mrb[137].mxu1  ;;  %v4283_v15 = vrot.slane %v11537_v47, 5  ;;  %v11562_v59 = vadd.f32 %v7895_v24, %v7894_v25  ;;  %v9149_v4 = vld [vmem:[%s12484_s3 + $0x4a0] sm:$0xff]   ;;  %v5574_v12 = vsel %vm5556_vm10, %v5569_v41, %v5573_v50 }
 0x2cf   : > { %8430 = vmatpush3.bf16.msra.mxu0 %v9151_v52  ;;  %v7683_v33 = vadd.f32 %v7682_v42, %v7681_v16  ;;  %v7684_v52 = vpop.f32.mrb[138].mxu1  ;;  %v9157_v16 = vld [vmem:[%s12484_s3 + $0x628] sm:$0xff]  }
 0x2d0   : > { %8431 = vmatprep.subr.bf16.mxu0 %v9152_v7  ;;  %v7685_v7 = vpop.f32.mrb[139].mxu1  ;;  %v4284_v41 = vsel %vm2432_vm3, %v4281_v58, %v4283_v15  ;;  %v7897_v25 = vpop.f32.mrb[180].mxu0 }
 0x2d1   : > { %8220 = vmatpush3.bf16.msra.mxu1 %v9143_v54  ;;  %v2373_v9 = vadd.f32 %v7683_v33, %v10985_v31  ;;  %v7686_v54 = vadd.f32 %v7685_v7, %v7684_v52  ;;  %v9158_v31 = vld [vmem:[%s12484_s3 + $0x670] sm:$0xff]   ;;  %v7898_v24 = vpop.f32.mrb[181].mxu0  ;;  %v12695_v7 = vld [vmem:[#allocation8_spill] sm:$0xff] }
 0x2d2   : > { %5758 = vmatmul.mubr.bf16.gmra.mrb[28].mxu0 %v5568_v48  ;;  %8221 = vmatprep.subr.bf16.mxu1 %v9148_v34  ;;  %v11607_v33 = vadd.f32 %v7898_v24, %v7897_v25  ;;  %v7900_v48 = vpop.f32.mrb[182].mxu0 }
 0x2d3   : > { %5765 = vmatprep.mubr.bf16.mxu0 %v5574_v12  ;;  %8432 = vmatpush3.bf16.msra.mxu0 %v9153_v2  ;;  %v2376_v34 = vadd.f32 %v7686_v54, %v11002_v30  ;;  %v11594_v2 = vld [vmem:[#allocation2 + $0x38] sm:$0xff]  ;;  %v11601_v58 = vadd.f32 %v11177_v19, %v2373_v9  ;;  %v9160_v30 = vld [vmem:[%s12484_s3 + $0x4f0] sm:$0xff]   ;;  %v7901_v9 = vpop.f32.mrb[183].mxu0 }
 0x2d4   : > { %4482 = vmatmul.mubr.bf16.gmra.mrb[244].mxu1 %v11276_v39  ;;  %8433 = vmatprep.subr.bf16.mxu0 %v9156_v62  ;;  %v5571_v42 = vrot.slane %v11594_v2, 4  ;;  %v9155_v39 = vld [vmem:[%s12484_s3 + $0x4a8] sm:$0xff]   ;;  %v5577_v62 = vrot.slane %v11009_v21, 4  ;;  %v9162_v54 = vld [vmem:[%s12484_s3 + $0x678] sm:$0xff]   ;;  %v11619_v25 = vadd.f32 %v7901_v9, %v7900_v48  ;;  %v12696_v48 = vld [vmem:[#allocation48_spill] sm:$0xff] }
 0x2d5   : > { %4489 = vmatprep.mubr.bf16.mxu1 %v4284_v41  ;;  %8222 = vmatpush3.bf16.msra.mxu1 %v9149_v4  ;;  %v7687_v52 = vpop.f32.mrb[140].mxu1  ;;  %v9159_v4 = vld [vmem:[%s12484_s3 + $0x630] sm:$0xff]   ;;  %v11613_v19 = vadd.f32 %v12695_v7, %v2376_v34  ;;  %v11642_v21 = vld [vmem:[#allocation2 + $0x40] sm:$0xff] }
 0x2d6   : > { %8223 = vmatprep.subr.bf16.mxu1 %v9154_v56  ;;  %v7688_v12 = vpop.f32.mrb[141].mxu1  ;;  %v4285_v56 = vrot.slane %v11594_v2, 5  ;;  %v5572_v24 = vsel %vm5556_vm10, %v5567_v57, %v5571_v42  ;;  %v9161_v34 = vld [vmem:[%s12484_s3 + $0x4b0] sm:$0xff]   ;;  %v9163_v57 = vld [vmem:[%s12484_s3 + $0x638] sm:$0xff]  }
 0x2d7   : > { %8434 = vmatpush3.bf16.msra.mxu0 %v9157_v16  ;;  %v7689_v41 = vadd.f32 %v7688_v12, %v7687_v52  ;;  %v7690_v16 = vpop.f32.mrb[142].mxu1  ;;  %v9164_v52 = vld [vmem:[%s12484_s3 + $0x4f8] sm:$0xff]  }
 0x2d8   : > { %8435 = vmatprep.subr.bf16.mxu0 %v9158_v31  ;;  %v7691_v7 = vpop.f32.mrb[143].mxu1  ;;  %v5578_v31 = vsel %vm5556_vm10, %v5573_v50, %v5577_v62  ;;  %v4286_v50 = vsel %vm2432_vm3, %v4283_v15, %v4285_v56 }
 0x2d9   : > { %8224 = vmatpush3.bf16.msra.mxu1 %v9155_v39  ;;  %v2381_v12 = vadd.f32 %v7689_v41, %v12696_v48  ;;  %v7692_v9 = vadd.f32 %v7691_v7, %v7690_v16  ;;  %v12697_v39 = vld [vmem:[#allocation51_spill] sm:$0xff]  ;;  %v5575_v41 = vrot.slane %v11642_v21, 4  ;;  %v12698_v16 = vld [vmem:[#allocation10_spill] sm:$0xff] }
 0x2da   : > { %5766 = vmatmul.mubr.bf16.gmra.mrb[32].mxu0 %v5572_v24  ;;  %8225 = vmatprep.subr.bf16.mxu1 %v9160_v30  ;;  %v7903_v24 = vpop.f32.mrb[184].mxu0 }
 0x2db   : > { %5773 = vmatprep.mubr.bf16.mxu0 %v5578_v31  ;;  %8436 = vmatpush3.bf16.msra.mxu0 %v9159_v4  ;;  %v2384_v30 = vadd.f32 %v7692_v9, %v12697_v39  ;;  %v9165_v4 = vld [vmem:[%s12484_s3 + $0x4b8] sm:$0xff]   ;;  %v7904_v7 = vpop.f32.mrb[185].mxu0  ;;  %v12699_v31 = vld [vmem:[#allocation44_spill] sm:$0xff]  ;;  %v5576_v61 = vsel %vm5556_vm10, %v5571_v42, %v5575_v41 }
 0x2dc   : > { %4490 = vmatmul.mubr.bf16.gmra.mrb[248].mxu1 %v11314_v14  ;;  %8437 = vmatprep.subr.bf16.mxu0 %v9162_v54  ;;  %v11649_v14 = vadd.f32 %v12698_v16, %v2381_v12  ;;  %v5581_v15 = vrot.slane %v12699_v31, 4  ;;  %v9166_v54 = vld [vmem:[%s12484_s3 + $0x5c0] sm:$0xff]   ;;  %v11655_v48 = vadd.f32 %v7904_v7, %v7903_v24  ;;  %v11661_v12 = vrot.slane %v11642_v21, 5 }
 0x2dd   : > { %4497 = vmatprep.mubr.bf16.mxu1 %v4286_v50  ;;  %8226 = vmatpush3.bf16.msra.mxu1 %v9161_v34  ;;  %v7693_v9 = vpop.f32.mrb[144].mxu1  ;;  %v7906_v50 = vpop.f32.mrb[186].mxu0  ;;  %v12700_v34 = vld [vmem:[#allocation5_spill] sm:$0xff] }
 0x2de   : > { %8227 = vmatprep.subr.bf16.mxu1 %v9164_v52  ;;  %v11658_v39 = vadd.f32 %v12700_v34, %v2384_v30  ;;  %v7694_v13 = vpop.f32.mrb[145].mxu1  ;;  %v7907_v51 = vpop.f32.mrb[187].mxu0  ;;  %12701 = vst [vmem:[#allocation11_spill] sm:$0xff] %v11661_v12  ;;  %v5582_v7 = vsel %vm5556_vm10, %v5577_v62, %v5581_v15 }
 0x2df   : > { %8438 = vmatpush3.bf16.msra.mxu0 %v9163_v57  ;;  %v7695_v16 = vadd.f32 %v7694_v13, %v7693_v9  ;;  %v11663_v31 = vadd.f32 %v7907_v51, %v7906_v50  ;;  %v7696_v52 = vpop.f32.mrb[146].mxu1  ;;  %v12703_v57 = vld [vmem:[#allocation56_spill] sm:$0xff]  ;;  %v4288_v51 = vsel %vm2432_vm3, %v4285_v56, %v11661_v12  ;;  %v12704_v13 = vld [vmem:[#allocation57_spill] sm:$0xff] }
 0x2e0   : > { %v7697_v24 = vpop.f32.mrb[147].mxu1 }
 0x2e1   : > { %12702 = vst [vmem:[#allocation16_spill] sm:$0xff] %v11663_v31  ;;  %8228 = vmatpush3.bf16.msra.mxu1 %v9165_v4  ;;  %v2389_v30 = vadd.f32 %v7695_v16, %v12703_v57  ;;  %v7698_v34 = vadd.f32 %v7697_v24, %v7696_v52  ;;  %v7909_v4 = vpop.f32.mrb[188].mxu0  ;;  %v12706_v16 = vld [vmem:[#allocation45_spill] sm:$0xff] }
 0x2e2   : > { %5774 = vmatmul.mubr.bf16.gmra.mrb[36].mxu0 %v5576_v61  ;;  %8353 = vmatprep.subr.bf16.mxu1 %v9166_v54  ;;  %v9206_v61 = vld [vmem:[#allocation2 + $0x48] sm:$0xff]  ;;  %v12705_v54 = vld [vmem:[#allocation6_spill] sm:$0xff]  ;;  %v7910_v50 = vpop.f32.mrb[189].mxu0  ;;  %v5585_v52 = vrot.slane %v12706_v16, 4 }
 0x2e3   : > { %5781 = vmatprep.mubr.bf16.mxu0 %v5582_v7  ;;  %v2392_v42 = vadd.f32 %v7698_v34, %v12704_v13  ;;  %v5579_v62 = vrot.slane %v9206_v61, 4  ;;  %v11676_v9 = vadd.f32 %v12705_v54, %v2389_v30  ;;  %v11679_v24 = vadd.f32 %v7910_v50, %v7909_v4  ;;  %v7912_v57 = vpop.f32.mrb[190].mxu0  ;;  %v9207_v13 = vld [vmem:[#allocation2 + $0x48] sm:$0xff]  ;;  %v5042_v50 = vld [vmem:[#allocation2 + $0x10] sm:$0x80] }
 0x2e4   : > { %4498 = vmatmul.mubr.bf16.gmra.mrb[252].mxu1 %v11357_v5  ;;  %v5508_v5 = vrot.slane %v5506_v53, 1  ;;  %v7913_v34 = vpop.f32.mrb[191].mxu0  ;;  %v5586_v4 = vsel %vm5556_vm10, %v5581_v15, %v5585_v52 }
 0x2e5   : > { %4505 = vmatprep.mubr.bf16.mxu1 %v4288_v51  ;;  %12707 = vst [vmem:[#allocation12_spill] sm:$0xff] %v11679_v24  ;;  %v7699_v7 = vpop.f32.mrb[148].mxu1  ;;  %v11682_v40 = vadd.f32 %v12708_v45, %v2392_v42  ;;  %v4289_v51 = vrot.slane %v9207_v13, 5  ;;  %v11684_v61 = vadd.f32 %v7913_v34, %v7912_v57  ;;  %v5580_v54 = vsel %vm5556_vm10, %v5575_v41, %v5579_v62  ;;  %v12710_v45 = vld [vmem:[#allocation46_spill] sm:$0xff]  ;;  %v9208_v13 = vld [vmem:[#allocation2 + $0x38] sm:$0xff] }
 0x2e6   : > { %v7700_v56 = vpop.f32.mrb[149].mxu1  ;;  %v11691_v42 = vsel %vm1789_vm1, %v12710_v45, %v5508_v5  ;;  %v5046_v34 = vshll.u32 %v5042_v50, 16 }
 0x2e7   : > { %v7701_v37 = vadd.f32 %v7700_v56, %v7699_v7  ;;  %12709 = vst [vmem:[#allocation18_spill] sm:$0xff] %v11684_v61  ;;  %v7702_v30 = vpop.f32.mrb[150].mxu1  ;;  %v4290_v7 = vsel %vm2432_vm3, %v11661_v12, %v4289_v51  ;;  %v9209_v56 = vld [vmem:[#allocation2 + $0x50] sm:$0xff] }
 0x2e8   : > { %v7703_v31 = vpop.f32.mrb[151].mxu1  ;;  %v7915_v57 = vpop.f32.mrb[192].mxu0  ;;  %v5583_v15 = vrot.slane %v9209_v56, 4  ;;  %v5510_v56 = vshrl.u32 %v11668_v3, 16 }
 0x2e9   : > { %v2397_v53 = vadd.f32 %v7701_v37, %v11368_v8  ;;  %v7704_v16 = vadd.f32 %v7703_v31, %v7702_v30  ;;  %v7916_v8 = vpop.f32.mrb[193].mxu0  ;;  %v5589_v31 = vrot.slane %v11691_v42, 4 }
 0x2ea   : > { %5782 = vmatmul.mubr.bf16.gmra.mrb[40].mxu0 %v5580_v54  ;;  %v12711_v54 = vld [vmem:[#allocation7_spill] sm:$0xff]  ;;  %v11700_v30 = vadd.f32 %v7916_v8, %v7915_v57  ;;  %v7918_v45 = vpop.f32.mrb[194].mxu0  ;;  %v5584_v42 = vsel %vm5556_vm10, %v5579_v62, %v5583_v15  ;;  %v5048_v57 = vrot.slane %v5046_v34, 1 }
 0x2eb   : > { %5789 = vmatprep.mubr.bf16.mxu0 %v5586_v4  ;;  %v2400_v41 = vadd.f32 %v7704_v16, %v11378_v44  ;;  %v11697_v37 = vadd.f32 %v12711_v54, %v2397_v53  ;;  %v7919_v44 = vpop.f32.mrb[195].mxu0  ;;  %v11705_v16 = vld [vmem:[#allocation2 + $0x50] sm:$0xff]  ;;  %v9212_v62 = vld [vmem:[#allocation2 + $0x58] sm:$0xff] }
 0x2ec   : > { %4506 = vmatmul.mubr.bf16.gmra.mrb[0].mxu1 %v9208_v13  ;;  %12713 = vst [vmem:[#allocation8_spill] sm:$0xff] %v11700_v30  ;;  %v11709_v54 = vadd.f32 %v7919_v44, %v7918_v45  ;;  %v5587_v34 = vrot.slane %v9212_v62, 4  ;;  %v4265_v45 = vld [vmem:[#allocation2 + $0x58] sm:$0x1f] }
 0x2ed   : > { %4513 = vmatprep.mubr.bf16.mxu1 %v4290_v7  ;;  %12712 = vst [vmem:[#allocation14_spill] sm:$0xff] %v11697_v37  ;;  %v7705_v4 = vpop.f32.mrb[152].mxu1  ;;  %v11703_v13 = vadd.f32 %v11370_v32, %v2400_v41  ;;  %v4291_v7 = vrot.slane %v11705_v16, 5  ;;  %v5590_v32 = vsel %vm5556_vm10, %v5585_v52, %v5589_v31  ;;  %v5512_v41 = vor.u32 %v5510_v56, %v5508_v5  ;;  %v9211_v37 = vld [vmem:[#allocation2 + $0x40] sm:$0xff] }
 0x2ee   : > { %v7706_v12 = vpop.f32.mrb[153].mxu1 }
 0x2ef   : > { %12714 = vst [vmem:[#allocation48_spill] sm:$0xff] %v11703_v13  ;;  %v7707_v53 = vadd.f32 %v7706_v12, %v7705_v4  ;;  %v7708_v61 = vpop.f32.mrb[154].mxu1  ;;  %v5044_v13 = vshrl.u32 %v5042_v50, 16  ;;  %v4292_v3 = vsel %vm2432_vm3, %v4289_v51, %v4291_v7 }
 0x2f0   : > { %v7709_v8 = vpop.f32.mrb[155].mxu1  ;;  %v7921_v4 = vpop.f32.mrb[196].mxu0 }
 0x2f1   : > { %v2405_v30 = vadd.f32 %v7707_v53, %v11393_v43  ;;  %v7710_v24 = vadd.f32 %v7709_v8, %v7708_v61  ;;  %v5049_v44 = vor.u32 %v5048_v57, %v5044_v13  ;;  %v7922_v5 = vpop.f32.mrb[197].mxu0  ;;  %v5593_v43 = vrot.slane %v5512_v41, 4  ;;  %v5432_v41 = vld [vmem:[#allocation2 + $0x60] sm:$0xf] }
 0x2f2   : > { %5790 = vmatmul.mubr.bf16.gmra.mrb[44].mxu0 %v5584_v42  ;;  %v11719_v61 = vadd.f32 %v7922_v5, %v7921_v4  ;;  %v7924_v56 = vpop.f32.mrb[198].mxu0  ;;  %v4293_v42 = vrot.slane %v4265_v45, 5 }
 0x2f3   : > { %5797 = vmatprep.mubr.bf16.mxu0 %v5590_v32  ;;  %v2408_v12 = vadd.f32 %v7710_v24, %v11400_v28  ;;  %v11717_v52 = vadd.f32 %v11387_v1, %v2405_v30  ;;  %v7925_v53 = vpop.f32.mrb[199].mxu0  ;;  %v5588_v30 = vsel %vm5556_vm10, %v5583_v15, %v5587_v34  ;;  %v5594_v32 = vsel %vm5556_vm10, %v5589_v31, %v5593_v43 }
 0x2f4   : > { %4514 = vmatmul.mubr.bf16.gmra.mrb[4].mxu1 %v9211_v37  ;;  %v12715_v37 = vld [vmem:[#allocation58_spill] sm:$0xff]  ;;  %v11726_v13 = vadd.f32 %v7925_v53, %v7924_v56  ;;  %v4294_v45 = vsel %vm2432_vm3, %v4291_v7, %v4293_v42  ;;  %v5591_v43 = vrot.slane %v5432_v41, 4  ;;  %v6197_v53 = vrot.slane %v11448_v22, 6 }
 0x2f5   : > { %4521 = vmatprep.mubr.bf16.mxu1 %v4292_v3  ;;  %v7711_v50 = vpop.f32.mrb[156].mxu1  ;;  %v5050_v51 = vsel %vm1789_vm1, %v5049_v44, %v12715_v37  ;;  %v11724_v28 = vadd.f32 %v11395_v20, %v2408_v12  ;;  %v9213_v12 = vld [vmem:[#allocation2 + $0x48] sm:$0xff]  ;;  %v12716_v44 = vld [vmem:[#allocation60_spill] sm:$0xff] }
 0x2f6   : > { %v7712_v24 = vpop.f32.mrb[157].mxu1  ;;  %v5101_v3 = vshrl.u32 %v5050_v51, 16  ;;  %v5104_v4 = vshll.u32 %v5050_v51, 16  ;;  %v12717_v5 = vshrl.u32 %v12716_v44, 16  ;;  %v12718_v15 = vshll.u32 %v12716_v44, 16 }
 0x2f7   : > { %v7713_v8 = vadd.f32 %v7712_v24, %v7711_v50  ;;  %v7714_v1 = vpop.f32.mrb[158].mxu1  ;;  %v6160_v51 = vld [vmem:[#allocation2 + $0x18] sm:$0xc0] }
 0x2f8   : > { %v7715_v57 = vpop.f32.mrb[159].mxu1  ;;  %v5108_v50 = vrot.slane %v12717_v5, 6  ;;  %v5109_v56 = vrot.slane %v12718_v15, 7  ;;  %v7927_v31 = vpop.f32.mrb[200].mxu0  ;;  %v5106_v7 = vrot.slane %v5104_v4, 7 }
 0x2f9   : > { %v2413_v62 = vadd.f32 %v7713_v8, %v11420_v11  ;;  %v7716_v20 = vadd.f32 %v7715_v57, %v7714_v1  ;;  %v7928_v24 = vpop.f32.mrb[201].mxu0  ;;  %v5103_v8 = vrot.slane %v5101_v3, 6 }
 0x2fa   : > { %5798 = vmatmul.mubr.bf16.gmra.mrb[48].mxu0 %v5588_v30  ;;  %v11741_v42 = vadd.f32 %v7928_v24, %v7927_v31  ;;  %v7930_v30 = vpop.f32.mrb[202].mxu0  ;;  %v5110_v41 = vor.u32 %v5109_v56, %v5108_v50 }
 0x2fb   : > { %5805 = vmatprep.mubr.bf16.mxu0 %v5594_v32  ;;  %v2416_v37 = vadd.f32 %v7716_v20, %v11428_v23  ;;  %v11738_v11 = vadd.f32 %v11416_v10, %v2413_v62  ;;  %v7931_v32 = vpop.f32.mrb[203].mxu0  ;;  %v6196_v20 = vrot.slane %v6160_v51, 6  ;;  %v5592_v62 = vsel %vm5556_vm10, %v5587_v34, %v5591_v43 }
 0x2fc   : > { %4522 = vmatmul.mubr.bf16.gmra.mrb[8].mxu1 %v9213_v12  ;;  %v5107_v4 = vor.u32 %v5106_v7, %v5103_v8 }
 0x2fd   : > { %4529 = vmatprep.mubr.bf16.mxu1 %v4294_v45  ;;  %v7717_v1 = vpop.f32.mrb[160].mxu1  ;;  %v11744_v57 = vadd.f32 %v11422_v60, %v2416_v37  ;;  %v11746_v45 = vadd.f32 %v7931_v32, %v7930_v30  ;;  %v6198_v3 = vsel %vm3655_vm8, %v6196_v20, %v6197_v53  ;;  %v6199_v37 = vrot.slane %v11485_v49, 6  ;;  %v9168_v30 = vld [vmem:[%s12484_s3 + $0x5c8] sm:$0xff]   ;;  %v12719_v32 = vld [vmem:[#allocation24_spill] sm:$0xff]  ;;  %v12720_v20 = vld [vmem:[#allocation26_spill] sm:$0xff] }
 0x2fe   : > { %v7718_v23 = vpop.f32.mrb[161].mxu1  ;;  %v5111_v60 = vsel %vm5092_vm7, %v5107_v4, %v5110_v41 }
 0x2ff   : > { %v7719_v12 = vadd.f32 %v7718_v23, %v7717_v1  ;;  %v7720_v10 = vpop.f32.mrb[162].mxu1  ;;  %v6200_v49 = vsel %vm3655_vm8, %v6197_v53, %v6199_v37  ;;  %v9169_v53 = vld [vmem:[%s12484_s3 + $0x588] sm:$0xff]  }
 0x300   : > { %v7721_v22 = vpop.f32.mrb[163].mxu1  ;;  %v8019_v15 = vpop.f32.mrb[204].mxu0 }
 0x301   : > { %v2421_v44 = vadd.f32 %v7719_v12, %v11437_v18  ;;  %v7722_v5 = vadd.f32 %v7721_v22, %v7720_v10  ;;  %v8020_v34 = vpop.f32.mrb[205].mxu0  ;;  %v5119_v12 = vsel %vm5092_vm7, %v5110_v41, %v12720_v20  ;;  %v9170_v41 = vld [vmem:[%s12484_s3 + $0x5d0] sm:$0xff]  }
 0x302   : > { %5806 = vmatmul.mubr.bf16.gmra.mrb[52].mxu0 %v5592_v62  ;;  %v11758_v31 = vadd.f32 %v8020_v34, %v8019_v15  ;;  %v8022_v18 = vpop.f32.mrb[206].mxu0 }
 0x303   : > { %6352 = vmatprep.mubr.bf16.mxu0 %v6198_v3  ;;  %v2424_v50 = vadd.f32 %v7722_v5, %v11444_v38  ;;  %v11755_v56 = vadd.f32 %v11435_v6, %v2421_v44  ;;  %v8023_v24 = vpop.f32.mrb[207].mxu0  ;;  %v9167_v6 = vld [vmem:[%s12484_s3 + $0x580] sm:$0xff]  }
 0x304   : > { %4530 = vmatmul.mubr.bf16.gmra.mrb[12].mxu1 %v11705_v16  ;;  %v11763_v7 = vadd.f32 %v8023_v24, %v8022_v18 }
 0x305   : > { %5332 = vmatprep.mubr.bf16.mxu1 %v5111_v60  ;;  %v7809_v43 = vpop.f32.mrb[164].mxu1  ;;  %v11761_v51 = vadd.f32 %v11439_v0, %v2424_v50 }
 0x306   : > { %v7810_v16 = vpop.f32.mrb[165].mxu1 }
 0x307   : > { %v7811_v8 = vadd.f32 %v7810_v16, %v7809_v43  ;;  %v7812_v38 = vpop.f32.mrb[166].mxu1 }
 0x308   : > { %v7813_v1 = vpop.f32.mrb[167].mxu1  ;;  %v8025_v62 = vpop.f32.mrb[208].mxu0 }
 0x309   : > { %v3132_v0 = vadd.f32 %v7811_v8, %v11492_v46  ;;  %v7814_v23 = vadd.f32 %v7813_v1, %v7812_v38  ;;  %v8026_v46 = vpop.f32.mrb[209].mxu0  ;;  %v12721_v8 = vld [vmem:[#allocation27_spill] sm:$0xff]  ;;  %v12722_v1 = vld [vmem:[#allocation28_spill] sm:$0xff] }
 0x30a   : > { %6353 = vmatmul.mubr.bf16.vlgmr.msra.gmra.mrb[56].mxu0 %v6198_v3  ;;  %v6201_v3 = vrot.slane %v11537_v47, 6  ;;  %v11787_v4 = vadd.f32 %v8026_v46, %v8025_v62  ;;  %v8028_v44 = vpop.f32.mrb[210].mxu0  ;;  %v9171_v47 = vld [vmem:[%s12484_s3 + $0x590] sm:$0xff]  }
 0x30b   : > { %6360 = vmatprep.mubr.bf16.mxu0 %v6200_v49  ;;  %v3133_v10 = vadd.f32 %v7814_v23, %v11504_v27  ;;  %v11781_v22 = vadd.f32 %v11453_v35, %v3132_v0  ;;  %v8029_v50 = vpop.f32.mrb[211].mxu0  ;;  %v9174_v0 = vld [vmem:[%s12484_s3 + $0x5e0] sm:$0xff]  }
 0x30c   : > { %5333 = vmatmul.mubr.bf16.vlgmr.msra.gmra.mrb[16].mxu1 %v12719_v32  ;;  %v11792_v35 = vadd.f32 %v8029_v50, %v8028_v44  ;;  %v6202_v18 = vsel %vm3655_vm8, %v6199_v37, %v6201_v3  ;;  %v9173_v37 = vld [vmem:[%s12484_s3 + $0x598] sm:$0xff]  }
 0x30d   : > { %5340 = vmatprep.mubr.bf16.mxu1 %v5119_v12  ;;  %8354 = vmatpush3.bf16.msra.mxu1 %v9167_v6  ;;  %v7815_v27 = vpop.f32.mrb[168].mxu1  ;;  %v11790_v5 = vadd.f32 %v11464_v36, %v3133_v10  ;;  %v9172_v36 = vld [vmem:[%s12484_s3 + $0x5d8] sm:$0xff]  }
 0x30e   : > { %8355 = vmatprep.subr.bf16.mxu1 %v9168_v30  ;;  %v7816_v60 = vpop.f32.mrb[169].mxu1 }
 0x30f   : > { %v7817_v15 = vadd.f32 %v7816_v60, %v7815_v27  ;;  %v7818_v34 = vpop.f32.mrb[170].mxu1  ;;  %v12723_v60 = vld [vmem:[#allocation30_spill] sm:$0xff] }
 0x310   : > { %v7819_v43 = vpop.f32.mrb[171].mxu1 }
 0x311   : > { %8356 = vmatpush3.bf16.msra.mxu1 %v9169_v53  ;;  %v3134_v16 = vadd.f32 %v7817_v15, %v11544_v17  ;;  %v7820_v24 = vadd.f32 %v7819_v43, %v7818_v34  ;;  %v6203_v17 = vrot.slane %v11594_v2, 6  ;;  %v9175_v2 = vld [vmem:[%s12484_s3 + $0x5a0] sm:$0xff]   ;;  %v12724_v34 = vld [vmem:[#allocation31_spill] sm:$0xff] }
 0x312   : > { %6361 = vmatmul.mubr.bf16.gmra.mrb[60].mxu0 %v6200_v49  ;;  %8357 = vmatprep.subr.bf16.mxu1 %v9170_v41 }
 0x313   : > { %6368 = vmatprep.mubr.bf16.mxu0 %v6202_v18  ;;  %v3135_v38 = vadd.f32 %v7820_v24, %v11556_v55  ;;  %v11809_v49 = vadd.f32 %v11498_v29, %v3134_v16  ;;  %v6204_v41 = vsel %vm3655_vm8, %v6201_v3, %v6203_v17  ;;  %v9177_v3 = vld [vmem:[%s12484_s3 + $0x5a8] sm:$0xff]  }
 0x314   : > { %5341 = vmatmul.mubr.bf16.gmra.mrb[20].mxu1 %v12721_v8 }
 0x315   : > { %v8031_v6 = vpop.f32.mrb[212].mxu0  ;;  %5348 = vmatprep.mubr.bf16.mxu1 %v12722_v1  ;;  %8358 = vmatpush3.bf16.msra.mxu1 %v9171_v47  ;;  %v11818_v20 = vadd.f32 %v11510_v26, %v3135_v38  ;;  %v9176_v26 = vld [vmem:[%s12484_s3 + $0x5e8] sm:$0xff]  }
 0x316   : > { %v8032_v30 = vpop.f32.mrb[213].mxu0  ;;  %8359 = vmatprep.subr.bf16.mxu1 %v9172_v36  ;;  %v7821_v23 = vpop.f32.mrb[172].mxu1 }
 0x317   : > { %v11815_v55 = vadd.f32 %v8032_v30, %v8031_v6  ;;  %v8034_v32 = vpop.f32.mrb[214].mxu0  ;;  %v7822_v12 = vpop.f32.mrb[173].mxu1 }
 0x318   : > { %v8035_v10 = vpop.f32.mrb[215].mxu0  ;;  %v7823_v62 = vadd.f32 %v7822_v12, %v7821_v23  ;;  %v7824_v53 = vpop.f32.mrb[174].mxu1  ;;  %v12725_v12 = vld [vmem:[#allocation33_spill] sm:$0xff] }
 0x319   : > { %v11820_v29 = vadd.f32 %v8035_v10, %v8034_v32  ;;  %8360 = vmatpush3.bf16.msra.mxu1 %v9173_v37  ;;  %v7825_v46 = vpop.f32.mrb[175].mxu1 }
 0x31a   : > { %6369 = vmatmul.mubr.bf16.gmra.mrb[64].mxu0 %v6202_v18  ;;  %8361 = vmatprep.subr.bf16.mxu1 %v9174_v0  ;;  %v3136_v27 = vadd.f32 %v7823_v62, %v11601_v58  ;;  %v7826_v44 = vadd.f32 %v7825_v46, %v7824_v53  ;;  %v6205_v58 = vrot.slane %v11642_v21, 6  ;;  %v9178_v18 = vld [vmem:[%s12484_s3 + $0x5f0] sm:$0xff]   ;;  %v11854_v0 = vld [vmem:[#allocation2 + $0x58] sm:$0x7f] }
 0x31b   : > { %6376 = vmatprep.mubr.bf16.mxu0 %v6204_v41  ;;  %v9179_v21 = vld [vmem:[%s12484_s3 + $0x5b0] sm:$0xff]  }
 0x31c   : > { %5349 = vmatmul.mubr.bf16.gmra.mrb[24].mxu1 %v12723_v60  ;;  %v3137_v50 = vadd.f32 %v7826_v44, %v11613_v19  ;;  %v11837_v47 = vadd.f32 %v11550_v63, %v3136_v27  ;;  %v6206_v30 = vsel %vm3655_vm8, %v6203_v17, %v6205_v58  ;;  %v12726_v53 = vld [vmem:[#allocation34_spill] sm:$0xff]  ;;  %v12555_v17 = vshll.u32 %v11854_v0, 16 }
 0x31d   : > { %v8037_v15 = vpop.f32.mrb[216].mxu0  ;;  %5356 = vmatprep.mubr.bf16.mxu1 %v12724_v34  ;;  %8362 = vmatpush3.bf16.msra.mxu1 %v9175_v2  ;;  %v9181_v2 = vld [vmem:[%s12484_s3 + $0x5b8] sm:$0xff]  }
 0x31e   : > { %v8038_v43 = vpop.f32.mrb[217].mxu0  ;;  %8363 = vmatprep.subr.bf16.mxu1 %v9176_v26  ;;  %v7827_v36 = vpop.f32.mrb[176].mxu1  ;;  %v11846_v24 = vadd.f32 %v11562_v59, %v3137_v50  ;;  %v9180_v59 = vld [vmem:[%s12484_s3 + $0x5f8] sm:$0xff]  }
 0x31f   : > { %v11843_v19 = vadd.f32 %v8038_v43, %v8037_v15  ;;  %v8040_v16 = vpop.f32.mrb[218].mxu0  ;;  %v7828_v8 = vpop.f32.mrb[177].mxu1  ;;  %v12727_v43 = vld [vmem:[#allocation29_spill] sm:$0xff] }
 0x320   : > { %v8041_v38 = vpop.f32.mrb[219].mxu0  ;;  %v7829_v6 = vadd.f32 %v7828_v8, %v7827_v36  ;;  %v7830_v1 = vpop.f32.mrb[178].mxu1  ;;  %v12729_v8 = vld [vmem:[#allocation35_spill] sm:$0xff] }
 0x321   : > { %v11848_v63 = vadd.f32 %v8041_v38, %v8040_v16  ;;  %8364 = vmatpush3.bf16.msra.mxu1 %v9177_v3  ;;  %v7831_v37 = vpop.f32.mrb[179].mxu1  ;;  %v5054_v3 = vrot.slane %v12555_v17, 1 }
 0x322   : > { %6377 = vmatmul.mubr.bf16.gmra.mrb[68].mxu0 %v6204_v41  ;;  %8365 = vmatprep.subr.bf16.mxu1 %v9178_v18  ;;  %v3138_v23 = vadd.f32 %v7829_v6, %v11649_v14  ;;  %v7832_v32 = vadd.f32 %v7831_v37, %v7830_v1  ;;  %v12728_v18 = vrot.slane %v12727_v43, 6  ;;  %v12730_v1 = vld [vmem:[#allocation38_spill] sm:$0xff] }
 0x323   : > { %6384 = vmatprep.mubr.bf16.mxu0 %v6206_v30 }
 0x324   : > { %5357 = vmatmul.mubr.bf16.gmra.mrb[28].mxu1 %v12725_v12  ;;  %v3139_v10 = vadd.f32 %v7832_v32, %v11658_v39  ;;  %v11868_v46 = vadd.f32 %v11607_v33, %v3138_v23  ;;  %v6208_v36 = vsel %vm3655_vm8, %v6205_v58, %v12728_v18  ;;  %v12732_v32 = vld [vmem:[#allocation16_spill] sm:$0xff] }
 0x325   : > { %v8043_v62 = vpop.f32.mrb[220].mxu0  ;;  %5364 = vmatprep.mubr.bf16.mxu1 %v12726_v53  ;;  %8366 = vmatpush3.bf16.msra.mxu1 %v9179_v21  ;;  %v12731_v21 = vld [vmem:[#allocation59_spill] sm:$0xff] }
 0x326   : > { %v8044_v14 = vpop.f32.mrb[221].mxu0  ;;  %8367 = vmatprep.subr.bf16.mxu1 %v9180_v59  ;;  %v7833_v26 = vpop.f32.mrb[180].mxu1  ;;  %v11873_v39 = vadd.f32 %v11619_v25, %v3139_v10  ;;  %v5055_v37 = vsel %vm1789_vm1, %v12731_v21, %v5054_v3  ;;  %v12738_v21 = vld [vmem:[#allocation48_spill] sm:$0xff] }
 0x327   : > { %v11870_v41 = vadd.f32 %v8044_v14, %v8043_v62  ;;  %v8046_v27 = vpop.f32.mrb[222].mxu0  ;;  %v7834_v44 = vpop.f32.mrb[181].mxu1  ;;  %v5168_v53 = vshll.u32 %v5055_v37, 16 }
 0x328   : > { %v8047_v60 = vpop.f32.mrb[223].mxu0  ;;  %v7835_v50 = vadd.f32 %v7834_v44, %v7833_v26  ;;  %v7836_v34 = vpop.f32.mrb[182].mxu1  ;;  %v12733_v44 = vld [vmem:[#allocation14_spill] sm:$0xff] }
 0x329   : > { %v11875_v15 = vadd.f32 %v8047_v60, %v8046_v27  ;;  %8368 = vmatpush3.bf16.msra.mxu1 %v9181_v2  ;;  %v7837_v33 = vpop.f32.mrb[183].mxu1 }
 0x32a   : > { %6385 = vmatmul.mubr.bf16.gmra.mrb[72].mxu0 %v6206_v30  ;;  %v3140_v16 = vadd.f32 %v7835_v50, %v11676_v9  ;;  %v7838_v25 = vadd.f32 %v7837_v33, %v7836_v34  ;;  %v12734_v34 = vld [vmem:[#allocation36_spill] sm:$0xff]  ;;  %v12735_v33 = vld [vmem:[#allocation23_spill] sm:$0xff] }
 0x32b   : > { %6392 = vmatprep.mubr.bf16.mxu0 %v6208_v36  ;;  %v5152_v18 = vrot.slane %v12735_v33, 6 }
 0x32c   : > { %5365 = vmatmul.mubr.bf16.gmra.mrb[32].mxu1 %v12729_v8  ;;  %v3141_v38 = vadd.f32 %v7838_v25, %v11682_v40  ;;  %v11889_v30 = vadd.f32 %v11655_v48, %v3140_v16  ;;  %v5165_v40 = vshrl.u32 %v5055_v37, 16  ;;  %v12554_v48 = vshrl.u32 %v11854_v0, 16  ;;  %v12736_v16 = vld [vmem:[#allocation20_spill] sm:$0xff]  ;;  %v12737_v8 = vld [vmem:[#allocation41_spill] sm:$0xff] }
 0x32d   : > { %v8049_v6 = vpop.f32.mrb[224].mxu0  ;;  %5372 = vmatprep.mubr.bf16.mxu1 %v12730_v1  ;;  %v5153_v25 = vrot.slane %v12736_v16, 7 }
 0x32e   : > { %v8050_v59 = vpop.f32.mrb[225].mxu0  ;;  %v7839_v58 = vpop.f32.mrb[184].mxu1  ;;  %v11894_v12 = vadd.f32 %v12732_v32, %v3141_v38  ;;  %v5167_v38 = vrot.slane %v5165_v40, 6  ;;  %v5058_v1 = vor.u32 %v12554_v48, %v5054_v3 }
 0x32f   : > { %v11891_v23 = vadd.f32 %v8050_v59, %v8049_v6  ;;  %v8052_v9 = vpop.f32.mrb[226].mxu0  ;;  %v7840_v10 = vpop.f32.mrb[185].mxu1  ;;  %v5170_v6 = vrot.slane %v5168_v53, 7  ;;  %v12739_v59 = vld [vmem:[#allocation42_spill] sm:$0xff] }
 0x330   : > { %v8053_v62 = vpop.f32.mrb[227].mxu0  ;;  %v7841_v2 = vadd.f32 %v7840_v10, %v7839_v58  ;;  %v7842_v26 = vpop.f32.mrb[186].mxu1  ;;  %v12740_v58 = vld [vmem:[#allocation12_spill] sm:$0xff]  ;;  %v5178_v33 = vshrl.u32 %v5058_v1, 16 }
 0x331   : > { %v11896_v14 = vadd.f32 %v8053_v62, %v8052_v9  ;;  %v7843_v27 = vpop.f32.mrb[187].mxu1  ;;  %v5171_v3 = vor.u32 %v5170_v6, %v5167_v38  ;;  %v12746_v6 = vld [vmem:[#allocation19_spill] sm:$0xff] }
 0x332   : > { %6393 = vmatmul.mubr.bf16.gmra.mrb[76].mxu0 %v6208_v36  ;;  %v3142_v60 = vadd.f32 %v7841_v2, %v12733_v44  ;;  %v7844_v50 = vadd.f32 %v7843_v27, %v7842_v26  ;;  %v5154_v26 = vor.u32 %v5153_v25, %v5152_v18  ;;  %v12741_v27 = vld [vmem:[#allocation18_spill] sm:$0xff] }
 0x333   : > { %6400 = vmatprep.mubr.bf16.mxu0 %v12734_v34 }
 0x334   : > { %5373 = vmatmul.mubr.bf16.gmra.mrb[36].mxu1 %v12737_v8  ;;  %v3143_v36 = vadd.f32 %v7844_v50, %v12738_v21  ;;  %v11909_v9 = vadd.f32 %v12740_v58, %v3142_v60  ;;  %v5181_v50 = vshll.u32 %v5058_v1, 16  ;;  %v11920_v58 = vld [vmem:[#allocation2 + $0x18] sm:$0xe0]  ;;  %v5161_v1 = vrot.slane %v12746_v6, 7 }
 0x335   : > { %v8055_v37 = vpop.f32.mrb[228].mxu0  ;;  %5380 = vmatprep.mubr.bf16.mxu1 %v12739_v59 }
 0x336   : > { %v8056_v32 = vpop.f32.mrb[229].mxu0  ;;  %v7845_v62 = vpop.f32.mrb[188].mxu1  ;;  %v11914_v40 = vadd.f32 %v12741_v27, %v3143_v36  ;;  %v12744_v36 = vld [vmem:[#allocation40_spill] sm:$0xff]  ;;  %v5180_v27 = vrot.slane %v5178_v33, 6 }
 0x337   : > { %v11911_v10 = vadd.f32 %v8056_v32, %v8055_v37  ;;  %v8058_v2 = vpop.f32.mrb[230].mxu0  ;;  %v7846_v53 = vpop.f32.mrb[189].mxu1  ;;  %v12743_v37 = vld [vmem:[#allocation4_spill] sm:$0xff]  ;;  %v12745_v32 = vld [vmem:[#allocation37_spill] sm:$0xff] }
 0x338   : > { %v8059_v44 = vpop.f32.mrb[231].mxu0  ;;  %v7847_v16 = vadd.f32 %v7846_v53, %v7845_v62  ;;  %v7848_v21 = vpop.f32.mrb[190].mxu1  ;;  %v5160_v59 = vrot.slane %v12743_v37, 6  ;;  %v5155_v38 = vsel %vm5092_vm7, %v12745_v32, %v5154_v26  ;;  %v12747_v62 = vld [vmem:[#allocation39_spill] sm:$0xff]  ;;  %v9214_v37 = vld [vmem:[#allocation2 + $0x60] sm:$0x3f] }
 0x339   : > { %v11916_v8 = vadd.f32 %v8059_v44, %v8058_v2  ;;  %v7849_v60 = vpop.f32.mrb[191].mxu1  ;;  %v5172_v2 = vsel %vm5092_vm7, %v12747_v62, %v5171_v3  ;;  %v6213_v32 = vrot.slane %v9214_v37, 6  ;;  %v12749_v37 = vld [vmem:[#allocation32_spill] sm:$0xff] }
 0x33a   : > { %6401 = vmatmul.mubr.bf16.gmra.mrb[80].mxu0 %v12734_v34  ;;  %v3144_v18 = vadd.f32 %v7847_v16, %v11717_v52  ;;  %v7850_v25 = vadd.f32 %v7849_v60, %v7848_v21  ;;  %v5183_v34 = vrot.slane %v5181_v50, 7  ;;  %v5837_v52 = vshll.u32 %v11920_v58, 16  ;;  %v12748_v16 = vld [vmem:[#allocation8_spill] sm:$0xff] }
 0x33b   : > { %12742 = vst [vmem:[#allocation51_spill] sm:$0xff] %v11916_v8  ;;  %6408 = vmatprep.mubr.bf16.mxu0 %v12744_v36  ;;  %v5162_v17 = vor.u32 %v5161_v1, %v5160_v59  ;;  %v12751_v59 = vshll.u32 %v11854_v0, 16 }
 0x33c   : > { %5381 = vmatmul.mubr.bf16.gmra.mrb[40].mxu1 %v5155_v38  ;;  %v3145_v53 = vadd.f32 %v7850_v25, %v11724_v28  ;;  %v11932_v21 = vadd.f32 %v12748_v16, %v3144_v18  ;;  %v5184_v25 = vor.u32 %v5183_v34, %v5180_v27  ;;  %v5839_v18 = vrot.slane %v5837_v52, 1 }
 0x33d   : > { %v8061_v44 = vpop.f32.mrb[232].mxu0  ;;  %5388 = vmatprep.mubr.bf16.mxu1 %v5172_v2  ;;  %v5174_v1 = vrot.slane %v12751_v59, 7  ;;  %v5163_v34 = vsel %vm5092_vm7, %v5154_v26, %v5162_v17  ;;  %v12752_v52 = vshrl.u32 %v11854_v0, 16 }
 0x33e   : > { %v8062_v60 = vpop.f32.mrb[233].mxu0  ;;  %v7851_v38 = vpop.f32.mrb[192].mxu1  ;;  %v11937_v33 = vadd.f32 %v11709_v54, %v3145_v53  ;;  %v5835_v54 = vshrl.u32 %v11920_v58, 16 }
 0x33f   : > { %v11934_v48 = vadd.f32 %v8062_v60, %v8061_v44  ;;  %v8064_v6 = vpop.f32.mrb[234].mxu0  ;;  %v7852_v50 = vpop.f32.mrb[193].mxu1  ;;  %v12750_v44 = vrot.slane %v12749_v37, 6 }
 0x340   : > { %v8065_v28 = vpop.f32.mrb[235].mxu0  ;;  %v7853_v62 = vadd.f32 %v7852_v50, %v7851_v38  ;;  %v7854_v8 = vpop.f32.mrb[194].mxu1  ;;  %v5173_v38 = vrot.slane %v12752_v52, 6  ;;  %v5840_v50 = vor.u32 %v5839_v18, %v5835_v54 }
 0x341   : > { %v11939_v2 = vadd.f32 %v8065_v28, %v8064_v6  ;;  %v7855_v16 = vpop.f32.mrb[195].mxu1  ;;  %v6214_v60 = vsel %vm3655_vm8, %v12750_v44, %v6213_v32 }
 0x342   : > { %6409 = vmatmul.mubr.bf16.gmra.mrb[84].mxu0 %v12744_v36  ;;  %v3146_v53 = vadd.f32 %v7853_v62, %v11738_v11  ;;  %v7856_v27 = vadd.f32 %v7855_v16, %v7854_v8  ;;  %v5185_v36 = vsel %vm5092_vm7, %v5171_v3, %v5184_v25  ;;  %v5175_v26 = vor.u32 %v5174_v1, %v5173_v38  ;;  %v12753_v16 = vld [vmem:[#allocation13_spill] sm:$0xff] }
 0x343   : > { %6416 = vmatprep.mubr.bf16.mxu0 %v6214_v60  ;;  %v5841_v0 = vsel %vm1789_vm1, %v5840_v50, %v12753_v16  ;;  %v12754_v25 = vld [vmem:[#allocation17_spill] sm:$0xff]  ;;  %v5885_v16 = vrot.slane %v11920_v58, 5 }
 0x344   : > { %5389 = vmatmul.mubr.bf16.gmra.mrb[44].mxu1 %v5163_v34  ;;  %v3147_v6 = vadd.f32 %v7856_v27, %v11744_v57  ;;  %v11955_v28 = vadd.f32 %v11719_v61, %v3146_v53  ;;  %v5889_v59 = vrot.slane %v12754_v25, 5  ;;  %v5888_v27 = vrot.slane %v5841_v0, 5 }
 0x345   : > { %v8067_v32 = vpop.f32.mrb[236].mxu0  ;;  %5396 = vmatprep.mubr.bf16.mxu1 %v5185_v36  ;;  %v5176_v52 = vsel %vm5092_vm7, %v5162_v17, %v5175_v26 }
 0x346   : > { %v8068_v37 = vpop.f32.mrb[237].mxu0  ;;  %v7857_v8 = vpop.f32.mrb[196].mxu1  ;;  %v11962_v44 = vadd.f32 %v11726_v13, %v3147_v6  ;;  %v5890_v13 = vsel %vm2432_vm3, %v5888_v27, %v5889_v59 }
 0x347   : > { %v11957_v11 = vadd.f32 %v8068_v37, %v8067_v32  ;;  %v8070_v62 = vpop.f32.mrb[238].mxu0  ;;  %v7858_v3 = vpop.f32.mrb[197].mxu1 }
 0x348   : > { %v8071_v57 = vpop.f32.mrb[239].mxu0  ;;  %v7859_v18 = vadd.f32 %v7858_v3, %v7857_v8  ;;  %v7860_v61 = vpop.f32.mrb[198].mxu1 }
 0x349   : > { %v11965_v54 = vadd.f32 %v8071_v57, %v8070_v62  ;;  %v7861_v53 = vpop.f32.mrb[199].mxu1  ;;  %v12755_v62 = vld [vmem:[#allocation21_spill] sm:$0xff] }
 0x34a   : > { %6417 = vmatmul.mubr.bf16.gmra.mrb[88].mxu0 %v6214_v60  ;;  %v3148_v34 = vadd.f32 %v7859_v18, %v11755_v56  ;;  %v7862_v1 = vadd.f32 %v7861_v53, %v7860_v61  ;;  %v5893_v26 = vrot.slane %v12755_v62, 5  ;;  %v12756_v18 = vld [vmem:[#allocation15_spill] sm:$0xff] }
 0x34b   : > { %v5887_v61 = vsel %vm2432_vm3, %v5885_v16, %v12756_v18 }
 0x34c   : > { %5397 = vmatmul.mubr.bf16.gmra.mrb[48].mxu1 %v5176_v52  ;;  %v3149_v38 = vadd.f32 %v7862_v1, %v11761_v51  ;;  %v11972_v6 = vadd.f32 %v11741_v42, %v3148_v34 }
 0x34d   : > { %v8159_v36 = vpop.f32.mrb[240].mxu0  ;;  %6069 = vmatprep.mubr.bf16.mxu1 %v5890_v13 }
 0x34e   : > { %v8160_v32 = vpop.f32.mrb[241].mxu0  ;;  %v11977_v56 = vadd.f32 %v11746_v45, %v3149_v38  ;;  %v5894_v45 = vsel %vm2432_vm3, %v5889_v59, %v5893_v26  ;;  %v12757_v59 = vld [vmem:[#allocation22_spill] sm:$0xff] }
 0x34f   : > { %v11974_v50 = vadd.f32 %v8160_v32, %v8159_v36  ;;  %v7949_v60 = vpop.f32.mrb[200].mxu1  ;;  %v8162_v37 = vpop.f32.mrb[242].mxu0 }
 0x350   : > { %v7950_v8 = vpop.f32.mrb[201].mxu1  ;;  %v8163_v17 = vpop.f32.mrb[243].mxu0 }
 0x351   : > { %v7951_v51 = vadd.f32 %v7950_v8, %v7949_v60  ;;  %v11981_v0 = vadd.f32 %v8163_v17, %v8162_v37  ;;  %v7952_v3 = vpop.f32.mrb[202].mxu1  ;;  %v5897_v37 = vrot.slane %v12757_v59, 5 }
 0x352   : > { %v7953_v42 = vpop.f32.mrb[203].mxu1 }
 0x353   : > { %v3913_v57 = vadd.f32 %v7951_v51, %v11781_v22  ;;  %v7954_v25 = vadd.f32 %v7953_v42, %v7952_v3  ;;  %v9215_v22 = vld [vmem:[#allocation2 + $0x28] sm:$0xff]  ;;  %v5898_v3 = vsel %vm2432_vm3, %v5893_v26, %v5897_v37 }
 0x354   : > { %6070 = vmatmul.mubr.bf16.vlgmr.msra.gmra.mrb[52].mxu1 %v5887_v61  ;;  %v5891_v38 = vrot.slane %v9215_v22, 5  ;;  %v12758_v26 = vld [vmem:[#allocation25_spill] sm:$0xff] }
 0x355   : > { %v3914_v53 = vadd.f32 %v7954_v25, %v11790_v5  ;;  %v8165_v27 = vpop.f32.mrb[244].mxu0  ;;  %6077 = vmatprep.mubr.bf16.mxu1 %v5894_v45  ;;  %v11989_v58 = vadd.f32 %v11758_v31, %v3913_v57 }
 0x356   : > { %v8166_v34 = vpop.f32.mrb[245].mxu0  ;;  %v5892_v51 = vsel %vm2432_vm3, %v12756_v18, %v5891_v38 }
 0x357   : > { %v11991_v1 = vadd.f32 %v8166_v34, %v8165_v27  ;;  %v7955_v52 = vpop.f32.mrb[204].mxu1  ;;  %v8168_v13 = vpop.f32.mrb[246].mxu0  ;;  %v11994_v36 = vadd.f32 %v11763_v7, %v3914_v53 }
 0x358   : > { %v7956_v32 = vpop.f32.mrb[205].mxu1  ;;  %v8169_v60 = vpop.f32.mrb[247].mxu0 }
 0x359   : > { %v7957_v5 = vadd.f32 %v7956_v32, %v7955_v52  ;;  %v11997_v8 = vadd.f32 %v8169_v60, %v8168_v13  ;;  %v7958_v17 = vpop.f32.mrb[206].mxu1  ;;  %v5901_v13 = vrot.slane %v12758_v26, 5  ;;  %v12759_v26 = vld [vmem:[#allocation43_spill] sm:$0xff] }
 0x35a   : > { %v7959_v31 = vpop.f32.mrb[207].mxu1 }
 0x35b   : > { %v3915_v62 = vadd.f32 %v7957_v5, %v11809_v49  ;;  %v7960_v16 = vadd.f32 %v7959_v31, %v7958_v17  ;;  %v9216_v49 = vld [vmem:[#allocation2 + $0x30] sm:$0xff]  ;;  %v5902_v17 = vsel %vm2432_vm3, %v5897_v37, %v5901_v13 }
 0x35c   : > { %6078 = vmatmul.mubr.bf16.gmra.mrb[56].mxu1 %v5892_v51  ;;  %v5895_v27 = vrot.slane %v9216_v49, 5 }
 0x35d   : > { %v3916_v7 = vadd.f32 %v7960_v16, %v11818_v20  ;;  %v8171_v42 = vpop.f32.mrb[248].mxu0  ;;  %6085 = vmatprep.mubr.bf16.mxu1 %v5898_v3  ;;  %v12005_v57 = vadd.f32 %v11787_v4, %v3915_v62 }
 0x35e   : > { %v8172_v25 = vpop.f32.mrb[249].mxu0  ;;  %v5896_v5 = vsel %vm2432_vm3, %v5891_v38, %v5895_v27 }
 0x35f   : > { %v12007_v61 = vadd.f32 %v8172_v25, %v8171_v42  ;;  %v7961_v45 = vpop.f32.mrb[208].mxu1  ;;  %v8174_v53 = vpop.f32.mrb[250].mxu0  ;;  %v12010_v34 = vadd.f32 %v11792_v35, %v3916_v7  ;;  %v9217_v42 = vld [vmem:[#allocation2 + $0x38] sm:$0xff] }
 0x360   : > { %v7962_v18 = vpop.f32.mrb[209].mxu1  ;;  %v8175_v52 = vpop.f32.mrb[251].mxu0 }
 0x361   : > { %v7963_v20 = vadd.f32 %v7962_v18, %v7961_v45  ;;  %v12013_v22 = vadd.f32 %v8175_v52, %v8174_v53  ;;  %v7964_v32 = vpop.f32.mrb[210].mxu1 }
 0x362   : > { %v7965_v4 = vpop.f32.mrb[211].mxu1 }
 0x363   : > { %v3917_v60 = vadd.f32 %v7963_v20, %v11837_v47  ;;  %v7966_v59 = vadd.f32 %v7965_v4, %v7964_v32  ;;  %v5899_v47 = vrot.slane %v9217_v42, 5  ;;  %v12760_v20 = vrot.slane %v12759_v26, 5 }
 0x364   : > { %6086 = vmatmul.mubr.bf16.gmra.mrb[60].mxu1 %v5896_v5 }
 0x365   : > { %v3918_v35 = vadd.f32 %v7966_v59, %v11846_v24  ;;  %v8177_v31 = vpop.f32.mrb[252].mxu0  ;;  %6093 = vmatprep.mubr.bf16.mxu1 %v5902_v17  ;;  %v12020_v62 = vadd.f32 %v11815_v55, %v3917_v60  ;;  %v5900_v52 = vsel %vm2432_vm3, %v5895_v27, %v5899_v47  ;;  %v5906_v32 = vsel %vm2432_vm3, %v5901_v13, %v12760_v20 }
 0x366   : > { %v8178_v16 = vpop.f32.mrb[253].mxu0 }
 0x367   : > { %v12022_v51 = vadd.f32 %v8178_v16, %v8177_v31  ;;  %v7967_v3 = vpop.f32.mrb[212].mxu1  ;;  %v8180_v7 = vpop.f32.mrb[254].mxu0  ;;  %v12025_v25 = vadd.f32 %v11820_v29, %v3918_v35 }
 0x368   : > { %v7968_v38 = vpop.f32.mrb[213].mxu1  ;;  %v8181_v45 = vpop.f32.mrb[255].mxu0 }
 0x369   : > { %v7969_v37 = vadd.f32 %v7968_v38, %v7967_v3  ;;  %v12027_v53 = vadd.f32 %v8181_v45, %v8180_v7  ;;  %v7970_v24 = vpop.f32.mrb[214].mxu1 }
 0x36a   : > { %v7971_v49 = vpop.f32.mrb[215].mxu1 }
 0x36b   : > { %v3919_v55 = vadd.f32 %v7969_v37, %v11868_v46  ;;  %v7972_v18 = vadd.f32 %v7971_v49, %v7970_v24  ;;  %v12762_v24 = vld [vmem:[#allocation47_spill] sm:$0xff] }
 0x36c   : > { %6094 = vmatmul.mubr.bf16.gmra.mrb[64].mxu1 %v5900_v52 }
 0x36d   : > { %v3920_v29 = vadd.f32 %v7972_v18, %v11873_v39  ;;  %v8183_v4 = vpop.f32.mrb[0].mxu0  ;;  %6101 = vmatprep.mubr.bf16.mxu1 %v5906_v32  ;;  %v12036_v60 = vadd.f32 %v11843_v19, %v3919_v55  ;;  %v12761_v19 = vld [vmem:[#allocation11_spill] sm:$0xff] }
 0x36e   : > { %v8184_v59 = vpop.f32.mrb[1].mxu0  ;;  %v5904_v38 = vsel %vm2432_vm3, %v5899_v47, %v12761_v19 }
 0x36f   : > { %v12038_v5 = vadd.f32 %v8184_v59, %v8183_v4  ;;  %v7973_v17 = vpop.f32.mrb[216].mxu1  ;;  %v8186_v46 = vpop.f32.mrb[2].mxu0  ;;  %v12041_v35 = vadd.f32 %v11848_v63, %v3920_v29 }
 0x370   : > { %v7974_v27 = vpop.f32.mrb[217].mxu1  ;;  %v8187_v31 = vpop.f32.mrb[3].mxu0 }
 0x371   : > { %v7975_v16 = vadd.f32 %v7974_v27, %v7973_v17  ;;  %v12043_v3 = vadd.f32 %v8187_v31, %v8186_v46  ;;  %v7976_v13 = vpop.f32.mrb[218].mxu1  ;;  %v12764_v27 = vld [vmem:[#allocation49_spill] sm:$0xff] }
 0x372   : > { %v7977_v39 = vpop.f32.mrb[219].mxu1 }
 0x373   : > { %v3921_v7 = vadd.f32 %v7975_v16, %v11889_v30  ;;  %v7978_v42 = vadd.f32 %v7977_v39, %v7976_v13 }
 0x374   : > { %6102 = vmatmul.mubr.bf16.gmra.mrb[68].mxu1 %v5904_v38 }
 0x375   : > { %v3922_v45 = vadd.f32 %v7978_v42, %v11894_v12  ;;  %v8189_v37 = vpop.f32.mrb[4].mxu0  ;;  %6109 = vmatprep.mubr.bf16.mxu1 %v12762_v24  ;;  %v12051_v63 = vadd.f32 %v11870_v41, %v3921_v7  ;;  %v12763_v41 = vrot.slane %v12727_v43, 5 }
 0x376   : > { %v8190_v49 = vpop.f32.mrb[5].mxu0 }
 0x377   : > { %v12053_v55 = vadd.f32 %v8190_v49, %v8189_v37  ;;  %v7979_v18 = vpop.f32.mrb[220].mxu1  ;;  %v8192_v52 = vpop.f32.mrb[6].mxu0  ;;  %v12056_v30 = vadd.f32 %v11875_v15, %v3922_v45  ;;  %v5908_v17 = vsel %vm2432_vm3, %v12761_v19, %v12763_v41 }
 0x378   : > { %v7980_v26 = vpop.f32.mrb[221].mxu1  ;;  %v8193_v20 = vpop.f32.mrb[7].mxu0 }
 0x379   : > { %v7981_v47 = vadd.f32 %v7980_v26, %v7979_v18  ;;  %v12058_v32 = vadd.f32 %v8193_v20, %v8192_v52  ;;  %v7982_v12 = vpop.f32.mrb[222].mxu1  ;;  %v12766_v52 = vld [vmem:[#allocation54_spill] sm:$0xff] }
 0x37a   : > { %v7983_v29 = vpop.f32.mrb[223].mxu1 }
 0x37b   : > { %v3923_v4 = vadd.f32 %v7981_v47, %v11909_v9  ;;  %v7984_v59 = vadd.f32 %v7983_v29, %v7982_v12  ;;  %v12767_v29 = vld [vmem:[#allocation51_spill] sm:$0xff] }
 0x37c   : > { %6110 = vmatmul.mubr.bf16.gmra.mrb[72].mxu1 %v5908_v17 }
 0x37d   : > { %v3924_v46 = vadd.f32 %v7984_v59, %v11914_v40  ;;  %v8195_v15 = vpop.f32.mrb[8].mxu0  ;;  %6117 = vmatprep.mubr.bf16.mxu1 %v12764_v27  ;;  %v12068_v31 = vadd.f32 %v11891_v23, %v3923_v4  ;;  %v12765_v23 = vld [vmem:[#allocation50_spill] sm:$0xff] }
 0x37e   : > { %v8196_v16 = vpop.f32.mrb[9].mxu0 }
 0x37f   : > { %v12070_v13 = vadd.f32 %v8196_v16, %v8195_v15  ;;  %v7985_v39 = vpop.f32.mrb[224].mxu1  ;;  %v8198_v9 = vpop.f32.mrb[10].mxu0  ;;  %v12073_v7 = vadd.f32 %v11896_v14, %v3924_v46 }
 0x380   : > { %v7986_v43 = vpop.f32.mrb[225].mxu1  ;;  %v8199_v42 = vpop.f32.mrb[11].mxu0 }
 0x381   : > { %v7987_v19 = vadd.f32 %v7986_v43, %v7985_v39  ;;  %v12075_v38 = vadd.f32 %v8199_v42, %v8198_v9  ;;  %v7988_v40 = vpop.f32.mrb[226].mxu1  ;;  %v12769_v9 = vld [vmem:[#allocation55_spill] sm:$0xff] }
 0x382   : > { %v7989_v45 = vpop.f32.mrb[227].mxu1 }
 0x383   : > { %v3925_v37 = vadd.f32 %v7987_v19, %v11932_v21  ;;  %v7990_v24 = vadd.f32 %v7989_v45, %v7988_v40 }
 0x384   : > { %6118 = vmatmul.mubr.bf16.gmra.mrb[76].mxu1 %v12765_v23 }
 0x385   : > { %v3926_v49 = vadd.f32 %v7990_v24, %v11937_v33  ;;  %v8201_v18 = vpop.f32.mrb[12].mxu0  ;;  %6125 = vmatprep.mubr.bf16.mxu1 %v12766_v52  ;;  %v12082_v14 = vadd.f32 %v11911_v10, %v3925_v37  ;;  %v12768_v10 = vld [vmem:[#allocation52_spill] sm:$0xff] }
 0x386   : > { %v8202_v26 = vpop.f32.mrb[13].mxu0 }
 0x387   : > { %v12084_v20 = vadd.f32 %v8202_v26, %v8201_v18  ;;  %v7991_v47 = vpop.f32.mrb[228].mxu1  ;;  %v8204_v12 = vpop.f32.mrb[14].mxu0  ;;  %v12087_v4 = vadd.f32 %v12767_v29, %v3926_v49 }
 0x388   : > { %v7992_v21 = vpop.f32.mrb[229].mxu1  ;;  %v8205_v59 = vpop.f32.mrb[15].mxu0 }
 0x389   : > { %v7993_v41 = vadd.f32 %v7992_v21, %v7991_v47  ;;  %v12089_v17 = vadd.f32 %v8205_v59, %v8204_v12  ;;  %v7994_v33 = vpop.f32.mrb[230].mxu1 }
 0x38a   : > { %v7995_v46 = vpop.f32.mrb[231].mxu1 }
 0x38b   : > { %v3927_v15 = vadd.f32 %v7993_v41, %v11955_v28  ;;  %v7996_v27 = vadd.f32 %v7995_v46, %v7994_v33 }
 0x38c   : > { %6126 = vmatmul.mubr.bf16.gmra.mrb[80].mxu1 %v12768_v10 }
 0x38d   : > { %v3928_v16 = vadd.f32 %v7996_v27, %v11962_v44  ;;  %v8207_v39 = vpop.f32.mrb[16].mxu0  ;;  %6133 = vmatprep.mubr.bf16.mxu1 %v12769_v9  ;;  %v12096_v43 = vadd.f32 %v11934_v48, %v3927_v15  ;;  %v12770_v48 = vld [vmem:[#allocation53_spill] sm:$0xff] }
 0x38e   : > { %v8208_v42 = vpop.f32.mrb[17].mxu0 }
 0x38f   : > { %v12098_v19 = vadd.f32 %v8208_v42, %v8207_v39  ;;  %v7997_v40 = vpop.f32.mrb[232].mxu1  ;;  %v8210_v45 = vpop.f32.mrb[18].mxu0  ;;  %v12101_v37 = vadd.f32 %v11939_v2, %v3928_v16 }
 0x390   : > { %v7998_v28 = vpop.f32.mrb[233].mxu1  ;;  %v8211_v24 = vpop.f32.mrb[19].mxu0 }
 0x391   : > { %v7999_v23 = vadd.f32 %v7998_v28, %v7997_v40  ;;  %v12103_v49 = vadd.f32 %v8211_v24, %v8210_v45  ;;  %v8000_v44 = vpop.f32.mrb[234].mxu1 }
 0x392   : > { %v8001_v18 = vpop.f32.mrb[235].mxu1 }
 0x393   : > { %v3929_v52 = vadd.f32 %v7999_v23, %v11972_v6  ;;  %v8002_v26 = vadd.f32 %v8001_v18, %v8000_v44 }
 0x394   : > { %6134 = vmatmul.mubr.bf16.gmra.mrb[84].mxu1 %v12770_v48 }
 0x395   : > { %v3930_v47 = vadd.f32 %v8002_v26, %v11977_v56  ;;  %v8299_v12 = vpop.f32.mrb[20].mxu0  ;;  %v12109_v29 = vadd.f32 %v11957_v11, %v3929_v52 }
 0x396   : > { %v8300_v2 = vpop.f32.mrb[21].mxu0 }
 0x397   : > { %v12111_v21 = vadd.f32 %v8300_v2, %v8299_v12  ;;  %v8089_v59 = vpop.f32.mrb[236].mxu1  ;;  %v8302_v41 = vpop.f32.mrb[22].mxu0  ;;  %v12114_v33 = vadd.f32 %v11965_v54, %v3930_v47 }
 0x398   : > { %v8090_v46 = vpop.f32.mrb[237].mxu1  ;;  %v8303_v15 = vpop.f32.mrb[23].mxu0 }
 0x399   : > { %v8091_v6 = vadd.f32 %v8090_v46, %v8089_v59  ;;  %v12116_v27 = vadd.f32 %v8303_v15, %v8302_v41  ;;  %v8092_v10 = vpop.f32.mrb[238].mxu1 }
 0x39a   : > { %v8093_v16 = vpop.f32.mrb[239].mxu1 }
 0x39b   : > { %v4538_v56 = vadd.f32 %v8091_v6, %v11989_v58  ;;  %v8094_v39 = vadd.f32 %v8093_v16, %v8092_v10 }
 0x39d   : > { %v4539_v11 = vadd.f32 %v8094_v39, %v11994_v36  ;;  %v8305_v9 = vpop.f32.mrb[24].mxu0  ;;  %v12121_v42 = vadd.f32 %v11974_v50, %v4538_v56 }
 0x39e   : > { %v8306_v40 = vpop.f32.mrb[25].mxu0 }
 0x39f   : > { %v12123_v45 = vadd.f32 %v8306_v40, %v8305_v9  ;;  %v8095_v54 = vpop.f32.mrb[240].mxu1  ;;  %v8308_v28 = vpop.f32.mrb[26].mxu0  ;;  %v12126_v24 = vadd.f32 %v11981_v0, %v4539_v11 }
 0x3a0   : > { %v8096_v23 = vpop.f32.mrb[241].mxu1  ;;  %v8309_v44 = vpop.f32.mrb[27].mxu0 }
 0x3a1   : > { %v8097_v18 = vadd.f32 %v8096_v23, %v8095_v54  ;;  %v12128_v52 = vadd.f32 %v8309_v44, %v8308_v28  ;;  %v8098_v58 = vpop.f32.mrb[242].mxu1 }
 0x3a2   : > { %v8099_v26 = vpop.f32.mrb[243].mxu1 }
 0x3a3   : > { %v4540_v36 = vadd.f32 %v8097_v18, %v12005_v57  ;;  %v8100_v48 = vadd.f32 %v8099_v26, %v8098_v58 }
 0x3a5   : > { %v4541_v50 = vadd.f32 %v8100_v48, %v12010_v34  ;;  %v8311_v47 = vpop.f32.mrb[28].mxu0  ;;  %v12133_v12 = vadd.f32 %v11991_v1, %v4540_v36 }
 0x3a6   : > { %v8312_v2 = vpop.f32.mrb[29].mxu0 }
 0x3a7   : > { %v12135_v59 = vadd.f32 %v8312_v2, %v8311_v47  ;;  %v8101_v0 = vpop.f32.mrb[244].mxu1  ;;  %v8314_v41 = vpop.f32.mrb[30].mxu0  ;;  %v12138_v46 = vadd.f32 %v11997_v8, %v4541_v50 }
 0x3a8   : > { %v8102_v15 = vpop.f32.mrb[245].mxu1  ;;  %v8315_v6 = vpop.f32.mrb[31].mxu0 }
 0x3a9   : > { %v8103_v10 = vadd.f32 %v8102_v15, %v8101_v0  ;;  %v12140_v16 = vadd.f32 %v8315_v6, %v8314_v41  ;;  %v8104_v57 = vpop.f32.mrb[246].mxu1 }
 0x3aa   : > { %v8105_v56 = vpop.f32.mrb[247].mxu1 }
 0x3ab   : > { %v4542_v34 = vadd.f32 %v8103_v10, %v12020_v62  ;;  %v8106_v39 = vadd.f32 %v8105_v56, %v8104_v57 }
 0x3ad   : > { %v4543_v1 = vadd.f32 %v8106_v39, %v12025_v25  ;;  %v8317_v11 = vpop.f32.mrb[32].mxu0  ;;  %v12145_v9 = vadd.f32 %v12007_v61, %v4542_v34 }
 0x3ae   : > { %v8318_v40 = vpop.f32.mrb[33].mxu0 }
 0x3af   : > { %v12147_v54 = vadd.f32 %v8318_v40, %v8317_v11  ;;  %v8107_v8 = vpop.f32.mrb[248].mxu1  ;;  %v8320_v28 = vpop.f32.mrb[34].mxu0  ;;  %v12150_v23 = vadd.f32 %v12013_v22, %v4543_v1 }
 0x3b0   : > { %v8108_v44 = vpop.f32.mrb[249].mxu1  ;;  %v8321_v18 = vpop.f32.mrb[35].mxu0 }
 0x3b1   : > { %v8109_v58 = vadd.f32 %v8108_v44, %v8107_v8  ;;  %v12152_v26 = vadd.f32 %v8321_v18, %v8320_v28  ;;  %v8110_v62 = vpop.f32.mrb[250].mxu1 }
 0x3b2   : > { %v8111_v36 = vpop.f32.mrb[251].mxu1 }
 0x3b3   : > { %v4544_v25 = vadd.f32 %v8109_v58, %v12036_v60  ;;  %v8112_v48 = vadd.f32 %v8111_v36, %v8110_v62 }
 0x3b5   : > { %v4545_v61 = vadd.f32 %v8112_v48, %v12041_v35  ;;  %v8323_v50 = vpop.f32.mrb[36].mxu0  ;;  %v12157_v47 = vadd.f32 %v12022_v51, %v4544_v25 }
 0x3b6   : > { %v8324_v2 = vpop.f32.mrb[37].mxu0 }
 0x3b7   : > { %v12159_v0 = vadd.f32 %v8324_v2, %v8323_v50  ;;  %v8113_v22 = vpop.f32.mrb[252].mxu1  ;;  %v8326_v41 = vpop.f32.mrb[38].mxu0  ;;  %v12162_v15 = vadd.f32 %v12027_v53, %v4545_v61 }
 0x3b8   : > { %v8114_v6 = vpop.f32.mrb[253].mxu1  ;;  %v8327_v10 = vpop.f32.mrb[39].mxu0 }
 0x3b9   : > { %v8115_v57 = vadd.f32 %v8114_v6, %v8113_v22  ;;  %v12164_v56 = vadd.f32 %v8327_v10, %v8326_v41  ;;  %v8116_v60 = vpop.f32.mrb[254].mxu1 }
 0x3ba   : > { %v8117_v34 = vpop.f32.mrb[255].mxu1 }
 0x3bb   : > { %v4546_v35 = vadd.f32 %v8115_v57, %v12051_v63  ;;  %v8118_v39 = vadd.f32 %v8117_v34, %v8116_v60 }
 0x3bd   : > { %v4547_v51 = vadd.f32 %v8118_v39, %v12056_v30  ;;  %v8329_v1 = vpop.f32.mrb[40].mxu0  ;;  %v12169_v11 = vadd.f32 %v12038_v5, %v4546_v35 }
 0x3be   : > { %v8330_v40 = vpop.f32.mrb[41].mxu0 }
 0x3bf   : > { %v12171_v8 = vadd.f32 %v8330_v40, %v8329_v1  ;;  %v8119_v53 = vpop.f32.mrb[0].mxu1  ;;  %v8332_v28 = vpop.f32.mrb[42].mxu0  ;;  %v12174_v44 = vadd.f32 %v12043_v3, %v4547_v51 }
 0x3c0   : > { %v8120_v18 = vpop.f32.mrb[1].mxu1  ;;  %v8333_v58 = vpop.f32.mrb[43].mxu0 }
 0x3c1   : > { %v8121_v62 = vadd.f32 %v8120_v18, %v8119_v53  ;;  %v12176_v36 = vadd.f32 %v8333_v58, %v8332_v28  ;;  %v8122_v63 = vpop.f32.mrb[2].mxu1 }
 0x3c2   : > { %v8123_v25 = vpop.f32.mrb[3].mxu1 }
 0x3c3   : > { %v4548_v30 = vadd.f32 %v8121_v62, %v12068_v31  ;;  %v8124_v48 = vadd.f32 %v8123_v25, %v8122_v63 }
 0x3c5   : > { %v4549_v5 = vadd.f32 %v8124_v48, %v12073_v7  ;;  %v8335_v61 = vpop.f32.mrb[44].mxu0  ;;  %v12181_v50 = vadd.f32 %v12053_v55, %v4548_v30 }
 0x3c6   : > { %v8336_v2 = vpop.f32.mrb[45].mxu0 }
 0x3c7   : > { %v12183_v22 = vadd.f32 %v8336_v2, %v8335_v61  ;;  %v8125_v3 = vpop.f32.mrb[4].mxu1  ;;  %v8338_v41 = vpop.f32.mrb[46].mxu0  ;;  %v12186_v6 = vadd.f32 %v12058_v32, %v4549_v5 }
 0x3c8   : > { %v8126_v10 = vpop.f32.mrb[5].mxu1  ;;  %v8339_v57 = vpop.f32.mrb[47].mxu0 }
 0x3c9   : > { %v8127_v60 = vadd.f32 %v8126_v10, %v8125_v3  ;;  %v12188_v34 = vadd.f32 %v8339_v57, %v8338_v41  ;;  %v8128_v31 = vpop.f32.mrb[6].mxu1 }
 0x3ca   : > { %v8129_v35 = vpop.f32.mrb[7].mxu1 }
 0x3cb   : > { %v4550_v7 = vadd.f32 %v8127_v60, %v12082_v14  ;;  %v8130_v39 = vadd.f32 %v8129_v35, %v8128_v31 }
 0x3cd   : > { %v4551_v55 = vadd.f32 %v8130_v39, %v12087_v4  ;;  %v8341_v51 = vpop.f32.mrb[48].mxu0  ;;  %v12193_v1 = vadd.f32 %v12070_v13, %v4550_v7 }
 0x3ce   : > { %v8342_v40 = vpop.f32.mrb[49].mxu0 }
 0x3cf   : > { %v12195_v53 = vadd.f32 %v8342_v40, %v8341_v51  ;;  %v8131_v32 = vpop.f32.mrb[8].mxu1  ;;  %v8344_v28 = vpop.f32.mrb[50].mxu0  ;;  %v12198_v18 = vadd.f32 %v12075_v38, %v4551_v55 }
 0x3d0   : > { %v8132_v58 = vpop.f32.mrb[9].mxu1  ;;  %v8345_v62 = vpop.f32.mrb[51].mxu0 }
 0x3d1   : > { %v8133_v63 = vadd.f32 %v8132_v58, %v8131_v32  ;;  %v12200_v25 = vadd.f32 %v8345_v62, %v8344_v28  ;;  %v8134_v14 = vpop.f32.mrb[10].mxu1 }
 0x3d2   : > { %v8135_v30 = vpop.f32.mrb[11].mxu1 }
 0x3d3   : > { %v4552_v4 = vadd.f32 %v8133_v63, %v12096_v43  ;;  %v8136_v48 = vadd.f32 %v8135_v30, %v8134_v14 }
 0x3d5   : > { %v4553_v13 = vadd.f32 %v8136_v48, %v12101_v37  ;;  %v8347_v5 = vpop.f32.mrb[52].mxu0  ;;  %v12205_v61 = vadd.f32 %v12084_v20, %v4552_v4 }
 0x3d6   : > { %v8348_v2 = vpop.f32.mrb[53].mxu0 }
 0x3d7   : > { %v12207_v3 = vadd.f32 %v8348_v2, %v8347_v5  ;;  %v8137_v38 = vpop.f32.mrb[12].mxu1  ;;  %v8350_v41 = vpop.f32.mrb[54].mxu0  ;;  %v12210_v10 = vadd.f32 %v12089_v17, %v4553_v13 }
 0x3d8   : > { %v8138_v57 = vpop.f32.mrb[13].mxu1  ;;  %v8351_v60 = vpop.f32.mrb[55].mxu0 }
 0x3d9   : > { %v8139_v31 = vadd.f32 %v8138_v57, %v8137_v38  ;;  %v12212_v35 = vadd.f32 %v8351_v60, %v8350_v41  ;;  %v8140_v43 = vpop.f32.mrb[14].mxu1 }
 0x3da   : > { %v8141_v7 = vpop.f32.mrb[15].mxu1 }
 0x3db   : > { %v4554_v37 = vadd.f32 %v8139_v31, %v12109_v29  ;;  %v8142_v39 = vadd.f32 %v8141_v7, %v8140_v43 }
 0x3dd   : > { %v4555_v20 = vadd.f32 %v8142_v39, %v12114_v33  ;;  %v8439_v55 = vpop.f32.mrb[56].mxu0  ;;  %v12217_v51 = vadd.f32 %v12098_v19, %v4554_v37 }
 0x3de   : > { %v8440_v40 = vpop.f32.mrb[57].mxu0 }
 0x3df   : > { %v12219_v32 = vadd.f32 %v8440_v40, %v8439_v55  ;;  %v8229_v17 = vpop.f32.mrb[16].mxu1  ;;  %v8442_v28 = vpop.f32.mrb[58].mxu0  ;;  %v12222_v58 = vadd.f32 %v12103_v49, %v4555_v20 }
 0x3e0   : > { %v8230_v62 = vpop.f32.mrb[17].mxu1  ;;  %v8443_v63 = vpop.f32.mrb[59].mxu0 }
 0x3e1   : > { %v8231_v14 = vadd.f32 %v8230_v62, %v8229_v17  ;;  %v12224_v30 = vadd.f32 %v8443_v63, %v8442_v28  ;;  %v8232_v29 = vpop.f32.mrb[18].mxu1 }
 0x3e2   : > { %v8233_v4 = vpop.f32.mrb[19].mxu1 }
 0x3e3   : > { %v5405_v33 = vadd.f32 %v8231_v14, %v12121_v42  ;;  %v8234_v48 = vadd.f32 %v8233_v4, %v8232_v29 }
 0x3e5   : > { %v5406_v19 = vadd.f32 %v8234_v48, %v12126_v24  ;;  %v8445_v13 = vpop.f32.mrb[60].mxu0  ;;  %v12229_v5 = vadd.f32 %v12111_v21, %v5405_v33 }
 0x3e6   : > { %v8446_v2 = vpop.f32.mrb[61].mxu0 }
 0x3e7   : > { %v12231_v38 = vadd.f32 %v8446_v2, %v8445_v13  ;;  %v8235_v49 = vpop.f32.mrb[20].mxu1  ;;  %v8448_v41 = vpop.f32.mrb[62].mxu0  ;;  %v12234_v57 = vadd.f32 %v12116_v27, %v5406_v19 }
 0x3e8   : > { %v8236_v60 = vpop.f32.mrb[21].mxu1  ;;  %v8449_v31 = vpop.f32.mrb[63].mxu0 }
 0x3e9   : > { %v8237_v43 = vadd.f32 %v8236_v60, %v8235_v49  ;;  %v12236_v7 = vadd.f32 %v8449_v31, %v8448_v41  ;;  %v8238_v42 = vpop.f32.mrb[22].mxu1 }
 0x3ea   : > { %v8239_v37 = vpop.f32.mrb[23].mxu1 }
 0x3eb   : > { %v5407_v24 = vadd.f32 %v8237_v43, %v12133_v12  ;;  %v8240_v39 = vadd.f32 %v8239_v37, %v8238_v42 }
 0x3ed   : > { %v5408_v21 = vadd.f32 %v8240_v39, %v12138_v46  ;;  %v8451_v20 = vpop.f32.mrb[64].mxu0  ;;  %v12241_v55 = vadd.f32 %v12123_v45, %v5407_v24 }
 0x3ee   : > { %v8452_v40 = vpop.f32.mrb[65].mxu0 }
 0x3ef   : > { %v12243_v17 = vadd.f32 %v8452_v40, %v8451_v20  ;;  %v8241_v27 = vpop.f32.mrb[24].mxu1  ;;  %v8454_v28 = vpop.f32.mrb[66].mxu0  ;;  %v12246_v62 = vadd.f32 %v12128_v52, %v5408_v21 }
 0x3f0   : > { %v8242_v63 = vpop.f32.mrb[25].mxu1  ;;  %v8455_v14 = vpop.f32.mrb[67].mxu0 }
 0x3f1   : > { %v8243_v29 = vadd.f32 %v8242_v63, %v8241_v27  ;;  %v12248_v4 = vadd.f32 %v8455_v14, %v8454_v28  ;;  %v8244_v12 = vpop.f32.mrb[26].mxu1 }
 0x3f2   : > { %v8245_v33 = vpop.f32.mrb[27].mxu1 }
 0x3f3   : > { %v5409_v46 = vadd.f32 %v8243_v29, %v12145_v9  ;;  %v8246_v48 = vadd.f32 %v8245_v33, %v8244_v12 }
 0x3f5   : > { %v5410_v45 = vadd.f32 %v8246_v48, %v12150_v23  ;;  %v8457_v19 = vpop.f32.mrb[68].mxu0  ;;  %v12253_v13 = vadd.f32 %v12135_v59, %v5409_v46 }
 0x3f6   : > { %v8458_v2 = vpop.f32.mrb[69].mxu0 }
 0x3f7   : > { %v12255_v49 = vadd.f32 %v8458_v2, %v8457_v19  ;;  %v8247_v52 = vpop.f32.mrb[28].mxu1  ;;  %v8460_v41 = vpop.f32.mrb[70].mxu0  ;;  %v12258_v60 = vadd.f32 %v12140_v16, %v5410_v45 }
 0x3f8   : > { %v8248_v31 = vpop.f32.mrb[29].mxu1  ;;  %v8461_v43 = vpop.f32.mrb[71].mxu0 }
 0x3f9   : > { %v8249_v42 = vadd.f32 %v8248_v31, %v8247_v52  ;;  %v12260_v37 = vadd.f32 %v8461_v43, %v8460_v41  ;;  %v8250_v9 = vpop.f32.mrb[30].mxu1 }
 0x3fa   : > { %v8251_v24 = vpop.f32.mrb[31].mxu1 }
 0x3fb   : > { %v5411_v23 = vadd.f32 %v8249_v42, %v12157_v47  ;;  %v8252_v39 = vadd.f32 %v8251_v24, %v8250_v9 }
 0x3fd   : > { %v5412_v59 = vadd.f32 %v8252_v39, %v12162_v15  ;;  %v8463_v21 = vpop.f32.mrb[72].mxu0  ;;  %v12265_v20 = vadd.f32 %v12147_v54, %v5411_v23  ;;  %v9182_v54 = vld [vmem:[%s12486_s5] sm:$0xff]  }
 0x3fe   : > { %v8464_v40 = vpop.f32.mrb[73].mxu0  ;;  %8871 = vmatprep.mubr.bf16.mxu1 %v9182_v54 }
 0x3ff   : > { %v12267_v27 = vadd.f32 %v8464_v40, %v8463_v21  ;;  %v8253_v16 = vpop.f32.mrb[32].mxu1  ;;  %v8466_v28 = vpop.f32.mrb[74].mxu0  ;;  %v12270_v63 = vadd.f32 %v12152_v26, %v5412_v59 }
 0x400   : > { %v8254_v14 = vpop.f32.mrb[33].mxu1  ;;  %v8467_v29 = vpop.f32.mrb[75].mxu0 }
 0x401   : > { %v8255_v12 = vadd.f32 %v8254_v14, %v8253_v16  ;;  %v12272_v33 = vadd.f32 %v8467_v29, %v8466_v28  ;;  %v8256_v47 = vpop.f32.mrb[34].mxu1 }
 0x402   : > { %v8257_v46 = vpop.f32.mrb[35].mxu1 }
 0x403   : > { %v5413_v15 = vadd.f32 %v8255_v12, %v12169_v11  ;;  %v8258_v48 = vadd.f32 %v8257_v46, %v8256_v47 }
 0x405   : > { %v5414_v45 = vadd.f32 %v8258_v48, %v12174_v44  ;;  %v8469_v19 = vpop.f32.mrb[76].mxu0  ;;  %v12280_v26 = vadd.f32 %v12159_v0, %v5413_v15 }
 0x406   : > { %v8470_v2 = vpop.f32.mrb[77].mxu0 }
 0x407   : > { %v12282_v52 = vadd.f32 %v8470_v2, %v8469_v19  ;;  %v8259_v41 = vpop.f32.mrb[36].mxu1  ;;  %v8472_v31 = vpop.f32.mrb[78].mxu0  ;;  %v12285_v43 = vadd.f32 %v12164_v56, %v5414_v45 }
 0x408   : > { %v8260_v11 = vpop.f32.mrb[37].mxu1  ;;  %v8473_v42 = vpop.f32.mrb[79].mxu0 }
 0x409   : > { %v8261_v9 = vadd.f32 %v8260_v11, %v8259_v41  ;;  %v12287_v24 = vadd.f32 %v8473_v42, %v8472_v31  ;;  %v8262_v23 = vpop.f32.mrb[38].mxu1 }
 0x40a   : > { %v8263_v44 = vpop.f32.mrb[39].mxu1 }
 0x40b   : > { %v5415_v39 = vadd.f32 %v8261_v9, %v12181_v50  ;;  %v8264_v0 = vadd.f32 %v8263_v44, %v8262_v23 }
 0x40d   : > { %v5416_v59 = vadd.f32 %v8264_v0, %v12186_v6  ;;  %v8475_v21 = vpop.f32.mrb[80].mxu0  ;;  %v12292_v40 = vadd.f32 %v12171_v8, %v5415_v39 }
 0x40e   : > { %v8476_v16 = vpop.f32.mrb[81].mxu0 }
 0x40f   : > { %v12294_v28 = vadd.f32 %v8476_v16, %v8475_v21  ;;  %v8265_v56 = vpop.f32.mrb[40].mxu1  ;;  %v8478_v14 = vpop.f32.mrb[82].mxu0  ;;  %v12297_v29 = vadd.f32 %v12176_v36, %v5416_v59 }
 0x410   : > { %v8266_v12 = vpop.f32.mrb[41].mxu1  ;;  %v8479_v47 = vpop.f32.mrb[83].mxu0 }
 0x411   : > { %v8267_v46 = vadd.f32 %v8266_v12, %v8265_v56  ;;  %v12299_v15 = vadd.f32 %v8479_v47, %v8478_v14  ;;  %v8268_v50 = vpop.f32.mrb[42].mxu1 }
 0x412   : > { %v8269_v48 = vpop.f32.mrb[43].mxu1 }
 0x413   : > { %v5417_v6 = vadd.f32 %v8267_v46, %v12193_v1  ;;  %v8270_v54 = vadd.f32 %v8269_v48, %v8268_v50 }
 0x415   : > { %v5418_v8 = vadd.f32 %v8270_v54, %v12198_v18  ;;  %v8481_v45 = vpop.f32.mrb[84].mxu0  ;;  %v12304_v19 = vadd.f32 %v12183_v22, %v5417_v6 }
 0x416   : > { %v8482_v2 = vpop.f32.mrb[85].mxu0 }
 0x417   : > { %v12306_v41 = vadd.f32 %v8482_v2, %v8481_v45  ;;  %v8271_v36 = vpop.f32.mrb[44].mxu1  ;;  %v8484_v31 = vpop.f32.mrb[86].mxu0  ;;  %v12309_v11 = vadd.f32 %v12188_v34, %v5418_v8 }
 0x418   : > { %v8272_v42 = vpop.f32.mrb[45].mxu1  ;;  %v8485_v9 = vpop.f32.mrb[87].mxu0 }
 0x419   : > { %v8273_v23 = vadd.f32 %v8272_v42, %v8271_v36  ;;  %v12311_v44 = vadd.f32 %v8485_v9, %v8484_v31  ;;  %v8274_v1 = vpop.f32.mrb[46].mxu1 }
 0x41a   : > { %v8275_v39 = vpop.f32.mrb[47].mxu1 }
 0x41b   : > { %v5419_v18 = vadd.f32 %v8273_v23, %v12205_v61  ;;  %v8276_v0 = vadd.f32 %v8275_v39, %v8274_v1 }
 0x41d   : > { %v5420_v22 = vadd.f32 %v8276_v0, %v12210_v10  ;;  %v8487_v59 = vpop.f32.mrb[88].mxu0  ;;  %v12316_v21 = vadd.f32 %v12195_v53, %v5419_v18 }
 0x41e   : > { %v8488_v16 = vpop.f32.mrb[89].mxu0 }
 0x41f   : > { %v12318_v56 = vadd.f32 %v8488_v16, %v8487_v59  ;;  %v8277_v34 = vpop.f32.mrb[48].mxu1  ;;  %v8490_v14 = vpop.f32.mrb[90].mxu0  ;;  %v12321_v12 = vadd.f32 %v12200_v25, %v5420_v22 }
 0x420   : > { %v8278_v47 = vpop.f32.mrb[49].mxu1  ;;  %v8491_v46 = vpop.f32.mrb[91].mxu0 }
 0x421   : > { %v8279_v50 = vadd.f32 %v8278_v47, %v8277_v34  ;;  %v12323_v48 = vadd.f32 %v8491_v46, %v8490_v14  ;;  %v8280_v61 = vpop.f32.mrb[50].mxu1 }
 0x422   : > { %v8281_v6 = vpop.f32.mrb[51].mxu1 }
 0x423   : > { %v5421_v10 = vadd.f32 %v8279_v50, %v12217_v51  ;;  %v8282_v54 = vadd.f32 %v8281_v6, %v8280_v61  ;;  %v12337_v51 = vld [vmem:[%s12485_s4] ss:$0 sm:$0xff] }
 0x425   : > { %v5422_v53 = vadd.f32 %v8282_v54, %v12222_v58  ;;  %v12328_v8 = vadd.f32 %v12207_v3, %v5421_v10 }
 0x427   : > { %v8369_v45 = vpop.f32.mrb[52].mxu1  ;;  %v12331_v2 = vadd.f32 %v12212_v35, %v5422_v53 }
 0x428   : > { %v8370_v25 = vpop.f32.mrb[53].mxu1 }
 0x429   : > { %v8371_v36 = vadd.f32 %v8370_v25, %v8369_v45  ;;  %v8372_v31 = vpop.f32.mrb[54].mxu1 }
 0x42a   : > { %v8373_v42 = vpop.f32.mrb[55].mxu1 }
 0x42b   : > { %v6142_v9 = vadd.f32 %v8371_v36, %v12229_v5  ;;  %v8374_v23 = vadd.f32 %v8373_v42, %v8372_v31 }
 0x42d   : > { %v6425_v58 = vadd.f32 %v12219_v32, %v6142_v9  ;;  %v6143_v3 = vadd.f32 %v8374_v23, %v12234_v57 }
 0x42f   : > { %v6450_v1 = vadd.f32 %v12337_v51, %v6425_v58  ;;  %v6426_v35 = vadd.f32 %v12224_v30, %v6143_v3  ;;  %v8375_v39 = vpop.f32.mrb[56].mxu1 }
 0x430   : > { %v8376_v18 = vpop.f32.mrb[57].mxu1 }
 0x431   : > { %v6468_v0 = vmax.f32 %v6450_v1, 0.0  ;;  %v6451_v22 = vadd.f32 %v12337_v51, %v6426_v35  ;;  %v8377_v5 = vadd.f32 %v8376_v18, %v8375_v39  ;;  %v8378_v59 = vpop.f32.mrb[58].mxu1 }
 0x432   : > { %v8379_v16 = vpop.f32.mrb[59].mxu1 }
 0x433   : > { %6486 = vst [vmem:[#allocation3] sm:$0xff] %v6468_v0  ;;  %v6469_v34 = vmax.f32 %v6451_v22, 0.0  ;;  %v6144_v14 = vadd.f32 %v8377_v5, %v12241_v55  ;;  %v8380_v47 = vadd.f32 %v8379_v16, %v8378_v59 }
 0x435   : > { %6487 = vst [vmem:[#allocation3 + $0x8] sm:$0xff] %v6469_v34  ;;  %v6427_v32 = vadd.f32 %v12231_v38, %v6144_v14  ;;  %v6145_v57 = vadd.f32 %v8380_v47, %v12246_v62 }
 0x437   : > { %v12348_v30 = vadd.f32 %v12337_v51, %v6427_v32  ;;  %v6428_v46 = vadd.f32 %v12236_v7, %v6145_v57  ;;  %v8381_v50 = vpop.f32.mrb[60].mxu1 }
 0x438   : > { %v8382_v61 = vpop.f32.mrb[61].mxu1 }
 0x439   : > { %v6470_v6 = vmax.f32 %v12348_v30, 0.0  ;;  %v12353_v10 = vadd.f32 %v12337_v51, %v6428_v46  ;;  %v8383_v54 = vadd.f32 %v8382_v61, %v8381_v50  ;;  %v8384_v55 = vpop.f32.mrb[62].mxu1 }
 0x43a   : > { %v8385_v53 = vpop.f32.mrb[63].mxu1 }
 0x43b   : > { %6488 = vst [vmem:[#allocation3 + $0x10] sm:$0xff] %v6470_v6  ;;  %v6471_v38 = vmax.f32 %v12353_v10, 0.0  ;;  %v6146_v62 = vadd.f32 %v8383_v54, %v12253_v13  ;;  %v8386_v45 = vadd.f32 %v8385_v53, %v8384_v55 }
 0x43c   : > { %v6520_v1 = vld [vmem:[#allocation3 + $0x1] sm:$0xff] }
 0x43d   : > { %6489 = vst [vmem:[#allocation3 + $0x18] sm:$0xff] %v6471_v38  ;;  %v6429_v25 = vadd.f32 %v12243_v17, %v6146_v62  ;;  %v6147_v7 = vadd.f32 %v8386_v45, %v12258_v60  ;;  %v6536_v5 = vmax.f32 %v6468_v0, %v6520_v1 }
 0x43f   : > { %v12360_v36 = vadd.f32 %v12337_v51, %v6429_v25  ;;  %v6430_v31 = vadd.f32 %v12248_v4, %v6147_v7  ;;  %v8387_v42 = vpop.f32.mrb[64].mxu1 }
 0x440   : > { %v8388_v9 = vpop.f32.mrb[65].mxu1 }
 0x441   : > { %v6472_v23 = vmax.f32 %v12360_v36, 0.0  ;;  %v12365_v58 = vadd.f32 %v12337_v51, %v6430_v31  ;;  %v8389_v3 = vadd.f32 %v8388_v9, %v8387_v42  ;;  %v8390_v13 = vpop.f32.mrb[66].mxu1 }
 0x442   : > { %v8391_v35 = vpop.f32.mrb[67].mxu1  ;;  %v6521_v39 = vld [vmem:[#allocation3 + $0x9] sm:$0xff] }
 0x443   : > { %v6552_v17 = vld [vmem:[#allocation3 + $0xe] sm:$0xff]  ;;  %6490 = vst [vmem:[#allocation3 + $0x20] sm:$0xff] %v6472_v23  ;;  %v6473_v60 = vmax.f32 %v12365_v58, 0.0  ;;  %v6148_v4 = vadd.f32 %v8389_v3, %v12265_v20  ;;  %v8392_v22 = vadd.f32 %v8391_v35, %v8390_v13  ;;  %v6537_v57 = vmax.f32 %v6469_v34, %v6521_v39 }
 0x444   : > { %v6568_v18 = vld [vmem:[#allocation3 + $0xf] sm:$0xff]  ;;  %v6569_v16 = vld [vmem:[#allocation3 + $0x17] sm:$0xff] }
 0x445   : > { %v6553_v59 = vld [vmem:[#allocation3 + $0x16] sm:$0xff]  ;;  %v6584_v14 = vmax.f32 %v6552_v17, %v6568_v18  ;;  %6491 = vst [vmem:[#allocation3 + $0x28] sm:$0xff] %v6473_v60  ;;  %v6431_v47 = vadd.f32 %v12255_v49, %v6148_v4  ;;  %v6149_v32 = vadd.f32 %v8392_v22, %v12270_v63 }
 0x446   : > { %v6585_v30 = vmax.f32 %v6553_v59, %v6569_v16  ;;  %v6522_v63 = vld [vmem:[#allocation3 + $0x11] sm:$0xff] }
 0x447   : > { %v12376_v46 = vadd.f32 %v12337_v51, %v6431_v47  ;;  %v6432_v50 = vadd.f32 %v12260_v37, %v6149_v32  ;;  %v8393_v20 = vpop.f32.mrb[68].mxu1  ;;  %v6600_v61 = vmax.f32 %v6536_v5, %v6584_v14  ;;  %v6538_v9 = vmax.f32 %v6470_v6, %v6522_v63 }
 0x448   : > { %v6601_v0 = vmax.f32 %v6537_v57, %v6585_v30  ;;  %v8394_v10 = vpop.f32.mrb[69].mxu1 }
 0x449   : > { %v6474_v54 = vmax.f32 %v12376_v46, 0.0  ;;  %v12381_v55 = vadd.f32 %v12337_v51, %v6432_v50  ;;  %v8395_v53 = vadd.f32 %v8394_v10, %v8393_v20  ;;  %v8396_v49 = vpop.f32.mrb[70].mxu1 }
 0x44a   : > { %v6620_v62 = vpack.c.bf16 %v6601_v0, %v6600_v61  ;;  %v8397_v34 = vpop.f32.mrb[71].mxu1  ;;  %v6523_v45 = vld [vmem:[#allocation3 + $0x19] sm:$0xff] }
 0x44b   : > { %v6554_v25 = vld [vmem:[#allocation3 + $0x1e] sm:$0xff]  ;;  %6492 = vst [vmem:[#allocation3 + $0x30] sm:$0xff] %v6474_v54  ;;  %v6475_v37 = vmax.f32 %v12381_v55, 0.0  ;;  %v6150_v31 = vadd.f32 %v8395_v53, %v12280_v26  ;;  %v8398_v42 = vadd.f32 %v8397_v34, %v8396_v49  ;;  %v6539_v17 = vmax.f32 %v6471_v38, %v6523_v45 }
 0x44c   : > { %v6570_v7 = vld [vmem:[#allocation3 + $0x1f] sm:$0xff]  ;;  %8855 = vmatprep.subr.bf16.mxu1 %v6620_v62  ;;  %v6571_v13 = vld [vmem:[#allocation3 + $0x27] sm:$0xff] }
 0x44d   : > { %8856 = vmatpush3.bf16.msra.mxu1 %v6620_v62  ;;  %v6555_v3 = vld [vmem:[#allocation3 + $0x26] sm:$0xff]  ;;  %v6586_v1 = vmax.f32 %v6554_v25, %v6570_v7  ;;  %6493 = vst [vmem:[#allocation3 + $0x38] sm:$0xff] %v6475_v37  ;;  %v6433_v35 = vadd.f32 %v12267_v27, %v6150_v31  ;;  %v6151_v39 = vadd.f32 %v8398_v42, %v12285_v43 }
 0x44e   : > { %v6587_v18 = vmax.f32 %v6555_v3, %v6571_v13  ;;  %v6524_v43 = vld [vmem:[#allocation3 + $0x21] sm:$0xff] }
 0x44f   : > { %v12392_v4 = vadd.f32 %v12337_v51, %v6433_v35  ;;  %v6434_v26 = vadd.f32 %v12272_v33, %v6151_v39  ;;  %v8399_v22 = vpop.f32.mrb[72].mxu1  ;;  %v6602_v5 = vmax.f32 %v6538_v9, %v6586_v1  ;;  %v6540_v0 = vmax.f32 %v6472_v23, %v6524_v43 }
 0x450   : > { %v6603_v6 = vmax.f32 %v6539_v17, %v6587_v18  ;;  %v8400_v59 = vpop.f32.mrb[73].mxu1 }
 0x451   : > { %v6476_v16 = vmax.f32 %v12392_v4, 0.0  ;;  %v12397_v14 = vadd.f32 %v12337_v51, %v6434_v26  ;;  %v8401_v47 = vadd.f32 %v8400_v59, %v8399_v22  ;;  %v8402_v27 = vpop.f32.mrb[74].mxu1 }
 0x452   : > { %v6621_v32 = vpack.c.bf16 %v6603_v6, %v6602_v5  ;;  %v8403_v38 = vpop.f32.mrb[75].mxu1  ;;  %v6525_v57 = vld [vmem:[#allocation3 + $0x29] sm:$0xff] }
 0x453   : > { %v6556_v30 = vld [vmem:[#allocation3 + $0x2e] sm:$0xff]  ;;  %6494 = vst [vmem:[#allocation3 + $0x40] sm:$0xff] %v6476_v16  ;;  %v6477_v33 = vmax.f32 %v12397_v14, 0.0  ;;  %v6152_v20 = vadd.f32 %v8401_v47, %v12292_v40  ;;  %v8404_v61 = vadd.f32 %v8403_v38, %v8402_v27  ;;  %v6541_v34 = vmax.f32 %v6473_v60, %v6525_v57 }
 0x454   : > { %v6572_v50 = vld [vmem:[#allocation3 + $0x2f] sm:$0xff]  ;;  %8857 = vmatprep.subr.bf16.mxu1 %v6621_v32  ;;  %v6573_v53 = vld [vmem:[#allocation3 + $0x37] sm:$0xff] }
 0x455   : > { %8858 = vmatpush3.bf16.msra.mxu1 %v6621_v32  ;;  %v6557_v10 = vld [vmem:[#allocation3 + $0x36] sm:$0xff]  ;;  %v6588_v49 = vmax.f32 %v6556_v30, %v6572_v50  ;;  %6495 = vst [vmem:[#allocation3 + $0x48] sm:$0xff] %v6477_v33  ;;  %v6435_v62 = vadd.f32 %v12282_v52, %v6152_v20  ;;  %v6153_v63 = vadd.f32 %v8404_v61, %v12297_v29 }
 0x456   : > { %v6589_v40 = vmax.f32 %v6557_v10, %v6573_v53  ;;  %v6526_v58 = vld [vmem:[#allocation3 + $0x31] sm:$0xff] }
 0x457   : > { %v12412_v45 = vadd.f32 %v12337_v51, %v6435_v62  ;;  %v6436_v36 = vadd.f32 %v12287_v24, %v6153_v63  ;;  %v8405_v23 = vpop.f32.mrb[76].mxu1  ;;  %v6604_v25 = vmax.f32 %v6540_v0, %v6588_v49  ;;  %v6542_v18 = vmax.f32 %v6474_v54, %v6526_v58 }
 0x458   : > { %v6605_v7 = vmax.f32 %v6541_v34, %v6589_v40  ;;  %v8406_v31 = vpop.f32.mrb[77].mxu1 }
 0x459   : > { %v6478_v42 = vmax.f32 %v12412_v45, 0.0  ;;  %v12417_v9 = vadd.f32 %v12337_v51, %v6436_v36  ;;  %v8407_v52 = vadd.f32 %v8406_v31, %v8405_v23  ;;  %v8408_v29 = vpop.f32.mrb[78].mxu1 }
 0x45a   : > { %v6622_v3 = vpack.c.bf16 %v6605_v7, %v6604_v25  ;;  %v8409_v60 = vpop.f32.mrb[79].mxu1  ;;  %v6527_v13 = vld [vmem:[#allocation3 + $0x39] sm:$0xff] }
 0x45b   : > { %v6558_v1 = vld [vmem:[#allocation3 + $0x3e] sm:$0xff]  ;;  %6496 = vst [vmem:[#allocation3 + $0x50] sm:$0xff] %v6478_v42  ;;  %v6479_v24 = vmax.f32 %v12417_v9, 0.0  ;;  %v6154_v39 = vadd.f32 %v8407_v52, %v12304_v19  ;;  %v8410_v17 = vadd.f32 %v8409_v60, %v8408_v29  ;;  %v6543_v47 = vmax.f32 %v6475_v37, %v6527_v13 }
 0x45c   : > { %v6574_v35 = vld [vmem:[#allocation3 + $0x3f] sm:$0xff]  ;;  %8859 = vmatprep.subr.bf16.mxu1 %v6622_v3  ;;  %v6575_v22 = vld [vmem:[#allocation3 + $0x47] sm:$0xff] }
 0x45d   : > { %8860 = vmatpush3.bf16.msra.mxu1 %v6622_v3  ;;  %v6559_v26 = vld [vmem:[#allocation3 + $0x46] sm:$0xff]  ;;  %v6590_v5 = vmax.f32 %v6558_v1, %v6574_v35  ;;  %6497 = vst [vmem:[#allocation3 + $0x58] sm:$0xff] %v6479_v24  ;;  %v6437_v6 = vadd.f32 %v12294_v28, %v6154_v39  ;;  %v6155_v59 = vadd.f32 %v8410_v17, %v12309_v11 }
 0x45e   : > { %v6591_v19 = vmax.f32 %v6559_v26, %v6575_v22  ;;  %v6528_v55 = vld [vmem:[#allocation3 + $0x41] sm:$0xff] }
 0x45f   : > { %v12432_v27 = vadd.f32 %v12337_v51, %v6437_v6  ;;  %v6438_v46 = vadd.f32 %v12299_v15, %v6155_v59  ;;  %v8411_v54 = vpop.f32.mrb[80].mxu1  ;;  %v6606_v32 = vmax.f32 %v6542_v18, %v6590_v5  ;;  %v6544_v49 = vmax.f32 %v6476_v16, %v6528_v55 }
 0x460   : > { %v6607_v43 = vmax.f32 %v6543_v47, %v6591_v19  ;;  %v8412_v38 = vpop.f32.mrb[81].mxu1 }
 0x461   : > { %v6480_v57 = vmax.f32 %v12432_v27, 0.0  ;;  %v12437_v30 = vadd.f32 %v12337_v51, %v6438_v46  ;;  %v8413_v28 = vadd.f32 %v8412_v38, %v8411_v54  ;;  %v8414_v11 = vpop.f32.mrb[82].mxu1 }
 0x462   : > { %v6623_v50 = vpack.c.bf16 %v6607_v43, %v6606_v32  ;;  %v8415_v37 = vpop.f32.mrb[83].mxu1  ;;  %v6529_v20 = vld [vmem:[#allocation3 + $0x49] sm:$0xff] }
 0x463   : > { %v6560_v61 = vld [vmem:[#allocation3 + $0x4e] sm:$0xff]  ;;  %6498 = vst [vmem:[#allocation3 + $0x60] sm:$0xff] %v6480_v57  ;;  %v6481_v15 = vmax.f32 %v12437_v30, 0.0  ;;  %v6156_v10 = vadd.f32 %v8413_v28, %v12316_v21  ;;  %v8416_v53 = vadd.f32 %v8415_v37, %v8414_v11  ;;  %v6545_v23 = vmax.f32 %v6477_v33, %v6529_v20 }
 0x464   : > { %v6576_v0 = vld [vmem:[#allocation3 + $0x4f] sm:$0xff]  ;;  %8861 = vmatprep.subr.bf16.mxu1 %v6623_v50  ;;  %v6577_v63 = vld [vmem:[#allocation3 + $0x57] sm:$0xff] }
 0x465   : > { %8862 = vmatpush3.bf16.msra.mxu1 %v6623_v50  ;;  %v6561_v62 = vld [vmem:[#allocation3 + $0x56] sm:$0xff]  ;;  %v6592_v34 = vmax.f32 %v6560_v61, %v6576_v0  ;;  %6499 = vst [vmem:[#allocation3 + $0x68] sm:$0xff] %v6481_v15  ;;  %v6439_v40 = vadd.f32 %v12306_v41, %v6156_v10  ;;  %v6157_v36 = vadd.f32 %v8416_v53, %v12321_v12 }
 0x466   : > { %v6593_v21 = vmax.f32 %v6561_v62, %v6577_v63  ;;  %v6530_v60 = vld [vmem:[#allocation3 + $0x51] sm:$0xff] }
 0x467   : > { %v12452_v25 = vadd.f32 %v12337_v51, %v6439_v40  ;;  %v6440_v4 = vadd.f32 %v12311_v44, %v6157_v36  ;;  %v8417_v16 = vpop.f32.mrb[84].mxu1  ;;  %v6608_v7 = vmax.f32 %v6544_v49, %v6592_v34  ;;  %v6546_v17 = vmax.f32 %v6478_v42, %v6530_v60  ;;  %v9183_v36 = vld [vmem:[%s12486_s5 + $0x8] sm:$0xff]  }
 0x468   : > { %v6609_v31 = vmax.f32 %v6545_v23, %v6593_v21  ;;  %v8418_v52 = vpop.f32.mrb[85].mxu1 }
 0x469   : > { %v6482_v29 = vmax.f32 %v12452_v25, 0.0  ;;  %v6465_v3 = vadd.f32 %v12337_v51, %v6440_v4  ;;  %v8419_v41 = vadd.f32 %v8418_v52, %v8417_v16  ;;  %v8420_v58 = vpop.f32.mrb[86].mxu1 }
 0x46a   : > { %v6624_v12 = vpack.c.bf16 %v6609_v31, %v6608_v7  ;;  %v8421_v14 = vpop.f32.mrb[87].mxu1  ;;  %v6531_v33 = vld [vmem:[#allocation3 + $0x59] sm:$0xff] }
 0x46b   : > { %v6562_v13 = vld [vmem:[#allocation3 + $0x5e] sm:$0xff]  ;;  %6500 = vst [vmem:[#allocation3 + $0x70] sm:$0xff] %v6482_v29  ;;  %v6483_v35 = vmax.f32 %v6465_v3, 0.0  ;;  %v6158_v44 = vadd.f32 %v8419_v41, %v12328_v8  ;;  %v8422_v39 = vadd.f32 %v8421_v14, %v8420_v58  ;;  %v6547_v59 = vmax.f32 %v6479_v24, %v6531_v33 }
 0x46c   : > { %v6578_v1 = vld [vmem:[#allocation3 + $0x5f] sm:$0xff]  ;;  %8863 = vmatprep.subr.bf16.mxu1 %v6624_v12  ;;  %v6579_v26 = vld [vmem:[#allocation3 + $0x67] sm:$0xff] }
 0x46d   : > { %8864 = vmatpush3.bf16.msra.mxu1 %v6624_v12  ;;  %v6563_v18 = vld [vmem:[#allocation3 + $0x66] sm:$0xff]  ;;  %v6594_v22 = vmax.f32 %v6562_v13, %v6578_v1  ;;  %6501 = vst [vmem:[#allocation3 + $0x78] sm:$0xff] %v6483_v35  ;;  %v6441_v5 = vadd.f32 %v12318_v56, %v6158_v44  ;;  %v6159_v6 = vadd.f32 %v8422_v39, %v12331_v2 }
 0x46e   : > { %v6595_v47 = vmax.f32 %v6563_v18, %v6579_v26  ;;  %v6532_v43 = vld [vmem:[#allocation3 + $0x61] sm:$0xff] }
 0x46f   : > { %v6466_v8 = vadd.f32 %v12337_v51, %v6441_v5  ;;  %v6442_v19 = vadd.f32 %v12323_v48, %v6159_v6  ;;  %v6610_v46 = vmax.f32 %v6546_v17, %v6594_v22  ;;  %v6548_v48 = vmax.f32 %v6480_v57, %v6532_v43 }
 0x470   : > { %v6611_v54 = vmax.f32 %v6547_v59, %v6595_v47 }
 0x471   : > { %v6484_v45 = vmax.f32 %v6466_v8, 0.0  ;;  %v6467_v42 = vadd.f32 %v12337_v51, %v6442_v19 }
 0x472   : > { %v6625_v32 = vpack.c.bf16 %v6611_v54, %v6610_v46  ;;  %v6533_v38 = vld [vmem:[#allocation3 + $0x69] sm:$0xff] }
 0x473   : > { %v6564_v28 = vld [vmem:[#allocation3 + $0x6e] sm:$0xff]  ;;  %6502 = vst [vmem:[#allocation3 + $0x80] sm:$0xff] %v6484_v45  ;;  %v6485_v2 = vmax.f32 %v6467_v42, 0.0  ;;  %v6549_v50 = vmax.f32 %v6481_v15, %v6533_v38 }
 0x474   : > { %v6580_v56 = vld [vmem:[#allocation3 + $0x6f] sm:$0xff]  ;;  %8865 = vmatprep.subr.bf16.mxu1 %v6625_v32  ;;  %v6581_v11 = vld [vmem:[#allocation3 + $0x77] sm:$0xff] }
 0x475   : > { %v6596_v9 = vmax.f32 %v6564_v28, %v6580_v56  ;;  %8866 = vmatpush3.bf16.msra.mxu1 %v6625_v32  ;;  %v6565_v24 = vld [vmem:[#allocation3 + $0x76] sm:$0xff]  ;;  %6503 = vst [vmem:[#allocation3 + $0x88] sm:$0xff] %v6485_v2 }
 0x476   : > { %v6597_v51 = vmax.f32 %v6565_v24, %v6581_v11  ;;  %v6534_v61 = vld [vmem:[#allocation3 + $0x71] sm:$0xff] }
 0x477   : > { %v6612_v55 = vmax.f32 %v6548_v48, %v6596_v9  ;;  %v6550_v34 = vmax.f32 %v6482_v29, %v6534_v61 }
 0x478   : > { %v6613_v37 = vmax.f32 %v6549_v50, %v6597_v51 }
 0x47a   : > { %v6626_v20 = vpack.c.bf16 %v6613_v37, %v6612_v55  ;;  %v6535_v0 = vld [vmem:[#allocation3 + $0x79] sm:$0xff] }
 0x47b   : > { %v6566_v10 = vld [vmem:[#allocation3 + $0x7e] sm:$0xff]  ;;  %v6551_v27 = vmax.f32 %v6483_v35, %v6535_v0 }
 0x47c   : > { %v6582_v53 = vld [vmem:[#allocation3 + $0x7f] sm:$0xff]  ;;  %8867 = vmatprep.subr.bf16.mxu1 %v6626_v20  ;;  %v6583_v63 = vld [vmem:[#allocation3 + $0x87] sm:$0xff] }
 0x47d   : > { %v6598_v49 = vmax.f32 %v6566_v10, %v6582_v53  ;;  %8868 = vmatpush3.bf16.msra.mxu1 %v6626_v20  ;;  %v6567_v62 = vld [vmem:[#allocation3 + $0x86] sm:$0xff] }
 0x47e   : > { %v6599_v57 = vmax.f32 %v6567_v62, %v6583_v63 }
 0x47f   : > { %v6614_v40 = vmax.f32 %v6550_v34, %v6598_v49 }
 0x480   : > { %v6615_v30 = vmax.f32 %v6551_v27, %v6599_v57 }
 0x482   : > { %v6627_v15 = vpack.c.bf16 %v6615_v30, %v6614_v40 }
 0x484   : > { %8869 = vmatprep.subr.bf16.mxu1 %v6627_v15 }
 0x485   : > { %8870 = vmatpush3.bf16.msra.mxu1 %v6627_v15 }
 0x488   : > { %8872 = vmatmul.mubr.bf16.vlgmr.msra.gmra.mrb[88].mxu1 %v9183_v36 }
 0x55b   : > { %v8873_v23 = vpop.f32.mrb[88].mxu1 }
 0x55c   : > { %v6674_v21 = vpop.f32.mrb[89].mxu1 }
 0x55d   : > { %v8874_v25 = vpop.f32.mrb[90].mxu1 }
 0x55e   : > { %v7460_v4 = vpack.c.bf16 %v8874_v25, %v8873_v23  ;;  %v6677_v16 = vpop.f32.mrb[91].mxu1 }
 0x55f   : > { %v7455_v7 = vpack.c.bf16 %v6677_v16, %v6674_v21 }
 0x560   : > { %7462 = vst [vmem:[%s251_s28 + $0x8] sm:$0xff] %v7460_v4  }
 0x561   : > { %7456 = vst [vmem:[%s251_s28] sm:$0xff] %v7455_v7  }
 0x562 PF: > { %s16_s21 = sadd.s32 1, %s9224_s21  }
 0x563   : > { %p13_p4 = scmp.ge.s32.totalorder %s16_s21, 4  }
 0x565   :  { %15 = sbr.rel (!%p13_p4) target bundleno = 1 (0x1), region = 86 }

</bundles_post_ra>
